<compile_context>
chip_gen: v7x
topology: tpu7x:2x2x1
jax: 0.10.0
libtpu: 0.0.40
codegen_flags: <defaults>
</compile_context>

<pallas_src>
import functools

import jax
import jax.numpy as jnp
from jax.experimental import pallas as pl
from jax.experimental.pallas import tpu as pltpu

EPS = 1e-5          # nn.BatchNorm2d default eps
_WIN_LEAD = 8       # zero prologue rows (supply the top-left padded read)
_WIN_TAIL = 8       # zero tail rows (bottom-right shifted reads land here)


def _round_up(x, m):
    return (x + m - 1) // m * m


def _vmem_limit_bytes():
    """Generation-aware scoped-VMEM request (safe on v5e / v6e / v7x)."""
    cap = 64 * 1024 * 1024
    try:
        info = pltpu.get_tpu_info()
        cap = int(getattr(info, "vmem_capacity_bytes", cap))
    except Exception:
        pass
    return max(32 * 1024 * 1024, min(cap // 2, 64 * 1024 * 1024))


def _pick_th(h, wp, cmax, budget_bytes):
    """Largest row-tile height dividing H whose VMEM estimate fits the budget."""
    for th in (128, 64, 32, 16, 8, 4, 2, 1):
        if h % th:
            continue
        tw = th * wp
        est = (2 * tw * cmax * 2            # main input block, double-buffered bf16
               + 4 * wp * cmax * 2          # two 1-row halos, double-buffered
               + 2 * 9 * cmax * cmax * 2    # resident weights
               + 2 * tw * cmax * 2          # bf16 y output block, double-buffered
               + (_WIN_LEAD + (th + 2) * wp + _WIN_TAIL) * cmax * 4  # f32 window
               + tw * cmax * 4              # f32 accumulator (vregs / spill)
               + tw * 4)                    # width mask
        if est <= budget_bytes:
            return th
    return 1


def _conv_kernel(mask_ref, scale_ref, shift_ref, w_ref, xm_ref, xtop_ref,
                 xbot_ref, y_ref, stats_ref, win_ref, *, apply_act, th, wp,
                 cin, cout):
    """One (batch, row-tile) step: window assembly (optionally fused with the
    previous stage's BN+ReLU) + 9 shifted MXU matmuls + BN partial stats.

    mask_ref : (th*wp, 1) f32   1.0 for valid width columns, 0.0 for padding
    scale/shift : (1, cin) f32  folded BN of the previous stage (apply_act)
    w_ref    : (9*cin, cout) bf16  tap-major weights (resident)
    xm_ref   : (1, th*wp, cin) bf16  this tile's rows (flattened pixels)
    xtop_ref : (1, wp, cin)    bf16  row above the tile (clamped at the top)
    xbot_ref : (1, wp, cin)    bf16  row below the tile (clamped at the bottom)
    y_ref    : (1, th*wp, cout) bf16 conv output (padded-width layout)
    stats_ref: (1, 1, 2, cout) f32   row0 = sum, row1 = sum of squares
    win_ref  : (LEAD + (th+2)*wp + TAIL, cin) f32 scratch
    """
    tw = th * wp
    i = pl.program_id(1)
    base = _WIN_LEAD

    def xform(chunk, nrows):
        v = chunk.astype(jnp.float32)
        if apply_act:  # fused BatchNorm + ReLU of the previous conv stage
            v = jnp.maximum(v * scale_ref[...] + shift_ref[...], 0.0)
            v = v * mask_ref[0:nrows, :]   # re-zero the width-padding columns
        return v

    # ---- assemble the halo'd window; image borders synthesized in VMEM -----
    win_ref[0:base, :] = jnp.zeros((base, cin), jnp.float32)
    win_ref[base:base + wp, :] = xform(xtop_ref[0], wp)

    @pl.when(i == 0)                       # top image border
    def _():
        win_ref[base:base + wp, :] = jnp.zeros((wp, cin), jnp.float32)

    win_ref[base + wp:base + wp + tw, :] = xform(xm_ref[0], tw)
    win_ref[base + wp + tw:base + 2 * wp + tw, :] = xform(xbot_ref[0], wp)

    @pl.when(i == pl.num_programs(1) - 1)  # bottom image border
    def _():
        win_ref[base + wp + tw:base + 2 * wp + tw, :] = (
            jnp.zeros((wp, cin), jnp.float32))

    win_ref[base + 2 * wp + tw:, :] = jnp.zeros((_WIN_TAIL, cin), jnp.float32)

    # ---- 3x3 conv: 9 shifted (tw, cin) x (cin, cout) MXU matmuls -----------
    # TODO(synk): fold taps into the contraction (K = 3*cin / 9*cin) when
    # cin % 128 == 0 to fill the 256-deep MXU on v6e / v7x.
    acc = jnp.zeros((tw, cout), jnp.float32)
    for k in range(9):
        ky, kx = divmod(k, 3)
        off = base + ky * wp + kx - 1
        a = win_ref[off:off + tw, :].astype(jnp.bfloat16)
        acc = acc + jnp.dot(a, w_ref[k * cin:(k + 1) * cin, :],
                            preferred_element_type=jnp.float32)

    # Zero the width-padding output columns: they double as the zero border of
    # the next stage's window and must not pollute the batch statistics.
    accm = acc * mask_ref[...]
    y_ref[0] = accm.astype(y_ref.dtype)
    stats_ref[0, 0] = jnp.concatenate(
        [jnp.sum(accm, axis=0, keepdims=True),
         jnp.sum(accm * accm, axis=0, keepdims=True)], axis=0)


def _conv_stage(xflat, wmat, scale, shift, mask, *, apply_act, h, wp, th,
                cin, cout):
    n = xflat.shape[0]
    ht = h // th
    tw = th * wp
    kern = functools.partial(_conv_kernel, apply_act=apply_act, th=th, wp=wp,
                             cin=cin, cout=cout)
    y, stats = pl.pallas_call(
        kern,
        grid=(n, ht),
        in_specs=[
            pl.BlockSpec((tw, 1), lambda b, i: (0, 0)),            # mask
            pl.BlockSpec((1, cin), lambda b, i: (0, 0)),           # scale
            pl.BlockSpec((1, cin), lambda b, i: (0, 0)),           # shift
            pl.BlockSpec((9 * cin, cout), lambda b, i: (0, 0)),    # weights
            pl.BlockSpec((1, tw, cin), lambda b, i: (b, i, 0)),    # tile rows
            pl.BlockSpec((1, wp, cin),                             # row above
                         lambda b, i: (b, jnp.maximum(i * th - 1, 0), 0)),
            pl.BlockSpec((1, wp, cin),                             # row below
                         lambda b, i: (b, jnp.minimum(i * th + th, h - 1), 0)),
        ],
        out_shape=(
            jax.ShapeDtypeStruct((n, h * wp, cout), jnp.bfloat16),
            jax.ShapeDtypeStruct((n, ht, 2, cout), jnp.float32),
        ),
        out_specs=(
            pl.BlockSpec((1, tw, cout), lambda b, i: (b, i, 0)),
            pl.BlockSpec((1, 1, 2, cout), lambda b, i: (b, i, 0, 0)),
        ),
        scratch_shapes=[
            pltpu.VMEM((_WIN_LEAD + (th + 2) * wp + _WIN_TAIL, cin),
                       jnp.float32)],
        compiler_params=pltpu.CompilerParams(
            dimension_semantics=("parallel", "parallel"),
            vmem_limit_bytes=_vmem_limit_bytes()),
    )(mask, scale, shift, wmat, xflat, xflat, xflat)
    return y, stats


def _bn_fold(stats, gamma, beta, count):
    # TODO(synk): shifted/Welford combine for very large N*H*W (f32
    # E[x^2]-E[x]^2 cancellation).
    s = jnp.sum(stats[:, :, 0, :], axis=(0, 1))
    ss = jnp.sum(stats[:, :, 1, :], axis=(0, 1))
    mean = s / count
    var = jnp.maximum(ss / count - mean * mean, 0.0)
    scale = gamma * jax.lax.rsqrt(var + EPS)
    shift = beta - mean * scale
    return scale, shift


def _bn_relu_kernel(y_ref, scale_ref, shift_ref, out_ref):
    out_ref[...] = jnp.maximum(
        y_ref[...].astype(jnp.float32) * scale_ref[...] + shift_ref[...], 0.0)


def _bn_relu(y, scale, shift, n, h, wp, cout):
    """Final folded BatchNorm + ReLU, lane-dense (last dim folded to 128)."""
    total = n * h * wp
    fold = 1
    if cout < 128 and 128 % cout == 0 and total % (128 // cout) == 0:
        fold = 128 // cout
    rows, lane = total // fold, fold * cout
    y2 = y.reshape(rows, lane)
    sc = jnp.tile(scale.reshape(1, cout), (1, fold))
    sh = jnp.tile(shift.reshape(1, cout), (1, fold))
    tm = rows
    for cand in (2048, 1024, 512, 256, 128, 64, 32, 16):
        if rows % cand == 0:
            tm = cand
            break
    out = pl.pallas_call(
        _bn_relu_kernel,
        grid=(rows // tm,),
        in_specs=[pl.BlockSpec((tm, lane), lambda i: (i, 0)),
                  pl.BlockSpec((1, lane), lambda i: (0, 0)),
                  pl.BlockSpec((1, lane), lambda i: (0, 0))],
        out_shape=jax.ShapeDtypeStruct((rows, lane), jnp.float32),
        out_specs=pl.BlockSpec((tm, lane), lambda i: (i, 0)),
        compiler_params=pltpu.CompilerParams(
            dimension_semantics=("parallel",),
            vmem_limit_bytes=_vmem_limit_bytes()),
    )(y2, sc, sh)
    return out.reshape(n, h, wp, cout)


def double_conv(x_nchw, params):
    """DoubleConv.forward (train-mode BatchNorm statistics), NCHW in / out."""
    # TODO(synk): BatchNorm running_mean/running_var buffer updates (training
    # state) are not materialized; forward uses batch statistics (train mode).
    n, cin, h, w = x_nchw.shape
    cout = params["w1"].shape[0]
    # Width padded to a multiple of 16 so every bf16 block's second-minor dim
    # stays sublane-tile aligned; the padding columns are exactly zero and
    # double as the next conv's zero border.
    wp = _round_up(w + 2, 16)
    th = _pick_th(h, wp, max(cin, cout), _vmem_limit_bytes() // 2)

    # Single XLA prep pass: NCHW -> NHWC, right-pad width, flatten, bf16.
    x = jnp.transpose(x_nchw, (0, 2, 3, 1))
    x = jnp.pad(x, ((0, 0), (0, 0), (0, wp - w), (0, 0)))
    xflat = x.reshape(n, h * wp, cin).astype(jnp.bfloat16)

    col = jnp.arange(th * wp, dtype=jnp.int32) % wp
    mask = (col < w).astype(jnp.float32).reshape(th * wp, 1)

    def wmat(w_oihw):  # (Cout, Cin, 3, 3) -> (9*Cin, Cout), tap-major, bf16
        co, ci = w_oihw.shape[0], w_oihw.shape[1]
        return jnp.transpose(w_oihw, (2, 3, 1, 0)).reshape(9 * ci, co).astype(
            jnp.bfloat16)

    cnt = float(n * h * w)
    dummy = jnp.zeros((1, cin), jnp.float32)

    # conv1 (+ per-tile BN partial statistics)
    y1, st1 = _conv_stage(xflat, wmat(params["w1"]), dummy, dummy, mask,
                          apply_act=False, h=h, wp=wp, th=th,
                          cin=cin, cout=cout)
    sc1, sh1 = _bn_fold(st1, params["g1"], params["b1"], cnt)

    # conv2 with conv1's BatchNorm + ReLU fused into its window assembly
    y2, st2 = _conv_stage(y1, wmat(params["w2"]), sc1.reshape(1, cout),
                          sh1.reshape(1, cout), mask, apply_act=True, h=h,
                          wp=wp, th=th, cin=cout, cout=cout)
    sc2, sh2 = _bn_fold(st2, params["g2"], params["b2"], cnt)

    # final BN + ReLU (lane-dense), then drop width padding -> NCHW
    act = _bn_relu(y2, sc2, sh2, n, h, wp, cout)
    return jnp.transpose(act[:, :, :w, :], (0, 3, 1, 2))


def init_params(key, in_channels, out_channels):
    # Deterministic synthetic init: uniform conv weights (bias=False),
    # BatchNorm gamma=1, beta=0 (PyTorch defaults).
    k1, k2 = jax.random.split(key)
    fan1 = in_channels * 9
    fan2 = out_channels * 9
    w1 = jax.random.uniform(k1, (out_channels, in_channels, 3, 3),
                            jnp.float32, -1.0, 1.0) * (1.0 / fan1) ** 0.5
    w2 = jax.random.uniform(k2, (out_channels, out_channels, 3, 3),
                            jnp.float32, -1.0, 1.0) * (1.0 / fan2) ** 0.5
    ones = jnp.ones((out_channels,), jnp.float32)
    zeros = jnp.zeros((out_channels,), jnp.float32)
    return {"w1": w1, "g1": ones, "b1": zeros,
            "w2": w2, "g2": ones, "b2": zeros}


def _reference(x_nchw, params):
    # Pure-JAX reference mirroring the kernel's precision path: conv operands
    # and stored conv outputs rounded to bf16; conv accumulation, BN math and
    # the final activation in f32; train-mode (batch) statistics.
    def stage(x, wt, g, b):
        xb = x.astype(jnp.bfloat16).astype(jnp.float32)
        wb = wt.astype(jnp.bfloat16).astype(jnp.float32)
        y = jax.lax.conv_general_dilated(
            xb, wb, window_strides=(1, 1), padding=((1, 1), (1, 1)),
            dimension_numbers=("NCHW", "OIHW", "NCHW"),
            precision=jax.lax.Precision.HIGHEST)
        mean = jnp.mean(y, axis=(0, 2, 3), keepdims=True)
        var = jnp.mean(jnp.square(y - mean), axis=(0, 2, 3), keepdims=True)
        scale = g.reshape(1, -1, 1, 1) * jax.lax.rsqrt(var + EPS)
        shift = b.reshape(1, -1, 1, 1) - mean * scale
        yb = y.astype(jnp.bfloat16).astype(jnp.float32)  # kernel stores bf16
        return jnp.maximum(yb * scale + shift, 0.0)

    x = stage(x_nchw, params["w1"], params["g1"], params["b1"])
    x = stage(x, params["w2"], params["g2"], params["b2"])
    return x


if __name__ == "__main__":
    key = jax.random.PRNGKey(0)
    kx, kp = jax.random.split(key)
    N, CIN, COUT, H, W = 2, 4, 8, 16, 16
    x = jax.random.normal(kx, (N, CIN, H, W), jnp.float32)
    params = init_params(kp, CIN, COUT)

    out = jax.block_until_ready(jax.jit(double_conv)(x, params))
    ref = jax.block_until_ready(_reference(x, params))
    assert out.shape == (N, COUT, H, W)
    max_err = float(jnp.max(jnp.abs(out - ref)))
    assert bool(jnp.allclose(out, ref, atol=3e-2, rtol=3e-2)), max_err
    print("KERNEL_OK")
</pallas_src>

<mosaic_0001>
module attributes {stable_mosaic.version = 11 : i64} {
  func.func @_conv_kernel(%arg0: i32, %arg1: i32, %arg2: memref<512x1xf32, #tpu.memory_space<vmem>>, %arg3: memref<1x4xf32, #tpu.memory_space<vmem>>, %arg4: memref<1x4xf32, #tpu.memory_space<vmem>>, %arg5: memref<36x8xbf16, #tpu.memory_space<vmem>>, %arg6: memref<1x512x4xbf16, #tpu.memory_space<vmem>>, %arg7: memref<1x32x4xbf16, #tpu.memory_space<vmem>>, %arg8: memref<1x32x4xbf16, #tpu.memory_space<vmem>>, %arg9: memref<1x512x8xbf16, #tpu.memory_space<vmem>>, %arg10: memref<1x1x2x8xf32, #tpu.memory_space<vmem>>, %arg11: memref<592x4xf32, #tpu.memory_space<vmem>>) attributes {dimension_semantics = [#tpu.dimension_semantics<parallel>, #tpu.dimension_semantics<parallel>], iteration_bounds = array<i64: 2, 1>, scalar_prefetch = 0 : i64, scratch_operands = 1 : i64, tpu.core_type = #tpu.core_type<tc>, window_params = [{pipeline_mode = #tpu.pipeline_mode<synchronous>, transform_indices = @transform_0, window_bounds = array<i64: 512, 1>}, {pipeline_mode = #tpu.pipeline_mode<synchronous>, transform_indices = @transform_1, window_bounds = array<i64: 1, 4>}, {pipeline_mode = #tpu.pipeline_mode<synchronous>, transform_indices = @transform_2, window_bounds = array<i64: 1, 4>}, {pipeline_mode = #tpu.pipeline_mode<synchronous>, transform_indices = @transform_3, window_bounds = array<i64: 36, 8>}, {transform_indices = @transform_4, window_bounds = array<i64: 1, 512, 4>}, {transform_indices = @transform_5, window_bounds = array<i64: 1, 32, 4>}, {transform_indices = @transform_6, window_bounds = array<i64: 1, 32, 4>}, {transform_indices = @transform_7, window_bounds = array<i64: 1, 512, 8>}, {transform_indices = @transform_8, window_bounds = array<i64: 1, 1, 2, 8>}]} {
    %cst = arith.constant 0.000000e+00 : f32
    %0 = vector.broadcast %cst : f32 to vector<8x4xf32>
    %c0 = arith.constant 0 : index
    %c0_0 = arith.constant 0 : index
    %1 = vector.load %arg11[%c0, %c0_0] : memref<592x4xf32, #tpu.memory_space<vmem>>, vector<8x4xf32>
    tpu.vector_store %arg11[%c0, %c0_0], %0 {strides = array<i32>} : memref<592x4xf32, #tpu.memory_space<vmem>>, vector<8x4xf32>,
    %c0_1 = arith.constant 0 : index
    %c0_2 = arith.constant 0 : index
    %c0_3 = arith.constant 0 : index
    %2 = vector.load %arg7[%c0_1, %c0_2, %c0_3] : memref<1x32x4xbf16, #tpu.memory_space<vmem>>, vector<1x32x4xbf16>
    %3 = vector.shape_cast %2 : vector<1x32x4xbf16> to vector<32x4xbf16>
    %4 = arith.extf %3 : vector<32x4xbf16> to vector<32x4xf32>
    %c8 = arith.constant 8 : index
    %c0_4 = arith.constant 0 : index
    %5 = vector.load %arg11[%c8, %c0_4] : memref<592x4xf32, #tpu.memory_space<vmem>>, vector<32x4xf32>
    tpu.vector_store %arg11[%c8, %c0_4], %4 {strides = array<i32>} : memref<592x4xf32, #tpu.memory_space<vmem>>, vector<32x4xf32>,
    %c0_i32 = arith.constant 0 : i32
    %6 = arith.cmpi eq, %arg1, %c0_i32 : i32
    %7 = arith.extui %6 : i1 to i32
    %c0_i32_5 = arith.constant 0 : i32
    %8 = arith.cmpi ne, %7, %c0_i32_5 : i32
    scf.if %8 {
      %cst_61 = arith.constant 0.000000e+00 : f32
      %84 = vector.broadcast %cst_61 : f32 to vector<32x4xf32>
      %c8_62 = arith.constant 8 : index
      %c0_63 = arith.constant 0 : index
      %85 = vector.load %arg11[%c8_62, %c0_63] : memref<592x4xf32, #tpu.memory_space<vmem>>, vector<32x4xf32>
      tpu.vector_store %arg11[%c8_62, %c0_63], %84 {strides = array<i32>} : memref<592x4xf32, #tpu.memory_space<vmem>>, vector<32x4xf32>,
    } else {
    }
    %c0_6 = arith.constant 0 : index
    %c0_7 = arith.constant 0 : index
    %c0_8 = arith.constant 0 : index
    %9 = vector.load %arg6[%c0_6, %c0_7, %c0_8] : memref<1x512x4xbf16, #tpu.memory_space<vmem>>, vector<1x512x4xbf16>
    %10 = vector.shape_cast %9 : vector<1x512x4xbf16> to vector<512x4xbf16>
    %11 = arith.extf %10 : vector<512x4xbf16> to vector<512x4xf32>
    %c40 = arith.constant 40 : index
    %c0_9 = arith.constant 0 : index
    %12 = vector.load %arg11[%c40, %c0_9] : memref<592x4xf32, #tpu.memory_space<vmem>>, vector<512x4xf32>
    tpu.vector_store %arg11[%c40, %c0_9], %11 {strides = array<i32>} : memref<592x4xf32, #tpu.memory_space<vmem>>, vector<512x4xf32>,
    %c0_10 = arith.constant 0 : index
    %c0_11 = arith.constant 0 : index
    %c0_12 = arith.constant 0 : index
    %13 = vector.load %arg8[%c0_10, %c0_11, %c0_12] : memref<1x32x4xbf16, #tpu.memory_space<vmem>>, vector<1x32x4xbf16>
    %14 = vector.shape_cast %13 : vector<1x32x4xbf16> to vector<32x4xbf16>
    %15 = arith.extf %14 : vector<32x4xbf16> to vector<32x4xf32>
    %c552 = arith.constant 552 : index
    %c0_13 = arith.constant 0 : index
    %16 = vector.load %arg11[%c552, %c0_13] : memref<592x4xf32, #tpu.memory_space<vmem>>, vector<32x4xf32>
    tpu.vector_store %arg11[%c552, %c0_13], %15 {strides = array<i32>} : memref<592x4xf32, #tpu.memory_space<vmem>>, vector<32x4xf32>,
    %c0_i32_14 = arith.constant 0 : i32
    %17 = arith.cmpi eq, %arg1, %c0_i32_14 : i32
    %18 = arith.extui %17 : i1 to i32
    %c0_i32_15 = arith.constant 0 : i32
    %19 = arith.cmpi ne, %18, %c0_i32_15 : i32
    scf.if %19 {
      %cst_61 = arith.constant 0.000000e+00 : f32
      %84 = vector.broadcast %cst_61 : f32 to vector<32x4xf32>
      %c552_62 = arith.constant 552 : index
      %c0_63 = arith.constant 0 : index
      %85 = vector.load %arg11[%c552_62, %c0_63] : memref<592x4xf32, #tpu.memory_space<vmem>>, vector<32x4xf32>
      tpu.vector_store %arg11[%c552_62, %c0_63], %84 {strides = array<i32>} : memref<592x4xf32, #tpu.memory_space<vmem>>, vector<32x4xf32>,
    } else {
    }
    %cst_16 = arith.constant 0.000000e+00 : f32
    %20 = vector.broadcast %cst_16 : f32 to vector<8x4xf32>
    %c584 = arith.constant 584 : index
    %c0_17 = arith.constant 0 : index
    %21 = vector.load %arg11[%c584, %c0_17] : memref<592x4xf32, #tpu.memory_space<vmem>>, vector<8x4xf32>
    tpu.vector_store %arg11[%c584, %c0_17], %20 {strides = array<i32>} : memref<592x4xf32, #tpu.memory_space<vmem>>, vector<8x4xf32>,
    %cst_18 = arith.constant 0.000000e+00 : f32
    %22 = vector.broadcast %cst_18 : f32 to vector<512x8xf32>
    %c7 = arith.constant 7 : index
    %c0_19 = arith.constant 0 : index
    %23 = vector.load %arg11[%c7, %c0_19] : memref<592x4xf32, #tpu.memory_space<vmem>>, vector<512x4xf32>
    %24 = arith.truncf %23 : vector<512x4xf32> to vector<512x4xbf16>
    %c0_20 = arith.constant 0 : index
    %c0_21 = arith.constant 0 : index
    %25 = vector.load %arg5[%c0_20, %c0_21] : memref<36x8xbf16, #tpu.memory_space<vmem>>, vector<4x8xbf16>
    %cst_22 = arith.constant dense<0.000000e+00> : vector<512x8xf32>
    %26 = tpu.matmul %24, %25, %cst_22 {dimension_numbers = #tpu.dot_dimension_numbers<[1], [0], [0], [1], [0, 0, 1, 1], [], []>} : vector<512x4xbf16>, vector<4x8xbf16>, vector<512x8xf32> -> vector<512x8xf32>
    %27 = arith.addf %22, %26 : vector<512x8xf32>
    %c8_23 = arith.constant 8 : index
    %c0_24 = arith.constant 0 : index
    %28 = vector.load %arg11[%c8_23, %c0_24] : memref<592x4xf32, #tpu.memory_space<vmem>>, vector<512x4xf32>
    %29 = arith.truncf %28 : vector<512x4xf32> to vector<512x4xbf16>
    %c4 = arith.constant 4 : index
    %c0_25 = arith.constant 0 : index
    %30 = vector.load %arg5[%c4, %c0_25] : memref<36x8xbf16, #tpu.memory_space<vmem>>, vector<4x8xbf16>
    %cst_26 = arith.constant dense<0.000000e+00> : vector<512x8xf32>
    %31 = tpu.matmul %29, %30, %cst_26 {dimension_numbers = #tpu.dot_dimension_numbers<[1], [0], [0], [1], [0, 0, 1, 1], [], []>} : vector<512x4xbf16>, vector<4x8xbf16>, vector<512x8xf32> -> vector<512x8xf32>
    %32 = arith.addf %27, %31 : vector<512x8xf32>
    %c9 = arith.constant 9 : index
    %c0_27 = arith.constant 0 : index
    %33 = vector.load %arg11[%c9, %c0_27] : memref<592x4xf32, #tpu.memory_space<vmem>>, vector<512x4xf32>
    %34 = arith.truncf %33 : vector<512x4xf32> to vector<512x4xbf16>
    %c8_28 = arith.constant 8 : index
    %c0_29 = arith.constant 0 : index
    %35 = vector.load %arg5[%c8_28, %c0_29] : memref<36x8xbf16, #tpu.memory_space<vmem>>, vector<4x8xbf16>
    %cst_30 = arith.constant dense<0.000000e+00> : vector<512x8xf32>
    %36 = tpu.matmul %34, %35, %cst_30 {dimension_numbers = #tpu.dot_dimension_numbers<[1], [0], [0], [1], [0, 0, 1, 1], [], []>} : vector<512x4xbf16>, vector<4x8xbf16>, vector<512x8xf32> -> vector<512x8xf32>
    %37 = arith.addf %32, %36 : vector<512x8xf32>
    %c39 = arith.constant 39 : index
    %c0_31 = arith.constant 0 : index
    %38 = vector.load %arg11[%c39, %c0_31] : memref<592x4xf32, #tpu.memory_space<vmem>>, vector<512x4xf32>
    %39 = arith.truncf %38 : vector<512x4xf32> to vector<512x4xbf16>
    %c12 = arith.constant 12 : index
    %c0_32 = arith.constant 0 : index
    %40 = vector.load %arg5[%c12, %c0_32] : memref<36x8xbf16, #tpu.memory_space<vmem>>, vector<4x8xbf16>
    %cst_33 = arith.constant dense<0.000000e+00> : vector<512x8xf32>
    %41 = tpu.matmul %39, %40, %cst_33 {dimension_numbers = #tpu.dot_dimension_numbers<[1], [0], [0], [1], [0, 0, 1, 1], [], []>} : vector<512x4xbf16>, vector<4x8xbf16>, vector<512x8xf32> -> vector<512x8xf32>
    %42 = arith.addf %37, %41 : vector<512x8xf32>
    %c40_34 = arith.constant 40 : index
    %c0_35 = arith.constant 0 : index
    %43 = vector.load %arg11[%c40_34, %c0_35] : memref<592x4xf32, #tpu.memory_space<vmem>>, vector<512x4xf32>
    %44 = arith.truncf %43 : vector<512x4xf32> to vector<512x4xbf16>
    %c16 = arith.constant 16 : index
    %c0_36 = arith.constant 0 : index
    %45 = vector.load %arg5[%c16, %c0_36] : memref<36x8xbf16, #tpu.memory_space<vmem>>, vector<4x8xbf16>
    %cst_37 = arith.constant dense<0.000000e+00> : vector<512x8xf32>
    %46 = tpu.matmul %44, %45, %cst_37 {dimension_numbers = #tpu.dot_dimension_numbers<[1], [0], [0], [1], [0, 0, 1, 1], [], []>} : vector<512x4xbf16>, vector<4x8xbf16>, vector<512x8xf32> -> vector<512x8xf32>
    %47 = arith.addf %42, %46 : vector<512x8xf32>
    %c41 = arith.constant 41 : index
    %c0_38 = arith.constant 0 : index
    %48 = vector.load %arg11[%c41, %c0_38] : memref<592x4xf32, #tpu.memory_space<vmem>>, vector<512x4xf32>
    %49 = arith.truncf %48 : vector<512x4xf32> to vector<512x4xbf16>
    %c20 = arith.constant 20 : index
    %c0_39 = arith.constant 0 : index
    %50 = vector.load %arg5[%c20, %c0_39] : memref<36x8xbf16, #tpu.memory_space<vmem>>, vector<4x8xbf16>
    %cst_40 = arith.constant dense<0.000000e+00> : vector<512x8xf32>
    %51 = tpu.matmul %49, %50, %cst_40 {dimension_numbers = #tpu.dot_dimension_numbers<[1], [0], [0], [1], [0, 0, 1, 1], [], []>} : vector<512x4xbf16>, vector<4x8xbf16>, vector<512x8xf32> -> vector<512x8xf32>
    %52 = arith.addf %47, %51 : vector<512x8xf32>
    %c71 = arith.constant 71 : index
    %c0_41 = arith.constant 0 : index
    %53 = vector.load %arg11[%c71, %c0_41] : memref<592x4xf32, #tpu.memory_space<vmem>>, vector<512x4xf32>
    %54 = arith.truncf %53 : vector<512x4xf32> to vector<512x4xbf16>
    %c24 = arith.constant 24 : index
    %c0_42 = arith.constant 0 : index
    %55 = vector.load %arg5[%c24, %c0_42] : memref<36x8xbf16, #tpu.memory_space<vmem>>, vector<4x8xbf16>
    %cst_43 = arith.constant dense<0.000000e+00> : vector<512x8xf32>
    %56 = tpu.matmul %54, %55, %cst_43 {dimension_numbers = #tpu.dot_dimension_numbers<[1], [0], [0], [1], [0, 0, 1, 1], [], []>} : vector<512x4xbf16>, vector<4x8xbf16>, vector<512x8xf32> -> vector<512x8xf32>
    %57 = arith.addf %52, %56 : vector<512x8xf32>
    %c72 = arith.constant 72 : index
    %c0_44 = arith.constant 0 : index
    %58 = vector.load %arg11[%c72, %c0_44] : memref<592x4xf32, #tpu.memory_space<vmem>>, vector<512x4xf32>
    %59 = arith.truncf %58 : vector<512x4xf32> to vector<512x4xbf16>
    %c28 = arith.constant 28 : index
    %c0_45 = arith.constant 0 : index
    %60 = vector.load %arg5[%c28, %c0_45] : memref<36x8xbf16, #tpu.memory_space<vmem>>, vector<4x8xbf16>
    %cst_46 = arith.constant dense<0.000000e+00> : vector<512x8xf32>
    %61 = tpu.matmul %59, %60, %cst_46 {dimension_numbers = #tpu.dot_dimension_numbers<[1], [0], [0], [1], [0, 0, 1, 1], [], []>} : vector<512x4xbf16>, vector<4x8xbf16>, vector<512x8xf32> -> vector<512x8xf32>
    %62 = arith.addf %57, %61 : vector<512x8xf32>
    %c73 = arith.constant 73 : index
    %c0_47 = arith.constant 0 : index
    %63 = vector.load %arg11[%c73, %c0_47] : memref<592x4xf32, #tpu.memory_space<vmem>>, vector<512x4xf32>
    %64 = arith.truncf %63 : vector<512x4xf32> to vector<512x4xbf16>
    %c32 = arith.constant 32 : index
    %c0_48 = arith.constant 0 : index
    %65 = vector.load %arg5[%c32, %c0_48] : memref<36x8xbf16, #tpu.memory_space<vmem>>, vector<4x8xbf16>
    %cst_49 = arith.constant dense<0.000000e+00> : vector<512x8xf32>
    %66 = tpu.matmul %64, %65, %cst_49 {dimension_numbers = #tpu.dot_dimension_numbers<[1], [0], [0], [1], [0, 0, 1, 1], [], []>} : vector<512x4xbf16>, vector<4x8xbf16>, vector<512x8xf32> -> vector<512x8xf32>
    %67 = arith.addf %62, %66 : vector<512x8xf32>
    %c0_50 = arith.constant 0 : index
    %c0_51 = arith.constant 0 : index
    %68 = vector.load %arg2[%c0_50, %c0_51] : memref<512x1xf32, #tpu.memory_space<vmem>>, vector<512x1xf32>
    %69 = vector.broadcast %68 : vector<512x1xf32> to vector<512x8xf32>
    %70 = arith.mulf %67, %69 : vector<512x8xf32>
    %71 = arith.truncf %70 : vector<512x8xf32> to vector<512x8xbf16>
    %c0_52 = arith.constant 0 : index
    %c0_53 = arith.constant 0 : index
    %c0_54 = arith.constant 0 : index
    %72 = vector.load %arg9[%c0_52, %c0_53, %c0_54] : memref<1x512x8xbf16, #tpu.memory_space<vmem>>, vector<1x512x8xbf16>
    %73 = vector.shape_cast %72 : vector<1x512x8xbf16> to vector<512x8xbf16>
    %74 = vector.shape_cast %71 : vector<512x8xbf16> to vector<1x512x8xbf16>
    tpu.vector_store %arg9[%c0_52, %c0_53, %c0_54], %74 {strides = array<i32>} : memref<1x512x8xbf16, #tpu.memory_space<vmem>>, vector<1x512x8xbf16>,
    %cst_55 = arith.constant dense<0.000000e+00> : vector<8xf32>
    %75 = vector.multi_reduction <add>, %70, %cst_55 [0] : vector<512x8xf32> to vector<8xf32>
    %76 = vector.shape_cast %75 : vector<8xf32> to vector<1x8xf32>
    %77 = arith.mulf %70, %70 : vector<512x8xf32>
    %cst_56 = arith.constant dense<0.000000e+00> : vector<8xf32>
    %78 = vector.multi_reduction <add>, %77, %cst_56 [0] : vector<512x8xf32> to vector<8xf32>
    %79 = vector.shape_cast %78 : vector<8xf32> to vector<1x8xf32>
    %80 = tpu.concatenate %76, %79 in 0 : vector<1x8xf32>, vector<1x8xf32> -> vector<2x8xf32>
    %c0_57 = arith.constant 0 : index
    %c0_58 = arith.constant 0 : index
    %c0_59 = arith.constant 0 : index
    %c0_60 = arith.constant 0 : index
    %81 = vector.load %arg10[%c0_57, %c0_58, %c0_59, %c0_60] : memref<1x1x2x8xf32, #tpu.memory_space<vmem>>, vector<1x1x2x8xf32>
    %82 = vector.shape_cast %81 : vector<1x1x2x8xf32> to vector<2x8xf32>
    %83 = vector.shape_cast %80 : vector<2x8xf32> to vector<1x1x2x8xf32>
    tpu.vector_store %arg10[%c0_57, %c0_58, %c0_59, %c0_60], %83 {strides = array<i32>} : memref<1x1x2x8xf32, #tpu.memory_space<vmem>>, vector<1x1x2x8xf32>,
    return
  }
  func.func @transform_0(%arg0: i32, %arg1: i32) -> (i32, i32) {
    %c0_i32 = arith.constant 0 : i32
    %c0_i32_0 = arith.constant 0 : i32
    %c0_i32_1 = arith.constant 0 : i32
    return %c0_i32, %c0_i32_0 : i32, i32
  }
  func.func @transform_1(%arg0: i32, %arg1: i32) -> (i32, i32) {
    %c0_i32 = arith.constant 0 : i32
    %c0_i32_0 = arith.constant 0 : i32
    %c0_i32_1 = arith.constant 0 : i32
    return %c0_i32, %c0_i32_0 : i32, i32
  }
  func.func @transform_2(%arg0: i32, %arg1: i32) -> (i32, i32) {
    %c0_i32 = arith.constant 0 : i32
    %c0_i32_0 = arith.constant 0 : i32
    %c0_i32_1 = arith.constant 0 : i32
    return %c0_i32, %c0_i32_0 : i32, i32
  }
  func.func @transform_3(%arg0: i32, %arg1: i32) -> (i32, i32) {
    %c0_i32 = arith.constant 0 : i32
    %c0_i32_0 = arith.constant 0 : i32
    %c0_i32_1 = arith.constant 0 : i32
    return %c0_i32, %c0_i32_0 : i32, i32
  }
  func.func @transform_4(%arg0: i32, %arg1: i32) -> (i32, i32, i32) {
    %c0_i32 = arith.constant 0 : i32
    %c0_i32_0 = arith.constant 0 : i32
    return %arg0, %arg1, %c0_i32 : i32, i32, i32
  }
  func.func @transform_5(%arg0: i32, %arg1: i32) -> (i32, i32, i32) {
    %c16_i32 = arith.constant 16 : i32
    %0 = arith.muli %arg1, %c16_i32 : i32
    %c1_i32 = arith.constant 1 : i32
    %1 = arith.subi %0, %c1_i32 : i32
    %c0_i32 = arith.constant 0 : i32
    %2 = arith.maxsi %1, %c0_i32 : i32
    %c0_i32_0 = arith.constant 0 : i32
    %c0_i32_1 = arith.constant 0 : i32
    return %arg0, %2, %c0_i32_0 : i32, i32, i32
  }
  func.func @transform_6(%arg0: i32, %arg1: i32) -> (i32, i32, i32) {
    %c16_i32 = arith.constant 16 : i32
    %0 = arith.muli %arg1, %c16_i32 : i32
    %c16_i32_0 = arith.constant 16 : i32
    %1 = arith.addi %0, %c16_i32_0 : i32
    %c15_i32 = arith.constant 15 : i32
    %2 = arith.minsi %1, %c15_i32 : i32
    %c0_i32 = arith.constant 0 : i32
    %c0_i32_1 = arith.constant 0 : i32
    return %arg0, %2, %c0_i32 : i32, i32, i32
  }
  func.func @transform_7(%arg0: i32, %arg1: i32) -> (i32, i32, i32) {
    %c0_i32 = arith.constant 0 : i32
    %c0_i32_0 = arith.constant 0 : i32
    return %arg0, %arg1, %c0_i32 : i32, i32, i32
  }
  func.func @transform_8(%arg0: i32, %arg1: i32) -> (i32, i32, i32, i32) {
    %c0_i32 = arith.constant 0 : i32
    %c0_i32_0 = arith.constant 0 : i32
    %c0_i32_1 = arith.constant 0 : i32
    return %arg0, %arg1, %c0_i32, %c0_i32_0 : i32, i32, i32, i32
  }
}

module attributes {stable_mosaic.version = 11 : i64} {
  func.func @_conv_kernel(%arg0: i32, %arg1: i32, %arg2: memref<512x1xf32, #tpu.memory_space<vmem>>, %arg3: memref<1x8xf32, #tpu.memory_space<vmem>>, %arg4: memref<1x8xf32, #tpu.memory_space<vmem>>, %arg5: memref<72x8xbf16, #tpu.memory_space<vmem>>, %arg6: memref<1x512x8xbf16, #tpu.memory_space<vmem>>, %arg7: memref<1x32x8xbf16, #tpu.memory_space<vmem>>, %arg8: memref<1x32x8xbf16, #tpu.memory_space<vmem>>, %arg9: memref<1x512x8xbf16, #tpu.memory_space<vmem>>, %arg10: memref<1x1x2x8xf32, #tpu.memory_space<vmem>>, %arg11: memref<592x8xf32, #tpu.memory_space<vmem>>) attributes {dimension_semantics = [#tpu.dimension_semantics<parallel>, #tpu.dimension_semantics<parallel>], iteration_bounds = array<i64: 2, 1>, scalar_prefetch = 0 : i64, scratch_operands = 1 : i64, tpu.core_type = #tpu.core_type<tc>, window_params = [{pipeline_mode = #tpu.pipeline_mode<synchronous>, transform_indices = @transform_0, window_bounds = array<i64: 512, 1>}, {pipeline_mode = #tpu.pipeline_mode<synchronous>, transform_indices = @transform_1, window_bounds = array<i64: 1, 8>}, {pipeline_mode = #tpu.pipeline_mode<synchronous>, transform_indices = @transform_2, window_bounds = array<i64: 1, 8>}, {pipeline_mode = #tpu.pipeline_mode<synchronous>, transform_indices = @transform_3, window_bounds = array<i64: 72, 8>}, {transform_indices = @transform_4, window_bounds = array<i64: 1, 512, 8>}, {transform_indices = @transform_5, window_bounds = array<i64: 1, 32, 8>}, {transform_indices = @transform_6, window_bounds = array<i64: 1, 32, 8>}, {transform_indices = @transform_7, window_bounds = array<i64: 1, 512, 8>}, {transform_indices = @transform_8, window_bounds = array<i64: 1, 1, 2, 8>}]} {
    %cst = arith.constant 0.000000e+00 : f32
    %0 = vector.broadcast %cst : f32 to vector<8x8xf32>
    %c0 = arith.constant 0 : index
    %c0_0 = arith.constant 0 : index
    %1 = vector.load %arg11[%c0, %c0_0] : memref<592x8xf32, #tpu.memory_space<vmem>>, vector<8x8xf32>
    tpu.vector_store %arg11[%c0, %c0_0], %0 {strides = array<i32>} : memref<592x8xf32, #tpu.memory_space<vmem>>, vector<8x8xf32>,
    %c0_1 = arith.constant 0 : index
    %c0_2 = arith.constant 0 : index
    %c0_3 = arith.constant 0 : index
    %2 = vector.load %arg7[%c0_1, %c0_2, %c0_3] : memref<1x32x8xbf16, #tpu.memory_space<vmem>>, vector<1x32x8xbf16>
    %3 = vector.shape_cast %2 : vector<1x32x8xbf16> to vector<32x8xbf16>
    %4 = arith.extf %3 : vector<32x8xbf16> to vector<32x8xf32>
    %c0_4 = arith.constant 0 : index
    %c0_5 = arith.constant 0 : index
    %5 = vector.load %arg3[%c0_4, %c0_5] : memref<1x8xf32, #tpu.memory_space<vmem>>, vector<1x8xf32>
    %6 = vector.broadcast %5 : vector<1x8xf32> to vector<32x8xf32>
    %7 = arith.mulf %4, %6 : vector<32x8xf32>
    %c0_6 = arith.constant 0 : index
    %c0_7 = arith.constant 0 : index
    %8 = vector.load %arg4[%c0_6, %c0_7] : memref<1x8xf32, #tpu.memory_space<vmem>>, vector<1x8xf32>
    %9 = vector.broadcast %8 : vector<1x8xf32> to vector<32x8xf32>
    %10 = arith.addf %7, %9 : vector<32x8xf32>
    %cst_8 = arith.constant 0.000000e+00 : f32
    %11 = vector.broadcast %cst_8 : f32 to vector<32x8xf32>
    %12 = arith.maximumf %10, %11 : vector<32x8xf32>
    %c0_9 = arith.constant 0 : index
    %c0_10 = arith.constant 0 : index
    %13 = vector.load %arg2[%c0_9, %c0_10] : memref<512x1xf32, #tpu.memory_space<vmem>>, vector<32x1xf32>
    %14 = vector.broadcast %13 : vector<32x1xf32> to vector<32x8xf32>
    %15 = arith.mulf %12, %14 : vector<32x8xf32>
    %c8 = arith.constant 8 : index
    %c0_11 = arith.constant 0 : index
    %16 = vector.load %arg11[%c8, %c0_11] : memref<592x8xf32, #tpu.memory_space<vmem>>, vector<32x8xf32>
    tpu.vector_store %arg11[%c8, %c0_11], %15 {strides = array<i32>} : memref<592x8xf32, #tpu.memory_space<vmem>>, vector<32x8xf32>,
    %c0_i32 = arith.constant 0 : i32
    %17 = arith.cmpi eq, %arg1, %c0_i32 : i32
    %18 = arith.extui %17 : i1 to i32
    %c0_i32_12 = arith.constant 0 : i32
    %19 = arith.cmpi ne, %18, %c0_i32_12 : i32
    scf.if %19 {
      %cst_83 = arith.constant 0.000000e+00 : f32
      %117 = vector.broadcast %cst_83 : f32 to vector<32x8xf32>
      %c8_84 = arith.constant 8 : index
      %c0_85 = arith.constant 0 : index
      %118 = vector.load %arg11[%c8_84, %c0_85] : memref<592x8xf32, #tpu.memory_space<vmem>>, vector<32x8xf32>
      tpu.vector_store %arg11[%c8_84, %c0_85], %117 {strides = array<i32>} : memref<592x8xf32, #tpu.memory_space<vmem>>, vector<32x8xf32>,
    } else {
    }
    %c0_13 = arith.constant 0 : index
    %c0_14 = arith.constant 0 : index
    %c0_15 = arith.constant 0 : index
    %20 = vector.load %arg6[%c0_13, %c0_14, %c0_15] : memref<1x512x8xbf16, #tpu.memory_space<vmem>>, vector<1x512x8xbf16>
    %21 = vector.shape_cast %20 : vector<1x512x8xbf16> to vector<512x8xbf16>
    %22 = arith.extf %21 : vector<512x8xbf16> to vector<512x8xf32>
    %c0_16 = arith.constant 0 : index
    %c0_17 = arith.constant 0 : index
    %23 = vector.load %arg3[%c0_16, %c0_17] : memref<1x8xf32, #tpu.memory_space<vmem>>, vector<1x8xf32>
    %24 = vector.broadcast %23 : vector<1x8xf32> to vector<512x8xf32>
    %25 = arith.mulf %22, %24 : vector<512x8xf32>
    %c0_18 = arith.constant 0 : index
    %c0_19 = arith.constant 0 : index
    %26 = vector.load %arg4[%c0_18, %c0_19] : memref<1x8xf32, #tpu.memory_space<vmem>>, vector<1x8xf32>
    %27 = vector.broadcast %26 : vector<1x8xf32> to vector<512x8xf32>
    %28 = arith.addf %25, %27 : vector<512x8xf32>
    %cst_20 = arith.constant 0.000000e+00 : f32
    %29 = vector.broadcast %cst_20 : f32 to vector<512x8xf32>
    %30 = arith.maximumf %28, %29 : vector<512x8xf32>
    %c0_21 = arith.constant 0 : index
    %c0_22 = arith.constant 0 : index
    %31 = vector.load %arg2[%c0_21, %c0_22] : memref<512x1xf32, #tpu.memory_space<vmem>>, vector<512x1xf32>
    %32 = vector.broadcast %31 : vector<512x1xf32> to vector<512x8xf32>
    %33 = arith.mulf %30, %32 : vector<512x8xf32>
    %c40 = arith.constant 40 : index
    %c0_23 = arith.constant 0 : index
    %34 = vector.load %arg11[%c40, %c0_23] : memref<592x8xf32, #tpu.memory_space<vmem>>, vector<512x8xf32>
    tpu.vector_store %arg11[%c40, %c0_23], %33 {strides = array<i32>} : memref<592x8xf32, #tpu.memory_space<vmem>>, vector<512x8xf32>,
    %c0_24 = arith.constant 0 : index
    %c0_25 = arith.constant 0 : index
    %c0_26 = arith.constant 0 : index
    %35 = vector.load %arg8[%c0_24, %c0_25, %c0_26] : memref<1x32x8xbf16, #tpu.memory_space<vmem>>, vector<1x32x8xbf16>
    %36 = vector.shape_cast %35 : vector<1x32x8xbf16> to vector<32x8xbf16>
    %37 = arith.extf %36 : vector<32x8xbf16> to vector<32x8xf32>
    %c0_27 = arith.constant 0 : index
    %c0_28 = arith.constant 0 : index
    %38 = vector.load %arg3[%c0_27, %c0_28] : memref<1x8xf32, #tpu.memory_space<vmem>>, vector<1x8xf32>
    %39 = vector.broadcast %38 : vector<1x8xf32> to vector<32x8xf32>
    %40 = arith.mulf %37, %39 : vector<32x8xf32>
    %c0_29 = arith.constant 0 : index
    %c0_30 = arith.constant 0 : index
    %41 = vector.load %arg4[%c0_29, %c0_30] : memref<1x8xf32, #tpu.memory_space<vmem>>, vector<1x8xf32>
    %42 = vector.broadcast %41 : vector<1x8xf32> to vector<32x8xf32>
    %43 = arith.addf %40, %42 : vector<32x8xf32>
    %cst_31 = arith.constant 0.000000e+00 : f32
    %44 = vector.broadcast %cst_31 : f32 to vector<32x8xf32>
    %45 = arith.maximumf %43, %44 : vector<32x8xf32>
    %c0_32 = arith.constant 0 : index
    %c0_33 = arith.constant 0 : index
    %46 = vector.load %arg2[%c0_32, %c0_33] : memref<512x1xf32, #tpu.memory_space<vmem>>, vector<32x1xf32>
    %47 = vector.broadcast %46 : vector<32x1xf32> to vector<32x8xf32>
    %48 = arith.mulf %45, %47 : vector<32x8xf32>
    %c552 = arith.constant 552 : index
    %c0_34 = arith.constant 0 : index
    %49 = vector.load %arg11[%c552, %c0_34] : memref<592x8xf32, #tpu.memory_space<vmem>>, vector<32x8xf32>
    tpu.vector_store %arg11[%c552, %c0_34], %48 {strides = array<i32>} : memref<592x8xf32, #tpu.memory_space<vmem>>, vector<32x8xf32>,
    %c0_i32_35 = arith.constant 0 : i32
    %50 = arith.cmpi eq, %arg1, %c0_i32_35 : i32
    %51 = arith.extui %50 : i1 to i32
    %c0_i32_36 = arith.constant 0 : i32
    %52 = arith.cmpi ne, %51, %c0_i32_36 : i32
    scf.if %52 {
      %cst_83 = arith.constant 0.000000e+00 : f32
      %117 = vector.broadcast %cst_83 : f32 to vector<32x8xf32>
      %c552_84 = arith.constant 552 : index
      %c0_85 = arith.constant 0 : index
      %118 = vector.load %arg11[%c552_84, %c0_85] : memref<592x8xf32, #tpu.memory_space<vmem>>, vector<32x8xf32>
      tpu.vector_store %arg11[%c552_84, %c0_85], %117 {strides = array<i32>} : memref<592x8xf32, #tpu.memory_space<vmem>>, vector<32x8xf32>,
    } else {
    }
    %cst_37 = arith.constant 0.000000e+00 : f32
    %53 = vector.broadcast %cst_37 : f32 to vector<8x8xf32>
    %c584 = arith.constant 584 : index
    %c0_38 = arith.constant 0 : index
    %54 = vector.load %arg11[%c584, %c0_38] : memref<592x8xf32, #tpu.memory_space<vmem>>, vector<8x8xf32>
    tpu.vector_store %arg11[%c584, %c0_38], %53 {strides = array<i32>} : memref<592x8xf32, #tpu.memory_space<vmem>>, vector<8x8xf32>,
    %cst_39 = arith.constant 0.000000e+00 : f32
    %55 = vector.broadcast %cst_39 : f32 to vector<512x8xf32>
    %c7 = arith.constant 7 : index
    %c0_40 = arith.constant 0 : index
    %56 = vector.load %arg11[%c7, %c0_40] : memref<592x8xf32, #tpu.memory_space<vmem>>, vector<512x8xf32>
    %57 = arith.truncf %56 : vector<512x8xf32> to vector<512x8xbf16>
    %c0_41 = arith.constant 0 : index
    %c0_42 = arith.constant 0 : index
    %58 = vector.load %arg5[%c0_41, %c0_42] : memref<72x8xbf16, #tpu.memory_space<vmem>>, vector<8x8xbf16>
    %cst_43 = arith.constant dense<0.000000e+00> : vector<512x8xf32>
    %59 = tpu.matmul %57, %58, %cst_43 {dimension_numbers = #tpu.dot_dimension_numbers<[1], [0], [0], [1], [0, 0, 1, 1], [], []>} : vector<512x8xbf16>, vector<8x8xbf16>, vector<512x8xf32> -> vector<512x8xf32>
    %60 = arith.addf %55, %59 : vector<512x8xf32>
    %c8_44 = arith.constant 8 : index
    %c0_45 = arith.constant 0 : index
    %61 = vector.load %arg11[%c8_44, %c0_45] : memref<592x8xf32, #tpu.memory_space<vmem>>, vector<512x8xf32>
    %62 = arith.truncf %61 : vector<512x8xf32> to vector<512x8xbf16>
    %c8_46 = arith.constant 8 : index
    %c0_47 = arith.constant 0 : index
    %63 = vector.load %arg5[%c8_46, %c0_47] : memref<72x8xbf16, #tpu.memory_space<vmem>>, vector<8x8xbf16>
    %cst_48 = arith.constant dense<0.000000e+00> : vector<512x8xf32>
    %64 = tpu.matmul %62, %63, %cst_48 {dimension_numbers = #tpu.dot_dimension_numbers<[1], [0], [0], [1], [0, 0, 1, 1], [], []>} : vector<512x8xbf16>, vector<8x8xbf16>, vector<512x8xf32> -> vector<512x8xf32>
    %65 = arith.addf %60, %64 : vector<512x8xf32>
    %c9 = arith.constant 9 : index
    %c0_49 = arith.constant 0 : index
    %66 = vector.load %arg11[%c9, %c0_49] : memref<592x8xf32, #tpu.memory_space<vmem>>, vector<512x8xf32>
    %67 = arith.truncf %66 : vector<512x8xf32> to vector<512x8xbf16>
    %c16 = arith.constant 16 : index
    %c0_50 = arith.constant 0 : index
    %68 = vector.load %arg5[%c16, %c0_50] : memref<72x8xbf16, #tpu.memory_space<vmem>>, vector<8x8xbf16>
    %cst_51 = arith.constant dense<0.000000e+00> : vector<512x8xf32>
    %69 = tpu.matmul %67, %68, %cst_51 {dimension_numbers = #tpu.dot_dimension_numbers<[1], [0], [0], [1], [0, 0, 1, 1], [], []>} : vector<512x8xbf16>, vector<8x8xbf16>, vector<512x8xf32> -> vector<512x8xf32>
    %70 = arith.addf %65, %69 : vector<512x8xf32>
    %c39 = arith.constant 39 : index
    %c0_52 = arith.constant 0 : index
    %71 = vector.load %arg11[%c39, %c0_52] : memref<592x8xf32, #tpu.memory_space<vmem>>, vector<512x8xf32>
    %72 = arith.truncf %71 : vector<512x8xf32> to vector<512x8xbf16>
    %c24 = arith.constant 24 : index
    %c0_53 = arith.constant 0 : index
    %73 = vector.load %arg5[%c24, %c0_53] : memref<72x8xbf16, #tpu.memory_space<vmem>>, vector<8x8xbf16>
    %cst_54 = arith.constant dense<0.000000e+00> : vector<512x8xf32>
    %74 = tpu.matmul %72, %73, %cst_54 {dimension_numbers = #tpu.dot_dimension_numbers<[1], [0], [0], [1], [0, 0, 1, 1], [], []>} : vector<512x8xbf16>, vector<8x8xbf16>, vector<512x8xf32> -> vector<512x8xf32>
    %75 = arith.addf %70, %74 : vector<512x8xf32>
    %c40_55 = arith.constant 40 : index
    %c0_56 = arith.constant 0 : index
    %76 = vector.load %arg11[%c40_55, %c0_56] : memref<592x8xf32, #tpu.memory_space<vmem>>, vector<512x8xf32>
    %77 = arith.truncf %76 : vector<512x8xf32> to vector<512x8xbf16>
    %c32 = arith.constant 32 : index
    %c0_57 = arith.constant 0 : index
    %78 = vector.load %arg5[%c32, %c0_57] : memref<72x8xbf16, #tpu.memory_space<vmem>>, vector<8x8xbf16>
    %cst_58 = arith.constant dense<0.000000e+00> : vector<512x8xf32>
    %79 = tpu.matmul %77, %78, %cst_58 {dimension_numbers = #tpu.dot_dimension_numbers<[1], [0], [0], [1], [0, 0, 1, 1], [], []>} : vector<512x8xbf16>, vector<8x8xbf16>, vector<512x8xf32> -> vector<512x8xf32>
    %80 = arith.addf %75, %79 : vector<512x8xf32>
    %c41 = arith.constant 41 : index
    %c0_59 = arith.constant 0 : index
    %81 = vector.load %arg11[%c41, %c0_59] : memref<592x8xf32, #tpu.memory_space<vmem>>, vector<512x8xf32>
    %82 = arith.truncf %81 : vector<512x8xf32> to vector<512x8xbf16>
    %c40_60 = arith.constant 40 : index
    %c0_61 = arith.constant 0 : index
    %83 = vector.load %arg5[%c40_60, %c0_61] : memref<72x8xbf16, #tpu.memory_space<vmem>>, vector<8x8xbf16>
    %cst_62 = arith.constant dense<0.000000e+00> : vector<512x8xf32>
    %84 = tpu.matmul %82, %83, %cst_62 {dimension_numbers = #tpu.dot_dimension_numbers<[1], [0], [0], [1], [0, 0, 1, 1], [], []>} : vector<512x8xbf16>, vector<8x8xbf16>, vector<512x8xf32> -> vector<512x8xf32>
    %85 = arith.addf %80, %84 : vector<512x8xf32>
    %c71 = arith.constant 71 : index
    %c0_63 = arith.constant 0 : index
    %86 = vector.load %arg11[%c71, %c0_63] : memref<592x8xf32, #tpu.memory_space<vmem>>, vector<512x8xf32>
    %87 = arith.truncf %86 : vector<512x8xf32> to vector<512x8xbf16>
    %c48 = arith.constant 48 : index
    %c0_64 = arith.constant 0 : index
    %88 = vector.load %arg5[%c48, %c0_64] : memref<72x8xbf16, #tpu.memory_space<vmem>>, vector<8x8xbf16>
    %cst_65 = arith.constant dense<0.000000e+00> : vector<512x8xf32>
    %89 = tpu.matmul %87, %88, %cst_65 {dimension_numbers = #tpu.dot_dimension_numbers<[1], [0], [0], [1], [0, 0, 1, 1], [], []>} : vector<512x8xbf16>, vector<8x8xbf16>, vector<512x8xf32> -> vector<512x8xf32>
    %90 = arith.addf %85, %89 : vector<512x8xf32>
    %c72 = arith.constant 72 : index
    %c0_66 = arith.constant 0 : index
    %91 = vector.load %arg11[%c72, %c0_66] : memref<592x8xf32, #tpu.memory_space<vmem>>, vector<512x8xf32>
    %92 = arith.truncf %91 : vector<512x8xf32> to vector<512x8xbf16>
    %c56 = arith.constant 56 : index
    %c0_67 = arith.constant 0 : index
    %93 = vector.load %arg5[%c56, %c0_67] : memref<72x8xbf16, #tpu.memory_space<vmem>>, vector<8x8xbf16>
    %cst_68 = arith.constant dense<0.000000e+00> : vector<512x8xf32>
    %94 = tpu.matmul %92, %93, %cst_68 {dimension_numbers = #tpu.dot_dimension_numbers<[1], [0], [0], [1], [0, 0, 1, 1], [], []>} : vector<512x8xbf16>, vector<8x8xbf16>, vector<512x8xf32> -> vector<512x8xf32>
    %95 = arith.addf %90, %94 : vector<512x8xf32>
    %c73 = arith.constant 73 : index
    %c0_69 = arith.constant 0 : index
    %96 = vector.load %arg11[%c73, %c0_69] : memref<592x8xf32, #tpu.memory_space<vmem>>, vector<512x8xf32>
    %97 = arith.truncf %96 : vector<512x8xf32> to vector<512x8xbf16>
    %c64 = arith.constant 64 : index
    %c0_70 = arith.constant 0 : index
    %98 = vector.load %arg5[%c64, %c0_70] : memref<72x8xbf16, #tpu.memory_space<vmem>>, vector<8x8xbf16>
    %cst_71 = arith.constant dense<0.000000e+00> : vector<512x8xf32>
    %99 = tpu.matmul %97, %98, %cst_71 {dimension_numbers = #tpu.dot_dimension_numbers<[1], [0], [0], [1], [0, 0, 1, 1], [], []>} : vector<512x8xbf16>, vector<8x8xbf16>, vector<512x8xf32> -> vector<512x8xf32>
    %100 = arith.addf %95, %99 : vector<512x8xf32>
    %c0_72 = arith.constant 0 : index
    %c0_73 = arith.constant 0 : index
    %101 = vector.load %arg2[%c0_72, %c0_73] : memref<512x1xf32, #tpu.memory_space<vmem>>, vector<512x1xf32>
    %102 = vector.broadcast %101 : vector<512x1xf32> to vector<512x8xf32>
    %103 = arith.mulf %100, %102 : vector<512x8xf32>
    %104 = arith.truncf %103 : vector<512x8xf32> to vector<512x8xbf16>
    %c0_74 = arith.constant 0 : index
    %c0_75 = arith.constant 0 : index
    %c0_76 = arith.constant 0 : index
    %105 = vector.load %arg9[%c0_74, %c0_75, %c0_76] : memref<1x512x8xbf16, #tpu.memory_space<vmem>>, vector<1x512x8xbf16>
    %106 = vector.shape_cast %105 : vector<1x512x8xbf16> to vector<512x8xbf16>
    %107 = vector.shape_cast %104 : vector<512x8xbf16> to vector<1x512x8xbf16>
    tpu.vector_store %arg9[%c0_74, %c0_75, %c0_76], %107 {strides = array<i32>} : memref<1x512x8xbf16, #tpu.memory_space<vmem>>, vector<1x512x8xbf16>,
    %cst_77 = arith.constant dense<0.000000e+00> : vector<8xf32>
    %108 = vector.multi_reduction <add>, %103, %cst_77 [0] : vector<512x8xf32> to vector<8xf32>
    %109 = vector.shape_cast %108 : vector<8xf32> to vector<1x8xf32>
    %110 = arith.mulf %103, %103 : vector<512x8xf32>
    %cst_78 = arith.constant dense<0.000000e+00> : vector<8xf32>
    %111 = vector.multi_reduction <add>, %110, %cst_78 [0] : vector<512x8xf32> to vector<8xf32>
    %112 = vector.shape_cast %111 : vector<8xf32> to vector<1x8xf32>
    %113 = tpu.concatenate %109, %112 in 0 : vector<1x8xf32>, vector<1x8xf32> -> vector<2x8xf32>
    %c0_79 = arith.constant 0 : index
    %c0_80 = arith.constant 0 : index
    %c0_81 = arith.constant 0 : index
    %c0_82 = arith.constant 0 : index
    %114 = vector.load %arg10[%c0_79, %c0_80, %c0_81, %c0_82] : memref<1x1x2x8xf32, #tpu.memory_space<vmem>>, vector<1x1x2x8xf32>
    %115 = vector.shape_cast %114 : vector<1x1x2x8xf32> to vector<2x8xf32>
    %116 = vector.shape_cast %113 : vector<2x8xf32> to vector<1x1x2x8xf32>
    tpu.vector_store %arg10[%c0_79, %c0_80, %c0_81, %c0_82], %116 {strides = array<i32>} : memref<1x1x2x8xf32, #tpu.memory_space<vmem>>, vector<1x1x2x8xf32>,
    return
  }
  func.func @transform_0(%arg0: i32, %arg1: i32) -> (i32, i32) {
    %c0_i32 = arith.constant 0 : i32
    %c0_i32_0 = arith.constant 0 : i32
    %c0_i32_1 = arith.constant 0 : i32
    return %c0_i32, %c0_i32_0 : i32, i32
  }
  func.func @transform_1(%arg0: i32, %arg1: i32) -> (i32, i32) {
    %c0_i32 = arith.constant 0 : i32
    %c0_i32_0 = arith.constant 0 : i32
    %c0_i32_1 = arith.constant 0 : i32
    return %c0_i32, %c0_i32_0 : i32, i32
  }
  func.func @transform_2(%arg0: i32, %arg1: i32) -> (i32, i32) {
    %c0_i32 = arith.constant 0 : i32
    %c0_i32_0 = arith.constant 0 : i32
    %c0_i32_1 = arith.constant 0 : i32
    return %c0_i32, %c0_i32_0 : i32, i32
  }
  func.func @transform_3(%arg0: i32, %arg1: i32) -> (i32, i32) {
    %c0_i32 = arith.constant 0 : i32
    %c0_i32_0 = arith.constant 0 : i32
    %c0_i32_1 = arith.constant 0 : i32
    return %c0_i32, %c0_i32_0 : i32, i32
  }
  func.func @transform_4(%arg0: i32, %arg1: i32) -> (i32, i32, i32) {
    %c0_i32 = arith.constant 0 : i32
    %c0_i32_0 = arith.constant 0 : i32
    return %arg0, %arg1, %c0_i32 : i32, i32, i32
  }
  func.func @transform_5(%arg0: i32, %arg1: i32) -> (i32, i32, i32) {
    %c16_i32 = arith.constant 16 : i32
    %0 = arith.muli %arg1, %c16_i32 : i32
    %c1_i32 = arith.constant 1 : i32
    %1 = arith.subi %0, %c1_i32 : i32
    %c0_i32 = arith.constant 0 : i32
    %2 = arith.maxsi %1, %c0_i32 : i32
    %c0_i32_0 = arith.constant 0 : i32
    %c0_i32_1 = arith.constant 0 : i32
    return %arg0, %2, %c0_i32_0 : i32, i32, i32
  }
  func.func @transform_6(%arg0: i32, %arg1: i32) -> (i32, i32, i32) {
    %c16_i32 = arith.constant 16 : i32
    %0 = arith.muli %arg1, %c16_i32 : i32
    %c16_i32_0 = arith.constant 16 : i32
    %1 = arith.addi %0, %c16_i32_0 : i32
    %c15_i32 = arith.constant 15 : i32
    %2 = arith.minsi %1, %c15_i32 : i32
    %c0_i32 = arith.constant 0 : i32
    %c0_i32_1 = arith.constant 0 : i32
    return %arg0, %2, %c0_i32 : i32, i32, i32
  }
  func.func @transform_7(%arg0: i32, %arg1: i32) -> (i32, i32, i32) {
    %c0_i32 = arith.constant 0 : i32
    %c0_i32_0 = arith.constant 0 : i32
    return %arg0, %arg1, %c0_i32 : i32, i32, i32
  }
  func.func @transform_8(%arg0: i32, %arg1: i32) -> (i32, i32, i32, i32) {
    %c0_i32 = arith.constant 0 : i32
    %c0_i32_0 = arith.constant 0 : i32
    %c0_i32_1 = arith.constant 0 : i32
    return %arg0, %arg1, %c0_i32, %c0_i32_0 : i32, i32, i32, i32
  }
}

module attributes {stable_mosaic.version = 11 : i64} {
  func.func @_bn_relu_kernel(%arg0: i32, %arg1: memref<64x128xbf16, #tpu.memory_space<vmem>>, %arg2: memref<1x128xf32, #tpu.memory_space<vmem>>, %arg3: memref<1x128xf32, #tpu.memory_space<vmem>>, %arg4: memref<64x128xf32, #tpu.memory_space<vmem>>) attributes {dimension_semantics = [#tpu.dimension_semantics<parallel>], iteration_bounds = array<i64: 1>, scalar_prefetch = 0 : i64, scratch_operands = 0 : i64, tpu.core_type = #tpu.core_type<tc>, window_params = [{transform_indices = @transform_0, window_bounds = array<i64: 64, 128>}, {pipeline_mode = #tpu.pipeline_mode<synchronous>, transform_indices = @transform_1, window_bounds = array<i64: 1, 128>}, {pipeline_mode = #tpu.pipeline_mode<synchronous>, transform_indices = @transform_2, window_bounds = array<i64: 1, 128>}, {transform_indices = @transform_3, window_bounds = array<i64: 64, 128>}]} {
    %c0 = arith.constant 0 : index
    %c0_0 = arith.constant 0 : index
    %0 = vector.load %arg1[%c0, %c0_0] : memref<64x128xbf16, #tpu.memory_space<vmem>>, vector<64x128xbf16>
    %1 = arith.extf %0 : vector<64x128xbf16> to vector<64x128xf32>
    %c0_1 = arith.constant 0 : index
    %c0_2 = arith.constant 0 : index
    %2 = vector.load %arg2[%c0_1, %c0_2] : memref<1x128xf32, #tpu.memory_space<vmem>>, vector<1x128xf32>
    %3 = vector.broadcast %2 : vector<1x128xf32> to vector<64x128xf32>
    %4 = arith.mulf %1, %3 : vector<64x128xf32>
    %c0_3 = arith.constant 0 : index
    %c0_4 = arith.constant 0 : index
    %5 = vector.load %arg3[%c0_3, %c0_4] : memref<1x128xf32, #tpu.memory_space<vmem>>, vector<1x128xf32>
    %6 = vector.broadcast %5 : vector<1x128xf32> to vector<64x128xf32>
    %7 = arith.addf %4, %6 : vector<64x128xf32>
    %cst = arith.constant 0.000000e+00 : f32
    %8 = vector.broadcast %cst : f32 to vector<64x128xf32>
    %9 = arith.maximumf %7, %8 : vector<64x128xf32>
    %c0_5 = arith.constant 0 : index
    %c0_6 = arith.constant 0 : index
    %10 = vector.load %arg4[%c0_5, %c0_6] : memref<64x128xf32, #tpu.memory_space<vmem>>, vector<64x128xf32>
    tpu.vector_store %arg4[%c0_5, %c0_6], %9 {strides = array<i32>} : memref<64x128xf32, #tpu.memory_space<vmem>>, vector<64x128xf32>,
    return
  }
  func.func @transform_0(%arg0: i32) -> (i32, i32) {
    %c0_i32 = arith.constant 0 : i32
    %c0_i32_0 = arith.constant 0 : i32
    return %arg0, %c0_i32 : i32, i32
  }
  func.func @transform_1(%arg0: i32) -> (i32, i32) {
    %c0_i32 = arith.constant 0 : i32
    %c0_i32_0 = arith.constant 0 : i32
    %c0_i32_1 = arith.constant 0 : i32
    return %c0_i32, %c0_i32_0 : i32, i32
  }
  func.func @transform_2(%arg0: i32) -> (i32, i32) {
    %c0_i32 = arith.constant 0 : i32
    %c0_i32_0 = arith.constant 0 : i32
    %c0_i32_1 = arith.constant 0 : i32
    return %c0_i32, %c0_i32_0 : i32, i32
  }
  func.func @transform_3(%arg0: i32) -> (i32, i32) {
    %c0_i32 = arith.constant 0 : i32
    %c0_i32_0 = arith.constant 0 : i32
    return %arg0, %c0_i32 : i32, i32
  }
}

</mosaic_0001>

<bundles_post_ra>
// kernel: double_conv.5
= control target key start
LH: loop header
LB: loop body
LE: loop exit
PB: predicated region body
PF: predicated region fallthrough
CT: control target
= control target key end

     0   :  { %s163_s0 = inlined_call_operand.vmem [shape: bf16[64,128], index: 0, kind: input, shape index: {}]   ;;  %s164_s1 = inlined_call_operand.vmem [shape: f32[1,128], index: 1, kind: input, shape index: {}]   ;;  %s165_s2 = inlined_call_operand.vmem [shape: f32[1,128], index: 2, kind: input, shape index: {}]   ;;  %s166_s3 = inlined_call_operand.vmem [shape: f32[64,128], index: 3, kind: output, shape index: {}]  }
   0x1   :  { %v83_v0 = vld [vmem:[%s163_s0] sm:$0xff]   ;;  %v98_v4 = vld [vmem:[%s163_s0 + $0x8] sm:$0xff]   ;;  %v99_v5 = vld [vmem:[%s163_s0 + $0x10] sm:$0xff]  }
   0x2   :  { %v80_v1 = vld [vmem:[%s164_s1] ss:$0 sm:$0xff]  ;;  %v84_v2 = vunpack.c.l.bf16 %v83_v0  ;;  %v85_v3 = vunpack.c.h.bf16 %v83_v0  ;;  %v100_v6 = vld [vmem:[%s163_s0 + $0x18] sm:$0xff]   ;;  %v88_v8 = vunpack.c.l.bf16 %v98_v4  ;;  %v89_v9 = vunpack.c.h.bf16 %v98_v4 }
   0x3   :  { %v81_v7 = vld [vmem:[%s165_s2] ss:$0 sm:$0xff]  ;;  %v92_v10 = vunpack.c.l.bf16 %v99_v5  ;;  %v93_v11 = vunpack.c.h.bf16 %v99_v5  ;;  %v96_v14 = vunpack.c.l.bf16 %v100_v6  ;;  %v97_v15 = vunpack.c.h.bf16 %v100_v6 }
   0x4   :  { %v37_v12 = vmul.f32 %v84_v2, %v80_v1  ;;  %v38_v13 = vmul.f32 %v85_v3, %v80_v1  ;;  %v39_v16 = vmul.f32 %v88_v8, %v80_v1  ;;  %v40_v17 = vmul.f32 %v89_v9, %v80_v1 }
   0x5   :  { %v41_v18 = vmul.f32 %v92_v10, %v80_v1  ;;  %v42_v19 = vmul.f32 %v93_v11, %v80_v1  ;;  %v43_v22 = vmul.f32 %v96_v14, %v80_v1  ;;  %v44_v23 = vmul.f32 %v97_v15, %v80_v1 }
   0x6   :  { %v52_v20 = vadd.f32 %v81_v7, %v37_v12  ;;  %v53_v21 = vadd.f32 %v81_v7, %v38_v13  ;;  %v54_v24 = vadd.f32 %v81_v7, %v39_v16  ;;  %v55_v25 = vadd.f32 %v81_v7, %v40_v17 }
   0x7   :  { %v56_v26 = vadd.f32 %v81_v7, %v41_v18  ;;  %v57_v27 = vadd.f32 %v81_v7, %v42_v19  ;;  %v58_v30 = vadd.f32 %v81_v7, %v43_v22  ;;  %v59_v31 = vadd.f32 %v81_v7, %v44_v23 }
   0x8   :  { %v60_v28 = vmax.f32 %v52_v20, 0.0  ;;  %v61_v29 = vmax.f32 %v53_v21, 0.0  ;;  %v62_v32 = vmax.f32 %v54_v24, 0.0  ;;  %v63_v33 = vmax.f32 %v55_v25, 0.0 }
   0x9   :  { %v64_v34 = vmax.f32 %v56_v26, 0.0  ;;  %v65_v35 = vmax.f32 %v57_v27, 0.0  ;;  %v66_v36 = vmax.f32 %v58_v30, 0.0  ;;  %v67_v37 = vmax.f32 %v59_v31, 0.0 }
   0xa   :  { %68 = vst [vmem:[%s166_s3] sm:$0xff] %v60_v28  ;;  %69 = vst [vmem:[%s166_s3 + $0x8] sm:$0xff] %v61_v29 }
   0xb   :  { %70 = vst [vmem:[%s166_s3 + $0x10] sm:$0xff] %v62_v32  ;;  %71 = vst [vmem:[%s166_s3 + $0x18] sm:$0xff] %v63_v33 }
   0xc   :  { %72 = vst [vmem:[%s166_s3 + $0x20] sm:$0xff] %v64_v34  ;;  %73 = vst [vmem:[%s166_s3 + $0x28] sm:$0xff] %v65_v35 }
   0xd   :  { %74 = vst [vmem:[%s166_s3 + $0x30] sm:$0xff] %v66_v36  ;;  %75 = vst [vmem:[%s166_s3 + $0x38] sm:$0xff] %v67_v37 }

// kernel: double_conv.3
= control target key start
LH: loop header
LB: loop body
LE: loop exit
PB: predicated region body
PF: predicated region fallthrough
CT: control target
= control target key end

     0   :  { %s8963_s26 = smov 0   ;;  %s8965_s2 = smov 0   ;;  %s10499_s0 = inlined_call_operand.vmem [shape: f32[512,1], index: 0, kind: input, shape index: {}]   ;;  %s10500_s1 = inlined_call_operand.vmem [shape: f32[1,4], index: 1, kind: input, shape index: {}, may-alias: {1,2}]   ;;  %s10501_s2 = inlined_call_operand.vmem [shape: f32[1,4], index: 2, kind: input, shape index: {}, may-alias: {1,2}]   ;;  %s10502_s3 = inlined_call_operand.vmem [shape: bf16[36,8], index: 3, kind: input, shape index: {}]   ;;  %s10503_s4 = inlined_call_operand.vmem [shape: bf16[2,512,4], index: 4, kind: input, shape index: {}, may-alias: {4,5,6}]   ;;  %s10504_s5 = inlined_call_operand.vmem [shape: bf16[2,512,4], index: 5, kind: input, shape index: {}, may-alias: {4,5,6}]   ;;  %s10505_s6 = inlined_call_operand.vmem [shape: bf16[2,512,4], index: 6, kind: input, shape index: {}, may-alias: {4,5,6}]   ;;  %s10506_s7 = inlined_call_operand.vmem [shape: bf16[2,512,8], index: 7, kind: output, shape index: {0}]   ;;  %s10507_s8 = inlined_call_operand.vmem [shape: f32[2,1,2,8], index: 8, kind: output, shape index: {1}]  }
   0x1   :  { %s8967_s27 = smov 0  }
   0x2 LB: > { %s31_s28 = sadd.s32 1, %s8910_s2  ;;  %p6829_p0 = scmp.ge.s32.totalorder %s8914_s27, 1  ;;  %s8914_s27 = sphi %s8967_s27, %s19_s27   ;;  %s8910_s2 = sphi %s8965_s2, %s10525_s2   ;;  %s8906_s26 = sphi %s8963_s26, %s10524_s26  }
   0x3   : > { %p33_p1 = scmp.ge.s32.totalorder %s31_s28, 2  ;;  %p354_p2 = scmp.lt.s32.totalorder %s8914_s27, 3 }
   0x5   : > { %s10527_s28 = smov (%p33_p1, %s31_s28), 0  ;;  %p355_p3 = pnand %p6829_p0, %p354_p2 }
   0x7   : > { %358 = sbr.rel (%p355_p3) target bundleno = 851 (0x353), region = 48 }
   0xe   : > { %v8887_v0 = vld [vmem:[%s10502_s3] ss:$0 sps:$4 sm:$0xcc]   ;;  %vm1021_vm0 = vcmask 1041408   ;;  %v2900_v1 = vld [vmem:[%s10502_s3 + $0x8] sm:$0x3] }
   0xf   : > { %p430_p4 = scmp.lt.s32.totalorder %s8906_s26, 1  ;;  %vm493_vm1 = vcmask 31744   ;;  %v924_v2 = vrot.slane %v8887_v0, 2  ;;  %8853 = vmatprep.subr.msk.bf16.mxu0 %vm1021_vm0, %v2900_v1  ;;  %v8989_v3 = vsel %vm1021_vm0, %v2900_v1, 0  ;;  %v8916_v4 = vmov 0.0  }
  0x10   : > { %494 = vst.msk [vmem:[#allocation2] sm:$0xff] %vm493_vm1, %v8916_v4  ;;  %726 = vst.msk [vmem:[#allocation2 + $0x248] sm:$0xff] %vm493_vm1, %v8916_v4  ;;  %8006 = vmatpush3.bf16.msra.mxu0 %v8989_v3  ;;  %v823_v5 = vld [vmem:[%s10502_s3] sm:$0x3]  ;;  %vm6261_vm2 = vcmask 60416   ;;  %vm6326_vm3 = vcmask 64512  }
  0x11   : > { %s10529_s26 = smov (!%p430_p4, %s8906_s26), 1  ;;  %v9004_v6 = vld [vmem:[%s10502_s3 + $0x8] ss:$0 sps:$4 sm:$0xcc]   ;;  %8849 = vmatprep.subr.msk.bf16.mxu1 %vm1021_vm0, %v924_v2  ;;  %v1023_v7 = vsel %vm1021_vm0, %v924_v2, 0  ;;  %v9029_v11 = vsel %vm1021_vm0, %v823_v5, 0 }
  0x12   : > { %7742 = vmatpush3.bf16.msra.mxu1 %v1023_v7  ;;  %s9009_s15 = sshll.u32 %s10529_s26, 8  ;;  %v3453_v8 = vrot.slane %v9004_v6, 2  ;;  %vm6657_vm4 = vcmask 1040384   ;;  %vm6659_vm5 = vcmask 58368  }
  0x13   : > { %s9016_s18 = scalar_lea.vmem %s10503_s4, %s9009_s15  ;;  %8850 = vmatprep.subr.msk.bf16.mxu1 %vm1021_vm0, %v823_v5  ;;  %s451_s21 = scalar_lea.vmem %s10504_s5, %s9009_s15 }
  0x14   : > { %v7275_v9 = vld [vmem:[%s9016_s18] sm:$0xff]   ;;  %v7412_v10 = vld [vmem:[%s9016_s18 + $0x8] sm:$0xff]   ;;  %8855 = vmatprep.subr.msk.bf16.mxu0 %vm1021_vm0, %v3453_v8  ;;  %v7413_v12 = vld [vmem:[%s9016_s18 + $0x10] sm:$0xff]   ;;  %s7200_s1 = sadd.s32 240, %s9009_s15  ;;  %s10077_s16 = scalar_lea.vmem %s10506_s7, %s9009_s15 }
  0x15   : > { %v7276_v13 = vunpack.c.l.bf16 %v7275_v9  ;;  %v7277_v14 = vunpack.c.h.bf16 %v7275_v9  ;;  %v7267_v15 = vld [vmem:[%s451_s21] sm:$0xff]   ;;  %v7411_v16 = vld [vmem:[%s451_s21 + $0x8] sm:$0xff]   ;;  %v7280_v17 = vunpack.c.l.bf16 %v7412_v10  ;;  %v7281_v18 = vunpack.c.h.bf16 %v7412_v10  ;;  %v7414_v19 = vld [vmem:[%s9016_s18 + $0x18] sm:$0xff]   ;;  %s9203_s9 = scalar_lea.vmem %s10505_s6, %s7200_s1  ;;  %s6838_s15 = sshll.u32 %s10529_s26, 1 }
  0x16   : > { %v7268_v20 = vunpack.c.l.bf16 %v7267_v15  ;;  %v7269_v21 = vunpack.c.h.bf16 %v7267_v15  ;;  %v7272_v22 = vunpack.c.l.bf16 %v7411_v16  ;;  %v7273_v23 = vunpack.c.h.bf16 %v7411_v16  ;;  %v7415_v24 = vld [vmem:[%s9016_s18 + $0x20] sm:$0xff]   ;;  %v7416_v25 = vld [vmem:[%s9016_s18 + $0x28] sm:$0xff]   ;;  %v7417_v26 = vld [vmem:[%s9016_s18 + $0x30] sm:$0xff]   ;;  %s491_s19 = scalar_lea.vmem %s10507_s8, %s6838_s15 }
  0x17   : > { %643 = vst.msk [vmem:[#allocation2 + $0x28] sm:$0xff] %vm493_vm1, %v7276_v13  ;;  %644 = vst.msk [vmem:[#allocation2 + $0x30] sm:$0xff] %vm493_vm1, %v7277_v14  ;;  %v7284_v27 = vunpack.c.l.bf16 %v7413_v12  ;;  %v7285_v28 = vunpack.c.h.bf16 %v7413_v12  ;;  %v7288_v29 = vunpack.c.l.bf16 %v7414_v19  ;;  %v7289_v30 = vunpack.c.h.bf16 %v7414_v19  ;;  %v7418_v31 = vld [vmem:[%s9016_s18 + $0x38] sm:$0xff]   ;;  %v7419_v32 = vld [vmem:[%s9016_s18 + $0x40] sm:$0xff]  }
  0x18   : > { %645 = vst.msk [vmem:[#allocation2 + $0x38] sm:$0xff] %vm493_vm1, %v7280_v17  ;;  %646 = vst.msk [vmem:[#allocation2 + $0x40] sm:$0xff] %vm493_vm1, %v7281_v18  ;;  %v7420_v33 = vld [vmem:[%s9016_s18 + $0x48] sm:$0xff]   ;;  %v7292_v34 = vunpack.c.l.bf16 %v7415_v24  ;;  %v7293_v35 = vunpack.c.h.bf16 %v7415_v24  ;;  %v7296_v36 = vunpack.c.l.bf16 %v7416_v25  ;;  %v7297_v37 = vunpack.c.h.bf16 %v7416_v25  ;;  %v7421_v38 = vld [vmem:[%s9016_s18 + $0x50] sm:$0xff]  }
  0x19   : > { %503 = vst.msk [vmem:[#allocation2 + $0x8] sm:$0xff] %vm493_vm1, %v7268_v20  ;;  %504 = vst.msk [vmem:[#allocation2 + $0x10] sm:$0xff] %vm493_vm1, %v7269_v21  ;;  %v7422_v39 = vld [vmem:[%s9016_s18 + $0x58] sm:$0xff]   ;;  %v7300_v40 = vunpack.c.l.bf16 %v7417_v26  ;;  %v7301_v41 = vunpack.c.h.bf16 %v7417_v26  ;;  %v7304_v42 = vunpack.c.l.bf16 %v7418_v31  ;;  %v7305_v43 = vunpack.c.h.bf16 %v7418_v31  ;;  %v7423_v44 = vld [vmem:[%s9016_s18 + $0x60] sm:$0xff]  }
  0x1a   : > { %505 = vst.msk [vmem:[#allocation2 + $0x18] sm:$0xff] %vm493_vm1, %v7272_v22  ;;  %506 = vst.msk [vmem:[#allocation2 + $0x20] sm:$0xff] %vm493_vm1, %v7273_v23  ;;  %v7424_v45 = vld [vmem:[%s9016_s18 + $0x68] sm:$0xff]   ;;  %v7308_v46 = vunpack.c.l.bf16 %v7419_v32  ;;  %v7309_v47 = vunpack.c.h.bf16 %v7419_v32  ;;  %v7312_v48 = vunpack.c.l.bf16 %v7420_v33  ;;  %v7313_v49 = vunpack.c.h.bf16 %v7420_v33  ;;  %v7425_v50 = vld [vmem:[%s9016_s18 + $0x70] sm:$0xff]  }
  0x1b   : > { %511 = vst.msk [vmem:[#allocation2 + $0x8] sm:$0xff] %vm493_vm1, %v8916_v4  ;;  %512 = vst.msk [vmem:[#allocation2 + $0x10] sm:$0xff] %vm493_vm1, %v8916_v4  ;;  %v7426_v51 = vld [vmem:[%s9016_s18 + $0x78] sm:$0xff]   ;;  %v7316_v52 = vunpack.c.l.bf16 %v7421_v38  ;;  %v7317_v53 = vunpack.c.h.bf16 %v7421_v38  ;;  %v7320_v54 = vunpack.c.l.bf16 %v7422_v39  ;;  %v7321_v55 = vunpack.c.h.bf16 %v7422_v39  ;;  %v7427_v56 = vld [vmem:[%s9016_s18 + $0x80] sm:$0xff]  }
  0x1c   : > { %513 = vst.msk [vmem:[#allocation2 + $0x18] sm:$0xff] %vm493_vm1, %v8916_v4  ;;  %514 = vst.msk [vmem:[#allocation2 + $0x20] sm:$0xff] %vm493_vm1, %v8916_v4  ;;  %v7428_v57 = vld [vmem:[%s9016_s18 + $0x88] sm:$0xff]   ;;  %v7324_v58 = vunpack.c.l.bf16 %v7423_v44  ;;  %v7325_v59 = vunpack.c.h.bf16 %v7423_v44  ;;  %v7328_v60 = vunpack.c.l.bf16 %v7424_v45  ;;  %v7329_v61 = vunpack.c.h.bf16 %v7424_v45  ;;  %v7429_v62 = vld [vmem:[%s9016_s18 + $0x90] sm:$0xff]  }
  0x1d   : > { %647 = vst.msk [vmem:[#allocation2 + $0x48] sm:$0xff] %vm493_vm1, %v7284_v27  ;;  %648 = vst.msk [vmem:[#allocation2 + $0x50] sm:$0xff] %vm493_vm1, %v7285_v28  ;;  %v7430_v63 = vld [vmem:[%s9016_s18 + $0x98] sm:$0xff]   ;;  %v7332_v0 = vunpack.c.l.bf16 %v7425_v50  ;;  %v7333_v1 = vunpack.c.h.bf16 %v7425_v50  ;;  %v7336_v2 = vunpack.c.l.bf16 %v7426_v51  ;;  %v7337_v5 = vunpack.c.h.bf16 %v7426_v51  ;;  %v7431_v7 = vld [vmem:[%s9016_s18 + $0xa0] sm:$0xff]  }
  0x1e   : > { %649 = vst.msk [vmem:[#allocation2 + $0x58] sm:$0xff] %vm493_vm1, %v7288_v29  ;;  %650 = vst.msk [vmem:[#allocation2 + $0x60] sm:$0xff] %vm493_vm1, %v7289_v30  ;;  %v9087_v9 = vld [vmem:[%s9016_s18 + $0xa8] sm:$0xff]   ;;  %v9090_v10 = vld [vmem:[%s9016_s18 + $0xb0] sm:$0xff]   ;;  %v7340_v15 = vunpack.c.l.bf16 %v7427_v56  ;;  %v7341_v16 = vunpack.c.h.bf16 %v7427_v56  ;;  %v7344_v17 = vunpack.c.l.bf16 %v7428_v57  ;;  %v7345_v18 = vunpack.c.h.bf16 %v7428_v57 }
  0x1f   : > { %651 = vst.msk [vmem:[#allocation2 + $0x68] sm:$0xff] %vm493_vm1, %v7292_v34  ;;  %652 = vst.msk [vmem:[#allocation2 + $0x70] sm:$0xff] %vm493_vm1, %v7293_v35  ;;  %v2804_v12 = vld [vmem:[#allocation2 + $0x28] sm:$0xff]  ;;  %v2805_v13 = vld [vmem:[#allocation2 + $0x30] sm:$0xff]  ;;  %v7348_v22 = vunpack.c.l.bf16 %v7429_v62  ;;  %v7349_v23 = vunpack.c.h.bf16 %v7429_v62  ;;  %v7352_v24 = vunpack.c.l.bf16 %v7430_v63  ;;  %v3551_v31 = vsel %vm1021_vm0, %v3453_v8, 0 }
  0x20   : > { %653 = vst.msk [vmem:[#allocation2 + $0x78] sm:$0xff] %vm493_vm1, %v7296_v36  ;;  %654 = vst.msk [vmem:[#allocation2 + $0x80] sm:$0xff] %vm493_vm1, %v7297_v37  ;;  %v2806_v14 = vld [vmem:[#allocation2 + $0x38] sm:$0xff]  ;;  %v2868_v20 = vpack.c.bf16 %v2805_v13, %v2804_v12  ;;  %v2807_v21 = vld [vmem:[#allocation2 + $0x40] sm:$0xff]  ;;  %v7353_v32 = vunpack.c.h.bf16 %v7430_v63  ;;  %v7356_v33 = vunpack.c.l.bf16 %v7431_v7  ;;  %v7357_v6 = vunpack.c.h.bf16 %v7431_v7 }
  0x21   : > { %655 = vst.msk [vmem:[#allocation2 + $0x88] sm:$0xff] %vm493_vm1, %v7300_v40  ;;  %656 = vst.msk [vmem:[#allocation2 + $0x90] sm:$0xff] %vm493_vm1, %v7301_v41  ;;  %v9097_v19 = vld [vmem:[%s9016_s18 + $0xb8] sm:$0xff]   ;;  %v9104_v25 = vld [vmem:[%s9016_s18 + $0xc0] sm:$0xff]   ;;  %v9109_v29 = vpack.c.bf16 %v2807_v21, %v2806_v14  ;;  %v7360_v8 = vunpack.c.l.bf16 %v9087_v9  ;;  %v7361_v38 = vunpack.c.h.bf16 %v9087_v9 }
  0x22   : > { %657 = vst.msk [vmem:[#allocation2 + $0x98] sm:$0xff] %vm493_vm1, %v7304_v42  ;;  %658 = vst.msk [vmem:[#allocation2 + $0xa0] sm:$0xff] %vm493_vm1, %v7305_v43  ;;  %v9107_v26 = vld [vmem:[%s9016_s18 + $0xc8] sm:$0xff]   ;;  %v825_v28 = vld [vmem:[#allocation2 + $0x10] sm:$0xff]  ;;  %8007 = vmatprep.mubr.msk.bf16.mxu0 %vm493_vm1, %v2868_v20  ;;  %v7364_v42 = vunpack.c.l.bf16 %v9090_v10  ;;  %v7365_v43 = vunpack.c.h.bf16 %v9090_v10 }
  0x23   : > { %659 = vst.msk [vmem:[#allocation2 + $0xa8] sm:$0xff] %vm493_vm1, %v7308_v46  ;;  %660 = vst.msk [vmem:[#allocation2 + $0xb0] sm:$0xff] %vm493_vm1, %v7309_v47  ;;  %v824_v27 = vld [vmem:[#allocation2 + $0x8] sm:$0xff]  ;;  %v826_v30 = vld [vmem:[#allocation2 + $0x18] sm:$0xff]  ;;  %8008 = vmatmul.mubr.msk.bf16.vlgmr.msra.gmra.mrb[0].mxu0 %vm493_vm1, %v9109_v29  ;;  %v7368_v47 = vunpack.c.l.bf16 %v9097_v19 }
  0x24   : > { %661 = vst.msk [vmem:[#allocation2 + $0xb8] sm:$0xff] %vm493_vm1, %v7312_v48  ;;  %662 = vst.msk [vmem:[#allocation2 + $0xc0] sm:$0xff] %vm493_vm1, %v7313_v49  ;;  %v888_v34 = vpack.c.bf16 %v825_v28, %v824_v27  ;;  %v827_v35 = vld [vmem:[#allocation2 + $0x20] sm:$0xff]  ;;  %v2808_v36 = vld [vmem:[#allocation2 + $0x48] sm:$0xff]  ;;  %8072 = vmatpush3.bf16.msra.mxu0 %v3551_v31  ;;  %v7369_v48 = vunpack.c.h.bf16 %v9097_v19  ;;  %v7372_v49 = vunpack.c.l.bf16 %v9104_v25 }
  0x25   : > { %663 = vst.msk [vmem:[#allocation2 + $0xc8] sm:$0xff] %vm493_vm1, %v7316_v52  ;;  %664 = vst.msk [vmem:[#allocation2 + $0xd0] sm:$0xff] %vm493_vm1, %v7317_v53  ;;  %v2809_v37 = vld [vmem:[#allocation2 + $0x50] sm:$0xff]  ;;  %v889_v39 = vpack.c.bf16 %v827_v35, %v826_v30  ;;  %v9129_v41 = vld [vmem:[%s10502_s3 + $0xc] sm:$0x3]  ;;  %v7373_v53 = vunpack.c.h.bf16 %v9104_v25 }
  0x26   : > { %665 = vst.msk [vmem:[#allocation2 + $0xd8] sm:$0xff] %vm493_vm1, %v7320_v54  ;;  %666 = vst.msk [vmem:[#allocation2 + $0xe0] sm:$0xff] %vm493_vm1, %v7321_v55  ;;  %v2870_v40 = vpack.c.bf16 %v2809_v37, %v2808_v36  ;;  %v7437_v44 = vld [vmem:[%s9016_s18 + $0xd0] sm:$0xff]   ;;  %7743 = vmatprep.mubr.msk.bf16.mxu1 %vm493_vm1, %v888_v34  ;;  %v2810_v45 = vld [vmem:[#allocation2 + $0x58] sm:$0xff]  ;;  %v7376_v54 = vunpack.c.l.bf16 %v9107_v26  ;;  %v7377_v55 = vunpack.c.h.bf16 %v9107_v26  ;;  %8856 = vmatprep.subr.msk.bf16.mxu0 %vm1021_vm0, %v9129_v41 }
  0x27   : > { %667 = vst.msk [vmem:[#allocation2 + $0xe8] sm:$0xff] %vm493_vm1, %v7324_v58  ;;  %668 = vst.msk [vmem:[#allocation2 + $0xf0] sm:$0xff] %vm493_vm1, %v7325_v59  ;;  %v2811_v46 = vld [vmem:[#allocation2 + $0x60] sm:$0xff]  ;;  %v7438_v50 = vld [vmem:[%s9016_s18 + $0xd8] sm:$0xff]   ;;  %7744 = vmatmul.mubr.msk.bf16.vlgmr.msra.gmra.mrb[0].mxu1 %vm493_vm1, %v889_v39  ;;  %v7380_v56 = vunpack.c.l.bf16 %v7437_v44  ;;  %v7381_v57 = vunpack.c.h.bf16 %v7437_v44 }
  0x28   : > { %669 = vst.msk [vmem:[#allocation2 + $0xf8] sm:$0xff] %vm493_vm1, %v7328_v60  ;;  %670 = vst.msk [vmem:[#allocation2 + $0x100] sm:$0xff] %vm493_vm1, %v7329_v61  ;;  %8011 = vmatprep.mubr.msk.bf16.mxu0 %vm493_vm1, %v2870_v40  ;;  %v2812_v51 = vld [vmem:[#allocation2 + $0x68] sm:$0xff]  ;;  %v2813_v52 = vld [vmem:[#allocation2 + $0x70] sm:$0xff]  ;;  %7808 = vmatpush3.bf16.msra.mxu1 %v9029_v11  ;;  %v2871_v58 = vpack.c.bf16 %v2811_v46, %v2810_v45  ;;  %v7384_v11 = vunpack.c.l.bf16 %v7438_v50  ;;  %v7385_v59 = vunpack.c.h.bf16 %v7438_v50 }
  0x29   : > { %671 = vst.msk [vmem:[#allocation2 + $0x108] sm:$0xff] %vm493_vm1, %v7332_v0  ;;  %672 = vst.msk [vmem:[#allocation2 + $0x110] sm:$0xff] %vm493_vm1, %v7333_v1  ;;  %7747 = vmatprep.mubr.msk.bf16.mxu1 %vm493_vm1, %v2868_v20  ;;  %v2872_v60 = vpack.c.bf16 %v2813_v52, %v2812_v51  ;;  %v2814_v61 = vld [vmem:[#allocation2 + $0x78] sm:$0xff]  ;;  %v2815_v62 = vld [vmem:[#allocation2 + $0x80] sm:$0xff] }
  0x2a   : > { %673 = vst.msk [vmem:[#allocation2 + $0x118] sm:$0xff] %vm493_vm1, %v7336_v2  ;;  %674 = vst.msk [vmem:[#allocation2 + $0x120] sm:$0xff] %vm493_vm1, %v7337_v5  ;;  %v2816_v63 = vld [vmem:[#allocation2 + $0x88] sm:$0xff]  ;;  %v2817_v0 = vld [vmem:[#allocation2 + $0x90] sm:$0xff]  ;;  %v2873_v1 = vpack.c.bf16 %v2815_v62, %v2814_v61 }
  0x2b   : > { %675 = vst.msk [vmem:[#allocation2 + $0x128] sm:$0xff] %vm493_vm1, %v7340_v15  ;;  %676 = vst.msk [vmem:[#allocation2 + $0x130] sm:$0xff] %vm493_vm1, %v7341_v16  ;;  %8012 = vmatmul.mubr.msk.bf16.gmra.mrb[4].mxu0 %vm493_vm1, %v2871_v58  ;;  %v2874_v2 = vpack.c.bf16 %v2817_v0, %v2816_v63  ;;  %v2818_v5 = vld [vmem:[#allocation2 + $0x98] sm:$0xff]  ;;  %v2819_v7 = vld [vmem:[#allocation2 + $0xa0] sm:$0xff] }
  0x2c   : > { %677 = vst.msk [vmem:[#allocation2 + $0x138] sm:$0xff] %vm493_vm1, %v7344_v17  ;;  %678 = vst.msk [vmem:[#allocation2 + $0x140] sm:$0xff] %vm493_vm1, %v7345_v18  ;;  %8015 = vmatprep.mubr.msk.bf16.mxu0 %vm493_vm1, %v2872_v60  ;;  %v2820_v9 = vld [vmem:[#allocation2 + $0xa8] sm:$0xff]  ;;  %v2821_v10 = vld [vmem:[#allocation2 + $0xb0] sm:$0xff]  ;;  %v2875_v12 = vpack.c.bf16 %v2819_v7, %v2818_v5 }
  0x2d   : > { %679 = vst.msk [vmem:[#allocation2 + $0x148] sm:$0xff] %vm493_vm1, %v7348_v22  ;;  %680 = vst.msk [vmem:[#allocation2 + $0x150] sm:$0xff] %vm493_vm1, %v7349_v23  ;;  %v2876_v13 = vpack.c.bf16 %v2821_v10, %v2820_v9  ;;  %v2822_v14 = vld [vmem:[#allocation2 + $0xb8] sm:$0xff]  ;;  %v2823_v15 = vld [vmem:[#allocation2 + $0xc0] sm:$0xff] }
  0x2e   : > { %681 = vst.msk [vmem:[#allocation2 + $0x158] sm:$0xff] %vm493_vm1, %v7352_v24  ;;  %682 = vst.msk [vmem:[#allocation2 + $0x160] sm:$0xff] %vm493_vm1, %v7353_v32  ;;  %v2824_v16 = vld [vmem:[#allocation2 + $0xc8] sm:$0xff]  ;;  %v2825_v17 = vld [vmem:[#allocation2 + $0xd0] sm:$0xff]  ;;  %v2877_v22 = vpack.c.bf16 %v2823_v15, %v2822_v14 }
  0x2f   : > { %683 = vst.msk [vmem:[#allocation2 + $0x168] sm:$0xff] %vm493_vm1, %v7356_v33  ;;  %684 = vst.msk [vmem:[#allocation2 + $0x170] sm:$0xff] %vm493_vm1, %v7357_v6  ;;  %7748 = vmatmul.mubr.msk.bf16.gmra.mrb[4].mxu1 %vm493_vm1, %v9109_v29  ;;  %v7439_v18 = vld [vmem:[%s9016_s18 + $0xe0] sm:$0xff]   ;;  %v7440_v21 = vld [vmem:[%s9016_s18 + $0xe8] sm:$0xff]   ;;  %v2878_v26 = vpack.c.bf16 %v2825_v17, %v2824_v16 }
  0x30   : > { %685 = vst.msk [vmem:[#allocation2 + $0x178] sm:$0xff] %vm493_vm1, %v7360_v8  ;;  %686 = vst.msk [vmem:[#allocation2 + $0x180] sm:$0xff] %vm493_vm1, %v7361_v38  ;;  %7751 = vmatprep.mubr.msk.bf16.mxu1 %vm493_vm1, %v2870_v40  ;;  %v7388_v19 = vunpack.c.l.bf16 %v7439_v18  ;;  %v7389_v20 = vunpack.c.h.bf16 %v7439_v18  ;;  %v7392_v23 = vunpack.c.l.bf16 %v7440_v21  ;;  %v7393_v24 = vunpack.c.h.bf16 %v7440_v21  ;;  %v9183_v25 = vld [vmem:[%s10502_s3 + $0x4] sm:$0x3]  ;;  %v2826_v27 = vld [vmem:[#allocation2 + $0xd8] sm:$0xff] }
  0x31   : > { %687 = vst.msk [vmem:[#allocation2 + $0x188] sm:$0xff] %vm493_vm1, %v7364_v42  ;;  %688 = vst.msk [vmem:[#allocation2 + $0x190] sm:$0xff] %vm493_vm1, %v7365_v43  ;;  %8851 = vmatprep.subr.msk.bf16.mxu1 %vm1021_vm0, %v9183_v25  ;;  %v2827_v28 = vld [vmem:[#allocation2 + $0xe0] sm:$0xff]  ;;  %v2828_v29 = vld [vmem:[#allocation2 + $0xe8] sm:$0xff] }
  0x32   : > { %689 = vst.msk [vmem:[#allocation2 + $0x198] sm:$0xff] %vm493_vm1, %v7368_v47  ;;  %690 = vst.msk [vmem:[#allocation2 + $0x1a0] sm:$0xff] %vm493_vm1, %v7369_v48  ;;  %v2829_v30 = vld [vmem:[#allocation2 + $0xf0] sm:$0xff]  ;;  %v2879_v31 = vpack.c.bf16 %v2827_v28, %v2826_v27  ;;  %v2830_v33 = vld [vmem:[#allocation2 + $0xf8] sm:$0xff] }
  0x33   : > { %691 = vst.msk [vmem:[#allocation2 + $0x1a8] sm:$0xff] %vm493_vm1, %v7372_v49  ;;  %692 = vst.msk [vmem:[#allocation2 + $0x1b0] sm:$0xff] %vm493_vm1, %v7373_v53  ;;  %8016 = vmatmul.mubr.msk.bf16.gmra.mrb[8].mxu0 %vm493_vm1, %v2873_v1  ;;  %v2880_v32 = vpack.c.bf16 %v2829_v30, %v2828_v29  ;;  %v2831_v34 = vld [vmem:[#allocation2 + $0x100] sm:$0xff]  ;;  %v2832_v35 = vld [vmem:[#allocation2 + $0x108] sm:$0xff] }
  0x34   : > { %693 = vst.msk [vmem:[#allocation2 + $0x1b8] sm:$0xff] %vm493_vm1, %v7376_v54  ;;  %694 = vst.msk [vmem:[#allocation2 + $0x1c0] sm:$0xff] %vm493_vm1, %v7377_v55  ;;  %8019 = vmatprep.mubr.msk.bf16.mxu0 %vm493_vm1, %v2874_v2  ;;  %v2833_v36 = vld [vmem:[#allocation2 + $0x110] sm:$0xff]  ;;  %v2881_v37 = vpack.c.bf16 %v2831_v34, %v2830_v33  ;;  %v7442_v40 = vld [vmem:[%s9016_s18 + $0xf8] sm:$0xff]  }
  0x35   : > { %695 = vst.msk [vmem:[#allocation2 + $0x1c8] sm:$0xff] %vm493_vm1, %v7380_v56  ;;  %696 = vst.msk [vmem:[#allocation2 + $0x1d0] sm:$0xff] %vm493_vm1, %v7381_v57  ;;  %v2882_v6 = vpack.c.bf16 %v2833_v36, %v2832_v35  ;;  %v7441_v8 = vld [vmem:[%s9016_s18 + $0xf0] sm:$0xff]   ;;  %v7400_v42 = vunpack.c.l.bf16 %v7442_v40  ;;  %v7401_v43 = vunpack.c.h.bf16 %v7442_v40  ;;  %v9209_v44 = vld [vmem:[%s9203_s9] sm:$0xff]  }
  0x36   : > { %697 = vst.msk [vmem:[#allocation2 + $0x1d8] sm:$0xff] %vm493_vm1, %v7384_v11  ;;  %698 = vst.msk [vmem:[#allocation2 + $0x1e0] sm:$0xff] %vm493_vm1, %v7385_v59  ;;  %v7396_v38 = vunpack.c.l.bf16 %v7441_v8  ;;  %v7397_v39 = vunpack.c.h.bf16 %v7441_v8  ;;  %v2834_v45 = vld [vmem:[#allocation2 + $0x118] sm:$0xff]  ;;  %v2835_v46 = vld [vmem:[#allocation2 + $0x120] sm:$0xff]  ;;  %v7404_v47 = vunpack.c.l.bf16 %v9209_v44  ;;  %v4100_v59 = vsel %vm1021_vm0, %v9129_v41, 0 }
  0x37   : > { %7752 = vmatmul.mubr.msk.bf16.gmra.mrb[8].mxu1 %vm493_vm1, %v2871_v58  ;;  %699 = vst.msk [vmem:[#allocation2 + $0x1e8] sm:$0xff] %vm493_vm1, %v7388_v19  ;;  %700 = vst.msk [vmem:[#allocation2 + $0x1f0] sm:$0xff] %vm493_vm1, %v7389_v20  ;;  %v3353_v48 = vld [vmem:[#allocation2 + $0x29] sm:$0xff]  ;;  %v3354_v49 = vld [vmem:[#allocation2 + $0x31] sm:$0xff]  ;;  %v2883_v50 = vpack.c.bf16 %v2835_v46, %v2834_v45 }
  0x38   : > { %7755 = vmatprep.mubr.msk.bf16.mxu1 %vm493_vm1, %v2872_v60  ;;  %701 = vst.msk [vmem:[#allocation2 + $0x1f8] sm:$0xff] %vm493_vm1, %v7392_v23  ;;  %702 = vst.msk [vmem:[#allocation2 + $0x200] sm:$0xff] %vm493_vm1, %v7393_v24  ;;  %v9222_v51 = vpack.c.bf16 %v3354_v49, %v3353_v48  ;;  %v3355_v52 = vld [vmem:[#allocation2 + $0x39] sm:$0xff]  ;;  %v3356_v53 = vld [vmem:[#allocation2 + $0x41] sm:$0xff] }
  0x39   : > { %703 = vst.msk [vmem:[#allocation2 + $0x208] sm:$0xff] %vm493_vm1, %v7396_v38  ;;  %704 = vst.msk [vmem:[#allocation2 + $0x210] sm:$0xff] %vm493_vm1, %v7397_v39  ;;  %v3357_v54 = vld [vmem:[#allocation2 + $0x49] sm:$0xff]  ;;  %v3358_v55 = vld [vmem:[#allocation2 + $0x51] sm:$0xff]  ;;  %v9229_v56 = vpack.c.bf16 %v3356_v53, %v3355_v52 }
  0x3a   : > { %705 = vst.msk [vmem:[#allocation2 + $0x218] sm:$0xff] %vm493_vm1, %v7400_v42  ;;  %706 = vst.msk [vmem:[#allocation2 + $0x220] sm:$0xff] %vm493_vm1, %v7401_v43  ;;  %v860_v57 = vld [vmem:[#allocation2 + $0x128] sm:$0xff]  ;;  %v861_v58 = vld [vmem:[#allocation2 + $0x130] sm:$0xff]  ;;  %v9231_v11 = vpack.c.bf16 %v3358_v55, %v3357_v54 }
  0x3b   : > { %8020 = vmatmul.mubr.msk.bf16.gmra.mrb[12].mxu0 %vm493_vm1, %v2875_v12  ;;  %715 = vst.msk [vmem:[#allocation2 + $0x228] sm:$0xff] %vm493_vm1, %v7404_v47  ;;  %v906_v60 = vpack.c.bf16 %v861_v58, %v860_v57  ;;  %v9240_v61 = vld [vmem:[%s10502_s3 + $0xc] ss:$0 sps:$4 sm:$0xcc]   ;;  %v3359_v62 = vld [vmem:[#allocation2 + $0x59] sm:$0xff]  ;;  %v3360_v63 = vld [vmem:[#allocation2 + $0x61] sm:$0xff] }
  0x3c   : > { %8023 = vmatprep.mubr.msk.bf16.mxu0 %vm493_vm1, %v2876_v13  ;;  %722 = vst.msk [vmem:[#allocation2 + $0x228] sm:$0xff] %vm493_vm1, %v8916_v4  ;;  %v3361_v0 = vld [vmem:[#allocation2 + $0x69] sm:$0xff]  ;;  %v4555_v41 = vrot.slane %v9240_v61, 2  ;;  %v863_v5 = vld [vmem:[#allocation2 + $0x140] sm:$0xff]  ;;  %v9247_v7 = vpack.c.bf16 %v3360_v63, %v3359_v62  ;;  %v3366_v18 = vld [vmem:[#allocation2 + $0x91] sm:$0xff] }
  0x3d   : > { %v864_v9 = vld [vmem:[#allocation2 + $0x148] sm:$0xff]  ;;  %v865_v10 = vld [vmem:[#allocation2 + $0x150] sm:$0xff]  ;;  %v3363_v15 = vld [vmem:[#allocation2 + $0x79] sm:$0xff] }
  0x3e   : > { %v908_v14 = vpack.c.bf16 %v865_v10, %v864_v9  ;;  %v3364_v16 = vld [vmem:[#allocation2 + $0x81] sm:$0xff]  ;;  %v3365_v17 = vld [vmem:[#allocation2 + $0x89] sm:$0xff]  ;;  %v866_v19 = vld [vmem:[#allocation2 + $0x158] sm:$0xff] }
  0x3f   : > { %7756 = vmatmul.mubr.msk.bf16.gmra.mrb[12].mxu1 %vm493_vm1, %v2873_v1  ;;  %v3362_v1 = vld [vmem:[#allocation2 + $0x71] sm:$0xff]  ;;  %v867_v20 = vld [vmem:[#allocation2 + $0x160] sm:$0xff]  ;;  %v9260_v21 = vpack.c.bf16 %v3364_v16, %v3363_v15  ;;  %v9262_v24 = vpack.c.bf16 %v3366_v18, %v3365_v17  ;;  %v3369_v30 = vld [vmem:[#allocation2 + $0xa9] sm:$0xff] }
  0x40   : > { %7759 = vmatprep.mubr.msk.bf16.mxu1 %vm493_vm1, %v2874_v2  ;;  %v862_v2 = vld [vmem:[#allocation2 + $0x138] sm:$0xff]  ;;  %v869_v23 = vld [vmem:[#allocation2 + $0x170] sm:$0xff]  ;;  %v3368_v29 = vld [vmem:[#allocation2 + $0xa1] sm:$0xff] }
  0x41   : > { %v3367_v28 = vld [vmem:[#allocation2 + $0x99] sm:$0xff]  ;;  %v872_v35 = vld [vmem:[#allocation2 + $0x188] sm:$0xff]  ;;  %v873_v36 = vld [vmem:[#allocation2 + $0x190] sm:$0xff] }
  0x42   : > { %v871_v33 = vld [vmem:[#allocation2 + $0x180] sm:$0xff]  ;;  %v9270_v34 = vpack.c.bf16 %v3368_v29, %v3367_v28  ;;  %v912_v8 = vpack.c.bf16 %v873_v36, %v872_v35  ;;  %v3373_v40 = vld [vmem:[#allocation2 + $0xc9] sm:$0xff]  ;;  %v3374_v42 = vld [vmem:[#allocation2 + $0xd1] sm:$0xff] }
  0x43   : > { %8024 = vmatmul.mubr.msk.bf16.gmra.mrb[16].mxu0 %vm493_vm1, %v2877_v22  ;;  %v3371_v38 = vld [vmem:[#allocation2 + $0xb9] sm:$0xff]  ;;  %v3372_v39 = vld [vmem:[#allocation2 + $0xc1] sm:$0xff]  ;;  %v877_v48 = vld [vmem:[#allocation2 + $0x1b0] sm:$0xff]  ;;  %v9282_v49 = vpack.c.bf16 %v3374_v42, %v3373_v40 }
  0x44   : > { %8027 = vmatprep.mubr.msk.bf16.mxu0 %vm493_vm1, %v2878_v26  ;;  %v874_v43 = vld [vmem:[#allocation2 + $0x198] sm:$0xff]  ;;  %v875_v45 = vld [vmem:[#allocation2 + $0x1a0] sm:$0xff]  ;;  %v9280_v46 = vpack.c.bf16 %v3372_v39, %v3371_v38  ;;  %v876_v47 = vld [vmem:[#allocation2 + $0x1a8] sm:$0xff] }
  0x45   : > { %v914_v52 = vpack.c.bf16 %v877_v48, %v876_v47  ;;  %v3375_v53 = vld [vmem:[#allocation2 + $0xd9] sm:$0xff]  ;;  %v3376_v54 = vld [vmem:[#allocation2 + $0xe1] sm:$0xff]  ;;  %v3377_v55 = vld [vmem:[#allocation2 + $0xe9] sm:$0xff] }
  0x46   : > { %v3378_v57 = vld [vmem:[#allocation2 + $0xf1] sm:$0xff]  ;;  %v880_v62 = vld [vmem:[#allocation2 + $0x1c8] sm:$0xff]  ;;  %v883_v15 = vld [vmem:[#allocation2 + $0x1e0] sm:$0xff] }
  0x47   : > { %7760 = vmatmul.mubr.msk.bf16.gmra.mrb[16].mxu1 %vm493_vm1, %v2875_v12  ;;  %v9252_v12 = vpack.c.bf16 %v3362_v1, %v3361_v0  ;;  %v878_v58 = vld [vmem:[#allocation2 + $0x1b8] sm:$0xff]  ;;  %v881_v63 = vld [vmem:[#allocation2 + $0x1d0] sm:$0xff]  ;;  %v9292_v0 = vpack.c.bf16 %v3378_v57, %v3377_v55  ;;  %v3380_v9 = vld [vmem:[#allocation2 + $0x101] sm:$0xff]  ;;  %v1896_v55 = vsel %vm1021_vm0, %v9183_v25, 0 }
  0x48   : > { %7763 = vmatprep.mubr.msk.bf16.mxu1 %vm493_vm1, %v2876_v13  ;;  %v907_v13 = vpack.c.bf16 %v863_v5, %v862_v2  ;;  %v916_v2 = vpack.c.bf16 %v881_v63, %v880_v62  ;;  %v3379_v5 = vld [vmem:[#allocation2 + $0xf9] sm:$0xff]  ;;  %v3381_v10 = vld [vmem:[#allocation2 + $0x109] sm:$0xff]  ;;  %v3386_v28 = vld [vmem:[#allocation2 + $0x131] sm:$0xff] }
  0x49   : > { %v9300_v16 = vpack.c.bf16 %v3380_v9, %v3379_v5  ;;  %v884_v17 = vld [vmem:[#allocation2 + $0x1e8] sm:$0xff]  ;;  %v885_v18 = vld [vmem:[#allocation2 + $0x1f0] sm:$0xff]  ;;  %v886_v29 = vld [vmem:[#allocation2 + $0x1f8] sm:$0xff] }
  0x4a   : > { %v3388_v38 = vld [vmem:[#allocation2 + $0x141] sm:$0xff]  ;;  %v3389_v39 = vld [vmem:[#allocation2 + $0x149] sm:$0xff]  ;;  %v3390_v40 = vld [vmem:[#allocation2 + $0x151] sm:$0xff] }
  0x4b   : > { %8028 = vmatmul.mubr.msk.bf16.gmra.mrb[20].mxu0 %vm493_vm1, %v2879_v31  ;;  %v729_v42 = vld [vmem:[#allocation2 + $0x17] sm:$0xff]  ;;  %v731_v47 = vld [vmem:[#allocation2 + $0x27] sm:$0xff]  ;;  %v732_v48 = vld [vmem:[#allocation2 + $0x2f] sm:$0xff] }
  0x4c   : > { %8031 = vmatprep.mubr.msk.bf16.mxu0 %vm493_vm1, %v2880_v32  ;;  %v3393_v62 = vld [vmem:[#allocation2 + $0x169] sm:$0xff]  ;;  %v3394_v63 = vld [vmem:[#allocation2 + $0x171] sm:$0xff] }
  0x4d   : > { %v735_v9 = vld [vmem:[#allocation2 + $0x47] sm:$0xff]  ;;  %v736_v25 = vld [vmem:[#allocation2 + $0x4f] sm:$0xff]  ;;  %v765_v61 = vld [vmem:[#allocation2 + $0x137] sm:$0xff] }
  0x4f   : > { %7764 = vmatmul.mubr.msk.bf16.gmra.mrb[20].mxu1 %vm493_vm1, %v2877_v22  ;;  %v868_v22 = vld [vmem:[#allocation2 + $0x168] sm:$0xff] }
  0x50   : > { %7767 = vmatprep.mubr.msk.bf16.mxu1 %vm493_vm1, %v2878_v26  ;;  %v909_v26 = vpack.c.bf16 %v867_v20, %v866_v19  ;;  %v910_v27 = vpack.c.bf16 %v869_v23, %v868_v22  ;;  %v918_v22 = vpack.c.bf16 %v885_v18, %v884_v17  ;;  %v3383_v23 = vld [vmem:[#allocation2 + $0x119] sm:$0xff]  ;;  %v3396_v17 = vld [vmem:[#allocation2 + $0x181] sm:$0xff]  ;;  %v3397_v18 = vld [vmem:[#allocation2 + $0x189] sm:$0xff] }
  0x53   : > { %8032 = vmatmul.mubr.msk.bf16.gmra.mrb[24].mxu0 %vm493_vm1, %v2881_v37 }
  0x54   : > { %8035 = vmatprep.mubr.msk.bf16.mxu0 %vm493_vm1, %v2882_v6 }
  0x57   : > { %7768 = vmatmul.mubr.msk.bf16.gmra.mrb[24].mxu1 %vm493_vm1, %v2879_v31  ;;  %v3370_v31 = vld [vmem:[#allocation2 + $0xb1] sm:$0xff] }
  0x58   : > { %7771 = vmatprep.mubr.msk.bf16.mxu1 %vm493_vm1, %v2880_v32  ;;  %v870_v32 = vld [vmem:[#allocation2 + $0x178] sm:$0xff] }
  0x5b   : > { %8036 = vmatmul.mubr.msk.bf16.gmra.mrb[28].mxu0 %vm493_vm1, %v2883_v50 }
  0x5c   : > { %8073 = vmatprep.mubr.msk.bf16.mxu0 %vm493_vm1, %v9222_v51 }
  0x5f   : > { %7772 = vmatmul.mubr.msk.bf16.gmra.mrb[28].mxu1 %vm493_vm1, %v2881_v37  ;;  %v9272_v37 = vpack.c.bf16 %v3370_v31, %v3369_v30  ;;  %v887_v30 = vld [vmem:[#allocation2 + $0x200] sm:$0xff] }
  0x60   : > { %7775 = vmatprep.mubr.msk.bf16.mxu1 %vm493_vm1, %v2882_v6  ;;  %v911_v6 = vpack.c.bf16 %v871_v33, %v870_v32  ;;  %v727_v32 = vld [vmem:[#allocation2 + $0x7] sm:$0xff]  ;;  %v728_v33 = vld [vmem:[#allocation2 + $0xf] sm:$0xff]  ;;  %v919_v36 = vpack.c.bf16 %v887_v30, %v886_v29 }
  0x63   : > { %8074 = vmatmul.mubr.msk.bf16.vlgmr.msra.gmra.mrb[0].mxu0 %vm493_vm1, %v9229_v56 }
  0x64   : > { %8138 = vmatpush3.bf16.msra.mxu0 %v4100_v59  ;;  %8077 = vmatprep.mubr.msk.bf16.mxu0 %vm493_vm1, %v9231_v11  ;;  %v879_v59 = vld [vmem:[#allocation2 + $0x1c0] sm:$0xff] }
  0x65   : > { %8857 = vmatprep.subr.msk.bf16.mxu0 %vm1021_vm0, %v4555_v41  ;;  %v915_v1 = vpack.c.bf16 %v879_v59, %v878_v58  ;;  %v3391_v58 = vld [vmem:[#allocation2 + $0x159] sm:$0xff]  ;;  %v3392_v59 = vld [vmem:[#allocation2 + $0x161] sm:$0xff] }
  0x66   : > { %v9338_v5 = vpack.c.bf16 %v3392_v59, %v3391_v58  ;;  %v3405_v58 = vld [vmem:[#allocation2 + $0x1c9] sm:$0xff]  ;;  %v3406_v59 = vld [vmem:[#allocation2 + $0x1d1] sm:$0xff] }
  0x67   : > { %7776 = vmatmul.mubr.msk.bf16.gmra.mrb[32].mxu1 %vm493_vm1, %v2883_v50  ;;  %v913_v50 = vpack.c.bf16 %v875_v45, %v874_v43  ;;  %v730_v43 = vld [vmem:[#allocation2 + $0x1f] sm:$0xff] }
  0x68   : > { %7779 = vmatprep.mubr.msk.bf16.mxu1 %vm493_vm1, %v906_v60  ;;  %v9290_v60 = vpack.c.bf16 %v3376_v54, %v3375_v53  ;;  %v792_v53 = vpack.c.bf16 %v730_v43, %v729_v42  ;;  %v793_v54 = vpack.c.bf16 %v732_v48, %v731_v47  ;;  %v743_v42 = vld [vmem:[#allocation2 + $0x87] sm:$0xff]  ;;  %v744_v43 = vld [vmem:[#allocation2 + $0x8f] sm:$0xff] }
  0x6b   : > { %8078 = vmatmul.mubr.msk.bf16.gmra.mrb[4].mxu0 %vm493_vm1, %v9247_v7 }
  0x6c   : > { %8081 = vmatprep.mubr.msk.bf16.mxu0 %vm493_vm1, %v9252_v12 }
  0x6f   : > { %7780 = vmatmul.mubr.msk.bf16.gmra.mrb[36].mxu1 %vm493_vm1, %v907_v13  ;;  %v3382_v13 = vld [vmem:[#allocation2 + $0x111] sm:$0xff] }
  0x70   : > { %7783 = vmatprep.mubr.msk.bf16.mxu1 %vm493_vm1, %v908_v14  ;;  %v882_v14 = vld [vmem:[#allocation2 + $0x1d8] sm:$0xff]  ;;  %v9302_v19 = vpack.c.bf16 %v3382_v13, %v3381_v10  ;;  %v9343_v10 = vpack.c.bf16 %v3394_v63, %v3393_v62 }
  0x71   : > { %v917_v20 = vpack.c.bf16 %v883_v15, %v882_v14  ;;  %v9345_v14 = vpack.c.bf16 %v736_v25, %v735_v9  ;;  %v3395_v15 = vld [vmem:[#allocation2 + $0x179] sm:$0xff]  ;;  %v748_v9 = vld [vmem:[#allocation2 + $0xaf] sm:$0xff]  ;;  %v9388_v25 = vpack.c.bf16 %v3406_v59, %v3405_v58  ;;  %v7405_v59 = vunpack.c.h.bf16 %v9209_v44 }
  0x72   : > { %v745_v62 = vld [vmem:[#allocation2 + $0x97] sm:$0xff]  ;;  %v746_v63 = vld [vmem:[#allocation2 + $0x9f] sm:$0xff] }
  0x73   : > { %8082 = vmatmul.mubr.msk.bf16.gmra.mrb[8].mxu0 %vm493_vm1, %v9260_v21  ;;  %v754_v58 = vld [vmem:[#allocation2 + $0xdf] sm:$0xff]  ;;  %716 = vst.msk [vmem:[#allocation2 + $0x230] sm:$0xff] %vm493_vm1, %v7405_v59  ;;  %v763_v59 = vld [vmem:[#allocation2 + $0x127] sm:$0xff] }
  0x74   : > { %8085 = vmatprep.mubr.msk.bf16.mxu0 %vm493_vm1, %v9262_v24  ;;  %723 = vst.msk [vmem:[#allocation2 + $0x230] sm:$0xff] %vm493_vm1, %v8916_v4 }
  0x77   : > { %7784 = vmatmul.mubr.msk.bf16.gmra.mrb[40].mxu1 %vm493_vm1, %v909_v26  ;;  %v3384_v26 = vld [vmem:[#allocation2 + $0x121] sm:$0xff] }
  0x78   : > { %7787 = vmatprep.mubr.msk.bf16.mxu1 %vm493_vm1, %v910_v27  ;;  %v3385_v27 = vld [vmem:[#allocation2 + $0x129] sm:$0xff]  ;;  %v9310_v31 = vpack.c.bf16 %v3384_v26, %v3383_v23  ;;  %v738_v23 = vld [vmem:[#allocation2 + $0x5f] sm:$0xff]  ;;  %v9354_v26 = vpack.c.bf16 %v3396_v17, %v3395_v15 }
  0x79   : > { %v9312_v35 = vpack.c.bf16 %v3386_v28, %v3385_v27  ;;  %v739_v27 = vld [vmem:[#allocation2 + $0x67] sm:$0xff]  ;;  %v740_v28 = vld [vmem:[#allocation2 + $0x6f] sm:$0xff]  ;;  %v3407_v17 = vld [vmem:[#allocation2 + $0x1d9] sm:$0xff] }
  0x7b   : > { %8086 = vmatmul.mubr.msk.bf16.gmra.mrb[12].mxu0 %vm493_vm1, %v9270_v34 }
  0x7c   : > { %8089 = vmatprep.mubr.msk.bf16.mxu0 %vm493_vm1, %v9272_v37 }
  0x7f   : > { %7788 = vmatmul.mubr.msk.bf16.gmra.mrb[44].mxu1 %vm493_vm1, %v911_v6  ;;  %v791_v6 = vpack.c.bf16 %v728_v33, %v727_v32  ;;  %v9360_v32 = vpack.c.bf16 %v740_v28, %v739_v27  ;;  %v3399_v33 = vld [vmem:[#allocation2 + $0x199] sm:$0xff] }
  0x80   : > { %7791 = vmatprep.mubr.msk.bf16.mxu1 %vm493_vm1, %v912_v8  ;;  %v3387_v8 = vld [vmem:[#allocation2 + $0x139] sm:$0xff] }
  0x81   : > { %v9320_v45 = vpack.c.bf16 %v3388_v38, %v3387_v8  ;;  %v3402_v8 = vld [vmem:[#allocation2 + $0x1b1] sm:$0xff]  ;;  %v750_v27 = vld [vmem:[#allocation2 + $0xbf] sm:$0xff] }
  0x82   : > { %v741_v38 = vld [vmem:[#allocation2 + $0x77] sm:$0xff] }
  0x83   : > { %8090 = vmatmul.mubr.msk.bf16.gmra.mrb[16].mxu0 %vm493_vm1, %v9280_v46 }
  0x84   : > { %8093 = vmatprep.mubr.msk.bf16.mxu0 %vm493_vm1, %v9282_v49 }
  0x87   : > { %7792 = vmatmul.mubr.msk.bf16.gmra.mrb[48].mxu1 %vm493_vm1, %v913_v50  ;;  %v9325_v50 = vld [vmem:[%s10502_s3 + $0x4] ss:$0 sps:$4 sm:$0xcc]  }
  0x88   : > { %7795 = vmatprep.mubr.msk.bf16.mxu1 %vm493_vm1, %v914_v52  ;;  %v9327_v52 = vpack.c.bf16 %v3390_v40, %v3389_v39  ;;  %v2351_v57 = vrot.slane %v9325_v50, 2  ;;  %v742_v39 = vld [vmem:[#allocation2 + $0x7f] sm:$0xff] }
  0x89   : > { %v9374_v48 = vpack.c.bf16 %v742_v39, %v741_v38  ;;  %v3411_v39 = vld [vmem:[#allocation2 + $0x1f9] sm:$0xff] }
  0x8a   : > { %v5561_v50 = vld [vmem:[%s10499_s0 + $0x20] sm:$0xff] }
  0x8b   : > { %8094 = vmatmul.mubr.msk.bf16.gmra.mrb[20].mxu0 %vm493_vm1, %v9290_v60 }
  0x8c   : > { %8097 = vmatprep.mubr.msk.bf16.mxu0 %vm493_vm1, %v9292_v0 }
  0x8f   : > { %7796 = vmatmul.mubr.msk.bf16.gmra.mrb[52].mxu1 %vm493_vm1, %v915_v1  ;;  %v733_v1 = vld [vmem:[#allocation2 + $0x37] sm:$0xff] }
  0x90   : > { %7799 = vmatprep.mubr.msk.bf16.mxu1 %vm493_vm1, %v916_v2  ;;  %v734_v2 = vld [vmem:[#allocation2 + $0x3f] sm:$0xff] }
  0x91   : > { %v794_v13 = vpack.c.bf16 %v734_v2, %v733_v1  ;;  %v747_v2 = vld [vmem:[#allocation2 + $0xa7] sm:$0xff] }
  0x92   : > { %v9392_v15 = vpack.c.bf16 %v748_v9, %v747_v2  ;;  %v755_v2 = vld [vmem:[#allocation2 + $0xe7] sm:$0xff]  ;;  %v756_v9 = vld [vmem:[#allocation2 + $0xef] sm:$0xff] }
  0x93   : > { %8098 = vmatmul.mubr.msk.bf16.gmra.mrb[24].mxu0 %vm493_vm1, %v9300_v16  ;;  %v9429_v44 = vpack.c.bf16 %v756_v9, %v755_v2  ;;  %v4653_v9 = vsel %vm1021_vm0, %v4555_v41, 0  ;;  %v766_v41 = vld [vmem:[#allocation2 + $0x13f] sm:$0xff] }
  0x94   : > { %8101 = vmatprep.mubr.msk.bf16.mxu0 %vm493_vm1, %v9302_v19 }
  0x97   : > { %7800 = vmatmul.mubr.msk.bf16.gmra.mrb[56].mxu1 %vm493_vm1, %v917_v20  ;;  %v3398_v20 = vld [vmem:[#allocation2 + $0x191] sm:$0xff] }
  0x98   : > { %7803 = vmatprep.mubr.msk.bf16.mxu1 %vm493_vm1, %v918_v22  ;;  %v737_v22 = vld [vmem:[#allocation2 + $0x57] sm:$0xff]  ;;  %v9356_v29 = vpack.c.bf16 %v3398_v20, %v3397_v18  ;;  %v3408_v18 = vld [vmem:[#allocation2 + $0x1e1] sm:$0xff]  ;;  %v3409_v20 = vld [vmem:[#allocation2 + $0x1e9] sm:$0xff] }
  0x99   : > { %v9358_v30 = vpack.c.bf16 %v738_v23, %v737_v22  ;;  %v3410_v22 = vld [vmem:[#allocation2 + $0x1f1] sm:$0xff]  ;;  %v9402_v28 = vpack.c.bf16 %v3408_v18, %v3407_v17 }
  0x9a   : > { %v749_v23 = vld [vmem:[#allocation2 + $0xb7] sm:$0xff] }
  0x9b   : > { %8102 = vmatmul.mubr.msk.bf16.gmra.mrb[28].mxu0 %vm493_vm1, %v9310_v31 }
  0x9c   : > { %8105 = vmatprep.mubr.msk.bf16.mxu0 %vm493_vm1, %v9312_v35 }
  0x9f   : > { %7804 = vmatmul.mubr.msk.bf16.gmra.mrb[60].mxu1 %vm493_vm1, %v919_v36  ;;  %v3400_v36 = vld [vmem:[#allocation2 + $0x1a1] sm:$0xff] }
  0xa0   : > { %7809 = vmatprep.mubr.msk.bf16.mxu1 %vm493_vm1, %v791_v6  ;;  %v3401_v6 = vld [vmem:[#allocation2 + $0x1a9] sm:$0xff]  ;;  %v9370_v40 = vpack.c.bf16 %v3400_v36, %v3399_v33 }
  0xa1   : > { %v9372_v47 = vpack.c.bf16 %v3402_v8, %v3401_v6  ;;  %v751_v33 = vld [vmem:[#allocation2 + $0xc7] sm:$0xff]  ;;  %v752_v36 = vld [vmem:[#allocation2 + $0xcf] sm:$0xff]  ;;  %v9404_v6 = vpack.c.bf16 %v3410_v22, %v3409_v20  ;;  %v9406_v8 = vpack.c.bf16 %v750_v27, %v749_v23  ;;  %v3415_v23 = vld [vmem:[#allocation2 + $0x219] sm:$0xff] }
  0xa2   : > { %v9408_v38 = vpack.c.bf16 %v752_v36, %v751_v33  ;;  %v3416_v27 = vld [vmem:[#allocation2 + $0x221] sm:$0xff]  ;;  %v757_v33 = vld [vmem:[#allocation2 + $0xf7] sm:$0xff] }
  0xa3   : > { %8106 = vmatmul.mubr.msk.bf16.gmra.mrb[32].mxu0 %vm493_vm1, %v9320_v45  ;;  %v758_v36 = vld [vmem:[#allocation2 + $0xff] sm:$0xff] }
  0xa4   : > { %8109 = vmatprep.mubr.msk.bf16.mxu0 %vm493_vm1, %v9327_v52 }
  0xa7   : > { %7810 = vmatmul.mubr.msk.bf16.vlgmr.msra.gmra.mrb[0].mxu1 %vm493_vm1, %v792_v53  ;;  %v9376_v53 = vpack.c.bf16 %v744_v43, %v743_v42  ;;  %v3412_v42 = vld [vmem:[#allocation2 + $0x201] sm:$0xff]  ;;  %v3413_v43 = vld [vmem:[#allocation2 + $0x209] sm:$0xff] }
  0xa8   : > { %7874 = vmatpush3.bf16.msra.mxu1 %v1896_v55  ;;  %7813 = vmatprep.mubr.msk.bf16.mxu1 %vm493_vm1, %v793_v54  ;;  %v3403_v54 = vld [vmem:[#allocation2 + $0x1b9] sm:$0xff]  ;;  %v3404_v55 = vld [vmem:[#allocation2 + $0x1c1] sm:$0xff] }
  0xa9   : > { %8852 = vmatprep.subr.msk.bf16.mxu1 %vm1021_vm0, %v2351_v57  ;;  %v9386_v1 = vpack.c.bf16 %v3404_v55, %v3403_v54  ;;  %v3414_v54 = vld [vmem:[#allocation2 + $0x211] sm:$0xff] }
  0xaa   : > { %v753_v55 = vld [vmem:[#allocation2 + $0xd7] sm:$0xff]  ;;  %v3447_v20 = vpack.c.bf16 %v3414_v54, %v3413_v43  ;;  %v760_v43 = vld [vmem:[#allocation2 + $0x10f] sm:$0xff]  ;;  %v9442_v54 = vpack.c.bf16 %v758_v36, %v757_v33  ;;  %v771_v33 = vld [vmem:[#allocation2 + $0x167] sm:$0xff] }
  0xab   : > { %8110 = vmatmul.mubr.msk.bf16.gmra.mrb[36].mxu0 %vm493_vm1, %v9338_v5  ;;  %v9423_v22 = vpack.c.bf16 %v754_v58, %v753_v55  ;;  %v761_v55 = vld [vmem:[#allocation2 + $0x117] sm:$0xff]  ;;  %v762_v58 = vld [vmem:[#allocation2 + $0x11f] sm:$0xff]  ;;  %v772_v36 = vld [vmem:[#allocation2 + $0x16f] sm:$0xff] }
  0xac   : > { %8113 = vmatprep.mubr.msk.bf16.mxu0 %vm493_vm1, %v9343_v10  ;;  %v9453_v2 = vpack.c.bf16 %v762_v58, %v761_v55  ;;  %v776_v55 = vld [vmem:[#allocation2 + $0x18f] sm:$0xff] }
  0xaf   : > { %7814 = vmatmul.mubr.msk.bf16.gmra.mrb[4].mxu1 %vm493_vm1, %v794_v13  ;;  %v9390_v13 = vpack.c.bf16 %v746_v63, %v745_v62  ;;  %v7443_v62 = vld [vmem:[%s9203_s9 + $0x8] sm:$0xff]   ;;  %v9420_v63 = vpack.c.bf16 %v3412_v42, %v3411_v39  ;;  %v3448_v39 = vpack.c.bf16 %v3416_v27, %v3415_v23  ;;  %v770_v27 = vld [vmem:[#allocation2 + $0x15f] sm:$0xff] }
  0xb0   : > { %7817 = vmatprep.mubr.msk.bf16.mxu1 %vm493_vm1, %v9345_v14  ;;  %v7408_v17 = vunpack.c.l.bf16 %v7443_v62  ;;  %v7409_v18 = vunpack.c.h.bf16 %v7443_v62  ;;  %v759_v42 = vld [vmem:[#allocation2 + $0x107] sm:$0xff]  ;;  %v764_v62 = vld [vmem:[#allocation2 + $0x12f] sm:$0xff] }
  0xb2   : > { %717 = vst.msk [vmem:[#allocation2 + $0x238] sm:$0xff] %vm493_vm1, %v7408_v17  ;;  %718 = vst.msk [vmem:[#allocation2 + $0x240] sm:$0xff] %vm493_vm1, %v7409_v18  ;;  %v9458_v17 = vpack.c.bf16 %v764_v62, %v763_v59  ;;  %v768_v18 = vld [vmem:[#allocation2 + $0x14f] sm:$0xff]  ;;  %v779_v62 = vld [vmem:[#allocation2 + $0x1a7] sm:$0xff] }
  0xb3   : > { %8114 = vmatmul.mubr.msk.bf16.gmra.mrb[40].mxu0 %vm493_vm1, %v9354_v26  ;;  %724 = vst.msk [vmem:[#allocation2 + $0x238] sm:$0xff] %vm493_vm1, %v8916_v4  ;;  %725 = vst.msk [vmem:[#allocation2 + $0x240] sm:$0xff] %vm493_vm1, %v8916_v4  ;;  %v9444_v4 = vpack.c.bf16 %v760_v43, %v759_v42  ;;  %v813_v42 = vpack.c.bf16 %v772_v36, %v771_v33  ;;  %v775_v43 = vld [vmem:[#allocation2 + $0x187] sm:$0xff]  ;;  %v788_v36 = vld [vmem:[#allocation2 + $0x1ef] sm:$0xff] }
  0xb4   : > { %8117 = vmatprep.mubr.msk.bf16.mxu0 %vm493_vm1, %v9356_v29  ;;  %v815_v59 = vpack.c.bf16 %v776_v55, %v775_v43  ;;  %v787_v33 = vld [vmem:[#allocation2 + $0x1e7] sm:$0xff]  ;;  %v1703_v55 = vld [vmem:[#allocation2 + $0x11] sm:$0xff] }
  0xb5   : > { %v1702_v43 = vld [vmem:[#allocation2 + $0x9] sm:$0xff] }
  0xb7   : > { %7818 = vmatmul.mubr.msk.bf16.gmra.mrb[8].mxu1 %vm493_vm1, %v9358_v30 }
  0xb8   : > { %7821 = vmatprep.mubr.msk.bf16.mxu1 %vm493_vm1, %v9360_v32 }
  0xbb   : > { %8118 = vmatmul.mubr.msk.bf16.gmra.mrb[44].mxu0 %vm493_vm1, %v9370_v40 }
  0xbc   : > { %8121 = vmatprep.mubr.msk.bf16.mxu0 %vm493_vm1, %v9372_v47 }
  0xbf   : > { %7822 = vmatmul.mubr.msk.bf16.gmra.mrb[12].mxu1 %vm493_vm1, %v9374_v48 }
  0xc0   : > { %7825 = vmatprep.mubr.msk.bf16.mxu1 %vm493_vm1, %v9376_v53 }
  0xc3   : > { %8122 = vmatmul.mubr.msk.bf16.gmra.mrb[48].mxu0 %vm493_vm1, %v9386_v1 }
  0xc4   : > { %8125 = vmatprep.mubr.msk.bf16.mxu0 %vm493_vm1, %v9388_v25 }
  0xc7   : > { %7826 = vmatmul.mubr.msk.bf16.gmra.mrb[16].mxu1 %vm493_vm1, %v9390_v13 }
  0xc8   : > { %7829 = vmatprep.mubr.msk.bf16.mxu1 %vm493_vm1, %v9392_v15 }
  0xcb   : > { %8126 = vmatmul.mubr.msk.bf16.gmra.mrb[52].mxu0 %vm493_vm1, %v9402_v28 }
  0xcc   : > { %8129 = vmatprep.mubr.msk.bf16.mxu0 %vm493_vm1, %v9404_v6 }
  0xcf   : > { %7830 = vmatmul.mubr.msk.bf16.gmra.mrb[20].mxu1 %vm493_vm1, %v9406_v8 }
  0xd0   : > { %7833 = vmatprep.mubr.msk.bf16.mxu1 %vm493_vm1, %v9408_v38 }
  0xd3   : > { %8130 = vmatmul.mubr.msk.bf16.gmra.mrb[56].mxu0 %vm493_vm1, %v9420_v63 }
  0xd4   : > { %8133 = vmatprep.mubr.msk.bf16.mxu0 %vm493_vm1, %v3447_v20  ;;  %v810_v20 = vpack.c.bf16 %v766_v41, %v765_v61 }
  0xd7   : > { %7834 = vmatmul.mubr.msk.bf16.gmra.mrb[24].mxu1 %vm493_vm1, %v9423_v22 }
  0xd8   : > { %7837 = vmatprep.mubr.msk.bf16.mxu1 %vm493_vm1, %v9429_v44 }
  0xdb   : > { %8134 = vmatmul.mubr.msk.bf16.gmra.mrb[60].mxu0 %vm493_vm1, %v3448_v39 }
  0xdc   : > { %8139 = vmatprep.mubr.msk.bf16.mxu0 %vm493_vm1, %v9345_v14  ;;  %v9465_v14 = vld [vmem:[%s10502_s3 + $0x10] sm:$0x3] }
  0xdf   : > { %7838 = vmatmul.mubr.msk.bf16.gmra.mrb[28].mxu1 %vm493_vm1, %v9442_v54 }
  0xe0   : > { %7841 = vmatprep.mubr.msk.bf16.mxu1 %vm493_vm1, %v9444_v4 }
  0xe3   : > { %8140 = vmatmul.mubr.msk.bf16.vlgmr.msra.gmra.mrb[0].mxu0 %vm493_vm1, %v9358_v30  ;;  %v767_v30 = vld [vmem:[#allocation2 + $0x147] sm:$0xff] }
  0xe4   : > { %8204 = vmatpush3.bf16.msra.mxu0 %v4653_v9  ;;  %8143 = vmatprep.mubr.msk.bf16.mxu0 %vm493_vm1, %v9360_v32  ;;  %v811_v23 = vpack.c.bf16 %v768_v18, %v767_v30  ;;  %v769_v32 = vld [vmem:[#allocation2 + $0x157] sm:$0xff]  ;;  %v780_v9 = vld [vmem:[#allocation2 + $0x1af] sm:$0xff]  ;;  %v783_v30 = vld [vmem:[#allocation2 + $0x1c7] sm:$0xff] }
  0xe5   : > { %8858 = vmatprep.subr.msk.bf16.mxu0 %vm1021_vm0, %v9465_v14  ;;  %v812_v39 = vpack.c.bf16 %v770_v27, %v769_v32  ;;  %v817_v41 = vpack.c.bf16 %v780_v9, %v779_v62  ;;  %v784_v18 = vld [vmem:[#allocation2 + $0x1cf] sm:$0xff]  ;;  %v2449_v9 = vsel %vm1021_vm0, %v2351_v57, 0 }
  0xe6   : > { %v819_v27 = vpack.c.bf16 %v784_v18, %v783_v30  ;;  %v5562_v57 = vld [vmem:[%s10499_s0 + $0x28] sm:$0xff]  ;;  %v3968_v30 = vld [vmem:[#allocation2 + $0x237] sm:$0xff] }
  0xe7   : > { %7842 = vmatmul.mubr.msk.bf16.gmra.mrb[32].mxu1 %vm493_vm1, %v9453_v2  ;;  %v4455_v18 = vld [vmem:[#allocation2 + $0x48] sm:$0xff] }
  0xe8   : > { %7845 = vmatprep.mubr.msk.bf16.mxu1 %vm493_vm1, %v9458_v17 }
  0xeb   : > { %8144 = vmatmul.mubr.msk.bf16.gmra.mrb[4].mxu0 %vm493_vm1, %v9374_v48  ;;  %v773_v48 = vld [vmem:[#allocation2 + $0x177] sm:$0xff] }
  0xec   : > { %8147 = vmatprep.mubr.msk.bf16.mxu0 %vm493_vm1, %v9376_v53  ;;  %v774_v53 = vld [vmem:[#allocation2 + $0x17f] sm:$0xff] }
  0xed   : > { %v814_v58 = vpack.c.bf16 %v774_v53, %v773_v48  ;;  %v821_v53 = vpack.c.bf16 %v788_v36, %v787_v33  ;;  %v5570_v33 = vld [vmem:[%s10499_s0 + $0x68] sm:$0xff]  ;;  %v5571_v36 = vld [vmem:[%s10499_s0 + $0x70] sm:$0xff] }
  0xef   : > { %7846 = vmatmul.mubr.msk.bf16.gmra.mrb[36].mxu1 %vm493_vm1, %v810_v20 }
  0xf0   : > { %7849 = vmatprep.mubr.msk.bf16.mxu1 %vm493_vm1, %v811_v23 }
  0xf3   : > { %8148 = vmatmul.mubr.msk.bf16.gmra.mrb[8].mxu0 %vm493_vm1, %v9390_v13  ;;  %v777_v13 = vld [vmem:[#allocation2 + $0x197] sm:$0xff] }
  0xf4   : > { %8151 = vmatprep.mubr.msk.bf16.mxu0 %vm493_vm1, %v9392_v15  ;;  %v778_v15 = vld [vmem:[#allocation2 + $0x19f] sm:$0xff] }
  0xf5   : > { %v816_v61 = vpack.c.bf16 %v778_v15, %v777_v13  ;;  %v1766_v15 = vpack.c.bf16 %v1703_v55, %v1702_v43  ;;  %v5573_v43 = vld [vmem:[%s10499_s0 + $0x80] sm:$0xff] }
  0xf7   : > { %7850 = vmatmul.mubr.msk.bf16.gmra.mrb[40].mxu1 %vm493_vm1, %v812_v39 }
  0xf8   : > { %7853 = vmatprep.mubr.msk.bf16.mxu1 %vm493_vm1, %v813_v42 }
  0xfb   : > { %8152 = vmatmul.mubr.msk.bf16.gmra.mrb[12].mxu0 %vm493_vm1, %v9406_v8  ;;  %v781_v8 = vld [vmem:[#allocation2 + $0x1b7] sm:$0xff] }
  0xfc   : > { %8155 = vmatprep.mubr.msk.bf16.mxu0 %vm493_vm1, %v9408_v38  ;;  %v782_v38 = vld [vmem:[#allocation2 + $0x1bf] sm:$0xff] }
  0xfd   : > { %v818_v32 = vpack.c.bf16 %v782_v38, %v781_v8  ;;  %v5566_v8 = vld [vmem:[%s10499_s0 + $0x48] sm:$0xff]  ;;  %v5567_v38 = vld [vmem:[%s10499_s0 + $0x50] sm:$0xff] }
  0xff   : > { %7854 = vmatmul.mubr.msk.bf16.gmra.mrb[44].mxu1 %vm493_vm1, %v814_v58 }
 0x100   : > { %7857 = vmatprep.mubr.msk.bf16.mxu1 %vm493_vm1, %v815_v59 }
 0x103   : > { %8156 = vmatmul.mubr.msk.bf16.gmra.mrb[16].mxu0 %vm493_vm1, %v9423_v22  ;;  %v785_v22 = vld [vmem:[#allocation2 + $0x1d7] sm:$0xff] }
 0x104   : > { %8159 = vmatprep.mubr.msk.bf16.mxu0 %vm493_vm1, %v9429_v44  ;;  %v786_v44 = vld [vmem:[#allocation2 + $0x1df] sm:$0xff] }
 0x105   : > { %v820_v48 = vpack.c.bf16 %v786_v44, %v785_v22  ;;  %v5569_v22 = vld [vmem:[%s10499_s0 + $0x60] sm:$0xff] }
 0x107   : > { %7858 = vmatmul.mubr.msk.bf16.gmra.mrb[48].mxu1 %vm493_vm1, %v816_v61 }
 0x108   : > { %7861 = vmatprep.mubr.msk.bf16.mxu1 %vm493_vm1, %v817_v41 }
 0x10b   : > { %8160 = vmatmul.mubr.msk.bf16.gmra.mrb[20].mxu0 %vm493_vm1, %v9442_v54  ;;  %v789_v54 = vld [vmem:[#allocation2 + $0x1f7] sm:$0xff] }
 0x10c   : > { %8163 = vmatprep.mubr.msk.bf16.mxu0 %vm493_vm1, %v9444_v4  ;;  %v790_v4 = vld [vmem:[#allocation2 + $0x1ff] sm:$0xff] }
 0x10d   : > { %v822_v13 = vpack.c.bf16 %v790_v4, %v789_v54  ;;  %v4460_v54 = vld [vmem:[#allocation2 + $0x70] sm:$0xff]  ;;  %v5572_v4 = vld [vmem:[%s10499_s0 + $0x78] sm:$0xff] }
 0x10f   : > { %7862 = vmatmul.mubr.msk.bf16.gmra.mrb[52].mxu1 %vm493_vm1, %v818_v32 }
 0x110   : > { %7865 = vmatprep.mubr.msk.bf16.mxu1 %vm493_vm1, %v819_v27 }
 0x113   : > { %8164 = vmatmul.mubr.msk.bf16.gmra.mrb[24].mxu0 %vm493_vm1, %v9453_v2  ;;  %v1704_v2 = vld [vmem:[#allocation2 + $0x19] sm:$0xff] }
 0x114   : > { %8167 = vmatprep.mubr.msk.bf16.mxu0 %vm493_vm1, %v9458_v17  ;;  %v1705_v17 = vld [vmem:[#allocation2 + $0x21] sm:$0xff] }
 0x115   : > { %v1767_v62 = vpack.c.bf16 %v1705_v17, %v1704_v2  ;;  %v5202_v2 = vsel %vm1021_vm0, %v9465_v14, 0  ;;  %v4462_v17 = vld [vmem:[#allocation2 + $0x80] sm:$0xff] }
 0x116   : > { %v5577_v14 = vld [vmem:[%s10499_s0 + $0xa0] sm:$0xff] }
 0x117   : > { %7866 = vmatmul.mubr.msk.bf16.gmra.mrb[56].mxu1 %vm493_vm1, %v820_v48 }
 0x118   : > { %7869 = vmatprep.mubr.msk.bf16.mxu1 %vm493_vm1, %v821_v53 }
 0x11b   : > { %8168 = vmatmul.mubr.msk.bf16.gmra.mrb[28].mxu0 %vm493_vm1, %v810_v20  ;;  %v8891_v20 = vld [vmem:[%s10502_s3 + $0x8] sm:$0x3] }
 0x11c   : > { %8171 = vmatprep.mubr.msk.bf16.mxu0 %vm493_vm1, %v811_v23 }
 0x11f   : > { %7870 = vmatmul.mubr.msk.bf16.gmra.mrb[60].mxu1 %vm493_vm1, %v822_v13 }
 0x120   : > { %7875 = vmatprep.mubr.msk.bf16.mxu1 %vm493_vm1, %v1766_v15  ;;  %v5575_v15 = vld [vmem:[%s10499_s0 + $0x90] sm:$0xff] }
 0x123   : > { %8172 = vmatmul.mubr.msk.bf16.gmra.mrb[32].mxu0 %vm493_vm1, %v812_v39  ;;  %v3964_v39 = vld [vmem:[#allocation2 + $0x217] sm:$0xff] }
 0x124   : > { %8175 = vmatprep.mubr.msk.bf16.mxu0 %vm493_vm1, %v813_v42  ;;  %v3965_v42 = vld [vmem:[#allocation2 + $0x21f] sm:$0xff] }
 0x127   : > { %7876 = vmatmul.mubr.msk.bf16.vlgmr.msra.gmra.mrb[0].mxu1 %vm493_vm1, %v1767_v62  ;;  %v4463_v62 = vld [vmem:[#allocation2 + $0x88] sm:$0xff] }
 0x128   : > { %7940 = vmatpush3.bf16.msra.mxu1 %v2449_v9  ;;  %7879 = vmatprep.mubr.msk.bf16.mxu1 %vm493_vm1, %v9222_v51  ;;  %v8917_v51 = vmov 0   ;;  %v4464_v9 = vld [vmem:[#allocation2 + $0x90] sm:$0xff] }
 0x129   : > { %8854 = vmatprep.subr.msk.bf16.mxu1 %vm1021_vm0, %v8891_v20  ;;  %8885 = vset.pattern.permute.xlu0 %v8917_v51  ;;  %v5576_v20 = vld [vmem:[%s10499_s0 + $0x98] sm:$0xff] }
 0x12a   : > { %8886 = vset.pattern.permute.xlu1 %v8917_v51 }
 0x12b   : > { %8176 = vmatmul.mubr.msk.bf16.gmra.mrb[36].mxu0 %vm493_vm1, %v814_v58  ;;  %v3967_v58 = vld [vmem:[#allocation2 + $0x22f] sm:$0xff] }
 0x12c   : > { %8179 = vmatprep.mubr.msk.bf16.mxu0 %vm493_vm1, %v815_v59  ;;  %v5564_v59 = vld [vmem:[%s10499_s0 + $0x38] sm:$0xff] }
 0x12f   : > { %7880 = vmatmul.mubr.msk.bf16.gmra.mrb[4].mxu1 %vm493_vm1, %v9229_v56  ;;  %v5557_v56 = vld [vmem:[%s10499_s0] sm:$0xff] }
 0x130   : > { %7883 = vmatprep.mubr.msk.bf16.mxu1 %vm493_vm1, %v9231_v11  ;;  %v5559_v11 = vld [vmem:[%s10499_s0 + $0x10] sm:$0xff]  ;;  %5623 = vperm.xlu0 %8885, %v5557_v56   ;;  %v5578_v56 = vld [vmem:[%s10499_s0 + $0xa8] sm:$0xff] }
 0x131   : > { %5633 = vperm.xlu1 %8886, %v5559_v11   ;;  %v5579_v11 = vld [vmem:[%s10499_s0 + $0xb0] sm:$0xff] }
 0x133   : > { %8180 = vmatmul.mubr.msk.bf16.gmra.mrb[40].mxu0 %vm493_vm1, %v816_v61  ;;  %v5565_v61 = vld [vmem:[%s10499_s0 + $0x40] sm:$0xff] }
 0x134   : > { %8183 = vmatprep.mubr.msk.bf16.mxu0 %vm493_vm1, %v817_v41  ;;  %v3999_v41 = vpack.c.bf16 %v3965_v42, %v3964_v39  ;;  %v4469_v39 = vld [vmem:[#allocation2 + $0xb8] sm:$0xff]  ;;  %v4471_v42 = vld [vmem:[#allocation2 + $0xc8] sm:$0xff] }
 0x137   : > { %7884 = vmatmul.mubr.msk.bf16.gmra.mrb[8].mxu1 %vm493_vm1, %v9247_v7  ;;  %v5558_v7 = vld [vmem:[%s10499_s0 + $0x8] sm:$0xff] }
 0x138   : > { %7887 = vmatprep.mubr.msk.bf16.mxu1 %vm493_vm1, %v9252_v12  ;;  %5628 = vperm.xlu0 %8885, %v5558_v7   ;;  %v3962_v12 = vld [vmem:[#allocation2 + $0x207] sm:$0xff]  ;;  %v4465_v7 = vld [vmem:[#allocation2 + $0x98] sm:$0xff] }
 0x13b   : > { %8184 = vmatmul.mubr.msk.bf16.gmra.mrb[44].mxu0 %vm493_vm1, %v818_v32  ;;  %v4456_v32 = vld [vmem:[#allocation2 + $0x50] sm:$0xff] }
 0x13c   : > { %8187 = vmatprep.mubr.msk.bf16.mxu0 %vm493_vm1, %v819_v27  ;;  %5643 = vperm.xlu0 %8885, %v5561_v50   ;;  %v5568_v27 = vld [vmem:[%s10499_s0 + $0x58] sm:$0xff]  ;;  %v5581_v50 = vld [vmem:[%s10499_s0 + $0xc0] sm:$0xff] }
 0x13f   : > { %7888 = vmatmul.mubr.msk.bf16.gmra.mrb[12].mxu1 %vm493_vm1, %v9260_v21  ;;  %v3963_v21 = vld [vmem:[#allocation2 + $0x20f] sm:$0xff] }
 0x140   : > { %7891 = vmatprep.mubr.msk.bf16.mxu1 %vm493_vm1, %v9262_v24  ;;  %v5560_v24 = vld [vmem:[%s10499_s0 + $0x18] sm:$0xff]  ;;  %v3998_v23 = vpack.c.bf16 %v3963_v21, %v3962_v12  ;;  %v4467_v12 = vld [vmem:[#allocation2 + $0xa8] sm:$0xff]  ;;  %v4468_v21 = vld [vmem:[#allocation2 + $0xb0] sm:$0xff] }
 0x141   : > { %5638 = vperm.xlu1 %8886, %v5560_v24   ;;  %v5580_v24 = vld [vmem:[%s10499_s0 + $0xb8] sm:$0xff] }
 0x143   : > { %8188 = vmatmul.mubr.msk.bf16.gmra.mrb[48].mxu0 %vm493_vm1, %v820_v48  ;;  %v4457_v48 = vld [vmem:[#allocation2 + $0x58] sm:$0xff] }
 0x144   : > { %8191 = vmatprep.mubr.msk.bf16.mxu0 %vm493_vm1, %v821_v53  ;;  %v4459_v53 = vld [vmem:[#allocation2 + $0x68] sm:$0xff] }
 0x145   : > { %5648 = vperm.xlu1 %8886, %v5562_v57  }
 0x147   : > { %7892 = vmatmul.mubr.msk.bf16.gmra.mrb[16].mxu1 %vm493_vm1, %v9270_v34  ;;  %v5563_v34 = vld [vmem:[%s10499_s0 + $0x30] sm:$0xff] }
 0x148   : > { %7895 = vmatprep.mubr.msk.bf16.mxu1 %vm493_vm1, %v9272_v37  ;;  %5653 = vperm.xlu0 %8885, %v5563_v34   ;;  %v3966_v37 = vld [vmem:[#allocation2 + $0x227] sm:$0xff]  ;;  %v5583_v34 = vld [vmem:[%s10499_s0 + $0xd0] sm:$0xff] }
 0x149   : > { %5658 = vperm.xlu1 %8886, %v5564_v59   ;;  %v5585_v59 = vld [vmem:[%s10499_s0 + $0xe0] sm:$0xff] }
 0x14b   : > { %8192 = vmatmul.mubr.msk.bf16.gmra.mrb[52].mxu0 %vm493_vm1, %v822_v13  ;;  %v5574_v13 = vld [vmem:[%s10499_s0 + $0x88] sm:$0xff] }
 0x14c   : > { %8195 = vmatprep.mubr.msk.bf16.mxu0 %vm493_vm1, %v3998_v23  ;;  %5663 = vperm.xlu0 %8885, %v5565_v61   ;;  %v5582_v23 = vld [vmem:[%s10499_s0 + $0xc8] sm:$0xff] }
 0x14d   : > { %5668 = vperm.xlu1 %8886, %v5566_v8   ;;  %v5587_v8 = vld [vmem:[%s10499_s0 + $0xf0] sm:$0xff] }
 0x14f   : > { %7896 = vmatmul.mubr.msk.bf16.gmra.mrb[20].mxu1 %vm493_vm1, %v9280_v46  ;;  %v4000_v46 = vpack.c.bf16 %v3967_v58, %v3966_v37  ;;  %v4472_v37 = vld [vmem:[#allocation2 + $0xd0] sm:$0xff]  ;;  %v5584_v58 = vld [vmem:[%s10499_s0 + $0xd8] sm:$0xff] }
 0x150   : > { %7899 = vmatprep.mubr.msk.bf16.mxu1 %vm493_vm1, %v9282_v49  ;;  %5673 = vperm.xlu0 %8885, %v5567_v38   ;;  %v3969_v49 = vld [vmem:[#allocation2 + $0x23f] sm:$0xff]  ;;  %v4475_v38 = vld [vmem:[#allocation2 + $0xe8] sm:$0xff] }
 0x151   : > { %5678 = vperm.xlu1 %8886, %v5568_v27   ;;  %v4001_v44 = vpack.c.bf16 %v3969_v49, %v3968_v30  ;;  %v4476_v30 = vld [vmem:[#allocation2 + $0xf0] sm:$0xff]  ;;  %v5588_v49 = vld [vmem:[%s10499_s0 + $0xf8] sm:$0xff]  ;;  %v5590_v27 = vld [vmem:[%s10499_s0 + $0x108] sm:$0xff] }
 0x153   : > { %8196 = vmatmul.mubr.msk.bf16.gmra.mrb[56].mxu0 %vm493_vm1, %v3999_v41  ;;  %v5586_v41 = vld [vmem:[%s10499_s0 + $0xe8] sm:$0xff] }
 0x154   : > { %8199 = vmatprep.mubr.msk.bf16.mxu0 %vm493_vm1, %v4000_v46  ;;  %5683 = vperm.xlu0 %8885, %v5569_v22   ;;  %v4473_v46 = vld [vmem:[#allocation2 + $0xd8] sm:$0xff]  ;;  %v5591_v22 = vld [vmem:[%s10499_s0 + $0x110] sm:$0xff] }
 0x155   : > { %5688 = vperm.xlu1 %8886, %v5570_v33   ;;  %v4479_v33 = vld [vmem:[#allocation2 + $0x108] sm:$0xff] }
 0x157   : > { %7900 = vmatmul.mubr.msk.bf16.gmra.mrb[24].mxu1 %vm493_vm1, %v9290_v60  ;;  %v4519_v60 = vpack.c.bf16 %v4456_v32, %v4455_v18  ;;  %v5589_v18 = vld [vmem:[%s10499_s0 + $0x100] sm:$0xff] }
 0x158   : > { %7903 = vmatprep.mubr.msk.bf16.mxu1 %vm493_vm1, %v9292_v0  ;;  %5693 = vperm.xlu0 %8885, %v5571_v36   ;;  %v4458_v0 = vld [vmem:[#allocation2 + $0x60] sm:$0xff]  ;;  %v5592_v36 = vld [vmem:[%s10499_s0 + $0x118] sm:$0xff] }
 0x159   : > { %5698 = vperm.xlu1 %8886, %v5572_v4   ;;  %v4520_v55 = vpack.c.bf16 %v4458_v0, %v4457_v48  ;;  %v5593_v48 = vld [vmem:[%s10499_s0 + $0x120] sm:$0xff]  ;;  %v4481_v4 = vld [vmem:[#allocation2 + $0x118] sm:$0xff] }
 0x15b   : > { %8200 = vmatmul.mubr.msk.bf16.gmra.mrb[60].mxu0 %vm493_vm1, %v4001_v44  ;;  %v4477_v44 = vld [vmem:[#allocation2 + $0xf8] sm:$0xff] }
 0x15c   : > { %8205 = vmatprep.mubr.msk.bf16.mxu0 %vm493_vm1, %v4519_v60  ;;  %5703 = vperm.xlu0 %8885, %v5573_v43   ;;  %v4480_v60 = vld [vmem:[#allocation2 + $0x110] sm:$0xff]  ;;  %v4483_v43 = vld [vmem:[#allocation2 + $0x128] sm:$0xff] }
 0x15d   : > { %5708 = vperm.xlu1 %8886, %v5574_v13   ;;  %v5596_v13 = vld [vmem:[%s10499_s0 + $0x138] sm:$0xff] }
 0x15f   : > { %7904 = vmatmul.mubr.msk.bf16.gmra.mrb[28].mxu1 %vm493_vm1, %v9300_v16  ;;  %v4521_v16 = vpack.c.bf16 %v4460_v54, %v4459_v53  ;;  %v5594_v53 = vld [vmem:[%s10499_s0 + $0x128] sm:$0xff]  ;;  %v5595_v54 = vld [vmem:[%s10499_s0 + $0x130] sm:$0xff] }
 0x160   : > { %7907 = vmatprep.mubr.msk.bf16.mxu1 %vm493_vm1, %v9302_v19  ;;  %5713 = vperm.xlu0 %8885, %v5575_v15   ;;  %v4461_v19 = vld [vmem:[#allocation2 + $0x78] sm:$0xff] }
 0x161   : > { %5718 = vperm.xlu1 %8886, %v5576_v20   ;;  %v4522_v51 = vpack.c.bf16 %v4462_v17, %v4461_v19  ;;  %v5599_v19 = vld [vmem:[%s10499_s0 + $0x150] sm:$0xff]  ;;  %v4486_v17 = vld [vmem:[#allocation2 + $0x140] sm:$0xff]  ;;  %v5600_v20 = vld [vmem:[%s10499_s0 + $0x158] sm:$0xff] }
 0x163   : > { %8206 = vmatmul.mubr.msk.bf16.vlgmr.msra.gmra.mrb[0].mxu0 %vm493_vm1, %v4520_v55  ;;  %v4484_v55 = vld [vmem:[#allocation2 + $0x130] sm:$0xff] }
 0x164   : > { %8270 = vmatpush3.bf16.msra.mxu0 %v5202_v2  ;;  %8209 = vmatprep.mubr.msk.bf16.mxu0 %vm493_vm1, %v4521_v16  ;;  %v5597_v16 = vld [vmem:[%s10499_s0 + $0x140] sm:$0xff]  ;;  %v5598_v2 = vld [vmem:[%s10499_s0 + $0x148] sm:$0xff] }
 0x165   : > { %5723 = vperm.xlu0 %8885, %v5577_v14   ;;  %5728 = vperm.xlu1 %8886, %v5578_v56   ;;  %v5601_v14 = vld [vmem:[%s10499_s0 + $0x160] sm:$0xff] }
 0x166   : > { %v2251_v56 = vld [vmem:[#allocation2 + $0x27] sm:$0xff] }
 0x167   : > { %7908 = vmatmul.mubr.msk.bf16.gmra.mrb[32].mxu1 %vm493_vm1, %v9310_v31  ;;  %v4523_v31 = vpack.c.bf16 %v4464_v9, %v4463_v62  ;;  %v4487_v62 = vld [vmem:[#allocation2 + $0x148] sm:$0xff]  ;;  %v4488_v9 = vld [vmem:[#allocation2 + $0x150] sm:$0xff] }
 0x168   : > { %7911 = vmatprep.mubr.msk.bf16.mxu1 %vm493_vm1, %v9312_v35  ;;  %v4466_v35 = vld [vmem:[#allocation2 + $0xa0] sm:$0xff] }
 0x169   : > { %5733 = vperm.xlu0 %8885, %v5579_v11   ;;  %5738 = vperm.xlu1 %8886, %v5580_v24   ;;  %v4524_v57 = vpack.c.bf16 %v4466_v35, %v4465_v7  ;;  %v9756_v11 = vpack.c.bf16 %v4488_v9, %v4487_v62  ;;  %v5603_v7 = vld [vmem:[%s10499_s0 + $0x170] sm:$0xff]  ;;  %v5616_v62 = vld [vmem:[%s10499_s0 + $0x1d8] sm:$0xff]  ;;  %v5617_v9 = vld [vmem:[%s10499_s0 + $0x1e0] sm:$0xff] }
 0x16a   : > { %v4492_v24 = vld [vmem:[#allocation2 + $0x170] sm:$0xff] }
 0x16b   : > { %8210 = vmatmul.mubr.msk.bf16.gmra.mrb[4].mxu0 %vm493_vm1, %v4522_v51 }
 0x16c   : > { %8213 = vmatprep.mubr.msk.bf16.mxu0 %vm493_vm1, %v4523_v31  ;;  %v2252_v31 = vld [vmem:[#allocation2 + $0x2f] sm:$0xff] }
 0x16d   : > { %5743 = vperm.xlu0 %8885, %v5581_v50   ;;  %5748 = vperm.xlu1 %8886, %v5582_v23   ;;  %v2315_v35 = vpack.c.bf16 %v2252_v31, %v2251_v56  ;;  %v5604_v50 = vld [vmem:[%s10499_s0 + $0x178] sm:$0xff]  ;;  %v2267_v31 = vld [vmem:[#allocation2 + $0xa7] sm:$0xff] }
 0x16e   : > { %v2253_v23 = vld [vmem:[#allocation2 + $0x37] sm:$0xff] }
 0x16f   : > { %7912 = vmatmul.mubr.msk.bf16.gmra.mrb[36].mxu1 %vm493_vm1, %v9320_v45  ;;  %v4525_v45 = vpack.c.bf16 %v4468_v21, %v4467_v12  ;;  %v4490_v12 = vld [vmem:[#allocation2 + $0x160] sm:$0xff]  ;;  %v4491_v21 = vld [vmem:[#allocation2 + $0x168] sm:$0xff] }
 0x170   : > { %7915 = vmatprep.mubr.msk.bf16.mxu1 %vm493_vm1, %v9327_v52  ;;  %v4470_v52 = vld [vmem:[#allocation2 + $0xc0] sm:$0xff] }
 0x171   : > { %5753 = vperm.xlu0 %8885, %v5583_v34   ;;  %5758 = vperm.xlu1 %8886, %v5584_v58   ;;  %v4526_v61 = vpack.c.bf16 %v4470_v52, %v4469_v39  ;;  %v2255_v39 = vld [vmem:[#allocation2 + $0x47] sm:$0xff]  ;;  %v2256_v52 = vld [vmem:[#allocation2 + $0x4f] sm:$0xff] }
 0x173   : > { %8214 = vmatmul.mubr.msk.bf16.gmra.mrb[8].mxu0 %vm493_vm1, %v4524_v57  ;;  %v5605_v57 = vld [vmem:[%s10499_s0 + $0x180] sm:$0xff] }
 0x174   : > { %8217 = vmatprep.mubr.msk.bf16.mxu0 %vm493_vm1, %v4525_v45  ;;  %v2254_v45 = vld [vmem:[#allocation2 + $0x3f] sm:$0xff] }
 0x175   : > { %5763 = vperm.xlu0 %8885, %v5585_v59   ;;  %5768 = vperm.xlu1 %8886, %v5586_v41   ;;  %v2316_v58 = vpack.c.bf16 %v2254_v45, %v2253_v23  ;;  %v2317_v59 = vpack.c.bf16 %v2256_v52, %v2255_v39  ;;  %v4494_v41 = vld [vmem:[#allocation2 + $0x180] sm:$0xff]  ;;  %v4508_v23 = vld [vmem:[#allocation2 + $0x1f0] sm:$0xff]  ;;  %v5620_v45 = vld [vmem:[%s10499_s0 + $0x1f8] sm:$0xff] }
 0x176   : > { %v2269_v39 = vld [vmem:[#allocation2 + $0xb7] sm:$0xff]  ;;  %v2270_v52 = vld [vmem:[#allocation2 + $0xbf] sm:$0xff] }
 0x177   : > { %7916 = vmatmul.mubr.msk.bf16.gmra.mrb[40].mxu1 %vm493_vm1, %v9338_v5  ;;  %v4527_v5 = vpack.c.bf16 %v4472_v37, %v4471_v42  ;;  %v9779_v42 = vpack.c.bf16 %v4492_v24, %v4491_v21  ;;  %v5607_v37 = vld [vmem:[%s10499_s0 + $0x190] sm:$0xff]  ;;  %v4505_v24 = vld [vmem:[#allocation2 + $0x1d8] sm:$0xff] }
 0x178   : > { %7919 = vmatprep.mubr.msk.bf16.mxu1 %vm493_vm1, %v9343_v10  ;;  %v4474_v10 = vld [vmem:[#allocation2 + $0xe0] sm:$0xff] }
 0x179   : > { %5773 = vperm.xlu0 %8885, %v5587_v8   ;;  %5778 = vperm.xlu1 %8886, %v5588_v49   ;;  %v4528_v32 = vpack.c.bf16 %v4474_v10, %v4473_v46  ;;  %v4496_v8 = vld [vmem:[#allocation2 + $0x190] sm:$0xff]  ;;  %v5608_v46 = vld [vmem:[%s10499_s0 + $0x198] sm:$0xff]  ;;  %v5609_v10 = vld [vmem:[%s10499_s0 + $0x1a0] sm:$0xff] }
 0x17b   : > { %8218 = vmatmul.mubr.msk.bf16.gmra.mrb[12].mxu0 %vm493_vm1, %v4526_v61  ;;  %v4493_v61 = vld [vmem:[#allocation2 + $0x178] sm:$0xff] }
 0x17c   : > { %8221 = vmatprep.mubr.msk.bf16.mxu0 %vm493_vm1, %v4527_v5  ;;  %v4495_v5 = vld [vmem:[#allocation2 + $0x188] sm:$0xff]  ;;  %v9797_v49 = vpack.c.bf16 %v4494_v41, %v4493_v61  ;;  %v2324_v61 = vpack.c.bf16 %v2270_v52, %v2269_v39 }
 0x17d   : > { %5783 = vperm.xlu0 %8885, %v5589_v18   ;;  %5788 = vperm.xlu1 %8886, %v5590_v27   ;;  %v2259_v18 = vld [vmem:[#allocation2 + $0x67] sm:$0xff]  ;;  %v9799_v27 = vpack.c.bf16 %v4496_v8, %v4495_v5  ;;  %v4509_v5 = vld [vmem:[#allocation2 + $0x1f8] sm:$0xff] }
 0x17e   : > { %v4510_v8 = vld [vmem:[#allocation2 + $0x200] sm:$0xff] }
 0x17f   : > { %7920 = vmatmul.mubr.msk.bf16.gmra.mrb[44].mxu1 %vm493_vm1, %v9354_v26  ;;  %v4529_v26 = vpack.c.bf16 %v4476_v30, %v4475_v38  ;;  %v2257_v38 = vld [vmem:[#allocation2 + $0x57] sm:$0xff]  ;;  %v2258_v30 = vld [vmem:[#allocation2 + $0x5f] sm:$0xff] }
 0x180   : > { %7923 = vmatprep.mubr.msk.bf16.mxu1 %vm493_vm1, %v9356_v29  ;;  %v4478_v29 = vld [vmem:[#allocation2 + $0x100] sm:$0xff] }
 0x181   : > { %5793 = vperm.xlu0 %8885, %v5591_v22   ;;  %5798 = vperm.xlu1 %8886, %v5592_v36   ;;  %v4530_v0 = vpack.c.bf16 %v4478_v29, %v4477_v44  ;;  %v2318_v22 = vpack.c.bf16 %v2258_v30, %v2257_v38  ;;  %v4497_v29 = vld [vmem:[#allocation2 + $0x198] sm:$0xff]  ;;  %v4500_v36 = vld [vmem:[#allocation2 + $0x1b0] sm:$0xff] }
 0x182   : > { %v2273_v38 = vld [vmem:[#allocation2 + $0xd7] sm:$0xff]  ;;  %v2274_v30 = vld [vmem:[#allocation2 + $0xdf] sm:$0xff] }
 0x183   : > { %8222 = vmatmul.mubr.msk.bf16.gmra.mrb[16].mxu0 %vm493_vm1, %v4528_v32  ;;  %v2260_v32 = vld [vmem:[#allocation2 + $0x6f] sm:$0xff] }
 0x184   : > { %8225 = vmatprep.mubr.msk.bf16.mxu0 %vm493_vm1, %v4529_v26  ;;  %v5610_v26 = vld [vmem:[%s10499_s0 + $0x1a8] sm:$0xff]  ;;  %v2319_v44 = vpack.c.bf16 %v2260_v32, %v2259_v18  ;;  %v9870_v18 = vpack.c.bf16 %v4510_v8, %v4509_v5  ;;  %v5017_v5 = vld [vmem:[#allocation2 + $0x91] sm:$0xff] }
 0x185   : > { %5803 = vperm.xlu0 %8885, %v5593_v48   ;;  %5808 = vperm.xlu1 %8886, %v5594_v53   ;;  %v5612_v48 = vld [vmem:[%s10499_s0 + $0x1b8] sm:$0xff]  ;;  %v2275_v32 = vld [vmem:[#allocation2 + $0xe7] sm:$0xff] }
 0x186   : > { %v2261_v53 = vld [vmem:[#allocation2 + $0x77] sm:$0xff] }
 0x187   : > { %7924 = vmatmul.mubr.msk.bf16.gmra.mrb[48].mxu1 %vm493_vm1, %v9370_v40  ;;  %v4531_v40 = vpack.c.bf16 %v4480_v60, %v4479_v33  ;;  %v4498_v33 = vld [vmem:[#allocation2 + $0x1a0] sm:$0xff]  ;;  %v4499_v60 = vld [vmem:[#allocation2 + $0x1a8] sm:$0xff]  ;;  %v2289_v8 = vld [vmem:[#allocation2 + $0x157] sm:$0xff] }
 0x188   : > { %7927 = vmatprep.mubr.msk.bf16.mxu1 %vm493_vm1, %v9372_v47  ;;  %v4482_v47 = vld [vmem:[#allocation2 + $0x120] sm:$0xff] }
 0x189   : > { %5813 = vperm.xlu0 %8885, %v5595_v54   ;;  %5818 = vperm.xlu1 %8886, %v5596_v13   ;;  %v4532_v15 = vpack.c.bf16 %v4482_v47, %v4481_v4  ;;  %v9819_v54 = vpack.c.bf16 %v4498_v33, %v4497_v29  ;;  %v2263_v4 = vld [vmem:[#allocation2 + $0x87] sm:$0xff]  ;;  %v2264_v47 = vld [vmem:[#allocation2 + $0x8f] sm:$0xff]  ;;  %v4513_v29 = vld [vmem:[#allocation2 + $0x218] sm:$0xff] }
 0x18a   : > { %v4514_v33 = vld [vmem:[#allocation2 + $0x220] sm:$0xff] }
 0x18b   : > { %8226 = vmatmul.mubr.msk.bf16.gmra.mrb[20].mxu0 %vm493_vm1, %v4530_v0  ;;  %v5613_v0 = vld [vmem:[%s10499_s0 + $0x1c0] sm:$0xff] }
 0x18c   : > { %8229 = vmatprep.mubr.msk.bf16.mxu0 %vm493_vm1, %v4531_v40  ;;  %v2262_v40 = vld [vmem:[#allocation2 + $0x7f] sm:$0xff] }
 0x18d   : > { %5823 = vperm.xlu0 %8885, %v5597_v16   ;;  %5828 = vperm.xlu1 %8886, %v5598_v2   ;;  %v2320_v13 = vpack.c.bf16 %v2262_v40, %v2261_v53  ;;  %v5615_v16 = vld [vmem:[%s10499_s0 + $0x1d0] sm:$0xff]  ;;  %v4501_v2 = vld [vmem:[#allocation2 + $0x1b8] sm:$0xff]  ;;  %v9880_v53 = vpack.c.bf16 %v4514_v33, %v4513_v29  ;;  %v2279_v40 = vld [vmem:[#allocation2 + $0x107] sm:$0xff] }
 0x18e   : > { %v5019_v29 = vld [vmem:[#allocation2 + $0xa1] sm:$0xff]  ;;  %v5020_v33 = vld [vmem:[#allocation2 + $0xa9] sm:$0xff] }
 0x18f   : > { %7928 = vmatmul.mubr.msk.bf16.gmra.mrb[52].mxu1 %vm493_vm1, %v9386_v1  ;;  %v9733_v1 = vpack.c.bf16 %v4484_v55, %v4483_v43  ;;  %v9821_v43 = vpack.c.bf16 %v4500_v36, %v4499_v60  ;;  %v5614_v55 = vld [vmem:[%s10499_s0 + $0x1c8] sm:$0xff]  ;;  %v4516_v36 = vld [vmem:[#allocation2 + $0x230] sm:$0xff] }
 0x190   : > { %7931 = vmatprep.mubr.msk.bf16.mxu1 %vm493_vm1, %v9388_v25  ;;  %v4485_v25 = vld [vmem:[#allocation2 + $0x138] sm:$0xff]  ;;  %v4515_v60 = vld [vmem:[#allocation2 + $0x228] sm:$0xff] }
 0x191   : > { %5833 = vperm.xlu0 %8885, %v5599_v19   ;;  %5838 = vperm.xlu1 %8886, %v5600_v20   ;;  %v9751_v51 = vpack.c.bf16 %v4486_v17, %v4485_v25  ;;  %v4502_v19 = vld [vmem:[#allocation2 + $0x1c0] sm:$0xff]  ;;  %v4503_v25 = vld [vmem:[#allocation2 + $0x1c8] sm:$0xff]  ;;  %v4504_v17 = vld [vmem:[#allocation2 + $0x1d0] sm:$0xff] }
 0x192   : > { %v2265_v20 = vld [vmem:[#allocation2 + $0x97] sm:$0xff]  ;;  %v9841_v56 = vpack.c.bf16 %v4502_v19, %v4501_v2  ;;  %v5008_v2 = vld [vmem:[#allocation2 + $0x49] sm:$0xff] }
 0x193   : > { %8230 = vmatmul.mubr.msk.bf16.gmra.mrb[24].mxu0 %vm493_vm1, %v4532_v15  ;;  %v2321_v15 = vpack.c.bf16 %v2264_v47, %v2263_v4  ;;  %v2280_v4 = vld [vmem:[#allocation2 + $0x10f] sm:$0xff]  ;;  %v4549_v47 = vpack.c.bf16 %v4516_v36, %v4515_v60  ;;  %v2293_v36 = vld [vmem:[#allocation2 + $0x177] sm:$0xff] }
 0x194   : > { %8233 = vmatprep.mubr.msk.bf16.mxu0 %vm493_vm1, %v9733_v1  ;;  %v5009_v19 = vld [vmem:[#allocation2 + $0x51] sm:$0xff] }
 0x195   : > { %5843 = vperm.xlu0 %8885, %v5601_v14   ;;  %v2266_v14 = vld [vmem:[#allocation2 + $0x9f] sm:$0xff]  ;;  %v5021_v60 = vld [vmem:[#allocation2 + $0xb1] sm:$0xff] }
 0x197   : > { %7932 = vmatmul.mubr.msk.bf16.gmra.mrb[56].mxu1 %vm493_vm1, %v9402_v28  ;;  %v5602_v28 = vld [vmem:[%s10499_s0 + $0x168] sm:$0xff] }
 0x198   : > { %7935 = vmatprep.mubr.msk.bf16.mxu1 %vm493_vm1, %v9404_v6  ;;  %5848 = vperm.xlu1 %8886, %v5602_v28   ;;  %v4489_v6 = vld [vmem:[#allocation2 + $0x158] sm:$0xff]  ;;  %v2268_v28 = vld [vmem:[#allocation2 + $0xaf] sm:$0xff] }
 0x199   : > { %5853 = vperm.xlu0 %8885, %v5603_v7   ;;  %v9774_v34 = vpack.c.bf16 %v4490_v12, %v4489_v6  ;;  %v9843_v7 = vpack.c.bf16 %v4504_v17, %v4503_v25  ;;  %v2322_v6 = vpack.c.bf16 %v2266_v14, %v2265_v20  ;;  %v5619_v12 = vld [vmem:[%s10499_s0 + $0x1f0] sm:$0xff]  ;;  %v2323_v21 = vpack.c.bf16 %v2268_v28, %v2267_v31  ;;  %v2282_v17 = vld [vmem:[#allocation2 + $0x11f] sm:$0xff] }
 0x19a   : > { %v2281_v25 = vld [vmem:[#allocation2 + $0x117] sm:$0xff]  ;;  %v2284_v20 = vld [vmem:[#allocation2 + $0x12f] sm:$0xff]  ;;  %v5072_v14 = vpack.c.bf16 %v5009_v19, %v5008_v2 }
 0x19b   : > { %8234 = vmatmul.mubr.msk.bf16.gmra.mrb[28].mxu0 %vm493_vm1, %v9751_v51  ;;  %v2330_v31 = vpack.c.bf16 %v2282_v17, %v2281_v25  ;;  %v5024_v2 = vld [vmem:[#allocation2 + $0xc9] sm:$0xff]  ;;  %v5025_v19 = vld [vmem:[#allocation2 + $0xd1] sm:$0xff]  ;;  %v2298_v17 = vld [vmem:[#allocation2 + $0x19f] sm:$0xff] }
 0x19c   : > { %8237 = vmatprep.mubr.msk.bf16.mxu0 %vm493_vm1, %v9756_v11  ;;  %5858 = vperm.xlu1 %8886, %v5604_v50   ;;  %v4506_v50 = vld [vmem:[#allocation2 + $0x1e0] sm:$0xff]  ;;  %v2297_v25 = vld [vmem:[#allocation2 + $0x197] sm:$0xff] }
 0x19d   : > { %5863 = vperm.xlu0 %8885, %v5605_v57   ;;  %v4507_v57 = vld [vmem:[#allocation2 + $0x1e8] sm:$0xff] }
 0x19f   : > { %7936 = vmatmul.mubr.msk.bf16.gmra.mrb[60].mxu1 %vm493_vm1, %v9420_v63  ;;  %v5606_v63 = vld [vmem:[%s10499_s0 + $0x188] sm:$0xff] }
 0x1a0   : > { %7941 = vmatprep.mubr.msk.bf16.mxu1 %vm493_vm1, %v2315_v35  ;;  %5868 = vperm.xlu1 %8886, %v5606_v63   ;;  %v5618_v35 = vld [vmem:[%s10499_s0 + $0x1e8] sm:$0xff]  ;;  %v9860_v63 = vpack.c.bf16 %v4506_v50, %v4505_v24  ;;  %v2285_v24 = vld [vmem:[#allocation2 + $0x137] sm:$0xff]  ;;  %v2286_v50 = vld [vmem:[#allocation2 + $0x13f] sm:$0xff] }
 0x1a1   : > { %5873 = vperm.xlu0 %8885, %v5607_v37   ;;  %v2271_v37 = vld [vmem:[#allocation2 + $0xc7] sm:$0xff]  ;;  %v2332_v52 = vpack.c.bf16 %v2286_v50, %v2285_v24  ;;  %v2301_v24 = vld [vmem:[#allocation2 + $0x1b7] sm:$0xff]  ;;  %v2302_v50 = vld [vmem:[#allocation2 + $0x1bf] sm:$0xff] }
 0x1a3   : > { %8238 = vmatmul.mubr.msk.bf16.gmra.mrb[32].mxu0 %vm493_vm1, %v9774_v34 }
 0x1a4   : > { %8241 = vmatprep.mubr.msk.bf16.mxu0 %vm493_vm1, %v9779_v42  ;;  %5878 = vperm.xlu1 %8886, %v5608_v46   ;;  %v4511_v46 = vld [vmem:[#allocation2 + $0x208] sm:$0xff] }
 0x1a5   : > { %5883 = vperm.xlu0 %8885, %v5609_v10   ;;  %v4512_v10 = vld [vmem:[#allocation2 + $0x210] sm:$0xff] }
 0x1a7   : > { %7942 = vmatmul.mubr.msk.bf16.vlgmr.msra.gmra.mrb[0].mxu1 %vm493_vm1, %v2316_v58  ;;  %v2272_v58 = vld [vmem:[#allocation2 + $0xcf] sm:$0xff] }
 0x1a8   : > { %8336 = vmatpush3.bf16.msra.mxu1 %v8989_v3  ;;  %7945 = vmatprep.mubr.msk.bf16.mxu1 %vm493_vm1, %v2317_v59  ;;  %v5611_v3 = vld [vmem:[%s10499_s0 + $0x1b0] sm:$0xff]  ;;  %v9862_v59 = vpack.c.bf16 %v4508_v23, %v4507_v57  ;;  %v2325_v41 = vpack.c.bf16 %v2272_v58, %v2271_v37  ;;  %v2287_v23 = vld [vmem:[#allocation2 + $0x147] sm:$0xff]  ;;  %v5014_v58 = vld [vmem:[#allocation2 + $0x79] sm:$0xff] }
 0x1a9   : > { %5888 = vperm.xlu1 %8886, %v5610_v26   ;;  %5893 = vperm.xlu0 %8885, %v5611_v3   ;;  %v2276_v26 = vld [vmem:[#allocation2 + $0xef] sm:$0xff]  ;;  %v2326_v3 = vpack.c.bf16 %v2274_v30, %v2273_v38  ;;  %v2291_v38 = vld [vmem:[#allocation2 + $0x167] sm:$0xff] }
 0x1aa   : > { %v2292_v30 = vld [vmem:[#allocation2 + $0x16f] sm:$0xff] }
 0x1ab   : > { %8242 = vmatmul.mubr.msk.bf16.gmra.mrb[36].mxu0 %vm493_vm1, %v9797_v49 }
 0x1ac   : > { %8245 = vmatprep.mubr.msk.bf16.mxu0 %vm493_vm1, %v9799_v27 }
 0x1ad   : > { %5898 = vperm.xlu1 %8886, %v5612_v48   ;;  %5903 = vperm.xlu0 %8885, %v5613_v0   ;;  %v2277_v48 = vld [vmem:[#allocation2 + $0xf7] sm:$0xff]  ;;  %v2278_v0 = vld [vmem:[#allocation2 + $0xff] sm:$0xff] }
 0x1af   : > { %7946 = vmatmul.mubr.msk.bf16.gmra.mrb[4].mxu1 %vm493_vm1, %v2318_v22  ;;  %v9872_v22 = vpack.c.bf16 %v4512_v10, %v4511_v46  ;;  %v2290_v46 = vld [vmem:[#allocation2 + $0x15f] sm:$0xff] }
 0x1b0   : > { %7949 = vmatprep.mubr.msk.bf16.mxu1 %vm493_vm1, %v2319_v44  ;;  %v2327_v44 = vpack.c.bf16 %v2276_v26, %v2275_v32  ;;  %v2334_v26 = vpack.c.bf16 %v2290_v46, %v2289_v8  ;;  %v2305_v8 = vld [vmem:[#allocation2 + $0x1d7] sm:$0xff]  ;;  %v2306_v46 = vld [vmem:[#allocation2 + $0x1df] sm:$0xff] }
 0x1b1   : > { %5908 = vperm.xlu1 %8886, %v5614_v55   ;;  %5913 = vperm.xlu0 %8885, %v5615_v16   ;;  %v2328_v55 = vpack.c.bf16 %v2278_v0, %v2277_v48  ;;  %v4517_v16 = vld [vmem:[#allocation2 + $0x238] sm:$0xff] }
 0x1b2   : > { %v2294_v48 = vld [vmem:[#allocation2 + $0x17f] sm:$0xff] }
 0x1b3   : > { %8246 = vmatmul.mubr.msk.bf16.gmra.mrb[40].mxu0 %vm493_vm1, %v9819_v54 }
 0x1b4   : > { %8249 = vmatprep.mubr.msk.bf16.mxu0 %vm493_vm1, %v9821_v43 }
 0x1b5   : > { %5918 = vperm.xlu1 %8886, %v5616_v62   ;;  %5923 = vperm.xlu0 %8885, %v5617_v9   ;;  %v2283_v9 = vld [vmem:[#allocation2 + $0x127] sm:$0xff] }
 0x1b6   : > { %v2331_v28 = vpack.c.bf16 %v2284_v20, %v2283_v9  ;;  %v2299_v9 = vld [vmem:[#allocation2 + $0x1a7] sm:$0xff]  ;;  %v2300_v20 = vld [vmem:[#allocation2 + $0x1af] sm:$0xff] }
 0x1b7   : > { %7950 = vmatmul.mubr.msk.bf16.gmra.mrb[8].mxu1 %vm493_vm1, %v2320_v13  ;;  %v2329_v13 = vpack.c.bf16 %v2280_v4, %v2279_v40  ;;  %v2295_v40 = vld [vmem:[#allocation2 + $0x187] sm:$0xff]  ;;  %v2296_v4 = vld [vmem:[#allocation2 + $0x18f] sm:$0xff] }
 0x1b8   : > { %7953 = vmatprep.mubr.msk.bf16.mxu1 %vm493_vm1, %v2321_v15  ;;  %v4518_v15 = vld [vmem:[#allocation2 + $0x240] sm:$0xff] }
 0x1b9   : > { %5928 = vperm.xlu1 %8886, %v5618_v35   ;;  %5933 = vperm.xlu0 %8885, %v5619_v12   ;;  %v4550_v62 = vpack.c.bf16 %v4518_v15, %v4517_v16  ;;  %v5010_v35 = vld [vmem:[#allocation2 + $0x59] sm:$0xff]  ;;  %v5012_v12 = vld [vmem:[#allocation2 + $0x69] sm:$0xff]  ;;  %v5023_v15 = vld [vmem:[#allocation2 + $0xc1] sm:$0xff] }
 0x1ba   : > { %v5022_v16 = vld [vmem:[#allocation2 + $0xb9] sm:$0xff] }
 0x1bb   : > { %8250 = vmatmul.mubr.msk.bf16.gmra.mrb[44].mxu0 %vm493_vm1, %v9841_v56 }
 0x1bc   : > { %8253 = vmatprep.mubr.msk.bf16.mxu0 %vm493_vm1, %v9843_v7 }
 0x1bd   : > { %5938 = vperm.xlu1 %8886, %v5620_v45   ;;  %v2288_v45 = vld [vmem:[#allocation2 + $0x14f] sm:$0xff] }
 0x1be   : > { %v2333_v37 = vpack.c.bf16 %v2288_v45, %v2287_v23  ;;  %v2303_v23 = vld [vmem:[#allocation2 + $0x1c7] sm:$0xff]  ;;  %v2304_v45 = vld [vmem:[#allocation2 + $0x1cf] sm:$0xff] }
 0x1bf   : > { %7954 = vmatmul.mubr.msk.bf16.gmra.mrb[12].mxu1 %vm493_vm1, %v2322_v6  ;;  %v5011_v6 = vld [vmem:[#allocation2 + $0x61] sm:$0xff] }
 0x1c0   : > { %7957 = vmatprep.mubr.msk.bf16.mxu1 %vm493_vm1, %v2323_v21  ;;  %v5013_v21 = vld [vmem:[#allocation2 + $0x71] sm:$0xff]  ;;  %v5073_v57 = vpack.c.bf16 %v5011_v6, %v5010_v35  ;;  %v5026_v35 = vld [vmem:[#allocation2 + $0xd9] sm:$0xff]  ;;  %v5027_v6 = vld [vmem:[#allocation2 + $0xe1] sm:$0xff] }
 0x1c1   : > { %v5074_v39 = vpack.c.bf16 %v5013_v21, %v5012_v12  ;;  %v5028_v12 = vld [vmem:[#allocation2 + $0xe9] sm:$0xff]  ;;  %v5029_v21 = vld [vmem:[#allocation2 + $0xf1] sm:$0xff] }
 0x1c3   : > { %8254 = vmatmul.mubr.msk.bf16.gmra.mrb[48].mxu0 %vm493_vm1, %v9860_v63 }
 0x1c4   : > { %8257 = vmatprep.mubr.msk.bf16.mxu0 %vm493_vm1, %v9862_v59 }
 0x1c7   : > { %7958 = vmatmul.mubr.msk.bf16.gmra.mrb[16].mxu1 %vm493_vm1, %v2324_v61  ;;  %v5015_v61 = vld [vmem:[#allocation2 + $0x81] sm:$0xff] }
 0x1c8   : > { %7961 = vmatprep.mubr.msk.bf16.mxu1 %vm493_vm1, %v2325_v41  ;;  %v5016_v41 = vld [vmem:[#allocation2 + $0x89] sm:$0xff]  ;;  %v5075_v10 = vpack.c.bf16 %v5015_v61, %v5014_v58  ;;  %v5030_v58 = vld [vmem:[#allocation2 + $0xf9] sm:$0xff]  ;;  %v5031_v61 = vld [vmem:[#allocation2 + $0x101] sm:$0xff] }
 0x1c9   : > { %v5076_v32 = vpack.c.bf16 %v5017_v5, %v5016_v41  ;;  %v5032_v41 = vld [vmem:[#allocation2 + $0x109] sm:$0xff]  ;;  %v5033_v5 = vld [vmem:[#allocation2 + $0x111] sm:$0xff] }
 0x1cb   : > { %8258 = vmatmul.mubr.msk.bf16.gmra.mrb[52].mxu0 %vm493_vm1, %v9870_v18 }
 0x1cc   : > { %8261 = vmatprep.mubr.msk.bf16.mxu0 %vm493_vm1, %v9872_v22 }
 0x1cf   : > { %7962 = vmatmul.mubr.msk.bf16.gmra.mrb[20].mxu1 %vm493_vm1, %v2326_v3  ;;  %v2335_v3 = vpack.c.bf16 %v2292_v30, %v2291_v38  ;;  %v2307_v38 = vld [vmem:[#allocation2 + $0x1e7] sm:$0xff]  ;;  %v2308_v30 = vld [vmem:[#allocation2 + $0x1ef] sm:$0xff] }
 0x1d0   : > { %7965 = vmatprep.mubr.msk.bf16.mxu1 %vm493_vm1, %v2327_v44  ;;  %v5018_v44 = vld [vmem:[#allocation2 + $0x99] sm:$0xff] }
 0x1d1   : > { %v5077_v0 = vpack.c.bf16 %v5019_v29, %v5018_v44  ;;  %v5034_v44 = vld [vmem:[#allocation2 + $0x119] sm:$0xff]  ;;  %v5035_v29 = vld [vmem:[#allocation2 + $0x121] sm:$0xff] }
 0x1d3   : > { %8262 = vmatmul.mubr.msk.bf16.gmra.mrb[56].mxu0 %vm493_vm1, %v9880_v53 }
 0x1d4   : > { %8265 = vmatprep.mubr.msk.bf16.mxu0 %vm493_vm1, %v4549_v47  ;;  %v5078_v47 = vpack.c.bf16 %v5021_v60, %v5020_v33  ;;  %v5036_v33 = vld [vmem:[#allocation2 + $0x129] sm:$0xff]  ;;  %v5037_v60 = vld [vmem:[#allocation2 + $0x131] sm:$0xff] }
 0x1d7   : > { %7966 = vmatmul.mubr.msk.bf16.gmra.mrb[24].mxu1 %vm493_vm1, %v2328_v55  ;;  %v2336_v55 = vpack.c.bf16 %v2294_v48, %v2293_v36  ;;  %v2309_v36 = vld [vmem:[#allocation2 + $0x1f7] sm:$0xff]  ;;  %v2310_v48 = vld [vmem:[#allocation2 + $0x1ff] sm:$0xff] }
 0x1d8   : > { %7969 = vmatprep.mubr.msk.bf16.mxu1 %vm493_vm1, %v2329_v13  ;;  %v2337_v13 = vpack.c.bf16 %v2296_v4, %v2295_v40  ;;  %v2311_v40 = vld [vmem:[#allocation2 + $0x207] sm:$0xff]  ;;  %v2312_v4 = vld [vmem:[#allocation2 + $0x20f] sm:$0xff] }
 0x1db   : > { %8266 = vmatmul.mubr.msk.bf16.gmra.mrb[60].mxu0 %vm493_vm1, %v4550_v62  ;;  %v5079_v62 = vpack.c.bf16 %v5023_v15, %v5022_v16  ;;  %v5038_v16 = vld [vmem:[#allocation2 + $0x139] sm:$0xff]  ;;  %v5039_v15 = vld [vmem:[#allocation2 + $0x141] sm:$0xff] }
 0x1dc   : > { %8271 = vmatprep.mubr.msk.bf16.mxu0 %vm493_vm1, %v5072_v14  ;;  %v5080_v14 = vpack.c.bf16 %v5025_v19, %v5024_v2  ;;  %v5040_v2 = vld [vmem:[#allocation2 + $0x149] sm:$0xff]  ;;  %v5041_v19 = vld [vmem:[#allocation2 + $0x151] sm:$0xff] }
 0x1df   : > { %7970 = vmatmul.mubr.msk.bf16.gmra.mrb[28].mxu1 %vm493_vm1, %v2330_v31  ;;  %v2338_v31 = vpack.c.bf16 %v2298_v17, %v2297_v25  ;;  %v2313_v25 = vld [vmem:[#allocation2 + $0x217] sm:$0xff]  ;;  %v2314_v17 = vld [vmem:[#allocation2 + $0x21f] sm:$0xff] }
 0x1e0   : > { %7973 = vmatprep.mubr.msk.bf16.mxu1 %vm493_vm1, %v2331_v28  ;;  %v2339_v28 = vpack.c.bf16 %v2300_v20, %v2299_v9  ;;  %v5088_v9 = vpack.c.bf16 %v5041_v19, %v5040_v2  ;;  %v2346_v20 = vpack.c.bf16 %v2314_v17, %v2313_v25 }
 0x1e3   : > { %8272 = vmatmul.mubr.msk.bf16.vlgmr.msra.gmra.mrb[0].mxu0 %vm493_vm1, %v5073_v57  ;;  %v5081_v57 = vpack.c.bf16 %v5027_v6, %v5026_v35  ;;  %v5045_v35 = vld [vmem:[#allocation2 + $0x171] sm:$0xff] }
 0x1e4   : > { %8275 = vmatprep.mubr.msk.bf16.mxu0 %vm493_vm1, %v5074_v39  ;;  %v5082_v39 = vpack.c.bf16 %v5029_v21, %v5028_v12  ;;  %v5046_v21 = vld [vmem:[#allocation2 + $0x179] sm:$0xff] }
 0x1e7   : > { %7974 = vmatmul.mubr.msk.bf16.gmra.mrb[32].mxu1 %vm493_vm1, %v2332_v52  ;;  %v2340_v52 = vpack.c.bf16 %v2302_v50, %v2301_v24  ;;  %v5047_v24 = vld [vmem:[#allocation2 + $0x181] sm:$0xff]  ;;  %v5048_v50 = vld [vmem:[#allocation2 + $0x189] sm:$0xff] }
 0x1e8   : > { %7977 = vmatprep.mubr.msk.bf16.mxu1 %vm493_vm1, %v2333_v37  ;;  %v2341_v37 = vpack.c.bf16 %v2304_v45, %v2303_v23  ;;  %v5091_v23 = vpack.c.bf16 %v5047_v24, %v5046_v21 }
 0x1eb   : > { %8276 = vmatmul.mubr.msk.bf16.gmra.mrb[4].mxu0 %vm493_vm1, %v5075_v10  ;;  %v5083_v10 = vpack.c.bf16 %v5031_v61, %v5030_v58  ;;  %v5055_v61 = vld [vmem:[#allocation2 + $0x1c1] sm:$0xff] }
 0x1ec   : > { %8279 = vmatprep.mubr.msk.bf16.mxu0 %vm493_vm1, %v5076_v32  ;;  %v5084_v32 = vpack.c.bf16 %v5033_v5, %v5032_v41  ;;  %v5056_v41 = vld [vmem:[#allocation2 + $0x1c9] sm:$0xff]  ;;  %v5057_v5 = vld [vmem:[#allocation2 + $0x1d1] sm:$0xff] }
 0x1ef   : > { %7978 = vmatmul.mubr.msk.bf16.gmra.mrb[36].mxu1 %vm493_vm1, %v2334_v26  ;;  %v2342_v26 = vpack.c.bf16 %v2306_v46, %v2305_v8  ;;  %v5096_v8 = vpack.c.bf16 %v5057_v5, %v5056_v41  ;;  %v5059_v46 = vld [vmem:[#allocation2 + $0x1e1] sm:$0xff] }
 0x1f0   : > { %7981 = vmatprep.mubr.msk.bf16.mxu1 %vm493_vm1, %v2335_v3  ;;  %v2343_v3 = vpack.c.bf16 %v2308_v30, %v2307_v38  ;;  %v5061_v38 = vld [vmem:[#allocation2 + $0x1f1] sm:$0xff] }
 0x1f3   : > { %8280 = vmatmul.mubr.msk.bf16.gmra.mrb[8].mxu0 %vm493_vm1, %v5077_v0  ;;  %v5085_v0 = vpack.c.bf16 %v5035_v29, %v5034_v44  ;;  %v5067_v29 = vld [vmem:[#allocation2 + $0x221] sm:$0xff] }
 0x1f4   : > { %8283 = vmatprep.mubr.msk.bf16.mxu0 %vm493_vm1, %v5078_v47  ;;  %v5086_v47 = vpack.c.bf16 %v5037_v60, %v5036_v33  ;;  %v5068_v33 = vld [vmem:[#allocation2 + $0x229] sm:$0xff]  ;;  %v5069_v60 = vld [vmem:[#allocation2 + $0x231] sm:$0xff] }
 0x1f7   : > { %7982 = vmatmul.mubr.msk.bf16.gmra.mrb[40].mxu1 %vm493_vm1, %v2336_v55  ;;  %v2344_v55 = vpack.c.bf16 %v2310_v48, %v2309_v36  ;;  %v5102_v36 = vpack.c.bf16 %v5069_v60, %v5068_v33  ;;  %v5071_v48 = vld [vmem:[#allocation2 + $0x241] sm:$0xff] }
 0x1f8   : > { %7985 = vmatprep.mubr.msk.bf16.mxu1 %vm493_vm1, %v2337_v13  ;;  %v2345_v13 = vpack.c.bf16 %v2312_v4, %v2311_v40 }
 0x1fb   : > { %8284 = vmatmul.mubr.msk.bf16.gmra.mrb[12].mxu0 %vm493_vm1, %v5079_v62  ;;  %v5087_v62 = vpack.c.bf16 %v5039_v15, %v5038_v16 }
 0x1fc   : > { %8287 = vmatprep.mubr.msk.bf16.mxu0 %vm493_vm1, %v5080_v14  ;;  %v5042_v14 = vld [vmem:[#allocation2 + $0x159] sm:$0xff] }
 0x1ff   : > { %7986 = vmatmul.mubr.msk.bf16.gmra.mrb[44].mxu1 %vm493_vm1, %v2338_v31  ;;  %v5043_v31 = vld [vmem:[#allocation2 + $0x161] sm:$0xff] }
 0x200   : > { %7989 = vmatprep.mubr.msk.bf16.mxu1 %vm493_vm1, %v2339_v28  ;;  %v5044_v28 = vld [vmem:[#allocation2 + $0x169] sm:$0xff]  ;;  %v5089_v6 = vpack.c.bf16 %v5043_v31, %v5042_v14 }
 0x201   : > { %v5090_v12 = vpack.c.bf16 %v5045_v35, %v5044_v28 }
 0x203   : > { %8288 = vmatmul.mubr.msk.bf16.gmra.mrb[16].mxu0 %vm493_vm1, %v5081_v57  ;;  %v5049_v57 = vld [vmem:[#allocation2 + $0x191] sm:$0xff] }
 0x204   : > { %8291 = vmatprep.mubr.msk.bf16.mxu0 %vm493_vm1, %v5082_v39  ;;  %v5092_v45 = vpack.c.bf16 %v5049_v57, %v5048_v50  ;;  %v5051_v39 = vld [vmem:[#allocation2 + $0x1a1] sm:$0xff] }
 0x207   : > { %7990 = vmatmul.mubr.msk.bf16.gmra.mrb[48].mxu1 %vm493_vm1, %v2340_v52  ;;  %v5052_v52 = vld [vmem:[#allocation2 + $0x1a9] sm:$0xff] }
 0x208   : > { %7993 = vmatprep.mubr.msk.bf16.mxu1 %vm493_vm1, %v2341_v37  ;;  %v5053_v37 = vld [vmem:[#allocation2 + $0x1b1] sm:$0xff] }
 0x209   : > { %v5094_v58 = vpack.c.bf16 %v5053_v37, %v5052_v52 }
 0x20b   : > { %8292 = vmatmul.mubr.msk.bf16.gmra.mrb[20].mxu0 %vm493_vm1, %v5083_v10  ;;  %v5060_v10 = vld [vmem:[#allocation2 + $0x1e9] sm:$0xff] }
 0x20c   : > { %8295 = vmatprep.mubr.msk.bf16.mxu0 %vm493_vm1, %v5084_v32  ;;  %v5098_v30 = vpack.c.bf16 %v5061_v38, %v5060_v10  ;;  %v5063_v32 = vld [vmem:[#allocation2 + $0x201] sm:$0xff] }
 0x20f   : > { %7994 = vmatmul.mubr.msk.bf16.gmra.mrb[52].mxu1 %vm493_vm1, %v2342_v26  ;;  %v5064_v26 = vld [vmem:[#allocation2 + $0x209] sm:$0xff] }
 0x210   : > { %7997 = vmatprep.mubr.msk.bf16.mxu1 %vm493_vm1, %v2343_v3  ;;  %v5065_v3 = vld [vmem:[#allocation2 + $0x211] sm:$0xff] }
 0x211   : > { %v5100_v44 = vpack.c.bf16 %v5065_v3, %v5064_v26 }
 0x213   : > { %8296 = vmatmul.mubr.msk.bf16.gmra.mrb[24].mxu0 %vm493_vm1, %v5085_v0  ;;  %v5634_v0 = vpop.permute.xlu1 %5633 }
 0x214   : > { %8299 = vmatprep.mubr.msk.bf16.mxu0 %vm493_vm1, %v5086_v47 }
 0x217   : > { %7998 = vmatmul.mubr.msk.bf16.gmra.mrb[56].mxu1 %vm493_vm1, %v2344_v55  ;;  %v9973_v4 = vpop.permute.xlu1 %5638 }
 0x218   : > { %8001 = vmatprep.mubr.msk.bf16.mxu1 %vm493_vm1, %v2345_v13 }
 0x21b   : > { %8300 = vmatmul.mubr.msk.bf16.gmra.mrb[28].mxu0 %vm493_vm1, %v5087_v62 }
 0x21c   : > { %8303 = vmatprep.mubr.msk.bf16.mxu0 %vm493_vm1, %v5088_v9 }
 0x21f   : > { %8002 = vmatmul.mubr.msk.bf16.gmra.mrb[60].mxu1 %vm493_vm1, %v2346_v20 }
 0x220   : > { %8039 = vmatprep.mubr.msk.bf16.mxu1 %vm493_vm1, %v9733_v1  ;;  %v5050_v1 = vld [vmem:[#allocation2 + $0x199] sm:$0xff] }
 0x223   : > { %8304 = vmatmul.mubr.msk.bf16.gmra.mrb[32].mxu0 %vm493_vm1, %v5089_v6 }
 0x224   : > { %8307 = vmatprep.mubr.msk.bf16.mxu0 %vm493_vm1, %v5090_v12 }
 0x227   : > { %8040 = vmatmul.mubr.msk.bf16.vlgmr.msra.gmra.mrb[32].mxu1 %vm493_vm1, %v9751_v51  ;;  %v5093_v51 = vpack.c.bf16 %v5051_v39, %v5050_v1 }
 0x228   : > { %8043 = vmatprep.mubr.msk.bf16.mxu1 %vm493_vm1, %v9756_v11  ;;  %v5054_v11 = vld [vmem:[#allocation2 + $0x1b9] sm:$0xff] }
 0x22b   : > { %8308 = vmatmul.mubr.msk.bf16.gmra.mrb[36].mxu0 %vm493_vm1, %v5091_v23 }
 0x22c   : > { %8311 = vmatprep.mubr.msk.bf16.mxu0 %vm493_vm1, %v5092_v45 }
 0x22f   : > { %8044 = vmatmul.mubr.msk.bf16.gmra.mrb[36].mxu1 %vm493_vm1, %v9774_v34  ;;  %v5095_v34 = vpack.c.bf16 %v5055_v61, %v5054_v11 }
 0x230   : > { %8047 = vmatprep.mubr.msk.bf16.mxu1 %vm493_vm1, %v9779_v42  ;;  %v5058_v42 = vld [vmem:[#allocation2 + $0x1d9] sm:$0xff] }
 0x233   : > { %8312 = vmatmul.mubr.msk.bf16.gmra.mrb[40].mxu0 %vm493_vm1, %v5093_v51 }
 0x234   : > { %8315 = vmatprep.mubr.msk.bf16.mxu0 %vm493_vm1, %v5094_v58 }
 0x237   : > { %8048 = vmatmul.mubr.msk.bf16.gmra.mrb[40].mxu1 %vm493_vm1, %v9797_v49  ;;  %v5097_v49 = vpack.c.bf16 %v5059_v46, %v5058_v42 }
 0x238   : > { %8051 = vmatprep.mubr.msk.bf16.mxu1 %vm493_vm1, %v9799_v27  ;;  %v5062_v27 = vld [vmem:[#allocation2 + $0x1f9] sm:$0xff] }
 0x23b   : > { %8316 = vmatmul.mubr.msk.bf16.gmra.mrb[44].mxu0 %vm493_vm1, %v5095_v34 }
 0x23c   : > { %8319 = vmatprep.mubr.msk.bf16.mxu0 %vm493_vm1, %v5096_v8 }
 0x23f   : > { %8052 = vmatmul.mubr.msk.bf16.gmra.mrb[44].mxu1 %vm493_vm1, %v9819_v54  ;;  %v5099_v54 = vpack.c.bf16 %v5063_v32, %v5062_v27 }
 0x240   : > { %8055 = vmatprep.mubr.msk.bf16.mxu1 %vm493_vm1, %v9821_v43  ;;  %v5066_v43 = vld [vmem:[#allocation2 + $0x219] sm:$0xff] }
 0x243   : > { %8320 = vmatmul.mubr.msk.bf16.gmra.mrb[48].mxu0 %vm493_vm1, %v5097_v49 }
 0x244   : > { %8323 = vmatprep.mubr.msk.bf16.mxu0 %vm493_vm1, %v5098_v30 }
 0x247   : > { %8056 = vmatmul.mubr.msk.bf16.gmra.mrb[48].mxu1 %vm493_vm1, %v9841_v56  ;;  %v5101_v56 = vpack.c.bf16 %v5067_v29, %v5066_v43 }
 0x248   : > { %8059 = vmatprep.mubr.msk.bf16.mxu1 %vm493_vm1, %v9843_v7  ;;  %v5070_v7 = vld [vmem:[#allocation2 + $0x239] sm:$0xff] }
 0x24b   : > { %8324 = vmatmul.mubr.msk.bf16.gmra.mrb[52].mxu0 %vm493_vm1, %v5099_v54 }
 0x24c   : > { %8327 = vmatprep.mubr.msk.bf16.mxu0 %vm493_vm1, %v5100_v44 }
 0x24f   : > { %8060 = vmatmul.mubr.msk.bf16.gmra.mrb[52].mxu1 %vm493_vm1, %v9860_v63  ;;  %v5103_v63 = vpack.c.bf16 %v5071_v48, %v5070_v7 }
 0x250   : > { %8063 = vmatprep.mubr.msk.bf16.mxu1 %vm493_vm1, %v9862_v59  ;;  %v9969_v59 = vpop.permute.xlu0 %5623 }
 0x253   : > { %8328 = vmatmul.mubr.msk.bf16.gmra.mrb[56].mxu0 %vm493_vm1, %v5101_v56 }
 0x254   : > { %8331 = vmatprep.mubr.msk.bf16.mxu0 %vm493_vm1, %v5102_v36  ;;  %v9971_v40 = vpop.permute.xlu0 %5628 }
 0x257   : > { %8064 = vmatmul.mubr.msk.bf16.gmra.mrb[56].mxu1 %vm493_vm1, %v9870_v18 }
 0x258   : > { %8067 = vmatprep.mubr.msk.bf16.mxu1 %vm493_vm1, %v9872_v22  ;;  %v9975_v55 = vpop.permute.xlu0 %5643  ;;  %v9977_v22 = vpop.permute.xlu1 %5648 }
 0x25b   : > { %8332 = vmatmul.mubr.msk.bf16.gmra.mrb[60].mxu0 %vm493_vm1, %v5103_v63 }
 0x25c   : > { %v9979_v15 = vpop.permute.xlu0 %5653  ;;  %v9989_v17 = vpop.permute.xlu1 %5658 }
 0x25f   : > { %8068 = vmatmul.mubr.msk.bf16.gmra.mrb[60].mxu1 %vm493_vm1, %v9880_v53 }
 0x260   : > { %v9991_v62 = vpop.permute.xlu0 %5663  ;;  %v9997_v14 = vpop.permute.xlu1 %5668 }
 0x264   : > { %v10001_v28 = vpop.permute.xlu0 %5673  ;;  %v10005_v6 = vpop.permute.xlu1 %5678 }
 0x268   : > { %v10009_v21 = vpop.permute.xlu0 %5683  ;;  %v10017_v23 = vpop.permute.xlu1 %5688 }
 0x26c   : > { %v10019_v45 = vpop.permute.xlu0 %5693  ;;  %v10029_v51 = vpop.permute.xlu1 %5698 }
 0x270   : > { %v10031_v58 = vpop.permute.xlu0 %5703  ;;  %v10037_v41 = vpop.permute.xlu1 %5708 }
 0x274   : > { %v10041_v34 = vpop.permute.xlu0 %5713  ;;  %v10045_v42 = vpop.permute.xlu1 %5718 }
 0x278   : > { %v10049_v10 = vpop.permute.xlu0 %5723  ;;  %v10057_v27 = vpop.permute.xlu1 %5728 }
 0x27a   : > { %v7943_v47 = vpop.f32.mrb[0].mxu1 }
 0x27b   : > { %v2485_v18 = vpop.f32.mrb[1].mxu1 }
 0x27c   : > { %v7944_v13 = vpop.f32.mrb[2].mxu1  ;;  %v10059_v32 = vpop.permute.xlu0 %5733 }
 0x27d   : > { %v2488_v16 = vpop.f32.mrb[3].mxu1  ;;  %v10069_v43 = vpop.permute.xlu1 %5738 }
 0x280   : > { %v10071_v29 = vpop.permute.xlu0 %5743 }
 0x281   : > { %10513 = vst [vmem:[#allocation8_spill] sm:$0xff] %v10071_v29 }
 0x282   : > { %v9981_v2 = vpop.f32.mrb[4].mxu1 }
 0x283   : > { %v9983_v53 = vpop.f32.mrb[5].mxu1 }
 0x284   : > { %v9985_v19 = vpop.f32.mrb[6].mxu1 }
 0x285   : > { %v9987_v25 = vpop.f32.mrb[7].mxu1 }
 0x28a   : > { %v9993_v9 = vpop.f32.mrb[8].mxu1 }
 0x28b   : > { %v9995_v20 = vpop.f32.mrb[9].mxu1 }
 0x28c   : > { %v9999_v31 = vpop.f32.mrb[10].mxu1 }
 0x28d   : > { %v10003_v35 = vpop.f32.mrb[11].mxu1 }
 0x292   : > { %v10007_v12 = vpop.f32.mrb[12].mxu1 }
 0x293   : > { %v10011_v24 = vpop.f32.mrb[13].mxu1 }
 0x294   : > { %v10013_v50 = vpop.f32.mrb[14].mxu1 }
 0x295   : > { %v10015_v57 = vpop.f32.mrb[15].mxu1 }
 0x29a   : > { %v10021_v1 = vpop.f32.mrb[16].mxu1 }
 0x29b   : > { %v10023_v39 = vpop.f32.mrb[17].mxu1 }
 0x29c   : > { %v10025_v52 = vpop.f32.mrb[18].mxu1 }
 0x29d   : > { %v10027_v37 = vpop.f32.mrb[19].mxu1 }
 0x2a2   : > { %v10033_v11 = vpop.f32.mrb[20].mxu1 }
 0x2a3   : > { %v10035_v61 = vpop.f32.mrb[21].mxu1 }
 0x2a4   : > { %v10039_v5 = vpop.f32.mrb[22].mxu1 }
 0x2a5   : > { %v10043_v8 = vpop.f32.mrb[23].mxu1 }
 0x2aa   : > { %v10047_v46 = vpop.f32.mrb[24].mxu1 }
 0x2ab   : > { %v10051_v38 = vpop.f32.mrb[25].mxu1 }
 0x2ac   : > { %v10053_v49 = vpop.f32.mrb[26].mxu1 }
 0x2ad   : > { %v10055_v30 = vpop.f32.mrb[27].mxu1 }
 0x2ae   : > { %10508 = vst [vmem:[#allocation3_spill] sm:$0xff] %v10055_v30 }
 0x2b2   : > { %v10061_v26 = vpop.f32.mrb[28].mxu1 }
 0x2b3   : > { %10509 = vst [vmem:[#allocation4_spill] sm:$0xff] %v10061_v26  ;;  %v10063_v3 = vpop.f32.mrb[29].mxu1 }
 0x2b4   : > { %10510 = vst [vmem:[#allocation5_spill] sm:$0xff] %v10063_v3  ;;  %v10065_v54 = vpop.f32.mrb[30].mxu1 }
 0x2b5   : > { %10511 = vst [vmem:[#allocation6_spill] sm:$0xff] %v10065_v54  ;;  %v10067_v44 = vpop.f32.mrb[31].mxu1 }
 0x2b6   : > { %10512 = vst [vmem:[#allocation7_spill] sm:$0xff] %v10067_v44  ;;  %v8273_v33 = vpop.f32.mrb[0].mxu0  ;;  %v10079_v44 = vpop.permute.xlu1 %5748 }
 0x2b7   : > { %v8337_v60 = vadd.f32 %v8273_v33, %v7943_v47  ;;  %v5238_v56 = vpop.f32.mrb[1].mxu0  ;;  %10514 = vst [vmem:[#allocation9_spill] sm:$0xff] %v10079_v44  ;;  %v10082_v47 = vpop.permute.xlu0 %5753 }
 0x2b8   : > { %v8338_v36 = vadd.f32 %v5238_v56, %v2485_v18  ;;  %v8274_v7 = vpop.f32.mrb[2].mxu0  ;;  %10515 = vst [vmem:[#allocation10_spill] sm:$0xff] %v10082_v47 }
 0x2b9   : > { %v5943_v48 = vmul.f32 %v8337_v60, %v5634_v0  ;;  %v8339_v63 = vadd.f32 %v8274_v7, %v7944_v13  ;;  %v5241_v30 = vpop.f32.mrb[3].mxu0 }
 0x2ba   : > { %v5941_v54 = vmul.f32 %v8338_v36, %v9969_v59  ;;  %v8340_v3 = vadd.f32 %v5241_v30, %v2488_v16 }
 0x2bb   : > { %v7204_v18 = vpack.c.bf16 %v5943_v48, %v5943_v48  ;;  %v5944_v0 = vmul.f32 %v8339_v63, %v9973_v4  ;;  %v6462_v56 = vmul.f32 %v5943_v48, %v5943_v48  ;;  %v6330_v44 = vsel %vm6326_vm3, %v5943_v48, 0.0  ;;  %v10103_v47 = vpop.permute.xlu0 %5763 }
 0x2bc   : > { %v7202_v13 = vpack.c.bf16 %v5941_v54, %v5941_v54  ;;  %v6460_v33 = vmul.f32 %v5941_v54, %v5941_v54  ;;  %v5942_v60 = vmul.f32 %v8340_v3, %v9971_v40  ;;  %v6327_v59 = vsel %vm6326_vm3, %v5941_v54, 0.0 }
 0x2bd   : > { %6264 = vst.msk [vmem:[%s10077_s16 + $0x8] sm:$0xf] %vm6261_vm2, %v7204_v18  ;;  %v7205_v7 = vpack.c.bf16 %v5944_v0, %v5944_v0  ;;  %v6463_v4 = vmul.f32 %v5944_v0, %v5944_v0  ;;  %v10095_v18 = vpop.permute.xlu1 %5758  ;;  %v6527_v48 = vsel %vm6326_vm3, %v6462_v56, 0.0 }
 0x2be   : > { %6262 = vst.msk [vmem:[%s10077_s16] sm:$0xf] %vm6261_vm2, %v7202_v13  ;;  %v7203_v16 = vpack.c.bf16 %v5942_v60, %v5942_v60  ;;  %v6328_v30 = vsel %vm6326_vm3, %v5942_v60, 0.0  ;;  %v6461_v36 = vmul.f32 %v5942_v60, %v5942_v60  ;;  %v8277_v26 = vpop.f32.mrb[4].mxu0  ;;  %v6524_v13 = vsel %vm6326_vm3, %v6460_v33, 0.0 }
 0x2bf   : > { %6265 = vst.msk [vmem:[%s10077_s16 + $0xc] sm:$0xf] %vm6261_vm2, %v7205_v7  ;;  %v6329_v63 = vadd.f32 %v6328_v30, %v6327_v59  ;;  %v8341_v40 = vadd.f32 %v8277_v26, %v9981_v2  ;;  %v5254_v3 = vpop.f32.mrb[5].mxu0 }
 0x2c0   : > { %6263 = vst.msk [vmem:[%s10077_s16 + $0x4] sm:$0xf] %vm6261_vm2, %v7203_v16  ;;  %v6525_v54 = vsel %vm6326_vm3, %v6461_v36, 0.0  ;;  %v8342_v60 = vadd.f32 %v5254_v3, %v9983_v53  ;;  %v8278_v29 = vpop.f32.mrb[6].mxu0  ;;  %v6332_v53 = vsel %vm6326_vm3, %v5944_v0, 0.0  ;;  %v6529_v36 = vsel %vm6326_vm3, %v6463_v4, 0.0 }
 0x2c1   : > { %v6331_v7 = vadd.f32 %v6330_v44, %v6329_v63  ;;  %v6526_v59 = vadd.f32 %v6525_v54, %v6524_v13  ;;  %v5947_v2 = vmul.f32 %v8341_v40, %v9979_v15  ;;  %v8343_v26 = vadd.f32 %v8278_v29, %v9985_v19  ;;  %v5257_v30 = vpop.f32.mrb[7].mxu0  ;;  %v10117_v56 = vpop.permute.xlu1 %5768 }
 0x2c2   : > { %v5945_v33 = vmul.f32 %v8342_v60, %v9975_v55  ;;  %v8344_v16 = vadd.f32 %v5257_v30, %v9987_v25  ;;  %v10122_v54 = vpop.permute.xlu0 %5773 }
 0x2c3   : > { %v6528_v3 = vadd.f32 %v6527_v48, %v6526_v59  ;;  %v7208_v44 = vpack.c.bf16 %v5947_v2, %v5947_v2  ;;  %v6333_v13 = vadd.f32 %v6332_v53, %v6331_v7  ;;  %v5948_v29 = vmul.f32 %v8343_v26, %v9989_v17 }
 0x2c4   : > { %v7206_v63 = vpack.c.bf16 %v5945_v33, %v5945_v33  ;;  %v6334_v15 = vsel %vm6326_vm3, %v5945_v33, 0.0  ;;  %v6464_v40 = vmul.f32 %v5945_v33, %v5945_v33  ;;  %v5946_v55 = vmul.f32 %v8344_v16, %v9977_v22 }
 0x2c5   : > { %6268 = vst.msk [vmem:[%s10077_s16 + $0x18] sm:$0xf] %vm6261_vm2, %v7208_v44  ;;  %v6530_v19 = vadd.f32 %v6529_v36, %v6528_v3  ;;  %v6335_v25 = vadd.f32 %v6334_v15, %v6333_v13  ;;  %v6466_v60 = vmul.f32 %v5947_v2, %v5947_v2  ;;  %v7209_v59 = vpack.c.bf16 %v5948_v29, %v5948_v29 }
 0x2c6   : > { %6266 = vst.msk [vmem:[%s10077_s16 + $0x10] sm:$0xf] %vm6261_vm2, %v7206_v63  ;;  %v6531_v0 = vsel %vm6326_vm3, %v6464_v40, 0.0  ;;  %v8281_v4 = vpop.f32.mrb[8].mxu0  ;;  %v7207_v48 = vpack.c.bf16 %v5946_v55, %v5946_v55  ;;  %v6336_v17 = vsel %vm6326_vm3, %v5946_v55, 0.0  ;;  %v6465_v22 = vmul.f32 %v5946_v55, %v5946_v55 }
 0x2c7   : > { %v6532_v7 = vadd.f32 %v6531_v0, %v6530_v19  ;;  %v5270_v30 = vpop.f32.mrb[9].mxu0  ;;  %v8345_v26 = vadd.f32 %v8281_v4, %v9993_v9  ;;  %v6338_v16 = vsel %vm6326_vm3, %v5947_v2, 0.0  ;;  %6269 = vst.msk [vmem:[%s10077_s16 + $0x1c] sm:$0xf] %vm6261_vm2, %v7209_v59  ;;  %v6337_v53 = vadd.f32 %v6336_v17, %v6335_v25 }
 0x2c8   : > { %v8282_v33 = vpop.f32.mrb[10].mxu0  ;;  %v8346_v36 = vadd.f32 %v5270_v30, %v9995_v20  ;;  %v6467_v63 = vmul.f32 %v5948_v29, %v5948_v29  ;;  %6267 = vst.msk [vmem:[%s10077_s16 + $0x14] sm:$0xf] %vm6261_vm2, %v7207_v48  ;;  %v6533_v13 = vsel %vm6326_vm3, %v6465_v22, 0.0  ;;  %v10138_v20 = vpop.permute.xlu1 %5778  ;;  %v6340_v25 = vsel %vm6326_vm3, %v5948_v29, 0.0 }
 0x2c9   : > { %v8347_v3 = vadd.f32 %v8282_v33, %v9999_v31  ;;  %v5273_v44 = vpop.f32.mrb[11].mxu0  ;;  %v5951_v15 = vmul.f32 %v8345_v26, %v10001_v28  ;;  %v6339_v40 = vadd.f32 %v6338_v16, %v6337_v53  ;;  %v6534_v2 = vadd.f32 %v6533_v13, %v6532_v7  ;;  %v10143_v28 = vpop.permute.xlu0 %5783 }
 0x2ca   : > { %v8348_v9 = vadd.f32 %v5273_v44, %v10003_v35  ;;  %v5949_v19 = vmul.f32 %v8346_v36, %v9991_v62  ;;  %v6535_v31 = vsel %vm6326_vm3, %v6466_v60, 0.0 }
 0x2cb   : > { %v5952_v55 = vmul.f32 %v8347_v3, %v10005_v6  ;;  %v7212_v0 = vpack.c.bf16 %v5951_v15, %v5951_v15  ;;  %v6536_v35 = vadd.f32 %v6535_v31, %v6534_v2  ;;  %v6341_v7 = vadd.f32 %v6340_v25, %v6339_v40 }
 0x2cc   : > { %v5950_v4 = vmul.f32 %v8348_v9, %v9997_v14  ;;  %v7210_v59 = vpack.c.bf16 %v5949_v19, %v5949_v19  ;;  %v6342_v62 = vsel %vm6326_vm3, %v5949_v19, 0.0  ;;  %v6537_v6 = vsel %vm6326_vm3, %v6467_v63, 0.0  ;;  %v10160_v2 = vpop.permute.xlu1 %5788 }
 0x2cd   : > { %6272 = vst.msk [vmem:[%s10077_s16 + $0x28] sm:$0xf] %vm6261_vm2, %v7212_v0  ;;  %v6346_v60 = vsel %vm6326_vm3, %v5951_v15, 0.0  ;;  %v6468_v30 = vmul.f32 %v5949_v19, %v5949_v19  ;;  %v7213_v48 = vpack.c.bf16 %v5952_v55, %v5952_v55  ;;  %v6470_v17 = vmul.f32 %v5951_v15, %v5951_v15  ;;  %v10166_v0 = vpop.permute.xlu0 %5793 }
 0x2ce   : > { %v8285_v29 = vpop.f32.mrb[12].mxu0  ;;  %6270 = vst.msk [vmem:[%s10077_s16 + $0x20] sm:$0xf] %vm6261_vm2, %v7210_v59  ;;  %v6343_v14 = vadd.f32 %v6342_v62, %v6341_v7  ;;  %v6538_v22 = vadd.f32 %v6537_v6, %v6536_v35  ;;  %v7211_v26 = vpack.c.bf16 %v5950_v4, %v5950_v4  ;;  %v6344_v53 = vsel %vm6326_vm3, %v5950_v4, 0.0 }
 0x2cf   : > { %v5286_v33 = vpop.f32.mrb[13].mxu0  ;;  %v6539_v16 = vsel %vm6326_vm3, %v6468_v30, 0.0  ;;  %6273 = vst.msk [vmem:[%s10077_s16 + $0x2c] sm:$0xf] %vm6261_vm2, %v7213_v48  ;;  %v6469_v36 = vmul.f32 %v5950_v4, %v5950_v4  ;;  %v8349_v3 = vadd.f32 %v8285_v29, %v10007_v12  ;;  %v6471_v13 = vmul.f32 %v5952_v55, %v5952_v55 }
 0x2d0   : > { %v8286_v44 = vpop.f32.mrb[14].mxu0  ;;  %v6540_v63 = vadd.f32 %v6539_v16, %v6538_v22  ;;  %6271 = vst.msk [vmem:[%s10077_s16 + $0x24] sm:$0xf] %vm6261_vm2, %v7211_v26  ;;  %v6345_v15 = vadd.f32 %v6344_v53, %v6343_v14  ;;  %v8350_v9 = vadd.f32 %v5286_v33, %v10011_v24  ;;  %v6543_v24 = vsel %vm6326_vm3, %v6470_v17, 0.0  ;;  %v10179_v22 = vpop.permute.xlu1 %5798 }
 0x2d1   : > { %v5289_v40 = vpop.f32.mrb[15].mxu0  ;;  %v6541_v19 = vsel %vm6326_vm3, %v6469_v36, 0.0  ;;  %v5955_v31 = vmul.f32 %v8349_v3, %v10019_v45  ;;  %v8351_v25 = vadd.f32 %v8286_v44, %v10013_v50  ;;  %v6348_v7 = vsel %vm6326_vm3, %v5952_v55, 0.0  ;;  %v10186_v3 = vpop.permute.xlu0 %5803 }
 0x2d2   : > { %v8352_v12 = vadd.f32 %v5289_v40, %v10015_v57  ;;  %v6347_v4 = vadd.f32 %v6346_v60, %v6345_v15  ;;  %v6542_v35 = vadd.f32 %v6541_v19, %v6540_v63  ;;  %v5953_v59 = vmul.f32 %v8350_v9, %v10009_v21 }
 0x2d3   : > { %v7216_v62 = vpack.c.bf16 %v5955_v31, %v5955_v31  ;;  %v5956_v6 = vmul.f32 %v8351_v25, %v10029_v51  ;;  %v6545_v48 = vsel %vm6326_vm3, %v6471_v13, 0.0  ;;  %v6474_v26 = vmul.f32 %v5955_v31, %v5955_v31 }
 0x2d4   : > { %v6544_v45 = vadd.f32 %v6543_v24, %v6542_v35  ;;  %v7214_v30 = vpack.c.bf16 %v5953_v59, %v5953_v59  ;;  %v6349_v50 = vadd.f32 %v6348_v7, %v6347_v4  ;;  %v6350_v57 = vsel %vm6326_vm3, %v5953_v59, 0.0 }
 0x2d5   : > { %6276 = vst.msk [vmem:[%s10077_s16 + $0x38] sm:$0xf] %vm6261_vm2, %v7216_v62  ;;  %v6472_v60 = vmul.f32 %v5953_v59, %v5953_v59  ;;  %v7217_v29 = vpack.c.bf16 %v5956_v6, %v5956_v6  ;;  %v5954_v14 = vmul.f32 %v8352_v12, %v10017_v23  ;;  %v6354_v25 = vsel %vm6326_vm3, %v5955_v31, 0.0  ;;  %v10200_v62 = vpop.permute.xlu1 %5808 }
 0x2d6   : > { %v8289_v21 = vpop.f32.mrb[16].mxu0  ;;  %6274 = vst.msk [vmem:[%s10077_s16 + $0x30] sm:$0xf] %vm6261_vm2, %v7214_v30  ;;  %v6351_v17 = vadd.f32 %v6350_v57, %v6349_v50  ;;  %v6546_v55 = vadd.f32 %v6545_v48, %v6544_v45  ;;  %v6551_v4 = vsel %vm6326_vm3, %v6474_v26, 0.0  ;;  %v10206_v57 = vpop.permute.xlu0 %5813 }
 0x2d7   : > { %v5302_v51 = vpop.f32.mrb[17].mxu0  ;;  %v6547_v33 = vsel %vm6326_vm3, %v6472_v60, 0.0  ;;  %6277 = vst.msk [vmem:[%s10077_s16 + $0x3c] sm:$0xf] %vm6261_vm2, %v7217_v29  ;;  %v8353_v16 = vadd.f32 %v8289_v21, %v10021_v1  ;;  %v7215_v63 = vpack.c.bf16 %v5954_v14, %v5954_v14  ;;  %v6352_v23 = vsel %vm6326_vm3, %v5954_v14, 0.0 }
 0x2d8   : > { %v8354_v53 = vadd.f32 %v5302_v51, %v10023_v39  ;;  %v8290_v36 = vpop.f32.mrb[18].mxu0  ;;  %v6548_v44 = vadd.f32 %v6547_v33, %v6546_v55  ;;  %v6353_v15 = vadd.f32 %v6352_v23, %v6351_v17  ;;  %v6473_v9 = vmul.f32 %v5954_v14, %v5954_v14 }
 0x2d9   : > { %v5305_v13 = vpop.f32.mrb[19].mxu0  ;;  %v5959_v40 = vmul.f32 %v8353_v16, %v10041_v34  ;;  %v6475_v1 = vmul.f32 %v5956_v6, %v5956_v6  ;;  %6275 = vst.msk [vmem:[%s10077_s16 + $0x34] sm:$0xf] %vm6261_vm2, %v7215_v63  ;;  %v8355_v39 = vadd.f32 %v8290_v36, %v10025_v52  ;;  %v6356_v34 = vsel %vm6326_vm3, %v5956_v6, 0.0 }
 0x2da   : > { %v5957_v19 = vmul.f32 %v8354_v53, %v10031_v58  ;;  %v8356_v12 = vadd.f32 %v5305_v13, %v10027_v37  ;;  %v6355_v35 = vadd.f32 %v6354_v25, %v6353_v15  ;;  %v6549_v59 = vsel %vm6326_vm3, %v6473_v9, 0.0  ;;  %v10223_v9 = vpop.permute.xlu1 %5818 }
 0x2db   : > { %v7220_v24 = vpack.c.bf16 %v5959_v40, %v5959_v40  ;;  %v6550_v7 = vadd.f32 %v6549_v59, %v6548_v44  ;;  %v5960_v37 = vmul.f32 %v8355_v39, %v10045_v42  ;;  %v6553_v6 = vsel %vm6326_vm3, %v6475_v1, 0.0  ;;  %v10226_v1 = vpop.permute.xlu0 %5823 }
 0x2dc   : > { %v7218_v58 = vpack.c.bf16 %v5957_v19, %v5957_v19  ;;  %v6358_v31 = vsel %vm6326_vm3, %v5957_v19, 0.0  ;;  %v6357_v52 = vadd.f32 %v6356_v34, %v6355_v35  ;;  %v6476_v45 = vmul.f32 %v5957_v19, %v5957_v19 }
 0x2dd   : > { %6280 = vst.msk [vmem:[%s10077_s16 + $0x48] sm:$0xf] %vm6261_vm2, %v7220_v24  ;;  %v5958_v30 = vmul.f32 %v8356_v12, %v10037_v41  ;;  %v6552_v48 = vadd.f32 %v6551_v4, %v6550_v7  ;;  %v6362_v21 = vsel %vm6326_vm3, %v5959_v40, 0.0  ;;  %v7221_v55 = vpack.c.bf16 %v5960_v37, %v5960_v37 }
 0x2de   : > { %v8293_v50 = vpop.f32.mrb[20].mxu0  ;;  %6278 = vst.msk [vmem:[%s10077_s16 + $0x40] sm:$0xf] %vm6261_vm2, %v7218_v58  ;;  %v6359_v17 = vadd.f32 %v6358_v31, %v6357_v52  ;;  %v6555_v42 = vsel %vm6326_vm3, %v6476_v45, 0.0  ;;  %v6478_v14 = vmul.f32 %v5959_v40, %v5959_v40  ;;  %v6479_v23 = vmul.f32 %v5960_v37, %v5960_v37 }
 0x2df   : > { %v8357_v60 = vadd.f32 %v8293_v50, %v10033_v11  ;;  %v5318_v29 = vpop.f32.mrb[21].mxu0  ;;  %v6554_v51 = vadd.f32 %v6553_v6, %v6552_v48  ;;  %v7219_v26 = vpack.c.bf16 %v5958_v30, %v5958_v30  ;;  %v6360_v33 = vsel %vm6326_vm3, %v5958_v30, 0.0  ;;  %6281 = vst.msk [vmem:[%s10077_s16 + $0x4c] sm:$0xf] %vm6261_vm2, %v7221_v55  ;;  %v10241_v48 = vpop.permute.xlu1 %5828 }
 0x2e0   : > { %v8294_v41 = vpop.f32.mrb[22].mxu0  ;;  %v6361_v53 = vadd.f32 %v6360_v33, %v6359_v17  ;;  %v6477_v36 = vmul.f32 %v5958_v30, %v5958_v30  ;;  %v8358_v44 = vadd.f32 %v5318_v29, %v10035_v61  ;;  %v6559_v4 = vsel %vm6326_vm3, %v6478_v14, 0.0 }
 0x2e1   : > { %v5321_v16 = vpop.f32.mrb[23].mxu0  ;;  %v5963_v11 = vmul.f32 %v8357_v60, %v10059_v32  ;;  %v6556_v63 = vadd.f32 %v6555_v42, %v6554_v51  ;;  %6279 = vst.msk [vmem:[%s10077_s16 + $0x44] sm:$0xf] %vm6261_vm2, %v7219_v26  ;;  %v8359_v13 = vadd.f32 %v8294_v41, %v10039_v5  ;;  %v6364_v32 = vsel %vm6326_vm3, %v5960_v37, 0.0  ;;  %v10247_v42 = vpop.permute.xlu0 %5833 }
 0x2e2   : > { %v8360_v15 = vadd.f32 %v5321_v16, %v10043_v8  ;;  %v6363_v40 = vadd.f32 %v6362_v21, %v6361_v53  ;;  %v6557_v19 = vsel %vm6326_vm3, %v6477_v36, 0.0  ;;  %v5961_v39 = vmul.f32 %v8358_v44, %v10049_v10  ;;  %v10516_v16 = vld [vmem:[#allocation10_spill] sm:$0xff]  ;;  %v10517_v36 = vld [vmem:[#allocation3_spill] sm:$0xff] }
 0x2e3   : > { %v7224_v25 = vpack.c.bf16 %v5963_v11, %v5963_v11  ;;  %v6558_v61 = vadd.f32 %v6557_v19, %v6556_v63  ;;  %v5964_v12 = vmul.f32 %v8359_v13, %v10069_v43  ;;  %v6561_v59 = vsel %vm6326_vm3, %v6479_v23, 0.0  ;;  %v10518_v63 = vld [vmem:[#allocation8_spill] sm:$0xff] }
 0x2e4   : > { %v6365_v5 = vadd.f32 %v6364_v32, %v6363_v40  ;;  %v5962_v8 = vmul.f32 %v8360_v15, %v10057_v27  ;;  %v7222_v34 = vpack.c.bf16 %v5961_v39, %v5961_v39  ;;  %v6366_v7 = vsel %vm6326_vm3, %v5961_v39, 0.0 }
 0x2e5   : > { %6284 = vst.msk [vmem:[%s10077_s16 + $0x58] sm:$0xf] %vm6261_vm2, %v7224_v25  ;;  %v6560_v24 = vadd.f32 %v6559_v4, %v6558_v61  ;;  %v6370_v10 = vsel %vm6326_vm3, %v5963_v11, 0.0  ;;  %v6480_v31 = vmul.f32 %v5961_v39, %v5961_v39  ;;  %v7225_v52 = vpack.c.bf16 %v5964_v12, %v5964_v12  ;;  %v10261_v4 = vpop.permute.xlu1 %5838 }
 0x2e6   : > { %v8297_v35 = vpop.f32.mrb[24].mxu0  ;;  %v6367_v43 = vadd.f32 %v6366_v7, %v6365_v5  ;;  %v6482_v37 = vmul.f32 %v5963_v11, %v5963_v11  ;;  %6282 = vst.msk [vmem:[%s10077_s16 + $0x50] sm:$0xf] %vm6261_vm2, %v7222_v34  ;;  %v7223_v30 = vpack.c.bf16 %v5962_v8, %v5962_v8  ;;  %v6368_v50 = vsel %vm6326_vm3, %v5962_v8, 0.0  ;;  %v10519_v34 = vld [vmem:[#allocation9_spill] sm:$0xff] }
 0x2e7   : > { %v5334_v58 = vpop.f32.mrb[25].mxu0  ;;  %v6562_v27 = vadd.f32 %v6561_v59, %v6560_v24  ;;  %v6563_v60 = vsel %vm6326_vm3, %v6480_v31, 0.0  ;;  %6285 = vst.msk [vmem:[%s10077_s16 + $0x5c] sm:$0xf] %vm6261_vm2, %v7225_v52  ;;  %v6481_v21 = vmul.f32 %v5962_v8, %v5962_v8  ;;  %v8361_v17 = vadd.f32 %v8297_v35, %v10047_v46  ;;  %v10266_v35 = vpop.permute.xlu0 %5843  ;;  %v10521_v31 = vld [vmem:[#allocation5_spill] sm:$0xff] }
 0x2e8   : > { %v8298_v45 = vpop.f32.mrb[26].mxu0  ;;  %v6369_v29 = vadd.f32 %v6368_v50, %v6367_v43  ;;  %v6483_v41 = vmul.f32 %v5964_v12, %v5964_v12  ;;  %6283 = vst.msk [vmem:[%s10077_s16 + $0x54] sm:$0xf] %vm6261_vm2, %v7223_v30  ;;  %v8362_v14 = vadd.f32 %v5334_v58, %v10051_v38  ;;  %v6372_v46 = vsel %vm6326_vm3, %v5964_v12, 0.0 }
 0x2e9   : > { %v5337_v6 = vpop.f32.mrb[27].mxu0  ;;  %v6564_v55 = vadd.f32 %v6563_v60, %v6562_v27  ;;  %v8363_v51 = vadd.f32 %v8298_v45, %v10053_v49  ;;  %v6565_v33 = vsel %vm6326_vm3, %v6481_v21, 0.0  ;;  %v5967_v53 = vmul.f32 %v8361_v17, %v10516_v16  ;;  %v10522_v45 = vld [vmem:[#allocation6_spill] sm:$0xff]  ;;  %v10523_v27 = vld [vmem:[#allocation7_spill] sm:$0xff]  ;;  %v10286_v16 = vpop.permute.xlu1 %5848 }
 0x2ea   : > { %v6371_v26 = vadd.f32 %v6370_v10, %v6369_v29  ;;  %v8364_v11 = vadd.f32 %v5337_v6, %v10517_v36  ;;  %v5965_v23 = vmul.f32 %v8362_v14, %v10518_v63  ;;  %v6567_v15 = vsel %vm6326_vm3, %v6482_v37, 0.0  ;;  %v10520_v10 = vld [vmem:[#allocation4_spill] sm:$0xff] }
 0x2eb   : > { %v6566_v44 = vadd.f32 %v6565_v33, %v6564_v55  ;;  %v5968_v13 = vmul.f32 %v8363_v51, %v10095_v18  ;;  %v7228_v38 = vpack.c.bf16 %v5967_v53, %v5967_v53  ;;  %v6569_v12 = vsel %vm6326_vm3, %v6483_v41, 0.0 }
 0x2ec   : > { %v6373_v49 = vadd.f32 %v6372_v46, %v6371_v26  ;;  %v7226_v25 = vpack.c.bf16 %v5965_v23, %v5965_v23  ;;  %v6374_v32 = vsel %vm6326_vm3, %v5965_v23, 0.0  ;;  %v6484_v61 = vmul.f32 %v5965_v23, %v5965_v23 }
 0x2ed   : > { %v6568_v19 = vadd.f32 %v6567_v15, %v6566_v44  ;;  %6288 = vst.msk [vmem:[%s10077_s16 + $0x68] sm:$0xf] %vm6261_vm2, %v7228_v38  ;;  %v7229_v5 = vpack.c.bf16 %v5968_v13, %v5968_v13  ;;  %v5966_v7 = vmul.f32 %v8364_v11, %v10519_v34  ;;  %v6486_v50 = vmul.f32 %v5967_v53, %v5967_v53 }
 0x2ee   : > { %v8301_v40 = vpop.f32.mrb[28].mxu0  ;;  %v6375_v18 = vadd.f32 %v6374_v32, %v6373_v49  ;;  %6286 = vst.msk [vmem:[%s10077_s16 + $0x60] sm:$0xf] %vm6261_vm2, %v7226_v25  ;;  %v6571_v24 = vsel %vm6326_vm3, %v6484_v61, 0.0  ;;  %v6378_v14 = vsel %vm6326_vm3, %v5967_v53, 0.0  ;;  %v6487_v51 = vmul.f32 %v5968_v13, %v5968_v13 }
 0x2ef   : > { %v5350_v39 = vpop.f32.mrb[29].mxu0  ;;  %v6570_v59 = vadd.f32 %v6569_v12, %v6568_v19  ;;  %6289 = vst.msk [vmem:[%s10077_s16 + $0x6c] sm:$0xf] %vm6261_vm2, %v7229_v5  ;;  %v8365_v43 = vadd.f32 %v8301_v40, %v10520_v10  ;;  %v7227_v60 = vpack.c.bf16 %v5966_v7, %v5966_v7  ;;  %v6376_v29 = vsel %vm6326_vm3, %v5966_v7, 0.0 }
 0x2f0   : > { %v8302_v8 = vpop.f32.mrb[30].mxu0  ;;  %v8366_v52 = vadd.f32 %v5350_v39, %v10521_v31  ;;  %v6377_v21 = vadd.f32 %v6376_v29, %v6375_v18  ;;  %v6485_v17 = vmul.f32 %v5966_v7, %v5966_v7  ;;  %v6577_v25 = vsel %vm6326_vm3, %v6487_v51, 0.0 }
 0x2f1   : > { %v5353_v58 = vpop.f32.mrb[31].mxu0  ;;  %v8367_v37 = vadd.f32 %v8302_v8, %v10522_v45  ;;  %v6572_v6 = vadd.f32 %v6571_v24, %v6570_v59  ;;  %v5971_v55 = vmul.f32 %v8365_v43, %v10122_v54  ;;  %6287 = vst.msk [vmem:[%s10077_s16 + $0x64] sm:$0xf] %vm6261_vm2, %v7227_v60  ;;  %v10289_v54 = vpop.permute.xlu0 %5853 }
 0x2f2   : > { %v8368_v30 = vadd.f32 %v5353_v58, %v10523_v27  ;;  %v5969_v41 = vmul.f32 %v8366_v52, %v10103_v47  ;;  %v6379_v36 = vadd.f32 %v6378_v14, %v6377_v21  ;;  %v6573_v11 = vsel %vm6326_vm3, %v6485_v17, 0.0  ;;  %v10309_v60 = vpop.permute.xlu1 %5858 }
 0x2f3   : > { %v5972_v26 = vmul.f32 %v8367_v37, %v10138_v20  ;;  %v7232_v46 = vpack.c.bf16 %v5971_v55, %v5971_v55  ;;  %v6380_v47 = vsel %vm6326_vm3, %v5968_v13, 0.0  ;;  %v6574_v53 = vadd.f32 %v6573_v11, %v6572_v6 }
 0x2f4   : > { %v5970_v33 = vmul.f32 %v8368_v30, %v10117_v56  ;;  %v7230_v63 = vpack.c.bf16 %v5969_v41, %v5969_v41  ;;  %v6382_v23 = vsel %vm6326_vm3, %v5969_v41, 0.0  ;;  %v6575_v20 = vsel %vm6326_vm3, %v6486_v50, 0.0 }
 0x2f5   : > { %6292 = vst.msk [vmem:[%s10077_s16 + $0x78] sm:$0xf] %vm6261_vm2, %v7232_v46  ;;  %v6381_v56 = vadd.f32 %v6380_v47, %v6379_v36  ;;  %v6488_v38 = vmul.f32 %v5969_v41, %v5969_v41  ;;  %v7233_v49 = vpack.c.bf16 %v5972_v26, %v5972_v26  ;;  %v6576_v32 = vadd.f32 %v6575_v20, %v6574_v53  ;;  %v10313_v41 = vpop.permute.xlu0 %5863 }
 0x2f6   : > { %v8305_v44 = vpop.f32.mrb[32].mxu0  ;;  %v6386_v13 = vsel %vm6326_vm3, %v5971_v55, 0.0  ;;  %6290 = vst.msk [vmem:[%s10077_s16 + $0x70] sm:$0xf] %vm6261_vm2, %v7230_v63  ;;  %v7231_v61 = vpack.c.bf16 %v5970_v33, %v5970_v33  ;;  %v6384_v8 = vsel %vm6326_vm3, %v5970_v33, 0.0  ;;  %v6489_v59 = vmul.f32 %v5970_v33, %v5970_v33 }
 0x2f7   : > { %v5366_v15 = vpop.f32.mrb[33].mxu0  ;;  %v6383_v18 = vadd.f32 %v6382_v23, %v6381_v56  ;;  %v6579_v5 = vsel %vm6326_vm3, %v6488_v38, 0.0  ;;  %6293 = vst.msk [vmem:[%s10077_s16 + $0x7c] sm:$0xf] %vm6261_vm2, %v7233_v49  ;;  %v6490_v34 = vmul.f32 %v5971_v55, %v5971_v55  ;;  %v6578_v7 = vadd.f32 %v6577_v25, %v6576_v32 }
 0x2f8   : > { %v8306_v19 = vpop.f32.mrb[34].mxu0  ;;  %6291 = vst.msk [vmem:[%s10077_s16 + $0x74] sm:$0xf] %vm6261_vm2, %v7231_v61  ;;  %v6581_v52 = vsel %vm6326_vm3, %v6489_v59, 0.0  ;;  %v6491_v30 = vmul.f32 %v5972_v26, %v5972_v26  ;;  %v6388_v51 = vsel %vm6326_vm3, %v5972_v26, 0.0 }
 0x2f9   : > { %v5369_v12 = vpop.f32.mrb[35].mxu0  ;;  %v6385_v31 = vadd.f32 %v6384_v8, %v6383_v18  ;;  %v6580_v27 = vadd.f32 %v6579_v5, %v6578_v7  ;;  %v6583_v14 = vsel %vm6326_vm3, %v6490_v34, 0.0  ;;  %v10332_v7 = vpop.permute.xlu1 %5868 }
 0x2fa   : > { %v8041_v40 = vpop.f32.mrb[32].mxu1  ;;  %v6585_v47 = vsel %vm6326_vm3, %v6491_v30, 0.0 }
 0x2fb   : > { %v3162_v39 = vpop.f32.mrb[33].mxu1  ;;  %v8369_v58 = vadd.f32 %v8305_v44, %v8041_v40  ;;  %v6387_v29 = vadd.f32 %v6386_v13, %v6385_v31  ;;  %v6582_v33 = vadd.f32 %v6581_v52, %v6580_v27  ;;  %v10336_v52 = vpop.permute.xlu0 %5873 }
 0x2fc   : > { %v8042_v24 = vpop.f32.mrb[34].mxu1  ;;  %v8370_v10 = vadd.f32 %v5366_v15, %v3162_v39 }
 0x2fd   : > { %v3165_v43 = vpop.f32.mrb[35].mxu1  ;;  %v8371_v45 = vadd.f32 %v8306_v19, %v8042_v24  ;;  %v5975_v50 = vmul.f32 %v8369_v58, %v10166_v0  ;;  %v6389_v11 = vadd.f32 %v6388_v51, %v6387_v29  ;;  %v6584_v53 = vadd.f32 %v6583_v14, %v6582_v33 }
 0x2fe   : > { %v8372_v37 = vadd.f32 %v5369_v12, %v3165_v43  ;;  %v5973_v6 = vmul.f32 %v8370_v10, %v10143_v28  ;;  %v8309_v55 = vpop.f32.mrb[36].mxu0 }
 0x2ff   : > { %v5976_v21 = vmul.f32 %v8371_v45, %v10179_v22  ;;  %v7236_v36 = vpack.c.bf16 %v5975_v50, %v5975_v50  ;;  %v5382_v0 = vpop.f32.mrb[37].mxu0  ;;  %v6394_v63 = vsel %vm6326_vm3, %v5975_v50, 0.0  ;;  %v6494_v20 = vmul.f32 %v5975_v50, %v5975_v50 }
 0x300   : > { %v5974_v17 = vmul.f32 %v8372_v37, %v10160_v2  ;;  %v7234_v28 = vpack.c.bf16 %v5973_v6, %v5973_v6  ;;  %v6390_v46 = vsel %vm6326_vm3, %v5973_v6, 0.0  ;;  %v6492_v44 = vmul.f32 %v5973_v6, %v5973_v6  ;;  %v8310_v2 = vpop.f32.mrb[38].mxu0 }
 0x301   : > { %6296 = vst.msk [vmem:[%s10077_s16 + $0x88] sm:$0xf] %vm6261_vm2, %v7236_v36  ;;  %v7237_v26 = vpack.c.bf16 %v5976_v21, %v5976_v21  ;;  %v5385_v15 = vpop.f32.mrb[39].mxu0  ;;  %v6391_v56 = vadd.f32 %v6390_v46, %v6389_v11  ;;  %v6586_v19 = vadd.f32 %v6585_v47, %v6584_v53  ;;  %v6495_v39 = vmul.f32 %v5976_v21, %v5976_v21 }
 0x302   : > { %v8045_v22 = vpop.f32.mrb[36].mxu1  ;;  %6294 = vst.msk [vmem:[%s10077_s16 + $0x80] sm:$0xf] %vm6261_vm2, %v7234_v28  ;;  %v6587_v38 = vsel %vm6326_vm3, %v6492_v44, 0.0  ;;  %v7235_v49 = vpack.c.bf16 %v5974_v17, %v5974_v17  ;;  %v6392_v25 = vsel %vm6326_vm3, %v5974_v17, 0.0  ;;  %v6493_v32 = vmul.f32 %v5974_v17, %v5974_v17 }
 0x303   : > { %v3178_v23 = vpop.f32.mrb[37].mxu1  ;;  %6297 = vst.msk [vmem:[%s10077_s16 + $0x8c] sm:$0xf] %vm6261_vm2, %v7237_v26  ;;  %v8373_v13 = vadd.f32 %v8309_v55, %v8045_v22  ;;  %v6393_v12 = vadd.f32 %v6392_v25, %v6391_v56  ;;  %v6588_v8 = vadd.f32 %v6587_v38, %v6586_v19  ;;  %v6591_v45 = vsel %vm6326_vm3, %v6494_v20, 0.0 }
 0x304   : > { %v8046_v40 = vpop.f32.mrb[38].mxu1  ;;  %6295 = vst.msk [vmem:[%s10077_s16 + $0x84] sm:$0xf] %vm6261_vm2, %v7235_v49  ;;  %v8374_v18 = vadd.f32 %v5382_v0, %v3178_v23  ;;  %v6589_v59 = vsel %vm6326_vm3, %v6493_v32, 0.0  ;;  %v6396_v37 = vsel %vm6326_vm3, %v5976_v21, 0.0  ;;  %v6593_v55 = vsel %vm6326_vm3, %v6495_v39, 0.0  ;;  %v10354_v49 = vpop.permute.xlu1 %5878 }
 0x305   : > { %v3181_v61 = vpop.f32.mrb[39].mxu1  ;;  %v8375_v5 = vadd.f32 %v8310_v2, %v8046_v40  ;;  %v5979_v24 = vmul.f32 %v8373_v13, %v10206_v57  ;;  %v6395_v58 = vadd.f32 %v6394_v63, %v6393_v12  ;;  %v6590_v27 = vadd.f32 %v6589_v59, %v6588_v8 }
 0x306   : > { %v8376_v34 = vadd.f32 %v5385_v15, %v3181_v61  ;;  %v5977_v10 = vmul.f32 %v8374_v18, %v10186_v3  ;;  %v8313_v31 = vpop.f32.mrb[40].mxu0  ;;  %v10360_v61 = vpop.permute.xlu0 %5883 }
 0x307   : > { %v5980_v43 = vmul.f32 %v8375_v5, %v10223_v9  ;;  %v7240_v30 = vpack.c.bf16 %v5979_v24, %v5979_v24  ;;  %v5398_v57 = vpop.f32.mrb[41].mxu0  ;;  %v6397_v6 = vadd.f32 %v6396_v37, %v6395_v58  ;;  %v6592_v14 = vadd.f32 %v6591_v45, %v6590_v27 }
 0x308   : > { %v7238_v50 = vpack.c.bf16 %v5977_v10, %v5977_v10  ;;  %v6398_v29 = vsel %vm6326_vm3, %v5977_v10, 0.0  ;;  %v6496_v17 = vmul.f32 %v5977_v10, %v5977_v10  ;;  %v8314_v9 = vpop.f32.mrb[42].mxu0  ;;  %v6498_v36 = vmul.f32 %v5979_v24, %v5979_v24 }
 0x309   : > { %6300 = vst.msk [vmem:[%s10077_s16 + $0x98] sm:$0xf] %vm6261_vm2, %v7240_v30  ;;  %v7241_v51 = vpack.c.bf16 %v5980_v43, %v5980_v43  ;;  %v5401_v21 = vpop.f32.mrb[43].mxu0  ;;  %v6399_v0 = vadd.f32 %v6398_v29, %v6397_v6  ;;  %v5978_v11 = vmul.f32 %v8376_v34, %v10200_v62  ;;  %v6594_v44 = vadd.f32 %v6593_v55, %v6592_v14 }
 0x30a   : > { %v8049_v3 = vpop.f32.mrb[40].mxu1  ;;  %6298 = vst.msk [vmem:[%s10077_s16 + $0x90] sm:$0xf] %vm6261_vm2, %v7238_v50  ;;  %v6595_v28 = vsel %vm6326_vm3, %v6496_v17, 0.0  ;;  %v6402_v63 = vsel %vm6326_vm3, %v5979_v24, 0.0  ;;  %v6499_v40 = vmul.f32 %v5980_v43, %v5980_v43  ;;  %v6599_v39 = vsel %vm6326_vm3, %v6498_v36, 0.0 }
 0x30b   : > { %v3194_v33 = vpop.f32.mrb[41].mxu1  ;;  %6301 = vst.msk [vmem:[%s10077_s16 + $0x9c] sm:$0xf] %vm6261_vm2, %v7241_v51  ;;  %v8377_v22 = vadd.f32 %v8313_v31, %v8049_v3  ;;  %v7239_v26 = vpack.c.bf16 %v5978_v11, %v5978_v11  ;;  %v6400_v23 = vsel %vm6326_vm3, %v5978_v11, 0.0  ;;  %v6497_v15 = vmul.f32 %v5978_v11, %v5978_v11 }
 0x30c   : > { %v8050_v46 = vpop.f32.mrb[42].mxu1  ;;  %v8378_v2 = vadd.f32 %v5398_v57, %v3194_v33  ;;  %v6596_v20 = vadd.f32 %v6595_v28, %v6594_v44  ;;  %v6401_v56 = vadd.f32 %v6400_v23, %v6399_v0  ;;  %v6404_v5 = vsel %vm6326_vm3, %v5980_v43, 0.0  ;;  %v10378_v28 = vpop.permute.xlu1 %5888 }
 0x30d   : > { %v8379_v47 = vadd.f32 %v8314_v9, %v8050_v46  ;;  %v3197_v53 = vpop.f32.mrb[43].mxu1  ;;  %v5983_v38 = vmul.f32 %v8377_v22, %v10247_v42  ;;  %6299 = vst.msk [vmem:[%s10077_s16 + $0x94] sm:$0xf] %vm6261_vm2, %v7239_v26  ;;  %v6597_v19 = vsel %vm6326_vm3, %v6497_v15, 0.0  ;;  %v6601_v27 = vsel %vm6326_vm3, %v6499_v40, 0.0 }
 0x30e   : > { %v5981_v62 = vmul.f32 %v8378_v2, %v10226_v1  ;;  %v8380_v32 = vadd.f32 %v5401_v21, %v3197_v53  ;;  %v8317_v13 = vpop.f32.mrb[44].mxu0  ;;  %v6403_v12 = vadd.f32 %v6402_v63, %v6401_v56  ;;  %v6598_v42 = vadd.f32 %v6597_v19, %v6596_v20 }
 0x30f   : > { %v5984_v25 = vmul.f32 %v8379_v47, %v10261_v4  ;;  %v7244_v18 = vpack.c.bf16 %v5983_v38, %v5983_v38  ;;  %v5414_v1 = vpop.f32.mrb[45].mxu0  ;;  %v6410_v30 = vsel %vm6326_vm3, %v5983_v38, 0.0  ;;  %v6502_v55 = vmul.f32 %v5983_v38, %v5983_v38  ;;  %v10383_v47 = vpop.permute.xlu0 %5893 }
 0x310   : > { %v7242_v8 = vpack.c.bf16 %v5981_v62, %v5981_v62  ;;  %v6406_v59 = vsel %vm6326_vm3, %v5981_v62, 0.0  ;;  %v6500_v24 = vmul.f32 %v5981_v62, %v5981_v62  ;;  %v8318_v4 = vpop.f32.mrb[46].mxu0  ;;  %v6600_v58 = vadd.f32 %v6599_v39, %v6598_v42 }
 0x311   : > { %6304 = vst.msk [vmem:[%s10077_s16 + $0xa8] sm:$0xf] %vm6261_vm2, %v7244_v18  ;;  %v6405_v10 = vadd.f32 %v6404_v5, %v6403_v12  ;;  %v7245_v31 = vpack.c.bf16 %v5984_v25, %v5984_v25  ;;  %v5417_v37 = vpop.f32.mrb[47].mxu0  ;;  %v5982_v57 = vmul.f32 %v8380_v32, %v10241_v48  ;;  %v6503_v11 = vmul.f32 %v5984_v25, %v5984_v25 }
 0x312   : > { %v8053_v34 = vpop.f32.mrb[44].mxu1  ;;  %6302 = vst.msk [vmem:[%s10077_s16 + $0xa0] sm:$0xf] %vm6261_vm2, %v7242_v8  ;;  %v6603_v43 = vsel %vm6326_vm3, %v6500_v24, 0.0  ;;  %v6602_v29 = vadd.f32 %v6601_v27, %v6600_v58  ;;  %v6412_v53 = vsel %vm6326_vm3, %v5984_v25, 0.0  ;;  %v6607_v23 = vsel %vm6326_vm3, %v6502_v55, 0.0 }
 0x313   : > { %v3210_v45 = vpop.f32.mrb[45].mxu1  ;;  %v6407_v6 = vadd.f32 %v6406_v59, %v6405_v10  ;;  %6305 = vst.msk [vmem:[%s10077_s16 + $0xac] sm:$0xf] %vm6261_vm2, %v7245_v31  ;;  %v8381_v17 = vadd.f32 %v8317_v13, %v8053_v34  ;;  %v7243_v14 = vpack.c.bf16 %v5982_v57, %v5982_v57  ;;  %v6408_v51 = vsel %vm6326_vm3, %v5982_v57, 0.0 }
 0x314   : > { %v8054_v50 = vpop.f32.mrb[46].mxu1  ;;  %v8382_v3 = vadd.f32 %v5414_v1, %v3210_v45  ;;  %v6501_v33 = vmul.f32 %v5982_v57, %v5982_v57  ;;  %v6604_v21 = vadd.f32 %v6603_v43, %v6602_v29  ;;  %v6609_v12 = vsel %vm6326_vm3, %v6503_v11, 0.0 }
 0x315   : > { %v3213_v9 = vpop.f32.mrb[47].mxu1  ;;  %v6409_v36 = vadd.f32 %v6408_v51, %v6407_v6  ;;  %v5987_v0 = vmul.f32 %v8381_v17, %v10289_v54  ;;  %6303 = vst.msk [vmem:[%s10077_s16 + $0xa4] sm:$0xf] %vm6261_vm2, %v7243_v14  ;;  %v8383_v44 = vadd.f32 %v8318_v4, %v8054_v50  ;;  %v10407_v17 = vpop.permute.xlu0 %5903 }
 0x316   : > { %v5985_v48 = vmul.f32 %v8382_v3, %v10266_v35  ;;  %v6605_v46 = vsel %vm6326_vm3, %v6501_v33, 0.0  ;;  %v8384_v22 = vadd.f32 %v5417_v37, %v3213_v9  ;;  %v8321_v2 = vpop.f32.mrb[48].mxu0 }
 0x317   : > { %v6411_v63 = vadd.f32 %v6410_v30, %v6409_v36  ;;  %v6606_v26 = vadd.f32 %v6605_v46, %v6604_v21  ;;  %v7248_v54 = vpack.c.bf16 %v5987_v0, %v5987_v0  ;;  %v5430_v35 = vpop.f32.mrb[49].mxu0  ;;  %v5988_v32 = vmul.f32 %v8383_v44, %v10309_v60  ;;  %v10402_v30 = vpop.permute.xlu1 %5898 }
 0x318   : > { %v7246_v15 = vpack.c.bf16 %v5985_v48, %v5985_v48  ;;  %v6414_v20 = vsel %vm6326_vm3, %v5985_v48, 0.0  ;;  %v6504_v56 = vmul.f32 %v5985_v48, %v5985_v48  ;;  %v8322_v62 = vpop.f32.mrb[50].mxu0  ;;  %v5986_v25 = vmul.f32 %v8384_v22, %v10286_v16 }
 0x319   : > { %v6608_v40 = vadd.f32 %v6607_v23, %v6606_v26  ;;  %6308 = vst.msk [vmem:[%s10077_s16 + $0xb8] sm:$0xf] %vm6261_vm2, %v7248_v54  ;;  %v6413_v19 = vadd.f32 %v6412_v53, %v6411_v63  ;;  %v5433_v39 = vpop.f32.mrb[51].mxu0  ;;  %v6506_v8 = vmul.f32 %v5987_v0, %v5987_v0  ;;  %v7249_v34 = vpack.c.bf16 %v5988_v32, %v5988_v32 }
 0x31a   : > { %v8057_v38 = vpop.f32.mrb[48].mxu1  ;;  %6306 = vst.msk [vmem:[%s10077_s16 + $0xb0] sm:$0xf] %vm6261_vm2, %v7246_v15  ;;  %v6611_v42 = vsel %vm6326_vm3, %v6504_v56, 0.0  ;;  %v6418_v16 = vsel %vm6326_vm3, %v5987_v0, 0.0  ;;  %v7247_v4 = vpack.c.bf16 %v5986_v25, %v5986_v25  ;;  %v6416_v58 = vsel %vm6326_vm3, %v5986_v25, 0.0 }
 0x31b   : > { %v3226_v13 = vpop.f32.mrb[49].mxu1  ;;  %v8385_v18 = vadd.f32 %v8321_v2, %v8057_v38  ;;  %v6415_v59 = vadd.f32 %v6414_v20, %v6413_v19  ;;  %v6610_v24 = vadd.f32 %v6609_v12, %v6608_v40  ;;  %v6505_v10 = vmul.f32 %v5986_v25, %v5986_v25  ;;  %6309 = vst.msk [vmem:[%s10077_s16 + $0xbc] sm:$0xf] %vm6261_vm2, %v7249_v34 }
 0x31c   : > { %v8386_v1 = vadd.f32 %v5430_v35, %v3226_v13  ;;  %v8058_v5 = vpop.f32.mrb[50].mxu1  ;;  %v6507_v43 = vmul.f32 %v5988_v32, %v5988_v32  ;;  %6307 = vst.msk [vmem:[%s10077_s16 + $0xb4] sm:$0xf] %vm6261_vm2, %v7247_v4  ;;  %v6615_v3 = vsel %vm6326_vm3, %v6506_v8, 0.0  ;;  %v6420_v14 = vsel %vm6326_vm3, %v5988_v32, 0.0  ;;  %v5914_v8 = vpop.permute.xlu0 %5913 }
 0x31d   : > { %v3229_v60 = vpop.f32.mrb[51].mxu1  ;;  %v6612_v31 = vadd.f32 %v6611_v42, %v6610_v24  ;;  %v6417_v45 = vadd.f32 %v6416_v58, %v6415_v59  ;;  %v5991_v37 = vmul.f32 %v8385_v18, %v10336_v52  ;;  %v6613_v57 = vsel %vm6326_vm3, %v6505_v10, 0.0 }
 0x31e   : > { %v5989_v27 = vmul.f32 %v8386_v1, %v10313_v41  ;;  %v8387_v50 = vadd.f32 %v8322_v62, %v8058_v5  ;;  %v8388_v6 = vadd.f32 %v5433_v39, %v3229_v60  ;;  %v8325_v29 = vpop.f32.mrb[52].mxu0  ;;  %v6617_v53 = vsel %vm6326_vm3, %v6507_v43, 0.0  ;;  %v10426_v39 = vpop.permute.xlu1 %5908 }
 0x31f   : > { %v6419_v9 = vadd.f32 %v6418_v16, %v6417_v45  ;;  %v6614_v55 = vadd.f32 %v6613_v57, %v6612_v31  ;;  %v7252_v52 = vpack.c.bf16 %v5991_v37, %v5991_v37  ;;  %v5446_v41 = vpop.f32.mrb[53].mxu0  ;;  %v6510_v23 = vmul.f32 %v5991_v37, %v5991_v37 }
 0x320   : > { %v7250_v51 = vpack.c.bf16 %v5989_v27, %v5989_v27  ;;  %v6422_v33 = vsel %vm6326_vm3, %v5989_v27, 0.0  ;;  %v6508_v21 = vmul.f32 %v5989_v27, %v5989_v27  ;;  %v8326_v0 = vpop.f32.mrb[54].mxu0  ;;  %v5992_v46 = vmul.f32 %v8387_v50, %v10354_v49 }
 0x321   : > { %v6616_v48 = vadd.f32 %v6615_v3, %v6614_v55  ;;  %6312 = vst.msk [vmem:[%s10077_s16 + $0xc8] sm:$0xf] %vm6261_vm2, %v7252_v52  ;;  %v6421_v11 = vadd.f32 %v6420_v14, %v6419_v9  ;;  %v5990_v44 = vmul.f32 %v8388_v6, %v10332_v7  ;;  %v5449_v2 = vpop.f32.mrb[55].mxu0  ;;  %v6426_v7 = vsel %vm6326_vm3, %v5991_v37, 0.0 }
 0x322   : > { %v8061_v36 = vpop.f32.mrb[52].mxu1  ;;  %6310 = vst.msk [vmem:[%s10077_s16 + $0xc0] sm:$0xf] %vm6261_vm2, %v7250_v51  ;;  %v6619_v63 = vsel %vm6326_vm3, %v6508_v21, 0.0  ;;  %v7253_v56 = vpack.c.bf16 %v5992_v46, %v5992_v46  ;;  %v6511_v12 = vmul.f32 %v5992_v46, %v5992_v46  ;;  %v6623_v59 = vsel %vm6326_vm3, %v6510_v23, 0.0 }
 0x323   : > { %v3242_v22 = vpop.f32.mrb[53].mxu1  ;;  %v8389_v26 = vadd.f32 %v8325_v29, %v8061_v36  ;;  %v6423_v15 = vadd.f32 %v6422_v33, %v6421_v11  ;;  %v6618_v20 = vadd.f32 %v6617_v53, %v6616_v48  ;;  %v7251_v38 = vpack.c.bf16 %v5990_v44, %v5990_v44  ;;  %v5919_v33 = vpop.permute.xlu1 %5918 }
 0x324   : > { %v8390_v54 = vadd.f32 %v5446_v41, %v3242_v22  ;;  %v8062_v35 = vpop.f32.mrb[54].mxu1  ;;  %v6424_v62 = vsel %vm6326_vm3, %v5990_v44, 0.0  ;;  %v6509_v40 = vmul.f32 %v5990_v44, %v5990_v44  ;;  %6313 = vst.msk [vmem:[%s10077_s16 + $0xcc] sm:$0xf] %vm6261_vm2, %v7253_v56  ;;  %v6625_v6 = vsel %vm6326_vm3, %v6511_v12, 0.0  ;;  %v5924_v22 = vpop.permute.xlu0 %5923 }
 0x325   : > { %v3245_v49 = vpop.f32.mrb[55].mxu1  ;;  %v6620_v19 = vadd.f32 %v6619_v63, %v6618_v20  ;;  %v6425_v32 = vadd.f32 %v6424_v62, %v6423_v15  ;;  %v5995_v25 = vmul.f32 %v8389_v26, %v10383_v47  ;;  %6311 = vst.msk [vmem:[%s10077_s16 + $0xc4] sm:$0xf] %vm6261_vm2, %v7251_v38  ;;  %v8391_v18 = vadd.f32 %v8326_v0, %v8062_v35 }
 0x326   : > { %v5993_v13 = vmul.f32 %v8390_v54, %v10360_v61  ;;  %v6621_v42 = vsel %vm6326_vm3, %v6509_v40, 0.0  ;;  %v8392_v1 = vadd.f32 %v5449_v2, %v3245_v49  ;;  %v8329_v5 = vpop.f32.mrb[56].mxu0  ;;  %v6428_v61 = vsel %vm6326_vm3, %v5992_v46, 0.0 }
 0x327   : > { %v6427_v24 = vadd.f32 %v6426_v7, %v6425_v32  ;;  %v6622_v34 = vadd.f32 %v6621_v42, %v6620_v19  ;;  %v7256_v60 = vpack.c.bf16 %v5995_v25, %v5995_v25  ;;  %v5462_v47 = vpop.f32.mrb[57].mxu0  ;;  %v5996_v27 = vmul.f32 %v8391_v18, %v10402_v30  ;;  %v5929_v18 = vpop.permute.xlu1 %5928 }
 0x328   : > { %v7254_v16 = vpack.c.bf16 %v5993_v13, %v5993_v13  ;;  %v6430_v4 = vsel %vm6326_vm3, %v5993_v13, 0.0  ;;  %v6512_v58 = vmul.f32 %v5993_v13, %v5993_v13  ;;  %v8330_v31 = vpop.f32.mrb[58].mxu0  ;;  %v5994_v43 = vmul.f32 %v8392_v1, %v10378_v28 }
 0x329   : > { %v6624_v45 = vadd.f32 %v6623_v59, %v6622_v34  ;;  %6316 = vst.msk [vmem:[%s10077_s16 + $0xd8] sm:$0xf] %vm6261_vm2, %v7256_v60  ;;  %v6429_v37 = vadd.f32 %v6428_v61, %v6427_v24  ;;  %v5465_v50 = vpop.f32.mrb[59].mxu0  ;;  %v6514_v52 = vmul.f32 %v5995_v25, %v5995_v25  ;;  %v7257_v51 = vpack.c.bf16 %v5996_v27, %v5996_v27 }
 0x32a   : > { %v8065_v10 = vpop.f32.mrb[56].mxu1  ;;  %6314 = vst.msk [vmem:[%s10077_s16 + $0xd0] sm:$0xf] %vm6261_vm2, %v7254_v16  ;;  %v6627_v29 = vsel %vm6326_vm3, %v6512_v58, 0.0  ;;  %v6434_v28 = vsel %vm6326_vm3, %v5995_v25, 0.0  ;;  %v7255_v21 = vpack.c.bf16 %v5994_v43, %v5994_v43  ;;  %v6432_v36 = vsel %vm6326_vm3, %v5994_v43, 0.0 }
 0x32b   : > { %v3258_v57 = vpop.f32.mrb[57].mxu1  ;;  %v8393_v3 = vadd.f32 %v8329_v5, %v8065_v10  ;;  %v6431_v41 = vadd.f32 %v6430_v4, %v6429_v37  ;;  %v6626_v14 = vadd.f32 %v6625_v6, %v6624_v45  ;;  %v6513_v0 = vmul.f32 %v5994_v43, %v5994_v43  ;;  %6317 = vst.msk [vmem:[%s10077_s16 + $0xdc] sm:$0xf] %vm6261_vm2, %v7257_v51 }
 0x32c   : > { %v8394_v9 = vadd.f32 %v5462_v47, %v3258_v57  ;;  %v8066_v55 = vpop.f32.mrb[58].mxu1  ;;  %v6515_v2 = vmul.f32 %v5996_v27, %v5996_v27  ;;  %6315 = vst.msk [vmem:[%s10077_s16 + $0xd4] sm:$0xf] %vm6261_vm2, %v7255_v21  ;;  %v6631_v35 = vsel %vm6326_vm3, %v6514_v52, 0.0  ;;  %v6436_v49 = vsel %vm6326_vm3, %v5996_v27, 0.0 }
 0x32d   : > { %v3261_v30 = vpop.f32.mrb[59].mxu1  ;;  %v6628_v48 = vadd.f32 %v6627_v29, %v6626_v14  ;;  %v6433_v11 = vadd.f32 %v6432_v36, %v6431_v41  ;;  %v5999_v46 = vmul.f32 %v8393_v3, %v5914_v8  ;;  %v6629_v53 = vsel %vm6326_vm3, %v6513_v0, 0.0  ;;  %v5939_v41 = vpop.permute.xlu1 %5938 }
 0x32e   : > { %v5997_v44 = vmul.f32 %v8394_v9, %v10407_v17  ;;  %v8395_v63 = vadd.f32 %v8330_v31, %v8066_v55  ;;  %v8396_v26 = vadd.f32 %v5465_v50, %v3261_v30  ;;  %v8333_v54 = vpop.f32.mrb[60].mxu0  ;;  %v6633_v1 = vsel %vm6326_vm3, %v6515_v2, 0.0 }
 0x32f   : > { %v6435_v23 = vadd.f32 %v6434_v28, %v6433_v11  ;;  %v6630_v15 = vadd.f32 %v6629_v53, %v6628_v48  ;;  %v7260_v20 = vpack.c.bf16 %v5999_v46, %v5999_v46  ;;  %v5478_v56 = vpop.f32.mrb[61].mxu0  ;;  %v6518_v34 = vmul.f32 %v5999_v46, %v5999_v46 }
 0x330   : > { %v7258_v17 = vpack.c.bf16 %v5997_v44, %v5997_v44  ;;  %v6438_v7 = vsel %vm6326_vm3, %v5997_v44, 0.0  ;;  %v6516_v38 = vmul.f32 %v5997_v44, %v5997_v44  ;;  %v8334_v40 = vpop.f32.mrb[62].mxu0  ;;  %v6000_v25 = vmul.f32 %v8395_v63, %v5919_v33 }
 0x331   : > { %v6632_v19 = vadd.f32 %v6631_v35, %v6630_v15  ;;  %6320 = vst.msk [vmem:[%s10077_s16 + $0xe8] sm:$0xf] %vm6261_vm2, %v7260_v20  ;;  %v6437_v32 = vadd.f32 %v6436_v49, %v6435_v23  ;;  %v5998_v13 = vmul.f32 %v8396_v26, %v10426_v39  ;;  %v5481_v42 = vpop.f32.mrb[63].mxu0  ;;  %v5934_v39 = vpop.permute.xlu0 %5933  ;;  %v6442_v4 = vsel %vm6326_vm3, %v5999_v46, 0.0 }
 0x332   : > { %v8069_v62 = vpop.f32.mrb[60].mxu1  ;;  %6318 = vst.msk [vmem:[%s10077_s16 + $0xe0] sm:$0xf] %vm6261_vm2, %v7258_v17  ;;  %v6635_v5 = vsel %vm6326_vm3, %v6516_v38, 0.0  ;;  %v7261_v61 = vpack.c.bf16 %v6000_v25, %v6000_v25  ;;  %v6519_v57 = vmul.f32 %v6000_v25, %v6000_v25  ;;  %v6639_v3 = vsel %vm6326_vm3, %v6518_v34, 0.0 }
 0x333   : > { %v3274_v12 = vpop.f32.mrb[61].mxu1  ;;  %v8397_v8 = vadd.f32 %v8333_v54, %v8069_v62  ;;  %v6439_v60 = vadd.f32 %v6438_v7, %v6437_v32  ;;  %v6634_v47 = vadd.f32 %v6633_v1, %v6632_v19  ;;  %v7259_v58 = vpack.c.bf16 %v5998_v13, %v5998_v13 }
 0x334   : > { %v8398_v59 = vadd.f32 %v5478_v56, %v3274_v12  ;;  %v8070_v24 = vpop.f32.mrb[62].mxu1  ;;  %v6440_v10 = vsel %vm6326_vm3, %v5998_v13, 0.0  ;;  %v6517_v31 = vmul.f32 %v5998_v13, %v5998_v13  ;;  %6321 = vst.msk [vmem:[%s10077_s16 + $0xec] sm:$0xf] %vm6261_vm2, %v7261_v61  ;;  %v6444_v14 = vsel %vm6326_vm3, %v6000_v25, 0.0 }
 0x335   : > { %v3277_v16 = vpop.f32.mrb[63].mxu1  ;;  %v6636_v45 = vadd.f32 %v6635_v5, %v6634_v47  ;;  %v6441_v37 = vadd.f32 %v6440_v10, %v6439_v60  ;;  %v6003_v27 = vmul.f32 %v8397_v8, %v5934_v39  ;;  %6319 = vst.msk [vmem:[%s10077_s16 + $0xe4] sm:$0xf] %vm6261_vm2, %v7259_v58  ;;  %v8399_v6 = vadd.f32 %v8334_v40, %v8070_v24 }
 0x336   : > { %v6001_v43 = vmul.f32 %v8398_v59, %v5924_v22  ;;  %v6637_v50 = vsel %vm6326_vm3, %v6517_v31, 0.0  ;;  %v8400_v29 = vadd.f32 %v5481_v42, %v3277_v16  ;;  %v6641_v48 = vsel %vm6326_vm3, %v6519_v57, 0.0 }
 0x337   : > { %v6443_v9 = vadd.f32 %v6442_v4, %v6441_v37  ;;  %v6638_v55 = vadd.f32 %v6637_v50, %v6636_v45  ;;  %v7264_v52 = vpack.c.bf16 %v6003_v27, %v6003_v27  ;;  %v6004_v36 = vmul.f32 %v8399_v6, %v5939_v41 }
 0x338   : > { %v7262_v51 = vpack.c.bf16 %v6001_v43, %v6001_v43  ;;  %v6446_v30 = vsel %vm6326_vm3, %v6001_v43, 0.0  ;;  %v6520_v33 = vmul.f32 %v6001_v43, %v6001_v43  ;;  %v6002_v0 = vmul.f32 %v8400_v29, %v5929_v18 }
 0x339   : > { %v6640_v28 = vadd.f32 %v6639_v3, %v6638_v55  ;;  %6324 = vst.msk [vmem:[%s10077_s16 + $0xf8] sm:$0xf] %vm6261_vm2, %v7264_v52  ;;  %v6445_v21 = vadd.f32 %v6444_v14, %v6443_v9  ;;  %v7265_v22 = vpack.c.bf16 %v6004_v36, %v6004_v36  ;;  %v6522_v2 = vmul.f32 %v6003_v27, %v6003_v27 }
 0x33a   : > { %6322 = vst.msk [vmem:[%s10077_s16 + $0xf0] sm:$0xf] %vm6261_vm2, %v7262_v51  ;;  %v6643_v11 = vsel %vm6326_vm3, %v6520_v33, 0.0  ;;  %v7263_v53 = vpack.c.bf16 %v6002_v0, %v6002_v0  ;;  %v6448_v63 = vsel %vm6326_vm3, %v6002_v0, 0.0  ;;  %v6521_v26 = vmul.f32 %v6002_v0, %v6002_v0 }
 0x33b   : > { %v6447_v46 = vadd.f32 %v6446_v30, %v6445_v21  ;;  %v6642_v44 = vadd.f32 %v6641_v48, %v6640_v28  ;;  %6325 = vst.msk [vmem:[%s10077_s16 + $0xfc] sm:$0xf] %vm6261_vm2, %v7265_v22  ;;  %v6450_v23 = vsel %vm6326_vm3, %v6003_v27, 0.0  ;;  %v6523_v15 = vmul.f32 %v6004_v36, %v6004_v36 }
 0x33c   : > { %6323 = vst.msk [vmem:[%s10077_s16 + $0xf4] sm:$0xf] %vm6261_vm2, %v7263_v53  ;;  %v6645_v20 = vsel %vm6326_vm3, %v6521_v26, 0.0  ;;  %v6647_v17 = vsel %vm6326_vm3, %v6522_v2, 0.0  ;;  %v6452_v7 = vsel %vm6326_vm3, %v6004_v36, 0.0 }
 0x33d   : > { %v6644_v54 = vadd.f32 %v6643_v11, %v6642_v44  ;;  %v6449_v35 = vadd.f32 %v6448_v63, %v6447_v46  ;;  %v6649_v40 = vsel %vm6326_vm3, %v6523_v15, 0.0 }
 0x33f   : > { %v6451_v56 = vadd.f32 %v6450_v23, %v6449_v35  ;;  %v6646_v49 = vadd.f32 %v6645_v20, %v6644_v54 }
 0x341   : > { %v6453_v38 = vadd.f32 %v6452_v7, %v6451_v56  ;;  %v6648_v62 = vadd.f32 %v6647_v17, %v6646_v49 }
 0x343   : > { %v6454_v19 = vrot.slane %v6453_v38, 4  ;;  %v6650_v32 = vadd.f32 %v6649_v40, %v6648_v62 }
 0x345   : > { %v6455_v25 = vadd.f32 %v6454_v19, %v6453_v38  ;;  %v6651_v13 = vrot.slane %v6650_v32, 4 }
 0x347   : > { %v6456_v12 = vrot.slane %v6455_v25, 2  ;;  %v6652_v42 = vadd.f32 %v6651_v13, %v6650_v32 }
 0x349   : > { %v6457_v18 = vadd.f32 %v6456_v12, %v6455_v25  ;;  %v6653_v1 = vrot.slane %v6652_v42, 2 }
 0x34b   : > { %v6458_v5 = vrot.slane %v6457_v18, 1  ;;  %v6654_v8 = vadd.f32 %v6653_v1, %v6652_v42 }
 0x34d   : > { %v6655_v59 = vrot.slane %v6654_v8, 1  ;;  %v6459_v24 = vadd.f32 %v6458_v5, %v6457_v18 }
 0x34f   : > { %v6656_v34 = vadd.f32 %v6655_v59, %v6654_v8 }
 0x351   : > { %v6658_v60 = vsel %vm6657_vm4, %v6459_v24, %v6656_v34 }
 0x352   : > { %6660 = vst.msk [vmem:[%s491_s19] sm:$0x3] %vm6659_vm5, %v6658_v60 }
 0x353 PF: > { %s19_s27 = sadd.s32 1, %s8914_s27   ;;  %s10524_s26 = smov %s8910_s2 }
 0x354   : > { %p16_p5 = scmp.ge.s32.totalorder %s19_s27, 4   ;;  %s10525_s2 = smov %s10527_s28 }
 0x356   :  { %18 = sbr.rel (!%p16_p5) target bundleno = 2 (0x2), region = 104 }

// kernel: double_conv.4
= control target key start
LH: loop header
LB: loop body
LE: loop exit
PB: predicated region body
PF: predicated region fallthrough
CT: control target
= control target key end

     0   :  { %s9709_s27 = smov 0   ;;  %s9711_s28 = smov 0   ;;  %s11727_s0 = inlined_call_operand.vmem [shape: f32[512,1], index: 0, kind: input, shape index: {}]   ;;  %s11728_s1 = inlined_call_operand.vmem [shape: f32[1,8], index: 1, kind: input, shape index: {}]   ;;  %s11729_s2 = inlined_call_operand.vmem [shape: f32[1,8], index: 2, kind: input, shape index: {}]   ;;  %s11730_s3 = inlined_call_operand.vmem [shape: bf16[72,8], index: 3, kind: input, shape index: {}]   ;;  %s11731_s4 = inlined_call_operand.vmem [shape: bf16[2,512,8], index: 4, kind: input, shape index: {}, may-alias: {4,5,6}]   ;;  %s11732_s5 = inlined_call_operand.vmem [shape: bf16[2,512,8], index: 5, kind: input, shape index: {}, may-alias: {4,5,6}]   ;;  %s11733_s6 = inlined_call_operand.vmem [shape: bf16[2,512,8], index: 6, kind: input, shape index: {}, may-alias: {4,5,6}]   ;;  %s11734_s7 = inlined_call_operand.vmem [shape: bf16[2,512,8], index: 7, kind: output, shape index: {0}]   ;;  %s11735_s8 = inlined_call_operand.vmem [shape: f32[2,1,2,8], index: 8, kind: output, shape index: {1}]  }
   0x1   :  { %s9713_s29 = smov 0  }
   0x2 LB: > { %s31_s30 = sadd.s32 1, %s9656_s28  ;;  %p7574_p0 = scmp.ge.s32.totalorder %s9660_s29, 1  ;;  %s9660_s29 = sphi %s9713_s29, %s19_s29   ;;  %s9656_s28 = sphi %s9711_s28, %s11757_s28   ;;  %s9652_s27 = sphi %s9709_s27, %s11756_s27  }
   0x3   : > { %p33_p1 = scmp.ge.s32.totalorder %s31_s30, 2  ;;  %p354_p2 = scmp.lt.s32.totalorder %s9660_s29, 3 }
   0x5   : > { %s11759_s30 = smov (%p33_p1, %s31_s30), 0  ;;  %p355_p3 = pnand %p7574_p0, %p354_p2 }
   0x7   : > { %358 = sbr.rel (%p355_p3) target bundleno = 981 (0x3d5), region = 48 }
   0xe   : > { %v9732_v0 = vld [vmem:[%s11727_s0 + $0x10] sm:$0xff]  ;;  %v9737_v1 = vld [vmem:[%s11727_s0] sm:$0xff]  ;;  %v9662_v2 = vmov 0   ;;  %vm493_vm0 = vcmask 64512   ;;  %v9663_v3 = vmov 0.0   ;;  %v9748_v4 = vld [vmem:[%s11727_s0 + $0x18] sm:$0xff] }
   0xf   : > { %9633 = vset.pattern.permute.xlu1 %v9662_v2  ;;  %9632 = vset.pattern.permute.xlu0 %v9662_v2  ;;  %494 = vst.msk [vmem:[#allocation2] sm:$0xff] %vm493_vm0, %v9663_v3  ;;  %1488 = vst.msk [vmem:[#allocation2 + $0x248] sm:$0xff] %vm493_vm0, %v9663_v3  ;;  %v9753_v5 = vld [vmem:[%s11727_s0 + $0x8] sm:$0xff]  ;;  %v9769_v7 = vld [vmem:[%s11727_s0 + $0x20] sm:$0xff]  ;;  %vm1779_vm1 = vcmask 1043456   ;;  %p430_p4 = scmp.lt.s32.totalorder %s9652_s27, 1 }
  0x10   : > { %545 = vperm.xlu1 %9633, %v9732_v0   ;;  %535 = vperm.xlu0 %9632, %v9737_v1   ;;  %v9764_v6 = vld [vmem:[%s11727_s0 + $0x28] sm:$0xff]  ;;  %v9776_v8 = vld [vmem:[%s11727_s0 + $0x38] sm:$0xff]  ;;  %v9781_v9 = vld [vmem:[%s11727_s0 + $0x30] sm:$0xff]  ;;  %vm7007_vm2 = vcmask 60416   ;;  %vm7402_vm3 = vcmask 1040384   ;;  %vm7404_vm4 = vcmask 58368  }
  0x11   : > { %v9788_v10 = vld [vmem:[%s11727_s0 + $0x48] sm:$0xff]  ;;  %v9793_v11 = vld [vmem:[%s11727_s0 + $0x40] sm:$0xff]  ;;  %v3654_v13 = vld [vmem:[%s11730_s3 + $0x10] sm:$0xf]  ;;  %s11761_s27 = smov (!%p430_p4, %s9652_s27), 1 }
  0x12   : > { %v1682_v12 = vld [vmem:[%s11730_s3 + $0x4] sm:$0xf]  ;;  %9600 = vmatprep.subr.msk.bf16.mxu0 %vm1779_vm1, %v3654_v13  ;;  %v9806_v14 = vld [vmem:[%s11730_s3] sm:$0xf]  ;;  %v9814_v16 = vld [vmem:[%s11727_s0 + $0x58] sm:$0xff]  ;;  %v9841_v21 = vsel %vm1779_vm1, %v3654_v13, 0 }
  0x13   : > { %9596 = vmatprep.subr.msk.bf16.mxu1 %vm1779_vm1, %v1682_v12  ;;  %v1781_v15 = vsel %vm1779_vm1, %v1682_v12, 0  ;;  %v9819_v17 = vld [vmem:[%s11727_s0 + $0x50] sm:$0xff]  ;;  %v9833_v19 = vld [vmem:[%s11727_s0 + $0x68] sm:$0xff]  ;;  %v9838_v20 = vld [vmem:[%s11727_s0 + $0x60] sm:$0xff]  ;;  %8753 = vmatpush3.bf16.msra.mxu0 %v9841_v21  ;;  %s9991_s9 = sshll.u32 %s11761_s27, 8 }
  0x14   : > { %550 = vperm.xlu1 %9633, %v9748_v4   ;;  %540 = vperm.xlu0 %9632, %v9753_v5   ;;  %v9828_v18 = vld [vmem:[%s11730_s3 + $0x14] sm:$0xf]  ;;  %v9851_v22 = vld [vmem:[%s11727_s0 + $0x78] sm:$0xff]  ;;  %v9863_v24 = vld [vmem:[%s11727_s0 + $0x88] sm:$0xff]  ;;  %s451_s16 = scalar_lea.vmem %s11732_s5, %s9991_s9  ;;  %s10019_s10 = scalar_lea.vmem %s11731_s4, %s9991_s9 }
  0x15   : > { %8489 = vmatpush3.bf16.msra.mxu1 %v1781_v15  ;;  %9602 = vmatprep.subr.msk.bf16.mxu0 %vm1779_vm1, %v9828_v18  ;;  %v9856_v23 = vld [vmem:[%s11727_s0 + $0x70] sm:$0xff]  ;;  %v9868_v25 = vld [vmem:[%s11727_s0 + $0x80] sm:$0xff]  ;;  %v9875_v26 = vld [vmem:[%s11727_s0 + $0x98] sm:$0xff]  ;;  %s7947_s25 = sadd.s32 240, %s9991_s9  ;;  %s11293_s24 = scalar_lea.vmem %s11734_s7, %s9991_s9 }
  0x16   : > { %9597 = vmatprep.subr.msk.bf16.mxu1 %vm1779_vm1, %v9806_v14  ;;  %v9880_v27 = vld [vmem:[%s11727_s0 + $0x90] sm:$0xff]  ;;  %v9887_v28 = vld [vmem:[%s11727_s0 + $0xa8] sm:$0xff]  ;;  %v9892_v29 = vld [vmem:[%s11727_s0 + $0xa0] sm:$0xff]  ;;  %s10481_s12 = scalar_lea.vmem %s11733_s6, %s7947_s25  ;;  %s7583_s9 = sshll.u32 %s11761_s27, 1 }
  0x17   : > { %v9899_v30 = vld [vmem:[%s11727_s0 + $0xb8] sm:$0xff]  ;;  %v9904_v31 = vld [vmem:[%s11727_s0 + $0xb0] sm:$0xff]  ;;  %v928_v32 = vld [vmem:[%s11727_s0 + $0xc8] sm:$0xff]  ;;  %s491_s11 = scalar_lea.vmem %s11735_s8, %s7583_s9 }
  0x18   : > { %974 = vperm.xlu1 %9633, %v9753_v5   ;;  %969 = vperm.xlu0 %9632, %v9737_v1   ;;  %v927_v33 = vld [vmem:[%s11727_s0 + $0xc0] sm:$0xff]  ;;  %v930_v34 = vld [vmem:[%s11727_s0 + $0xd8] sm:$0xff]  ;;  %v929_v35 = vld [vmem:[%s11727_s0 + $0xd0] sm:$0xff] }
  0x19   : > { %v932_v36 = vld [vmem:[%s11727_s0 + $0xe8] sm:$0xff]  ;;  %v931_v37 = vld [vmem:[%s11727_s0 + $0xe0] sm:$0xff]  ;;  %v934_v38 = vld [vmem:[%s11727_s0 + $0xf8] sm:$0xff] }
  0x1a   : > { %v933_v39 = vld [vmem:[%s11727_s0 + $0xf0] sm:$0xff]  ;;  %v936_v40 = vld [vmem:[%s11727_s0 + $0x108] sm:$0xff]  ;;  %v935_v41 = vld [vmem:[%s11727_s0 + $0x100] sm:$0xff] }
  0x1b   : > { %v938_v42 = vld [vmem:[%s11727_s0 + $0x118] sm:$0xff]  ;;  %v937_v43 = vld [vmem:[%s11727_s0 + $0x110] sm:$0xff]  ;;  %v940_v44 = vld [vmem:[%s11727_s0 + $0x128] sm:$0xff] }
  0x1c   : > { %984 = vperm.xlu1 %9633, %v9748_v4   ;;  %979 = vperm.xlu0 %9632, %v9732_v0   ;;  %v939_v45 = vld [vmem:[%s11727_s0 + $0x120] sm:$0xff]  ;;  %v942_v46 = vld [vmem:[%s11727_s0 + $0x138] sm:$0xff]  ;;  %v941_v47 = vld [vmem:[%s11727_s0 + $0x130] sm:$0xff] }
  0x1d   : > { %v944_v48 = vld [vmem:[%s11727_s0 + $0x148] sm:$0xff]  ;;  %v943_v49 = vld [vmem:[%s11727_s0 + $0x140] sm:$0xff]  ;;  %v946_v50 = vld [vmem:[%s11727_s0 + $0x158] sm:$0xff] }
  0x1e   : > { %v945_v51 = vld [vmem:[%s11727_s0 + $0x150] sm:$0xff]  ;;  %v948_v52 = vld [vmem:[%s11727_s0 + $0x168] sm:$0xff]  ;;  %v947_v53 = vld [vmem:[%s11727_s0 + $0x160] sm:$0xff] }
  0x1f   : > { %v950_v54 = vld [vmem:[%s11727_s0 + $0x178] sm:$0xff]  ;;  %v949_v55 = vld [vmem:[%s11727_s0 + $0x170] sm:$0xff]  ;;  %v952_v56 = vld [vmem:[%s11727_s0 + $0x188] sm:$0xff] }
  0x20   : > { %994 = vperm.xlu1 %9633, %v9764_v6   ;;  %989 = vperm.xlu0 %9632, %v9769_v7   ;;  %v951_v57 = vld [vmem:[%s11727_s0 + $0x180] sm:$0xff]  ;;  %v954_v58 = vld [vmem:[%s11727_s0 + $0x198] sm:$0xff]  ;;  %v953_v59 = vld [vmem:[%s11727_s0 + $0x190] sm:$0xff] }
  0x21   : > { %v956_v60 = vld [vmem:[%s11727_s0 + $0x1a8] sm:$0xff]  ;;  %v955_v61 = vld [vmem:[%s11727_s0 + $0x1a0] sm:$0xff]  ;;  %v958_v13 = vld [vmem:[%s11727_s0 + $0x1b8] sm:$0xff] }
  0x22   : > { %v8158_v62 = vld [vmem:[%s451_s16 + $0x8] sm:$0xff]   ;;  %v8014_v63 = vld [vmem:[%s451_s16] sm:$0xff]   ;;  %v957_v15 = vld [vmem:[%s11727_s0 + $0x1b0] sm:$0xff] }
  0x23   : > { %v8019_v2 = vunpack.c.l.bf16 %v8158_v62  ;;  %v8015_v12 = vunpack.c.l.bf16 %v8014_v63 }
  0x24   : > { %1004 = vperm.xlu1 %9633, %v9776_v8   ;;  %999 = vperm.xlu0 %9632, %v9781_v9  }
  0x28   : > { %1014 = vperm.xlu1 %9633, %v9788_v10   ;;  %1009 = vperm.xlu0 %9632, %v9793_v11  }
  0x2c   : > { %1024 = vperm.xlu1 %9633, %v9814_v16   ;;  %1019 = vperm.xlu0 %9632, %v9819_v17  }
  0x30   : > { %1034 = vperm.xlu1 %9633, %v9833_v19   ;;  %1029 = vperm.xlu0 %9632, %v9838_v20  }
  0x34   : > { %1044 = vperm.xlu1 %9633, %v9851_v22   ;;  %1039 = vperm.xlu0 %9632, %v9856_v23  }
  0x38   : > { %1054 = vperm.xlu1 %9633, %v9863_v24   ;;  %1049 = vperm.xlu0 %9632, %v9868_v25  }
  0x3c   : > { %1064 = vperm.xlu1 %9633, %v9875_v26   ;;  %1059 = vperm.xlu0 %9632, %v9880_v27  }
  0x40   : > { %1074 = vperm.xlu1 %9633, %v9887_v28   ;;  %1069 = vperm.xlu0 %9632, %v9892_v29  }
  0x44   : > { %1084 = vperm.xlu1 %9633, %v9899_v30   ;;  %1079 = vperm.xlu0 %9632, %v9904_v31  }
  0x48   : > { %1094 = vperm.xlu1 %9633, %v928_v32   ;;  %1089 = vperm.xlu0 %9632, %v927_v33   ;;  %v10024_v32 = vld [vmem:[%s11728_s1] ss:$0 sm:$0xff]  ;;  %v8020_v33 = vunpack.c.h.bf16 %v8158_v62 }
  0x4c   : > { %1104 = vperm.xlu1 %9633, %v930_v34   ;;  %1099 = vperm.xlu0 %9632, %v929_v35   ;;  %v512_v34 = vmul.f32 %v8019_v2, %v10024_v32  ;;  %v510_v35 = vmul.f32 %v8015_v12, %v10024_v32 }
  0x50   : > { %1114 = vperm.xlu1 %9633, %v932_v36   ;;  %1109 = vperm.xlu0 %9632, %v931_v37   ;;  %v8016_v36 = vunpack.c.h.bf16 %v8014_v63  ;;  %v8022_v37 = vld [vmem:[%s10019_s10] sm:$0xff]  }
  0x54   : > { %1124 = vperm.xlu1 %9633, %v934_v38   ;;  %1119 = vperm.xlu0 %9632, %v933_v39   ;;  %v960_v38 = vld [vmem:[%s11727_s0 + $0x1c8] sm:$0xff]  ;;  %v959_v39 = vld [vmem:[%s11727_s0 + $0x1c0] sm:$0xff] }
  0x58   : > { %1134 = vperm.xlu1 %9633, %v936_v40   ;;  %1129 = vperm.xlu0 %9632, %v935_v41   ;;  %v10038_v40 = vld [vmem:[%s11729_s2] ss:$0 sm:$0xff]  ;;  %v513_v41 = vmul.f32 %v8020_v33, %v10024_v32 }
  0x5c   : > { %1144 = vperm.xlu1 %9633, %v938_v42   ;;  %1139 = vperm.xlu0 %9632, %v937_v43   ;;  %v8024_v42 = vunpack.c.h.bf16 %v8022_v37  ;;  %v8023_v43 = vunpack.c.l.bf16 %v8022_v37 }
  0x60   : > { %1154 = vperm.xlu1 %9633, %v940_v44   ;;  %1149 = vperm.xlu0 %9632, %v939_v45   ;;  %v8159_v44 = vld [vmem:[%s10019_s10 + $0x8] sm:$0xff]   ;;  %v523_v45 = vadd.f32 %v10038_v40, %v512_v34  ;;  %v8161_v34 = vld [vmem:[%s10019_s10 + $0x18] sm:$0xff]  }
  0x64   : > { %1164 = vperm.xlu1 %9633, %v942_v46   ;;  %1159 = vperm.xlu0 %9632, %v941_v47   ;;  %v521_v46 = vadd.f32 %v10038_v40, %v510_v35  ;;  %v511_v47 = vmul.f32 %v8016_v36, %v10024_v32 }
  0x68   : > { %1174 = vperm.xlu1 %9633, %v944_v48   ;;  %1169 = vperm.xlu0 %9632, %v943_v49   ;;  %v962_v48 = vld [vmem:[%s11727_s0 + $0x1d8] sm:$0xff]  ;;  %v961_v49 = vld [vmem:[%s11727_s0 + $0x1d0] sm:$0xff] }
  0x6c   : > { %1184 = vperm.xlu1 %9633, %v946_v50   ;;  %1179 = vperm.xlu0 %9632, %v945_v51   ;;  %v524_v50 = vadd.f32 %v10038_v40, %v513_v41  ;;  %v8028_v51 = vunpack.c.h.bf16 %v8159_v44 }
  0x6e   : > { %v707_v62 = vmul.f32 %v8028_v51, %v10024_v32 }
  0x70   : > { %1194 = vperm.xlu1 %9633, %v948_v52   ;;  %1189 = vperm.xlu0 %9632, %v947_v53   ;;  %v705_v52 = vmul.f32 %v8024_v42, %v10024_v32  ;;  %v704_v53 = vmul.f32 %v8023_v43, %v10024_v32  ;;  %v778_v41 = vadd.f32 %v10038_v40, %v707_v62  ;;  %v8036_v42 = vunpack.c.h.bf16 %v8161_v34 }
  0x72   : > { %v776_v12 = vadd.f32 %v10038_v40, %v705_v52 }
  0x74   : > { %1204 = vperm.xlu1 %9633, %v950_v54   ;;  %1199 = vperm.xlu0 %9632, %v949_v55   ;;  %v8027_v54 = vunpack.c.l.bf16 %v8159_v44  ;;  %v527_v55 = vmax.f32 %v523_v45, 0.0  ;;  %v840_v45 = vmax.f32 %v776_v12, 0.0 }
  0x78   : > { %1214 = vperm.xlu1 %9633, %v952_v56   ;;  %1209 = vperm.xlu0 %9632, %v951_v57   ;;  %v525_v56 = vmax.f32 %v521_v46, 0.0  ;;  %v522_v57 = vadd.f32 %v10038_v40, %v511_v47 }
  0x7a   : > { %v526_v37 = vmax.f32 %v522_v57, 0.0 }
  0x7c   : > { %1224 = vperm.xlu1 %9633, %v954_v58   ;;  %1219 = vperm.xlu0 %9632, %v953_v59   ;;  %v8160_v58 = vld [vmem:[%s10019_s10 + $0x10] sm:$0xff]   ;;  %v964_v59 = vld [vmem:[%s11727_s0 + $0x1e8] sm:$0xff] }
  0x7d   : > { %v8032_v33 = vunpack.c.h.bf16 %v8160_v58 }
  0x7f   : > { %v709_v47 = vmul.f32 %v8032_v33, %v10024_v32 }
  0x80   : > { %1234 = vperm.xlu1 %9633, %v956_v60   ;;  %1229 = vperm.xlu0 %9632, %v955_v61   ;;  %v963_v60 = vld [vmem:[%s11727_s0 + $0x1e0] sm:$0xff]  ;;  %v528_v61 = vmax.f32 %v524_v50, 0.0 }
  0x84   : > { %1244 = vperm.xlu1 %9633, %v958_v13   ;;  %1239 = vperm.xlu0 %9632, %v957_v15   ;;  %v775_v13 = vadd.f32 %v10038_v40, %v704_v53  ;;  %v706_v15 = vmul.f32 %v8027_v54, %v10024_v32  ;;  %v966_v54 = vld [vmem:[%s11727_s0 + $0x1f8] sm:$0xff] }
  0x86   : > { %v777_v46 = vadd.f32 %v10038_v40, %v706_v15  ;;  %v839_v52 = vmax.f32 %v775_v13, 0.0 }
  0x88   : > { %1254 = vperm.xlu1 %9633, %v960_v38   ;;  %1249 = vperm.xlu0 %9632, %v959_v39   ;;  %v8031_v38 = vunpack.c.l.bf16 %v8160_v58  ;;  %v965_v39 = vld [vmem:[%s11727_s0 + $0x1f0] sm:$0xff]  ;;  %v841_v13 = vmax.f32 %v777_v46, 0.0 }
  0x8a   : > { %v708_v53 = vmul.f32 %v8031_v38, %v10024_v32 }
  0x8c   : > { %1264 = vperm.xlu1 %9633, %v962_v48   ;;  %1259 = vperm.xlu0 %9632, %v961_v49   ;;  %v8035_v48 = vunpack.c.l.bf16 %v8161_v34  ;;  %v8162_v49 = vld [vmem:[%s10019_s10 + $0x20] sm:$0xff]   ;;  %v779_v15 = vadd.f32 %v10038_v40, %v708_v53 }
  0x8d   : > { %v8039_v57 = vunpack.c.l.bf16 %v8162_v49 }
  0x8e   : > { %v710_v62 = vmul.f32 %v8035_v48, %v10024_v32  ;;  %v8164_v48 = vld [vmem:[%s10019_s10 + $0x30] sm:$0xff]  }
  0x8f   : > { %v546_v63 = vpop.permute.xlu1 %545  ;;  %v536_v2 = vpop.permute.xlu0 %535 }
  0x90   : > { %v555_v35 = vmul.f32 %v546_v63, %v527_v55  ;;  %v553_v36 = vmul.f32 %v536_v2, %v525_v56  ;;  %1274 = vperm.xlu1 %9633, %v964_v59   ;;  %1269 = vperm.xlu0 %9632, %v963_v60   ;;  %v711_v55 = vmul.f32 %v8036_v42, %v10024_v32  ;;  %v8040_v56 = vunpack.c.h.bf16 %v8162_v49  ;;  %v8163_v63 = vld [vmem:[%s10019_s10 + $0x28] sm:$0xff]  }
  0x91   : > { %v842_v60 = vmax.f32 %v778_v41, 0.0  ;;  %v781_v41 = vadd.f32 %v10038_v40, %v710_v62  ;;  %v2169_v49 = vsel %vm1779_vm1, %v9806_v14, 0  ;;  %v8165_v14 = vld [vmem:[%s10019_s10 + $0x38] sm:$0xff]  }
  0x92   : > { %559 = vst.msk [vmem:[#allocation2 + $0x18] sm:$0xff] %vm493_vm0, %v555_v35  ;;  %557 = vst.msk [vmem:[#allocation2 + $0x8] sm:$0xff] %vm493_vm0, %v553_v36  ;;  %v782_v33 = vadd.f32 %v10038_v40, %v711_v55  ;;  %v713_v34 = vmul.f32 %v8040_v56, %v10024_v32  ;;  %v712_v35 = vmul.f32 %v8039_v57, %v10024_v32  ;;  %v8044_v36 = vunpack.c.h.bf16 %v8163_v63 }
  0x93   : > { %567 = vst.msk [vmem:[#allocation2 + $0x18] sm:$0xff] %vm493_vm0, %v9663_v3  ;;  %565 = vst.msk [vmem:[#allocation2 + $0x8] sm:$0xff] %vm493_vm0, %v9663_v3  ;;  %v551_v43 = vpop.permute.xlu1 %550  ;;  %v541_v44 = vpop.permute.xlu0 %540 }
  0x94   : > { %v556_v50 = vmul.f32 %v551_v43, %v528_v61  ;;  %v554_v51 = vmul.f32 %v541_v44, %v526_v37  ;;  %1455 = vperm.xlu1 %9633, %v9737_v1   ;;  %1279 = vperm.xlu0 %9632, %v965_v39   ;;  %v780_v61 = vadd.f32 %v10038_v40, %v709_v47  ;;  %v843_v44 = vmax.f32 %v779_v15, 0.0 }
  0x95   : > { %v8043_v47 = vunpack.c.l.bf16 %v8163_v63  ;;  %v784_v53 = vadd.f32 %v10038_v40, %v713_v34  ;;  %v715_v55 = vmul.f32 %v8044_v36, %v10024_v32 }
  0x96   : > { %560 = vst.msk [vmem:[#allocation2 + $0x20] sm:$0xff] %vm493_vm0, %v556_v50  ;;  %558 = vst.msk [vmem:[#allocation2 + $0x10] sm:$0xff] %vm493_vm0, %v554_v51  ;;  %v844_v39 = vmax.f32 %v780_v61, 0.0  ;;  %v8047_v61 = vunpack.c.l.bf16 %v8164_v48 }
  0x97   : > { %568 = vst.msk [vmem:[#allocation2 + $0x20] sm:$0xff] %vm493_vm0, %v9663_v3  ;;  %566 = vst.msk [vmem:[#allocation2 + $0x10] sm:$0xff] %vm493_vm0, %v9663_v3  ;;  %v975_v58 = vpop.permute.xlu1 %974  ;;  %v970_v59 = vpop.permute.xlu0 %969  ;;  %v848_v34 = vmax.f32 %v784_v53, 0.0 }
  0x98   : > { %v1288_v2 = vmul.f32 %v975_v58, %v840_v45  ;;  %v1287_v12 = vmul.f32 %v970_v59, %v839_v52  ;;  %1460 = vperm.xlu1 %9633, %v9753_v5   ;;  %1284 = vperm.xlu0 %9632, %v966_v54   ;;  %v846_v52 = vmax.f32 %v782_v33, 0.0  ;;  %v783_v54 = vadd.f32 %v10038_v40, %v712_v35 }
  0x99   : > { %v8052_v35 = vunpack.c.h.bf16 %v8165_v14 }
  0x9a   : > { %1352 = vst.msk [vmem:[#allocation2 + $0x30] sm:$0xff] %vm493_vm0, %v1288_v2  ;;  %1351 = vst.msk [vmem:[#allocation2 + $0x28] sm:$0xff] %vm493_vm0, %v1287_v12  ;;  %v1586_v45 = vld [vmem:[#allocation2 + $0x8] sm:$0xff]  ;;  %v1588_v46 = vld [vmem:[#allocation2 + $0x18] sm:$0xff]  ;;  %v845_v2 = vmax.f32 %v781_v41, 0.0  ;;  %v714_v12 = vmul.f32 %v8043_v47, %v10024_v32 }
  0x9b   : > { %v985_v37 = vpop.permute.xlu1 %984  ;;  %v980_v38 = vpop.permute.xlu0 %979  ;;  %v8166_v41 = vld [vmem:[%s10019_s10 + $0x40] sm:$0xff]  }
  0x9c   : > { %v1290_v42 = vmul.f32 %v985_v37, %v842_v60  ;;  %v1289_v43 = vmul.f32 %v980_v38, %v841_v13  ;;  %1470 = vperm.xlu1 %9633, %v9748_v4   ;;  %1465 = vperm.xlu0 %9632, %v9732_v0   ;;  %v8048_v60 = vunpack.c.h.bf16 %v8164_v48  ;;  %v716_v38 = vmul.f32 %v8047_v61, %v10024_v32  ;;  %v10147_v61 = vld [vmem:[%s11730_s3 + $0x18] sm:$0xf] }
  0x9e   : > { %1354 = vst.msk [vmem:[#allocation2 + $0x40] sm:$0xff] %vm493_vm0, %v1290_v42  ;;  %1353 = vst.msk [vmem:[#allocation2 + $0x38] sm:$0xff] %vm493_vm0, %v1289_v43  ;;  %v1587_v50 = vld [vmem:[#allocation2 + $0x10] sm:$0xff]  ;;  %v1589_v51 = vld [vmem:[#allocation2 + $0x20] sm:$0xff]  ;;  %v717_v37 = vmul.f32 %v8048_v60, %v10024_v32  ;;  %v787_v60 = vadd.f32 %v10038_v40, %v716_v38 }
  0x9f   : > { %v995_v56 = vpop.permute.xlu1 %994  ;;  %v990_v57 = vpop.permute.xlu0 %989  ;;  %v1650_v58 = vpack.c.bf16 %v1587_v50, %v1586_v45  ;;  %v1651_v59 = vpack.c.bf16 %v1589_v51, %v1588_v46  ;;  %v785_v45 = vadd.f32 %v10038_v40, %v714_v12 }
  0xa0   : > { %v1292_v62 = vmul.f32 %v995_v56, %v844_v39  ;;  %v1291_v63 = vmul.f32 %v990_v57, %v843_v44  ;;  %6374 = vperm.xlu1 %9633, %v9753_v5   ;;  %6369 = vperm.xlu0 %9632, %v9737_v1   ;;  %v786_v1 = vadd.f32 %v10038_v40, %v715_v55  ;;  %v8051_v39 = vunpack.c.l.bf16 %v8165_v14  ;;  %v8167_v56 = vld [vmem:[%s10019_s10 + $0x48] sm:$0xff]  }
  0xa1   : > { %8490 = vmatprep.mubr.msk.bf16.mxu1 %vm493_vm0, %v1650_v58  ;;  %v1590_v13 = vld [vmem:[#allocation2 + $0x28] sm:$0xff]  ;;  %v1591_v15 = vld [vmem:[#allocation2 + $0x30] sm:$0xff]  ;;  %v847_v44 = vmax.f32 %v783_v54, 0.0  ;;  %v788_v53 = vadd.f32 %v10038_v40, %v717_v37  ;;  %v8055_v55 = vunpack.c.l.bf16 %v8166_v41 }
  0xa2   : > { %1356 = vst.msk [vmem:[#allocation2 + $0x50] sm:$0xff] %vm493_vm0, %v1292_v62  ;;  %1355 = vst.msk [vmem:[#allocation2 + $0x48] sm:$0xff] %vm493_vm0, %v1291_v63  ;;  %8491 = vmatmul.mubr.msk.bf16.vlgmr.msra.gmra.mrb[0].mxu1 %vm493_vm0, %v1651_v59  ;;  %v1652_v33 = vpack.c.bf16 %v1591_v15, %v1590_v13  ;;  %v718_v54 = vmul.f32 %v8051_v39, %v10024_v32  ;;  %v2556_v57 = vld [vmem:[%s11730_s3 + $0x8] sm:$0xf]  ;;  %v8060_v63 = vunpack.c.h.bf16 %v8167_v56  ;;  %v8168_v37 = vld [vmem:[%s10019_s10 + $0x50] sm:$0xff]  }
  0xa3   : > { %v1005_v5 = vpop.permute.xlu1 %1004  ;;  %v1000_v36 = vpop.permute.xlu0 %999  ;;  %8555 = vmatpush3.bf16.msra.mxu1 %v2169_v49  ;;  %v8056_v49 = vunpack.c.h.bf16 %v8166_v41  ;;  %v852_v13 = vmax.f32 %v788_v53, 0.0 }
  0xa4   : > { %v1294_v42 = vmul.f32 %v1005_v5, %v846_v52  ;;  %v1293_v43 = vmul.f32 %v1000_v36, %v845_v2  ;;  %6384 = vperm.xlu1 %9633, %v9748_v4   ;;  %6379 = vperm.xlu0 %9632, %v9732_v0   ;;  %v4301_v4 = vsel %vm1779_vm1, %v9828_v18, 0  ;;  %v719_v0 = vmul.f32 %v8052_v35, %v10024_v32 }
  0xa5   : > { %8494 = vmatprep.mubr.msk.bf16.mxu1 %vm493_vm0, %v1652_v33  ;;  %8754 = vmatprep.mubr.msk.bf16.mxu0 %vm493_vm0, %v1652_v33  ;;  %v3560_v46 = vld [vmem:[#allocation2 + $0x38] sm:$0xff]  ;;  %v3561_v47 = vld [vmem:[#allocation2 + $0x40] sm:$0xff]  ;;  %v850_v52 = vmax.f32 %v786_v1, 0.0  ;;  %v849_v18 = vmax.f32 %v785_v45, 0.0  ;;  %v789_v33 = vadd.f32 %v10038_v40, %v718_v54  ;;  %v851_v36 = vmax.f32 %v787_v60, 0.0 }
  0xa6   : > { %1358 = vst.msk [vmem:[#allocation2 + $0x60] sm:$0xff] %vm493_vm0, %v1294_v42  ;;  %1357 = vst.msk [vmem:[#allocation2 + $0x58] sm:$0xff] %vm493_vm0, %v1293_v43  ;;  %v3623_v48 = vpack.c.bf16 %v3561_v47, %v3560_v46  ;;  %9598 = vmatprep.subr.msk.bf16.mxu1 %vm1779_vm1, %v2556_v57  ;;  %v790_v15 = vadd.f32 %v10038_v40, %v719_v0  ;;  %v8059_v1 = vunpack.c.l.bf16 %v8167_v56  ;;  %v8064_v46 = vunpack.c.h.bf16 %v8168_v37 }
  0xa7   : > { %v1015_v50 = vpop.permute.xlu1 %1014  ;;  %v1010_v51 = vpop.permute.xlu0 %1009  ;;  %v8063_v47 = vunpack.c.l.bf16 %v8168_v37 }
  0xa8   : > { %v1296_v58 = vmul.f32 %v1015_v50, %v848_v34  ;;  %v1295_v59 = vmul.f32 %v1010_v51, %v847_v44  ;;  %6394 = vperm.xlu1 %9633, %v9764_v6   ;;  %6389 = vperm.xlu0 %9632, %v9769_v7   ;;  %v721_v7 = vmul.f32 %v8056_v49, %v10024_v32  ;;  %v854_v44 = vmax.f32 %v790_v15, 0.0 }
  0xa9   : > { %8755 = vmatmul.mubr.msk.bf16.vlgmr.msra.gmra.mrb[0].mxu0 %vm493_vm0, %v3623_v48  ;;  %v1594_v14 = vld [vmem:[#allocation2 + $0x48] sm:$0xff]  ;;  %v1595_v62 = vld [vmem:[#allocation2 + $0x50] sm:$0xff]  ;;  %v720_v34 = vmul.f32 %v8055_v55, %v10024_v32  ;;  %v853_v49 = vmax.f32 %v789_v33, 0.0  ;;  %v722_v50 = vmul.f32 %v8059_v1, %v10024_v32 }
  0xaa   : > { %1360 = vst.msk [vmem:[#allocation2 + $0x70] sm:$0xff] %vm493_vm0, %v1296_v58  ;;  %1359 = vst.msk [vmem:[#allocation2 + $0x68] sm:$0xff] %vm493_vm0, %v1295_v59  ;;  %8819 = vmatpush3.bf16.msra.mxu0 %v4301_v4  ;;  %8495 = vmatmul.mubr.msk.bf16.gmra.mrb[4].mxu1 %vm493_vm0, %v3623_v48  ;;  %v1654_v6 = vpack.c.bf16 %v1595_v62, %v1594_v14  ;;  %v792_v42 = vadd.f32 %v10038_v40, %v721_v7  ;;  %v8169_v48 = vld [vmem:[%s10019_s10 + $0x58] sm:$0xff]  }
  0xab   : > { %v1025_v2 = vpop.permute.xlu1 %1024  ;;  %v1020_v12 = vpop.permute.xlu0 %1019  ;;  %9603 = vmatprep.subr.msk.bf16.mxu0 %vm1779_vm1, %v10147_v61  ;;  %v791_v45 = vadd.f32 %v10038_v40, %v720_v34  ;;  %v725_v58 = vmul.f32 %v8064_v46, %v10024_v32  ;;  %v724_v59 = vmul.f32 %v8063_v47, %v10024_v32  ;;  %v793_v14 = vadd.f32 %v10038_v40, %v722_v50 }
  0xac   : > { %v1298_v35 = vmul.f32 %v1025_v2, %v850_v52  ;;  %v1297_v5 = vmul.f32 %v1020_v12, %v849_v18  ;;  %6404 = vperm.xlu1 %9633, %v9776_v8   ;;  %6399 = vperm.xlu0 %9632, %v9781_v9   ;;  %v723_v8 = vmul.f32 %v8060_v63, %v10024_v32  ;;  %v856_v56 = vmax.f32 %v792_v42, 0.0 }
  0xad   : > { %8498 = vmatprep.mubr.msk.bf16.mxu1 %vm493_vm0, %v1654_v6  ;;  %8758 = vmatprep.mubr.msk.bf16.mxu0 %vm493_vm0, %v1654_v6  ;;  %v3564_v38 = vld [vmem:[#allocation2 + $0x58] sm:$0xff]  ;;  %v3565_v39 = vld [vmem:[#allocation2 + $0x60] sm:$0xff]  ;;  %v855_v57 = vmax.f32 %v791_v45, 0.0  ;;  %v8067_v62 = vunpack.c.l.bf16 %v8169_v48  ;;  %v796_v15 = vadd.f32 %v10038_v40, %v725_v58  ;;  %v795_v33 = vadd.f32 %v10038_v40, %v724_v59 }
  0xae   : > { %1362 = vst.msk [vmem:[#allocation2 + $0x80] sm:$0xff] %vm493_vm0, %v1298_v35  ;;  %1361 = vst.msk [vmem:[#allocation2 + $0x78] sm:$0xff] %vm493_vm0, %v1297_v5  ;;  %v3625_v41 = vpack.c.bf16 %v3565_v39, %v3564_v38  ;;  %v794_v54 = vadd.f32 %v10038_v40, %v723_v8  ;;  %v8170_v6 = vld [vmem:[%s10019_s10 + $0x60] sm:$0xff]   ;;  %v8171_v5 = vld [vmem:[%s10019_s10 + $0x68] sm:$0xff]   ;;  %v857_v37 = vmax.f32 %v793_v14, 0.0 }
  0xaf   : > { %v1035_v9 = vpop.permute.xlu1 %1034  ;;  %v1030_v43 = vpop.permute.xlu0 %1029  ;;  %v8072_v34 = vunpack.c.h.bf16 %v8170_v6  ;;  %v8071_v35 = vunpack.c.l.bf16 %v8170_v6  ;;  %v726_v38 = vmul.f32 %v8067_v62, %v10024_v32 }
  0xb0   : > { %v1300_v4 = vmul.f32 %v1035_v9, %v852_v13  ;;  %v1299_v0 = vmul.f32 %v1030_v43, %v851_v36  ;;  %6414 = vperm.xlu1 %9633, %v9788_v10   ;;  %6409 = vperm.xlu0 %9632, %v9793_v11   ;;  %v8068_v10 = vunpack.c.h.bf16 %v8169_v48  ;;  %v858_v12 = vmax.f32 %v794_v54, 0.0 }
  0xb1   : > { %8759 = vmatmul.mubr.msk.bf16.gmra.mrb[4].mxu0 %vm493_vm0, %v3625_v41  ;;  %v1598_v51 = vld [vmem:[#allocation2 + $0x68] sm:$0xff]  ;;  %v1599_v52 = vld [vmem:[#allocation2 + $0x70] sm:$0xff]  ;;  %v860_v43 = vmax.f32 %v796_v15, 0.0  ;;  %v729_v45 = vmul.f32 %v8072_v34, %v10024_v32  ;;  %v728_v46 = vmul.f32 %v8071_v35, %v10024_v32  ;;  %v8174_v35 = vld [vmem:[%s10019_s10 + $0x80] sm:$0xff]  }
  0xb2   : > { %1364 = vst.msk [vmem:[#allocation2 + $0x90] sm:$0xff] %vm493_vm0, %v1300_v4  ;;  %1363 = vst.msk [vmem:[#allocation2 + $0x88] sm:$0xff] %vm493_vm0, %v1299_v0  ;;  %8499 = vmatmul.mubr.msk.bf16.gmra.mrb[8].mxu1 %vm493_vm0, %v3625_v41  ;;  %v1656_v53 = vpack.c.bf16 %v1599_v52, %v1598_v51  ;;  %v797_v4 = vadd.f32 %v10038_v40, %v726_v38  ;;  %v8075_v0 = vunpack.c.l.bf16 %v8171_v5 }
  0xb3   : > { %v1045_v55 = vpop.permute.xlu1 %1044  ;;  %v1040_v11 = vpop.permute.xlu0 %1039 }
  0xb4   : > { %v1302_v18 = vmul.f32 %v1045_v55, %v854_v44  ;;  %v1301_v60 = vmul.f32 %v1040_v11, %v853_v49  ;;  %6424 = vperm.xlu1 %9633, %v9814_v16   ;;  %6419 = vperm.xlu0 %9632, %v9819_v17   ;;  %v727_v16 = vmul.f32 %v8068_v10, %v10024_v32  ;;  %v859_v44 = vmax.f32 %v795_v33, 0.0  ;;  %v8172_v49 = vld [vmem:[%s10019_s10 + $0x70] sm:$0xff]  }
  0xb5   : > { %8502 = vmatprep.mubr.msk.bf16.mxu1 %vm493_vm0, %v1656_v53  ;;  %8762 = vmatprep.mubr.msk.bf16.mxu0 %vm493_vm0, %v1656_v53  ;;  %v3568_v7 = vld [vmem:[#allocation2 + $0x78] sm:$0xff]  ;;  %v3569_v63 = vld [vmem:[#allocation2 + $0x80] sm:$0xff]  ;;  %v800_v10 = vadd.f32 %v10038_v40, %v729_v45  ;;  %v799_v55 = vadd.f32 %v10038_v40, %v728_v46  ;;  %v8080_v11 = vunpack.c.h.bf16 %v8172_v49 }
  0xb6   : > { %1366 = vst.msk [vmem:[#allocation2 + $0xa0] sm:$0xff] %vm493_vm0, %v1302_v18  ;;  %1365 = vst.msk [vmem:[#allocation2 + $0x98] sm:$0xff] %vm493_vm0, %v1301_v60  ;;  %v3627_v2 = vpack.c.bf16 %v3569_v63, %v3568_v7  ;;  %v798_v8 = vadd.f32 %v10038_v40, %v727_v16  ;;  %v861_v18 = vmax.f32 %v797_v4, 0.0  ;;  %v730_v60 = vmul.f32 %v8075_v0, %v10024_v32 }
  0xb7   : > { %v1055_v17 = vpop.permute.xlu1 %1054  ;;  %v1050_v13 = vpop.permute.xlu0 %1049  ;;  %v733_v16 = vmul.f32 %v8080_v11, %v10024_v32 }
  0xb8   : > { %v1304_v36 = vmul.f32 %v1055_v17, %v856_v56  ;;  %v1303_v1 = vmul.f32 %v1050_v13, %v855_v57  ;;  %6434 = vperm.xlu1 %9633, %v9833_v19   ;;  %6429 = vperm.xlu0 %9632, %v9838_v20   ;;  %v8076_v19 = vunpack.c.h.bf16 %v8171_v5  ;;  %v862_v53 = vmax.f32 %v798_v8, 0.0  ;;  %v8173_v57 = vld [vmem:[%s10019_s10 + $0x78] sm:$0xff]  }
  0xb9   : > { %8763 = vmatmul.mubr.msk.bf16.gmra.mrb[8].mxu0 %vm493_vm0, %v3627_v2  ;;  %v1602_v39 = vld [vmem:[#allocation2 + $0x88] sm:$0xff]  ;;  %v1603_v41 = vld [vmem:[#allocation2 + $0x90] sm:$0xff]  ;;  %v8079_v56 = vunpack.c.l.bf16 %v8172_v49  ;;  %v801_v33 = vadd.f32 %v10038_v40, %v730_v60  ;;  %v8083_v34 = vunpack.c.l.bf16 %v8173_v57  ;;  %v8087_v8 = vunpack.c.l.bf16 %v8174_v35 }
  0xba   : > { %1368 = vst.msk [vmem:[#allocation2 + $0xb0] sm:$0xff] %vm493_vm0, %v1304_v36  ;;  %1367 = vst.msk [vmem:[#allocation2 + $0xa8] sm:$0xff] %vm493_vm0, %v1303_v1  ;;  %8503 = vmatmul.mubr.msk.bf16.gmra.mrb[12].mxu1 %vm493_vm0, %v3627_v2  ;;  %v1658_v42 = vpack.c.bf16 %v1603_v41, %v1602_v39  ;;  %v864_v2 = vmax.f32 %v800_v10, 0.0  ;;  %v804_v39 = vadd.f32 %v10038_v40, %v733_v16  ;;  %v8176_v10 = vld [vmem:[%s10019_s10 + $0x90] sm:$0xff]  }
  0xbb   : > { %v1065_v9 = vpop.permute.xlu1 %1064  ;;  %v1060_v20 = vpop.permute.xlu0 %1059  ;;  %v732_v17 = vmul.f32 %v8079_v56, %v10024_v32 }
  0xbc   : > { %v1306_v47 = vmul.f32 %v1065_v9, %v858_v12  ;;  %v1305_v48 = vmul.f32 %v1060_v20, %v857_v37  ;;  %6444 = vperm.xlu1 %9633, %v9851_v22   ;;  %6439 = vperm.xlu0 %9632, %v9856_v23   ;;  %v731_v22 = vmul.f32 %v8076_v19, %v10024_v32  ;;  %v863_v12 = vmax.f32 %v799_v55, 0.0  ;;  %v8175_v19 = vld [vmem:[%s10019_s10 + $0x88] sm:$0xff]   ;;  %v6327_v55 = vld [vmem:[%s11727_s0 + $0xc0] sm:$0xff] }
  0xbd   : > { %8506 = vmatprep.mubr.msk.bf16.mxu1 %vm493_vm0, %v1658_v42  ;;  %8766 = vmatprep.mubr.msk.bf16.mxu0 %vm493_vm0, %v1658_v42  ;;  %v3572_v50 = vld [vmem:[#allocation2 + $0x98] sm:$0xff]  ;;  %v3573_v51 = vld [vmem:[#allocation2 + $0xa0] sm:$0xff]  ;;  %v803_v41 = vadd.f32 %v10038_v40, %v732_v17  ;;  %v8088_v42 = vunpack.c.h.bf16 %v8174_v35  ;;  %v868_v0 = vmax.f32 %v804_v39, 0.0 }
  0xbe   : > { %1370 = vst.msk [vmem:[#allocation2 + $0xc0] sm:$0xff] %vm493_vm0, %v1306_v47  ;;  %1369 = vst.msk [vmem:[#allocation2 + $0xb8] sm:$0xff] %vm493_vm0, %v1305_v48  ;;  %v3629_v52 = vpack.c.bf16 %v3573_v51, %v3572_v50  ;;  %v802_v7 = vadd.f32 %v10038_v40, %v731_v22  ;;  %v736_v51 = vmul.f32 %v8087_v8, %v10024_v32  ;;  %v6328_v22 = vld [vmem:[%s11727_s0 + $0xc8] sm:$0xff]  ;;  %v6331_v8 = vld [vmem:[%s11727_s0 + $0xe0] sm:$0xff] }
  0xbf   : > { %v1075_v23 = vpop.permute.xlu1 %1074  ;;  %v1070_v54 = vpop.permute.xlu0 %1069  ;;  %v867_v49 = vmax.f32 %v803_v41, 0.0  ;;  %v737_v50 = vmul.f32 %v8088_v42, %v10024_v32  ;;  %v8178_v42 = vld [vmem:[%s10019_s10 + $0xa0] sm:$0xff]  }
  0xc0   : > { %v1308_v58 = vmul.f32 %v1075_v23, %v860_v43  ;;  %v1307_v59 = vmul.f32 %v1070_v54, %v859_v44  ;;  %6454 = vperm.xlu1 %9633, %v9863_v24   ;;  %6449 = vperm.xlu0 %9632, %v9868_v25   ;;  %v8084_v24 = vunpack.c.h.bf16 %v8173_v57  ;;  %v866_v37 = vmax.f32 %v802_v7, 0.0 }
  0xc1   : > { %8767 = vmatmul.mubr.msk.bf16.gmra.mrb[12].mxu0 %vm493_vm0, %v3629_v52  ;;  %v1606_v14 = vld [vmem:[#allocation2 + $0xa8] sm:$0xff]  ;;  %v1607_v62 = vld [vmem:[#allocation2 + $0xb0] sm:$0xff]  ;;  %v865_v43 = vmax.f32 %v801_v33, 0.0  ;;  %v734_v44 = vmul.f32 %v8083_v34, %v10024_v32  ;;  %v8091_v54 = vunpack.c.l.bf16 %v8175_v19  ;;  %v807_v60 = vadd.f32 %v10038_v40, %v736_v51  ;;  %v6334_v51 = vld [vmem:[%s11727_s0 + $0xf8] sm:$0xff] }
  0xc2   : > { %1372 = vst.msk [vmem:[#allocation2 + $0xd0] sm:$0xff] %vm493_vm0, %v1308_v58  ;;  %1371 = vst.msk [vmem:[#allocation2 + $0xc8] sm:$0xff] %vm493_vm0, %v1307_v59  ;;  %8507 = vmatmul.mubr.msk.bf16.gmra.mrb[16].mxu1 %vm493_vm0, %v3629_v52  ;;  %v1660_v6 = vpack.c.bf16 %v1607_v62, %v1606_v14  ;;  %v8096_v14 = vunpack.c.h.bf16 %v8176_v10  ;;  %v8095_v62 = vunpack.c.l.bf16 %v8176_v10 }
  0xc3   : > { %v1085_v63 = vpop.permute.xlu1 %1084  ;;  %v1080_v25 = vpop.permute.xlu0 %1079  ;;  %v805_v23 = vadd.f32 %v10038_v40, %v734_v44 }
  0xc4   : > { %v1310_v13 = vmul.f32 %v1085_v63, %v862_v53  ;;  %v1309_v15 = vmul.f32 %v1080_v25, %v861_v18  ;;  %6464 = vperm.xlu1 %9633, %v9875_v26   ;;  %6459 = vperm.xlu0 %9632, %v9880_v27   ;;  %v735_v26 = vmul.f32 %v8084_v24, %v10024_v32  ;;  %v6330_v25 = vld [vmem:[%s11727_s0 + $0xd8] sm:$0xff] }
  0xc5   : > { %8510 = vmatprep.mubr.msk.bf16.mxu1 %vm493_vm0, %v1660_v6  ;;  %8770 = vmatprep.mubr.msk.bf16.mxu0 %vm493_vm0, %v1660_v6  ;;  %v3576_v5 = vld [vmem:[#allocation2 + $0xb8] sm:$0xff]  ;;  %v3577_v36 = vld [vmem:[#allocation2 + $0xc0] sm:$0xff]  ;;  %v808_v18 = vadd.f32 %v10038_v40, %v737_v50  ;;  %v869_v63 = vmax.f32 %v805_v23, 0.0 }
  0xc6   : > { %1374 = vst.msk [vmem:[#allocation2 + $0xe0] sm:$0xff] %vm493_vm0, %v1310_v13  ;;  %1373 = vst.msk [vmem:[#allocation2 + $0xd8] sm:$0xff] %vm493_vm0, %v1309_v15  ;;  %v3631_v1 = vpack.c.bf16 %v3577_v36, %v3576_v5  ;;  %v806_v48 = vadd.f32 %v10038_v40, %v735_v26  ;;  %v8177_v6 = vld [vmem:[%s10019_s10 + $0x98] sm:$0xff]   ;;  %v871_v36 = vmax.f32 %v807_v60, 0.0 }
  0xc7   : > { %v1095_v27 = vpop.permute.xlu1 %1094  ;;  %v1090_v38 = vpop.permute.xlu0 %1089  ;;  %v8100_v33 = vunpack.c.h.bf16 %v8177_v6  ;;  %v872_v5 = vmax.f32 %v808_v18, 0.0  ;;  %v8099_v41 = vunpack.c.l.bf16 %v8177_v6  ;;  %v6335_v6 = vld [vmem:[%s11727_s0 + $0x100] sm:$0xff] }
  0xc8   : > { %v1312_v9 = vmul.f32 %v1095_v27, %v864_v2  ;;  %v1311_v20 = vmul.f32 %v1090_v38, %v863_v12  ;;  %6474 = vperm.xlu1 %9633, %v9887_v28   ;;  %6469 = vperm.xlu0 %9632, %v9892_v29   ;;  %v8092_v28 = vunpack.c.h.bf16 %v8175_v19  ;;  %v870_v56 = vmax.f32 %v806_v48, 0.0  ;;  %v6329_v12 = vld [vmem:[%s11727_s0 + $0xd0] sm:$0xff]  ;;  %v6332_v38 = vld [vmem:[%s11727_s0 + $0xe8] sm:$0xff] }
  0xc9   : > { %8771 = vmatmul.mubr.msk.bf16.gmra.mrb[16].mxu0 %vm493_vm0, %v3631_v1  ;;  %v1610_v45 = vld [vmem:[#allocation2 + $0xc8] sm:$0xff]  ;;  %v1611_v46 = vld [vmem:[#allocation2 + $0xd0] sm:$0xff]  ;;  %v738_v2 = vmul.f32 %v8091_v54, %v10024_v32  ;;  %v743_v44 = vmul.f32 %v8100_v33, %v10024_v32 }
  0xca   : > { %1376 = vst.msk [vmem:[#allocation2 + $0xf0] sm:$0xff] %vm493_vm0, %v1312_v9  ;;  %1375 = vst.msk [vmem:[#allocation2 + $0xe8] sm:$0xff] %vm493_vm0, %v1311_v20  ;;  %8511 = vmatmul.mubr.msk.bf16.gmra.mrb[20].mxu1 %vm493_vm0, %v3631_v1  ;;  %v1662_v47 = vpack.c.bf16 %v1611_v46, %v1610_v45  ;;  %v739_v57 = vmul.f32 %v8092_v28, %v10024_v32  ;;  %v741_v1 = vmul.f32 %v8096_v14, %v10024_v32  ;;  %v4107_v33 = vld [vmem:[#allocation2 + $0x29] sm:$0xff] }
  0xcb   : > { %v1105_v4 = vpop.permute.xlu1 %1104  ;;  %v1100_v29 = vpop.permute.xlu0 %1099  ;;  %v809_v39 = vadd.f32 %v10038_v40, %v738_v2  ;;  %v8104_v28 = vunpack.c.h.bf16 %v8178_v42  ;;  %v10307_v10 = vadd.f32 %v10038_v40, %v743_v44 }
  0xcc   : > { %v1314_v52 = vmul.f32 %v1105_v4, %v866_v37  ;;  %v1313_v53 = vmul.f32 %v1100_v29, %v865_v43  ;;  %6484 = vperm.xlu1 %9633, %v9899_v30   ;;  %6479 = vperm.xlu0 %9632, %v9904_v31   ;;  %v810_v15 = vadd.f32 %v10038_v40, %v739_v57  ;;  %v8103_v4 = vunpack.c.l.bf16 %v8178_v42  ;;  %v8179_v29 = vld [vmem:[%s10019_s10 + $0xa8] sm:$0xff]  }
  0xcd   : > { %8514 = vmatprep.mubr.msk.bf16.mxu1 %vm493_vm0, %v1662_v47  ;;  %8774 = vmatprep.mubr.msk.bf16.mxu0 %vm493_vm0, %v1662_v47  ;;  %v3580_v30 = vld [vmem:[#allocation2 + $0xd8] sm:$0xff]  ;;  %v3581_v11 = vld [vmem:[#allocation2 + $0xe0] sm:$0xff]  ;;  %v740_v37 = vmul.f32 %v8095_v62, %v10024_v32  ;;  %v812_v47 = vadd.f32 %v10038_v40, %v741_v1  ;;  %v873_v50 = vmax.f32 %v809_v39, 0.0  ;;  %v6336_v62 = vld [vmem:[%s11727_s0 + $0x108] sm:$0xff] }
  0xce   : > { %1378 = vst.msk [vmem:[#allocation2 + $0x100] sm:$0xff] %vm493_vm0, %v1314_v52  ;;  %1377 = vst.msk [vmem:[#allocation2 + $0xf8] sm:$0xff] %vm493_vm0, %v1313_v53  ;;  %v3633_v31 = vpack.c.bf16 %v3581_v11, %v3580_v30  ;;  %v874_v43 = vmax.f32 %v810_v15, 0.0  ;;  %v742_v52 = vmul.f32 %v8099_v41, %v10024_v32  ;;  %v6333_v53 = vld [vmem:[%s11727_s0 + $0xf0] sm:$0xff]  ;;  %v744_v57 = vmul.f32 %v8103_v4, %v10024_v32  ;;  %v8181_v1 = vld [vmem:[%s10019_s10 + $0xb8] sm:$0xff]  }
  0xcf   : > { %v1115_v58 = vpop.permute.xlu1 %1114  ;;  %v1110_v59 = vpop.permute.xlu0 %1109  ;;  %v811_v48 = vadd.f32 %v10038_v40, %v740_v37  ;;  %v6338_v39 = vld [vmem:[%s11727_s0 + $0x118] sm:$0xff]  ;;  %v6337_v41 = vld [vmem:[%s11727_s0 + $0x110] sm:$0xff] }
  0xd0   : > { %v1316_v7 = vmul.f32 %v1115_v58, %v868_v0  ;;  %v1315_v24 = vmul.f32 %v1110_v59, %v867_v49  ;;  %6494 = vperm.xlu1 %9633, %v6328_v22   ;;  %6489 = vperm.xlu0 %9632, %v6327_v55   ;;  %v8108_v55 = vunpack.c.h.bf16 %v8179_v29  ;;  %v8107_v58 = vunpack.c.l.bf16 %v8179_v29  ;;  %v8180_v59 = vld [vmem:[%s10019_s10 + $0xb0] sm:$0xff]  }
  0xd1   : > { %8775 = vmatmul.mubr.msk.bf16.gmra.mrb[20].mxu0 %vm493_vm0, %v3633_v31  ;;  %v1614_v16 = vld [vmem:[#allocation2 + $0xe8] sm:$0xff]  ;;  %v1615_v17 = vld [vmem:[#allocation2 + $0xf0] sm:$0xff]  ;;  %v875_v14 = vmax.f32 %v811_v48, 0.0  ;;  %v8115_v48 = vunpack.c.l.bf16 %v8181_v1 }
  0xd2   : > { %1380 = vst.msk [vmem:[#allocation2 + $0x110] sm:$0xff] %vm493_vm0, %v1316_v7  ;;  %1379 = vst.msk [vmem:[#allocation2 + $0x108] sm:$0xff] %vm493_vm0, %v1315_v24  ;;  %8515 = vmatmul.mubr.msk.bf16.gmra.mrb[24].mxu1 %vm493_vm0, %v3633_v31  ;;  %v1664_v13 = vpack.c.bf16 %v1615_v17, %v1614_v16  ;;  %v876_v31 = vmax.f32 %v812_v47, 0.0  ;;  %v813_v7 = vadd.f32 %v10038_v40, %v742_v52  ;;  %v8112_v17 = vunpack.c.h.bf16 %v8180_v59  ;;  %v6339_v52 = vld [vmem:[%s11727_s0 + $0x120] sm:$0xff] }
  0xd3   : > { %v1125_v34 = vpop.permute.xlu1 %1124  ;;  %v1120_v35 = vpop.permute.xlu0 %1119  ;;  %v747_v16 = vmul.f32 %v8108_v55, %v10024_v32 }
  0xd4   : > { %v1318_v26 = vmul.f32 %v1125_v34, %v870_v56  ;;  %v1317_v27 = vmul.f32 %v1120_v35, %v869_v63  ;;  %6504 = vperm.xlu1 %9633, %v6330_v25   ;;  %6499 = vperm.xlu0 %9632, %v6329_v12   ;;  %v745_v56 = vmul.f32 %v8104_v28, %v10024_v32  ;;  %v4108_v25 = vld [vmem:[#allocation2 + $0x31] sm:$0xff]  ;;  %v878_v12 = vmax.f32 %v10307_v10, 0.0  ;;  %v8182_v28 = vld [vmem:[%s10019_s10 + $0xc0] sm:$0xff]  }
  0xd5   : > { %8518 = vmatprep.mubr.msk.bf16.mxu1 %vm493_vm0, %v1664_v13  ;;  %8778 = vmatprep.mubr.msk.bf16.mxu0 %vm493_vm0, %v1664_v13  ;;  %v3584_v19 = vld [vmem:[#allocation2 + $0xf8] sm:$0xff]  ;;  %v3585_v9 = vld [vmem:[#allocation2 + $0x100] sm:$0xff]  ;;  %v815_v35 = vadd.f32 %v10038_v40, %v744_v57 }
  0xd6   : > { %1382 = vst.msk [vmem:[#allocation2 + $0x120] sm:$0xff] %vm493_vm0, %v1318_v26  ;;  %1381 = vst.msk [vmem:[#allocation2 + $0x118] sm:$0xff] %vm493_vm0, %v1317_v27  ;;  %v3635_v20 = vpack.c.bf16 %v3585_v9, %v3584_v19  ;;  %v816_v34 = vadd.f32 %v10038_v40, %v745_v56  ;;  %v4171_v27 = vpack.c.bf16 %v4108_v25, %v4107_v33  ;;  %v10346_v9 = vld [vmem:[%s11728_s1] ss:$0 sm:$0xff]  ;;  %v10384_v25 = vld [vmem:[%s11730_s3 + $0x1c] sm:$0xf] }
  0xd7   : > { %v1135_v45 = vpop.permute.xlu1 %1134  ;;  %v1130_v46 = vpop.permute.xlu0 %1129  ;;  %v10341_v19 = vadd.f32 %v10038_v40, %v747_v16  ;;  %v879_v40 = vmax.f32 %v815_v35, 0.0 }
  0xd8   : > { %v1320_v0 = vmul.f32 %v1135_v45, %v872_v5  ;;  %v1319_v49 = vmul.f32 %v1130_v46, %v871_v36  ;;  %6514 = vperm.xlu1 %9633, %v6332_v38   ;;  %6509 = vperm.xlu0 %9632, %v6331_v8   ;;  %v746_v5 = vmul.f32 %v8107_v58, %v10024_v32  ;;  %v8111_v36 = vunpack.c.l.bf16 %v8180_v59  ;;  %v4111_v58 = vld [vmem:[#allocation2 + $0x49] sm:$0xff] }
  0xd9   : > { %8779 = vmatmul.mubr.msk.bf16.gmra.mrb[24].mxu0 %vm493_vm0, %v3635_v20  ;;  %v1618_v22 = vld [vmem:[#allocation2 + $0x108] sm:$0xff]  ;;  %v1619_v23 = vld [vmem:[#allocation2 + $0x110] sm:$0xff]  ;;  %v877_v38 = vmax.f32 %v813_v7, 0.0  ;;  %v880_v46 = vmax.f32 %v816_v34, 0.0  ;;  %v882_v55 = vmax.f32 %v10341_v19, 0.0 }
  0xda   : > { %1384 = vst.msk [vmem:[#allocation2 + $0x130] sm:$0xff] %vm493_vm0, %v1320_v0  ;;  %1383 = vst.msk [vmem:[#allocation2 + $0x128] sm:$0xff] %vm493_vm0, %v1319_v49  ;;  %8519 = vmatmul.mubr.msk.bf16.gmra.mrb[28].mxu1 %vm493_vm0, %v3635_v20  ;;  %v1666_v54 = vpack.c.bf16 %v1619_v23, %v1618_v22  ;;  %v749_v20 = vmul.f32 %v10346_v9, %v8112_v17  ;;  %v748_v47 = vmul.f32 %v10346_v9, %v8111_v36  ;;  %v4110_v0 = vld [vmem:[#allocation2 + $0x41] sm:$0xff]  ;;  %v10354_v49 = vld [vmem:[%s11729_s2] ss:$0 sm:$0xff] }
  0xdb   : > { %v1145_v30 = vpop.permute.xlu1 %1144  ;;  %v1140_v11 = vpop.permute.xlu0 %1139  ;;  %v4112_v22 = vld [vmem:[#allocation2 + $0x51] sm:$0xff]  ;;  %v4109_v23 = vld [vmem:[#allocation2 + $0x39] sm:$0xff] }
  0xdc   : > { %v1322_v18 = vmul.f32 %v1145_v30, %v874_v43  ;;  %v1321_v60 = vmul.f32 %v1140_v11, %v873_v50  ;;  %6524 = vperm.xlu1 %9633, %v6334_v51   ;;  %6519 = vperm.xlu0 %9632, %v6333_v53   ;;  %v8116_v43 = vunpack.c.h.bf16 %v8181_v1  ;;  %v817_v50 = vadd.f32 %v10354_v49, %v746_v5  ;;  %v6340_v51 = vld [vmem:[%s11727_s0 + $0x128] sm:$0xff]  ;;  %v4116_v19 = vld [vmem:[#allocation2 + $0x71] sm:$0xff] }
  0xdd   : > { %8522 = vmatprep.mubr.msk.bf16.mxu1 %vm493_vm0, %v1666_v54  ;;  %8782 = vmatprep.mubr.msk.bf16.mxu0 %vm493_vm0, %v1666_v54  ;;  %v3588_v24 = vld [vmem:[#allocation2 + $0x118] sm:$0xff]  ;;  %v3589_v63 = vld [vmem:[#allocation2 + $0x120] sm:$0xff]  ;;  %v4850_v53 = vsel %vm1779_vm1, %v10147_v61, 0  ;;  %v10370_v30 = vadd.f32 %v10354_v49, %v749_v20  ;;  %v4172_v61 = vpack.c.bf16 %v4110_v0, %v4109_v23  ;;  %v10374_v59 = vadd.f32 %v10354_v49, %v748_v47 }
  0xde   : > { %1386 = vst.msk [vmem:[#allocation2 + $0x140] sm:$0xff] %vm493_vm0, %v1322_v18  ;;  %1385 = vst.msk [vmem:[#allocation2 + $0x138] sm:$0xff] %vm493_vm0, %v1321_v60  ;;  %v3637_v2 = vpack.c.bf16 %v3589_v63, %v3588_v24  ;;  %v751_v11 = vmul.f32 %v10346_v9, %v8116_v43  ;;  %v750_v18 = vmul.f32 %v10346_v9, %v8115_v48  ;;  %v8119_v60 = vunpack.c.l.bf16 %v8182_v28  ;;  %v6342_v63 = vld [vmem:[%s11727_s0 + $0x138] sm:$0xff] }
  0xdf   : > { %v1155_v13 = vpop.permute.xlu1 %1154  ;;  %v1150_v15 = vpop.permute.xlu0 %1149  ;;  %v4173_v7 = vpack.c.bf16 %v4112_v22, %v4111_v58  ;;  %v881_v24 = vmax.f32 %v817_v50, 0.0  ;;  %v884_v36 = vmax.f32 %v10370_v30, 0.0  ;;  %v4113_v20 = vld [vmem:[#allocation2 + $0x59] sm:$0xff]  ;;  %v6345_v30 = vld [vmem:[%s11727_s0 + $0x150] sm:$0xff] }
  0xe0   : > { %v1324_v37 = vmul.f32 %v1155_v13, %v876_v31  ;;  %v1323_v26 = vmul.f32 %v1150_v15, %v875_v14  ;;  %6534 = vperm.xlu1 %9633, %v6336_v62   ;;  %6529 = vperm.xlu0 %9632, %v6335_v6   ;;  %v8120_v31 = vunpack.c.h.bf16 %v8182_v28  ;;  %v8183_v14 = vld [vmem:[%s10019_s10 + $0xc8] sm:$0xff]   ;;  %v10394_v15 = vadd.f32 %v10354_v49, %v751_v11 }
  0xe1   : > { %8783 = vmatmul.mubr.msk.bf16.gmra.mrb[28].mxu0 %vm493_vm0, %v3637_v2  ;;  %v1622_v42 = vld [vmem:[#allocation2 + $0x128] sm:$0xff]  ;;  %v1623_v32 = vld [vmem:[#allocation2 + $0x130] sm:$0xff]  ;;  %v8124_v34 = vunpack.c.h.bf16 %v8183_v14  ;;  %v752_v1 = vmul.f32 %v10346_v9, %v8119_v60 }
  0xe2   : > { %1388 = vst.msk [vmem:[#allocation2 + $0x150] sm:$0xff] %vm493_vm0, %v1324_v37  ;;  %1387 = vst.msk [vmem:[#allocation2 + $0x148] sm:$0xff] %vm493_vm0, %v1323_v26  ;;  %8820 = vmatprep.mubr.msk.bf16.mxu0 %vm493_vm0, %v4171_v27  ;;  %8523 = vmatmul.mubr.msk.bf16.gmra.mrb[32].mxu1 %vm493_vm0, %v3637_v2  ;;  %v1668_v8 = vpack.c.bf16 %v1623_v32, %v1622_v42  ;;  %v753_v33 = vmul.f32 %v10346_v9, %v8120_v31  ;;  %v8123_v37 = vunpack.c.l.bf16 %v8183_v14  ;;  %v8184_v26 = vld [vmem:[%s10019_s10 + $0xd0] sm:$0xff]   ;;  %v6344_v32 = vld [vmem:[%s11727_s0 + $0x148] sm:$0xff] }
  0xe3   : > { %v1165_v44 = vpop.permute.xlu1 %1164  ;;  %v1160_v45 = vpop.permute.xlu0 %1159  ;;  %v821_v42 = vadd.f32 %v10354_v49, %v750_v18  ;;  %v755_v47 = vmul.f32 %v10346_v9, %v8124_v34  ;;  %v8128_v48 = vunpack.c.h.bf16 %v8184_v26  ;;  %v823_v0 = vadd.f32 %v10354_v49, %v752_v1 }
  0xe4   : > { %v1326_v4 = vmul.f32 %v1165_v44, %v878_v12  ;;  %v1325_v29 = vmul.f32 %v1160_v45, %v877_v38  ;;  %6544 = vperm.xlu1 %9633, %v6338_v39   ;;  %6539 = vperm.xlu0 %9632, %v6337_v41   ;;  %v6341_v12 = vld [vmem:[%s11727_s0 + $0x130] sm:$0xff]  ;;  %v883_v39 = vmax.f32 %v10374_v59, 0.0  ;;  %v4114_v41 = vld [vmem:[#allocation2 + $0x61] sm:$0xff]  ;;  %v886_v45 = vmax.f32 %v10394_v15, 0.0  ;;  %v4117_v15 = vld [vmem:[#allocation2 + $0x79] sm:$0xff] }
  0xe5   : > { %8526 = vmatprep.mubr.msk.bf16.mxu1 %vm493_vm0, %v1668_v8  ;;  %v1624_v54 = vld [vmem:[#allocation2 + $0x138] sm:$0xff]  ;;  %v1625_v10 = vld [vmem:[#allocation2 + $0x140] sm:$0xff]  ;;  %v754_v50 = vmul.f32 %v10346_v9, %v8123_v37 }
  0xe6   : > { %1390 = vst.msk [vmem:[#allocation2 + $0x160] sm:$0xff] %vm493_vm0, %v1326_v4  ;;  %1389 = vst.msk [vmem:[#allocation2 + $0x158] sm:$0xff] %vm493_vm0, %v1325_v29  ;;  %v1669_v2 = vpack.c.bf16 %v1625_v10, %v1624_v54  ;;  %v6343_v8 = vld [vmem:[%s11727_s0 + $0x140] sm:$0xff]  ;;  %v4174_v29 = vpack.c.bf16 %v4114_v41, %v4113_v20  ;;  %v885_v54 = vmax.f32 %v821_v42, 0.0  ;;  %v6346_v10 = vld [vmem:[%s11727_s0 + $0x158] sm:$0xff] }
  0xe7   : > { %v1175_v56 = vpop.permute.xlu1 %1174  ;;  %v1170_v57 = vpop.permute.xlu0 %1169 }
  0xe8   : > { %v1328_v62 = vmul.f32 %v1175_v56, %v880_v46  ;;  %v1327_v6 = vmul.f32 %v1170_v57, %v879_v40  ;;  %6554 = vperm.xlu1 %9633, %v6340_v51   ;;  %6549 = vperm.xlu0 %9632, %v6339_v52   ;;  %v10416_v46 = vadd.f32 %v10354_v49, %v753_v33  ;;  %v4115_v40 = vld [vmem:[#allocation2 + $0x69] sm:$0xff]  ;;  %v8127_v51 = vunpack.c.l.bf16 %v8184_v26  ;;  %v8185_v52 = vld [vmem:[%s10019_s10 + $0xd8] sm:$0xff]  }
  0xe9   : > { %8821 = vmatmul.mubr.msk.bf16.vlgmr.msra.gmra.mrb[0].mxu0 %vm493_vm0, %v4172_v61  ;;  %v1626_v16 = vld [vmem:[#allocation2 + $0x148] sm:$0xff]  ;;  %v1627_v17 = vld [vmem:[#allocation2 + $0x150] sm:$0xff]  ;;  %v4175_v23 = vpack.c.bf16 %v4116_v19, %v4115_v40  ;;  %v10433_v57 = vadd.f32 %v10354_v49, %v755_v47  ;;  %v757_v61 = vmul.f32 %v10346_v9, %v8128_v48  ;;  %v8132_v58 = vunpack.c.h.bf16 %v8185_v52 }
  0xea   : > { %1392 = vst.msk [vmem:[#allocation2 + $0x170] sm:$0xff] %vm493_vm0, %v1328_v62  ;;  %1391 = vst.msk [vmem:[#allocation2 + $0x168] sm:$0xff] %vm493_vm0, %v1327_v6  ;;  %8885 = vmatpush3.bf16.msra.mxu0 %v4850_v53  ;;  %8824 = vmatprep.mubr.msk.bf16.mxu0 %vm493_vm0, %v4173_v7  ;;  %v1670_v13 = vpack.c.bf16 %v1627_v17, %v1626_v16  ;;  %v888_v60 = vmax.f32 %v10416_v46, 0.0  ;;  %v756_v14 = vmul.f32 %v10346_v9, %v8127_v51  ;;  %v8186_v6 = vld [vmem:[%s10019_s10 + $0xe0] sm:$0xff]   ;;  %v6348_v16 = vld [vmem:[%s11727_s0 + $0x168] sm:$0xff] }
  0xeb   : > { %8527 = vmatmul.mubr.msk.bf16.gmra.mrb[36].mxu1 %vm493_vm0, %v1669_v2  ;;  %v1185_v35 = vpop.permute.xlu1 %1184  ;;  %v1180_v5 = vpop.permute.xlu0 %1179  ;;  %9604 = vmatprep.subr.msk.bf16.mxu0 %vm1779_vm1, %v10384_v25  ;;  %v8131_v62 = vunpack.c.l.bf16 %v8185_v52  ;;  %v4118_v2 = vld [vmem:[#allocation2 + $0x81] sm:$0xff]  ;;  %v8136_v1 = vunpack.c.h.bf16 %v8186_v6  ;;  %v8135_v42 = vunpack.c.l.bf16 %v8186_v6  ;;  %v6349_v46 = vld [vmem:[%s11727_s0 + $0x170] sm:$0xff] }
  0xec   : > { %v1330_v27 = vmul.f32 %v1185_v35, %v882_v55  ;;  %v1329_v38 = vmul.f32 %v1180_v5, %v881_v24  ;;  %6564 = vperm.xlu1 %9633, %v6342_v63   ;;  %6559 = vperm.xlu0 %9632, %v6341_v12   ;;  %v887_v63 = vmax.f32 %v823_v0, 0.0  ;;  %v825_v12 = vadd.f32 %v10354_v49, %v754_v50  ;;  %v6347_v17 = vld [vmem:[%s11727_s0 + $0x160] sm:$0xff] }
  0xed   : > { %8530 = vmatprep.mubr.msk.bf16.mxu1 %vm493_vm0, %v1670_v13  ;;  %v1628_v43 = vld [vmem:[#allocation2 + $0x158] sm:$0xff]  ;;  %v1629_v44 = vld [vmem:[#allocation2 + $0x160] sm:$0xff]  ;;  %v890_v35 = vmax.f32 %v10433_v57, 0.0  ;;  %v10452_v5 = vadd.f32 %v10354_v49, %v757_v61  ;;  %v758_v41 = vmul.f32 %v10346_v9, %v8131_v62  ;;  %v760_v52 = vmul.f32 %v10346_v9, %v8135_v42 }
  0xee   : > { %1394 = vst.msk [vmem:[#allocation2 + $0x180] sm:$0xff] %vm493_vm0, %v1330_v27  ;;  %1393 = vst.msk [vmem:[#allocation2 + $0x178] sm:$0xff] %vm493_vm0, %v1329_v38  ;;  %v1671_v55 = vpack.c.bf16 %v1629_v44, %v1628_v43  ;;  %v4120_v13 = vld [vmem:[#allocation2 + $0x91] sm:$0xff]  ;;  %v4176_v27 = vpack.c.bf16 %v4118_v2, %v4117_v15  ;;  %v4119_v38 = vld [vmem:[#allocation2 + $0x89] sm:$0xff]  ;;  %v889_v43 = vmax.f32 %v825_v12, 0.0 }
  0xef   : > { %v1195_v28 = vpop.permute.xlu1 %1194  ;;  %v1190_v4 = vpop.permute.xlu0 %1189  ;;  %v4177_v20 = vpack.c.bf16 %v4120_v13, %v4119_v38  ;;  %v6350_v44 = vld [vmem:[%s11727_s0 + $0x178] sm:$0xff]  ;;  %v892_v51 = vmax.f32 %v10452_v5, 0.0 }
  0xf0   : > { %v1332_v53 = vmul.f32 %v1195_v28, %v884_v36  ;;  %v1331_v22 = vmul.f32 %v1190_v4, %v883_v39  ;;  %6574 = vperm.xlu1 %9633, %v6344_v32   ;;  %6569 = vperm.xlu0 %9632, %v6343_v8   ;;  %v759_v36 = vmul.f32 %v10346_v9, %v8132_v58  ;;  %v8187_v32 = vld [vmem:[%s10019_s10 + $0xe8] sm:$0xff]   ;;  %v4121_v57 = vld [vmem:[#allocation2 + $0x99] sm:$0xff] }
  0xf1   : > { %8825 = vmatmul.mubr.msk.bf16.gmra.mrb[4].mxu0 %vm493_vm0, %v4174_v29  ;;  %v1630_v11 = vld [vmem:[#allocation2 + $0x168] sm:$0xff]  ;;  %v1631_v31 = vld [vmem:[#allocation2 + $0x170] sm:$0xff]  ;;  %v827_v39 = vadd.f32 %v10354_v49, %v756_v14  ;;  %v761_v29 = vmul.f32 %v10346_v9, %v8136_v1  ;;  %v8140_v40 = vunpack.c.h.bf16 %v8187_v32 }
  0xf2   : > { %1396 = vst.msk [vmem:[#allocation2 + $0x190] sm:$0xff] %vm493_vm0, %v1332_v53  ;;  %1395 = vst.msk [vmem:[#allocation2 + $0x188] sm:$0xff] %vm493_vm0, %v1331_v22  ;;  %8828 = vmatprep.mubr.msk.bf16.mxu0 %vm493_vm0, %v4175_v23  ;;  %v1672_v56 = vpack.c.bf16 %v1631_v31, %v1630_v11  ;;  %v10470_v4 = vadd.f32 %v10354_v49, %v759_v36  ;;  %v8139_v53 = vunpack.c.l.bf16 %v8187_v32  ;;  %v8188_v22 = vld [vmem:[%s10019_s10 + $0xf0] sm:$0xff]   ;;  %v6352_v11 = vld [vmem:[%s11727_s0 + $0x188] sm:$0xff] }
  0xf3   : > { %8531 = vmatmul.mubr.msk.bf16.gmra.mrb[40].mxu1 %vm493_vm0, %v1671_v55  ;;  %v1205_v59 = vpop.permute.xlu1 %1204  ;;  %v1200_v18 = vpop.permute.xlu0 %1199  ;;  %v4122_v55 = vld [vmem:[#allocation2 + $0xa1] sm:$0xff]  ;;  %v8144_v14 = vunpack.c.h.bf16 %v8188_v22  ;;  %v8143_v12 = vunpack.c.l.bf16 %v8188_v22  ;;  %v6353_v36 = vld [vmem:[%s11727_s0 + $0x190] sm:$0xff] }
  0xf4   : > { %v1334_v7 = vmul.f32 %v1205_v59, %v886_v45  ;;  %v1333_v24 = vmul.f32 %v1200_v18, %v885_v54  ;;  %6584 = vperm.xlu1 %9633, %v6346_v10   ;;  %6579 = vperm.xlu0 %9632, %v6345_v30   ;;  %v891_v10 = vmax.f32 %v827_v39, 0.0  ;;  %v829_v30 = vadd.f32 %v10354_v49, %v758_v41  ;;  %v6351_v31 = vld [vmem:[%s11727_s0 + $0x180] sm:$0xff] }
  0xf5   : > { %8534 = vmatprep.mubr.msk.bf16.mxu1 %vm493_vm0, %v1672_v56  ;;  %v1632_v33 = vld [vmem:[#allocation2 + $0x178] sm:$0xff]  ;;  %v1633_v34 = vld [vmem:[#allocation2 + $0x180] sm:$0xff]  ;;  %v894_v59 = vmax.f32 %v10470_v4, 0.0  ;;  %v10494_v18 = vadd.f32 %v10354_v49, %v761_v29  ;;  %v762_v2 = vmul.f32 %v10346_v9, %v8139_v53  ;;  %v765_v38 = vmul.f32 %v10346_v9, %v8144_v14  ;;  %v6357_v14 = vld [vmem:[%s11727_s0 + $0x1b0] sm:$0xff] }
  0xf6   : > { %1398 = vst.msk [vmem:[#allocation2 + $0x1a0] sm:$0xff] %vm493_vm0, %v1334_v7  ;;  %1397 = vst.msk [vmem:[#allocation2 + $0x198] sm:$0xff] %vm493_vm0, %v1333_v24  ;;  %v1673_v45 = vpack.c.bf16 %v1633_v34, %v1632_v33  ;;  %v4124_v56 = vld [vmem:[#allocation2 + $0xb1] sm:$0xff]  ;;  %v4178_v7 = vpack.c.bf16 %v4122_v55, %v4121_v57  ;;  %v4123_v24 = vld [vmem:[#allocation2 + $0xa9] sm:$0xff]  ;;  %v893_v33 = vmax.f32 %v829_v30, 0.0 }
  0xf7   : > { %v1215_v37 = vpop.permute.xlu1 %1214  ;;  %v1210_v26 = vpop.permute.xlu0 %1209  ;;  %v4179_v15 = vpack.c.bf16 %v4124_v56, %v4123_v24  ;;  %v6354_v34 = vld [vmem:[%s11727_s0 + $0x198] sm:$0xff]  ;;  %v896_v32 = vmax.f32 %v10494_v18, 0.0  ;;  %v10549_v30 = vld [vmem:[%s11729_s2] ss:$0 sm:$0xff]  ;;  %v8190_v18 = vld [vmem:[%s10481_s12 + $0x8] sm:$0xff]  }
  0xf8   : > { %v1336_v8 = vmul.f32 %v1215_v37, %v888_v60  ;;  %v1335_v19 = vmul.f32 %v1210_v26, %v887_v63  ;;  %6594 = vperm.xlu1 %9633, %v6348_v16   ;;  %6589 = vperm.xlu0 %9632, %v6347_v17   ;;  %v763_v60 = vmul.f32 %v10346_v9, %v8140_v40  ;;  %v10500_v16 = vld [vmem:[%s10481_s12] sm:$0xff]   ;;  %v4128_v4 = vld [vmem:[#allocation2 + $0xd1] sm:$0xff] }
  0xf9   : > { %8829 = vmatmul.mubr.msk.bf16.gmra.mrb[8].mxu0 %vm493_vm0, %v4176_v27  ;;  %v1634_v47 = vld [vmem:[#allocation2 + $0x188] sm:$0xff]  ;;  %v1635_v48 = vld [vmem:[#allocation2 + $0x190] sm:$0xff]  ;;  %v831_v63 = vadd.f32 %v10354_v49, %v760_v52  ;;  %v8151_v39 = vunpack.c.l.bf16 %v10500_v16  ;;  %v4125_v29 = vld [vmem:[#allocation2 + $0xb9] sm:$0xff]  ;;  %v8152_v53 = vunpack.c.h.bf16 %v10500_v16 }
  0xfa   : > { %1400 = vst.msk [vmem:[#allocation2 + $0x1b0] sm:$0xff] %vm493_vm0, %v1336_v8  ;;  %1399 = vst.msk [vmem:[#allocation2 + $0x1a8] sm:$0xff] %vm493_vm0, %v1335_v19  ;;  %8832 = vmatprep.mubr.msk.bf16.mxu0 %vm493_vm0, %v4177_v20  ;;  %v1674_v28 = vpack.c.bf16 %v1635_v48, %v1634_v47  ;;  %v10516_v27 = vadd.f32 %v10354_v49, %v763_v60  ;;  %v764_v8 = vmul.f32 %v10346_v9, %v8143_v12  ;;  %v10526_v19 = vld [vmem:[%s11728_s1] ss:$0 sm:$0xff]  ;;  %v6356_v48 = vld [vmem:[%s11727_s0 + $0x1a8] sm:$0xff] }
  0xfb   : > { %8535 = vmatmul.mubr.msk.bf16.gmra.mrb[44].mxu1 %vm493_vm0, %v1673_v45  ;;  %v1225_v0 = vpop.permute.xlu1 %1224  ;;  %v1220_v50 = vpop.permute.xlu0 %1219  ;;  %v895_v45 = vmax.f32 %v831_v63, 0.0  ;;  %v833_v47 = vadd.f32 %v10354_v49, %v762_v2  ;;  %v1430_v52 = vmul.f32 %v8151_v39, %v10526_v19  ;;  %v1431_v63 = vmul.f32 %v8152_v53, %v10526_v19 }
  0xfc   : > { %v1338_v23 = vmul.f32 %v1225_v0, %v890_v35  ;;  %v1337_v54 = vmul.f32 %v1220_v50, %v889_v43  ;;  %6604 = vperm.xlu1 %9633, %v6350_v44   ;;  %6599 = vperm.xlu0 %9632, %v6349_v46   ;;  %v10506_v35 = vld [vmem:[%s10019_s10 + $0xf8] sm:$0xff]   ;;  %v4126_v46 = vld [vmem:[#allocation2 + $0xc1] sm:$0xff]  ;;  %v898_v50 = vmax.f32 %v10516_v27, 0.0  ;;  %v835_v55 = vadd.f32 %v10354_v49, %v764_v8 }
  0xfd   : > { %8538 = vmatprep.mubr.msk.bf16.mxu1 %vm493_vm0, %v1674_v28  ;;  %v1636_v61 = vld [vmem:[#allocation2 + $0x198] sm:$0xff]  ;;  %v1637_v58 = vld [vmem:[#allocation2 + $0x1a0] sm:$0xff]  ;;  %v8147_v20 = vunpack.c.l.bf16 %v10506_v35  ;;  %v1441_v24 = vadd.f32 %v10549_v30, %v1430_v52 }
  0xfe   : > { %1402 = vst.msk [vmem:[#allocation2 + $0x1c0] sm:$0xff] %vm493_vm0, %v1338_v23  ;;  %1401 = vst.msk [vmem:[#allocation2 + $0x1b8] sm:$0xff] %vm493_vm0, %v1337_v54  ;;  %v1675_v5 = vpack.c.bf16 %v1637_v58, %v1636_v61  ;;  %v6355_v28 = vld [vmem:[%s11727_s0 + $0x1a0] sm:$0xff]  ;;  %v4180_v54 = vpack.c.bf16 %v4126_v46, %v4125_v29  ;;  %v897_v58 = vmax.f32 %v833_v47, 0.0 }
  0xff   : > { %v1235_v62 = vpop.permute.xlu1 %1234  ;;  %v1230_v6 = vpop.permute.xlu0 %1229  ;;  %v1445_v39 = vmax.f32 %v1441_v24, 0.0 }
 0x100   : > { %v1340_v17 = vmul.f32 %v1235_v62, %v892_v51  ;;  %v1339_v13 = vmul.f32 %v1230_v6, %v891_v10  ;;  %6614 = vperm.xlu1 %9633, %v6352_v11   ;;  %6609 = vperm.xlu0 %9632, %v6351_v31   ;;  %v10541_v51 = vadd.f32 %v10354_v49, %v765_v38  ;;  %v4127_v10 = vld [vmem:[#allocation2 + $0xc9] sm:$0xff]  ;;  %v8148_v31 = vunpack.c.h.bf16 %v10506_v35 }
 0x101   : > { %8833 = vmatmul.mubr.msk.bf16.gmra.mrb[12].mxu0 %vm493_vm0, %v4178_v7  ;;  %v1638_v1 = vld [vmem:[#allocation2 + $0x1a8] sm:$0xff]  ;;  %v1639_v37 = vld [vmem:[#allocation2 + $0x1b0] sm:$0xff]  ;;  %v766_v11 = vmul.f32 %v10346_v9, %v8147_v20  ;;  %v4181_v61 = vpack.c.bf16 %v4128_v4, %v4127_v10  ;;  %v899_v35 = vmax.f32 %v835_v55, 0.0  ;;  %v6362_v4 = vld [vmem:[%s11727_s0 + $0x1d8] sm:$0xff] }
 0x102   : > { %1404 = vst.msk [vmem:[#allocation2 + $0x1d0] sm:$0xff] %vm493_vm0, %v1340_v17  ;;  %1403 = vst.msk [vmem:[#allocation2 + $0x1c8] sm:$0xff] %vm493_vm0, %v1339_v13  ;;  %8836 = vmatprep.mubr.msk.bf16.mxu0 %vm493_vm0, %v4179_v15  ;;  %v1676_v26 = vpack.c.bf16 %v1639_v37, %v1638_v1  ;;  %v900_v16 = vmax.f32 %v10541_v51, 0.0  ;;  %v767_v17 = vmul.f32 %v10346_v9, %v8148_v31  ;;  %v8156_v13 = vunpack.c.h.bf16 %v8190_v18  ;;  %v6360_v1 = vld [vmem:[%s11727_s0 + $0x1c8] sm:$0xff]  ;;  %v6359_v9 = vld [vmem:[%s11727_s0 + $0x1c0] sm:$0xff] }
 0x103   : > { %8539 = vmatmul.mubr.msk.bf16.gmra.mrb[48].mxu1 %vm493_vm0, %v1675_v5  ;;  %v1245_v41 = vpop.permute.xlu1 %1244  ;;  %v1240_v42 = vpop.permute.xlu0 %1239  ;;  %v8155_v15 = vunpack.c.l.bf16 %v8190_v18  ;;  %v4130_v5 = vld [vmem:[#allocation2 + $0xe1] sm:$0xff]  ;;  %v4132_v37 = vld [vmem:[#allocation2 + $0xf1] sm:$0xff]  ;;  %v4131_v20 = vld [vmem:[#allocation2 + $0xe9] sm:$0xff] }
 0x104   : > { %v1342_v43 = vmul.f32 %v1245_v41, %v894_v59  ;;  %v1341_v44 = vmul.f32 %v1240_v42, %v893_v33  ;;  %6624 = vperm.xlu1 %9633, %v6354_v34   ;;  %6619 = vperm.xlu0 %9632, %v6353_v36   ;;  %v6358_v59 = vld [vmem:[%s11727_s0 + $0x1b8] sm:$0xff]  ;;  %v837_v36 = vadd.f32 %v10354_v49, %v766_v11  ;;  %v6364_v10 = vld [vmem:[%s11727_s0 + $0x1e8] sm:$0xff]  ;;  %v6363_v55 = vld [vmem:[%s11727_s0 + $0x1e0] sm:$0xff] }
 0x105   : > { %8542 = vmatprep.mubr.msk.bf16.mxu1 %vm493_vm0, %v1676_v26  ;;  %v1640_v40 = vld [vmem:[#allocation2 + $0x1b8] sm:$0xff]  ;;  %v1641_v0 = vld [vmem:[#allocation2 + $0x1c0] sm:$0xff]  ;;  %v1442_v41 = vadd.f32 %v10549_v30, %v1431_v63 }
 0x106   : > { %1406 = vst.msk [vmem:[#allocation2 + $0x1e0] sm:$0xff] %vm493_vm0, %v1342_v43  ;;  %1405 = vst.msk [vmem:[#allocation2 + $0x1d8] sm:$0xff] %vm493_vm0, %v1341_v44  ;;  %v1677_v60 = vpack.c.bf16 %v1641_v0, %v1640_v40  ;;  %v4129_v26 = vld [vmem:[#allocation2 + $0xd9] sm:$0xff]  ;;  %v838_v43 = vadd.f32 %v10354_v49, %v767_v17  ;;  %v1433_v44 = vmul.f32 %v8156_v13, %v10526_v19  ;;  %v6361_v49 = vld [vmem:[%s11727_s0 + $0x1d0] sm:$0xff] }
 0x107   : > { %v1255_v22 = vpop.permute.xlu1 %1254  ;;  %v1250_v23 = vpop.permute.xlu0 %1249  ;;  %v4182_v8 = vpack.c.bf16 %v4130_v5, %v4129_v26  ;;  %v1446_v52 = vmax.f32 %v1442_v41, 0.0  ;;  %v4134_v11 = vld [vmem:[#allocation2 + $0x101] sm:$0xff]  ;;  %v6365_v17 = vld [vmem:[%s11727_s0 + $0x1f0] sm:$0xff] }
 0x108   : > { %v1344_v56 = vmul.f32 %v1255_v22, %v896_v32  ;;  %v1343_v57 = vmul.f32 %v1250_v23, %v895_v45  ;;  %6634 = vperm.xlu1 %9633, %v6356_v48   ;;  %6629 = vperm.xlu0 %9632, %v6355_v28   ;;  %v1432_v45 = vmul.f32 %v8155_v15, %v10526_v19  ;;  %v901_v28 = vmax.f32 %v837_v36, 0.0  ;;  %v4138_v5 = vld [vmem:[#allocation2 + $0x121] sm:$0xff]  ;;  %v1491_v36 = vld [vmem:[#allocation2 + $0x17] sm:$0xff]  ;;  %v1494_v41 = vld [vmem:[#allocation2 + $0x2f] sm:$0xff] }
 0x109   : > { %8837 = vmatmul.mubr.msk.bf16.gmra.mrb[16].mxu0 %vm493_vm0, %v4180_v54  ;;  %v1642_v62 = vld [vmem:[#allocation2 + $0x1c8] sm:$0xff]  ;;  %v1643_v6 = vld [vmem:[#allocation2 + $0x1d0] sm:$0xff]  ;;  %v4183_v48 = vpack.c.bf16 %v4132_v37, %v4131_v20  ;;  %v1444_v53 = vadd.f32 %v10549_v30, %v1433_v44  ;;  %v902_v54 = vmax.f32 %v838_v43, 0.0  ;;  %v4137_v37 = vld [vmem:[#allocation2 + $0x119] sm:$0xff] }
 0x10a   : > { %1408 = vst.msk [vmem:[#allocation2 + $0x1f0] sm:$0xff] %vm493_vm0, %v1344_v56  ;;  %1407 = vst.msk [vmem:[#allocation2 + $0x1e8] sm:$0xff] %vm493_vm0, %v1343_v57  ;;  %8840 = vmatprep.mubr.msk.bf16.mxu0 %vm493_vm0, %v4181_v61  ;;  %v1678_v7 = vpack.c.bf16 %v1643_v6, %v1642_v62  ;;  %v1443_v31 = vadd.f32 %v10549_v30, %v1432_v45  ;;  %v4136_v56 = vld [vmem:[#allocation2 + $0x111] sm:$0xff]  ;;  %v1489_v57 = vld [vmem:[#allocation2 + $0x7] sm:$0xff]  ;;  %v10633_v26 = vpack.c.bf16 %v4138_v5, %v4137_v37 }
 0x10b   : > { %8543 = vmatmul.mubr.msk.bf16.gmra.mrb[52].mxu1 %vm493_vm0, %v1677_v60  ;;  %v1265_v2 = vpop.permute.xlu1 %1264  ;;  %v1260_v12 = vpop.permute.xlu0 %1259  ;;  %v1490_v61 = vld [vmem:[#allocation2 + $0xf] sm:$0xff]  ;;  %v1448_v6 = vmax.f32 %v1444_v53, 0.0  ;;  %v4142_v20 = vld [vmem:[#allocation2 + $0x141] sm:$0xff]  ;;  %v4141_v45 = vld [vmem:[#allocation2 + $0x139] sm:$0xff] }
 0x10c   : > { %v1346_v33 = vmul.f32 %v1265_v2, %v898_v50  ;;  %v1345_v34 = vmul.f32 %v1260_v12, %v897_v58  ;;  %6644 = vperm.xlu1 %9633, %v6358_v59   ;;  %6639 = vperm.xlu0 %9632, %v6357_v14   ;;  %v4133_v58 = vld [vmem:[#allocation2 + $0xf9] sm:$0xff]  ;;  %v4135_v30 = vld [vmem:[#allocation2 + $0x109] sm:$0xff]  ;;  %v1447_v2 = vmax.f32 %v1443_v31, 0.0  ;;  %v1553_v13 = vpack.c.bf16 %v1490_v61, %v1489_v57  ;;  %v4144_v44 = vld [vmem:[#allocation2 + $0x151] sm:$0xff] }
 0x10d   : > { %8546 = vmatprep.mubr.msk.bf16.mxu1 %vm493_vm0, %v1678_v7  ;;  %v1644_v27 = vld [vmem:[#allocation2 + $0x1d8] sm:$0xff]  ;;  %v1645_v38 = vld [vmem:[#allocation2 + $0x1e0] sm:$0xff]  ;;  %v10607_v62 = vpack.c.bf16 %v4134_v11, %v4133_v58  ;;  %v10609_v63 = vpack.c.bf16 %v4136_v56, %v4135_v30  ;;  %v10650_v43 = vld [vmem:[%s11730_s3 + $0xc] sm:$0xf] }
 0x10e   : > { %1410 = vst.msk [vmem:[#allocation2 + $0x200] sm:$0xff] %vm493_vm0, %v1346_v33  ;;  %1409 = vst.msk [vmem:[#allocation2 + $0x1f8] sm:$0xff] %vm493_vm0, %v1345_v34  ;;  %v1679_v29 = vpack.c.bf16 %v1645_v38, %v1644_v27  ;;  %v4139_v27 = vld [vmem:[#allocation2 + $0x129] sm:$0xff]  ;;  %v1500_v53 = vld [vmem:[#allocation2 + $0x5f] sm:$0xff] }
 0x10f   : > { %v1275_v42 = vpop.permute.xlu1 %1274  ;;  %v1270_v32 = vpop.permute.xlu0 %1269  ;;  %v4150_v56 = vld [vmem:[#allocation2 + $0x181] sm:$0xff]  ;;  %v4152_v57 = vld [vmem:[#allocation2 + $0x191] sm:$0xff]  ;;  %v4149_v61 = vld [vmem:[#allocation2 + $0x179] sm:$0xff] }
 0x110   : > { %v1348_v46 = vmul.f32 %v1275_v42, %v900_v16  ;;  %v1347_v47 = vmul.f32 %v1270_v32, %v899_v35  ;;  %6654 = vperm.xlu1 %9633, %v6360_v1   ;;  %6649 = vperm.xlu0 %9632, %v6359_v9   ;;  %v6366_v16 = vld [vmem:[%s11727_s0 + $0x1f8] sm:$0xff]  ;;  %v9636_v32 = vld [vmem:[%s11730_s3 + $0x8] sm:$0xf]  ;;  %v1506_v30 = vld [vmem:[#allocation2 + $0x8f] sm:$0xff] }
 0x111   : > { %8841 = vmatmul.mubr.msk.bf16.gmra.mrb[20].mxu0 %vm493_vm0, %v4182_v8  ;;  %v1646_v40 = vld [vmem:[#allocation2 + $0x1e8] sm:$0xff]  ;;  %v1647_v0 = vld [vmem:[#allocation2 + $0x1f0] sm:$0xff]  ;;  %v1492_v1 = vld [vmem:[#allocation2 + $0x1f] sm:$0xff]  ;;  %v2654_v8 = vsel %vm1779_vm1, %v9636_v32, 0 }
 0x112   : > { %1412 = vst.msk [vmem:[#allocation2 + $0x210] sm:$0xff] %vm493_vm0, %v1348_v46  ;;  %1411 = vst.msk [vmem:[#allocation2 + $0x208] sm:$0xff] %vm493_vm0, %v1347_v47  ;;  %8844 = vmatprep.mubr.msk.bf16.mxu0 %vm493_vm0, %v4183_v48  ;;  %v1680_v19 = vpack.c.bf16 %v1647_v0, %v1646_v40  ;;  %v4140_v9 = vld [vmem:[#allocation2 + $0x131] sm:$0xff]  ;;  %v1554_v38 = vpack.c.bf16 %v1492_v1, %v1491_v36  ;;  %v1496_v47 = vld [vmem:[#allocation2 + $0x3f] sm:$0xff]  ;;  %v10654_v48 = vpack.c.bf16 %v4142_v20, %v4141_v45 }
 0x113   : > { %8547 = vmatmul.mubr.msk.bf16.gmra.mrb[56].mxu1 %vm493_vm0, %v1679_v29  ;;  %v1456_v50 = vpop.permute.xlu1 %1455  ;;  %v1280_v51 = vpop.permute.xlu0 %1279  ;;  %v10635_v42 = vpack.c.bf16 %v4140_v9, %v4139_v27  ;;  %v1495_v46 = vld [vmem:[#allocation2 + $0x37] sm:$0xff]  ;;  %v1498_v29 = vld [vmem:[#allocation2 + $0x4f] sm:$0xff]  ;;  %v4158_v9 = vld [vmem:[#allocation2 + $0x1c1] sm:$0xff] }
 0x114   : > { %v1473_v22 = vmul.f32 %v1456_v50, %v1445_v39  ;;  %v1349_v23 = vmul.f32 %v1280_v51, %v901_v28  ;;  %6664 = vperm.xlu1 %9633, %v6362_v4   ;;  %6659 = vperm.xlu0 %9632, %v6361_v49   ;;  %v1493_v39 = vld [vmem:[#allocation2 + $0x27] sm:$0xff]  ;;  %v1556_v40 = vpack.c.bf16 %v1496_v47, %v1495_v46  ;;  %v4148_v50 = vld [vmem:[#allocation2 + $0x171] sm:$0xff]  ;;  %v4145_v51 = vld [vmem:[#allocation2 + $0x159] sm:$0xff] }
 0x115   : > { %8550 = vmatprep.mubr.msk.bf16.mxu1 %vm493_vm0, %v1680_v19  ;;  %v1648_v59 = vld [vmem:[#allocation2 + $0x1f8] sm:$0xff]  ;;  %v1649_v18 = vld [vmem:[#allocation2 + $0x200] sm:$0xff]  ;;  %v4143_v28 = vld [vmem:[#allocation2 + $0x149] sm:$0xff] }
 0x116   : > { %1477 = vst.msk [vmem:[#allocation2 + $0x228] sm:$0xff] %vm493_vm0, %v1473_v22  ;;  %1413 = vst.msk [vmem:[#allocation2 + $0x218] sm:$0xff] %vm493_vm0, %v1349_v23  ;;  %v1681_v12 = vpack.c.bf16 %v1649_v18, %v1648_v59  ;;  %v1497_v4 = vld [vmem:[#allocation2 + $0x47] sm:$0xff]  ;;  %v10656_v49 = vpack.c.bf16 %v4144_v44, %v4143_v28  ;;  %v1503_v58 = vld [vmem:[#allocation2 + $0x77] sm:$0xff]  ;;  %v10683_v18 = vpack.c.bf16 %v4150_v56, %v4149_v61 }
 0x117   : > { %1484 = vst.msk [vmem:[#allocation2 + $0x228] sm:$0xff] %vm493_vm0, %v9663_v3  ;;  %v1461_v60 = vpop.permute.xlu1 %1460  ;;  %v1285_v14 = vpop.permute.xlu0 %1284  ;;  %v10662_v0 = vpack.c.bf16 %v1498_v29, %v1497_v4  ;;  %v4146_v19 = vld [vmem:[#allocation2 + $0x161] sm:$0xff]  ;;  %v4147_v23 = vld [vmem:[#allocation2 + $0x169] sm:$0xff]  ;;  %v4160_v37 = vld [vmem:[#allocation2 + $0x1d1] sm:$0xff] }
 0x118   : > { %v1474_v7 = vmul.f32 %v1461_v60, %v1446_v52  ;;  %v1350_v24 = vmul.f32 %v1285_v14, %v902_v54  ;;  %6674 = vperm.xlu1 %9633, %v6364_v10   ;;  %6669 = vperm.xlu0 %9632, %v6363_v55   ;;  %v1499_v52 = vld [vmem:[#allocation2 + $0x57] sm:$0xff]  ;;  %v10667_v22 = vpack.c.bf16 %v4146_v19, %v4145_v51  ;;  %v1501_v54 = vld [vmem:[#allocation2 + $0x67] sm:$0xff]  ;;  %v1502_v10 = vld [vmem:[#allocation2 + $0x6f] sm:$0xff] }
 0x119   : > { %8845 = vmatmul.mubr.msk.bf16.gmra.mrb[24].mxu0 %vm493_vm0, %v10607_v62  ;;  %v10669_v55 = vpack.c.bf16 %v4148_v50, %v4147_v23  ;;  %v10673_v11 = vpack.c.bf16 %v1500_v53, %v1499_v52  ;;  %v10677_v31 = vpack.c.bf16 %v1502_v10, %v1501_v54  ;;  %v1504_v59 = vld [vmem:[#allocation2 + $0x7f] sm:$0xff]  ;;  %v4151_v60 = vld [vmem:[#allocation2 + $0x189] sm:$0xff]  ;;  %v4164_v47 = vld [vmem:[#allocation2 + $0x1f1] sm:$0xff] }
 0x11a   : > { %1478 = vst.msk [vmem:[#allocation2 + $0x230] sm:$0xff] %vm493_vm0, %v1474_v7  ;;  %1414 = vst.msk [vmem:[#allocation2 + $0x220] sm:$0xff] %vm493_vm0, %v1350_v24  ;;  %8848 = vmatprep.mubr.msk.bf16.mxu0 %vm493_vm0, %v10609_v63  ;;  %v1505_v14 = vld [vmem:[#allocation2 + $0x87] sm:$0xff]  ;;  %v10689_v7 = vpack.c.bf16 %v1504_v59, %v1503_v58  ;;  %v4157_v27 = vld [vmem:[#allocation2 + $0x1b9] sm:$0xff] }
 0x11b   : > { %1485 = vst.msk [vmem:[#allocation2 + $0x230] sm:$0xff] %vm493_vm0, %v9663_v3  ;;  %8551 = vmatmul.mubr.msk.bf16.gmra.mrb[60].mxu1 %vm493_vm0, %v1681_v12  ;;  %v1471_v15 = vpop.permute.xlu1 %1470  ;;  %v1466_v33 = vpop.permute.xlu0 %1465  ;;  %v10693_v24 = vpack.c.bf16 %v1506_v30, %v1505_v14  ;;  %v4156_v12 = vld [vmem:[#allocation2 + $0x1b1] sm:$0xff]  ;;  %v4159_v32 = vld [vmem:[#allocation2 + $0x1c9] sm:$0xff]  ;;  %v4162_v46 = vld [vmem:[#allocation2 + $0x1e1] sm:$0xff] }
 0x11c   : > { %v1476_v34 = vmul.f32 %v1471_v15, %v1448_v6  ;;  %v1475_v35 = vmul.f32 %v1466_v33, %v1447_v2  ;;  %6684 = vperm.xlu1 %9633, %v6366_v16   ;;  %6679 = vperm.xlu0 %9632, %v6365_v17   ;;  %v10685_v6 = vpack.c.bf16 %v4152_v57, %v4151_v60  ;;  %v4154_v2 = vld [vmem:[#allocation2 + $0x1a1] sm:$0xff]  ;;  %v4153_v16 = vld [vmem:[#allocation2 + $0x199] sm:$0xff]  ;;  %v4155_v33 = vld [vmem:[#allocation2 + $0x1a9] sm:$0xff] }
 0x11d   : > { %8556 = vmatprep.mubr.msk.bf16.mxu1 %vm493_vm0, %v1553_v13  ;;  %v1507_v17 = vld [vmem:[#allocation2 + $0x97] sm:$0xff]  ;;  %v1508_v13 = vld [vmem:[#allocation2 + $0x9f] sm:$0xff]  ;;  %v10699_v15 = vpack.c.bf16 %v4154_v2, %v4153_v16  ;;  %v10701_v5 = vpack.c.bf16 %v4156_v12, %v4155_v33  ;;  %v10717_v20 = vpack.c.bf16 %v4160_v37, %v4159_v32  ;;  %v4163_v19 = vld [vmem:[#allocation2 + $0x1e9] sm:$0xff]  ;;  %v5399_v32 = vsel %vm1779_vm1, %v10384_v25, 0 }
 0x11e   : > { %1480 = vst.msk [vmem:[#allocation2 + $0x240] sm:$0xff] %vm493_vm0, %v1476_v34  ;;  %1479 = vst.msk [vmem:[#allocation2 + $0x238] sm:$0xff] %vm493_vm0, %v1475_v35  ;;  %v1509_v34 = vld [vmem:[#allocation2 + $0xa7] sm:$0xff]  ;;  %v1510_v35 = vld [vmem:[#allocation2 + $0xaf] sm:$0xff]  ;;  %v10705_v36 = vpack.c.bf16 %v1508_v13, %v1507_v17  ;;  %v10733_v52 = vpack.c.bf16 %v4164_v47, %v4163_v19 }
 0x11f   : > { %1487 = vst.msk [vmem:[#allocation2 + $0x240] sm:$0xff] %vm493_vm0, %v9663_v3  ;;  %1486 = vst.msk [vmem:[#allocation2 + $0x238] sm:$0xff] %vm493_vm0, %v9663_v3  ;;  %v1555_v3 = vpack.c.bf16 %v1494_v41, %v1493_v39  ;;  %v10709_v1 = vpack.c.bf16 %v1510_v35, %v1509_v34  ;;  %v1512_v39 = vld [vmem:[#allocation2 + $0xbf] sm:$0xff]  ;;  %v10715_v41 = vpack.c.bf16 %v4158_v9, %v4157_v27  ;;  %v1515_v4 = vld [vmem:[#allocation2 + $0xd7] sm:$0xff] }
 0x120   : > { %v4161_v28 = vld [vmem:[#allocation2 + $0x1d9] sm:$0xff]  ;;  %v1517_v50 = vld [vmem:[#allocation2 + $0xe7] sm:$0xff]  ;;  %v1518_v51 = vld [vmem:[#allocation2 + $0xef] sm:$0xff] }
 0x121   : > { %8849 = vmatmul.mubr.msk.bf16.gmra.mrb[28].mxu0 %vm493_vm0, %v10633_v26  ;;  %v1516_v29 = vld [vmem:[#allocation2 + $0xdf] sm:$0xff]  ;;  %v10741_v23 = vpack.c.bf16 %v1518_v51, %v1517_v50  ;;  %v4168_v10 = vld [vmem:[#allocation2 + $0x211] sm:$0xff]  ;;  %v4167_v59 = vld [vmem:[#allocation2 + $0x209] sm:$0xff] }
 0x122   : > { %8852 = vmatprep.mubr.msk.bf16.mxu0 %vm493_vm0, %v10635_v42  ;;  %v10737_v53 = vpack.c.bf16 %v1516_v29, %v1515_v4  ;;  %v4166_v54 = vld [vmem:[#allocation2 + $0x201] sm:$0xff]  ;;  %v4165_v56 = vld [vmem:[#allocation2 + $0x1f9] sm:$0xff]  ;;  %v1522_v14 = vld [vmem:[#allocation2 + $0x10f] sm:$0xff]  ;;  %v4201_v30 = vpack.c.bf16 %v4168_v10, %v4167_v59 }
 0x123   : > { %8557 = vmatmul.mubr.msk.bf16.vlgmr.msra.gmra.mrb[0].mxu1 %vm493_vm0, %v1554_v38  ;;  %v1511_v38 = vld [vmem:[#allocation2 + $0xb7] sm:$0xff]  ;;  %v1520_v61 = vld [vmem:[#allocation2 + $0xff] sm:$0xff]  ;;  %v10747_v58 = vpack.c.bf16 %v4166_v54, %v4165_v56  ;;  %v1521_v60 = vld [vmem:[#allocation2 + $0x107] sm:$0xff] }
 0x124   : > { %8560 = vmatprep.mubr.msk.bf16.mxu1 %vm493_vm0, %v1555_v3  ;;  %8621 = vmatpush3.bf16.msra.mxu1 %v2654_v8  ;;  %v1513_v8 = vld [vmem:[#allocation2 + $0xc7] sm:$0xff]  ;;  %v1514_v3 = vld [vmem:[#allocation2 + $0xcf] sm:$0xff]  ;;  %v10721_v44 = vpack.c.bf16 %v1512_v39, %v1511_v38  ;;  %v1519_v57 = vld [vmem:[#allocation2 + $0xf7] sm:$0xff]  ;;  %v10754_v12 = vpack.c.bf16 %v1522_v14, %v1521_v60 }
 0x125   : > { %9599 = vmatprep.subr.msk.bf16.mxu1 %vm1779_vm1, %v10650_v43  ;;  %v10725_v45 = vpack.c.bf16 %v1514_v3, %v1513_v8  ;;  %v10751_v2 = vpack.c.bf16 %v1520_v61, %v1519_v57  ;;  %v4169_v16 = vld [vmem:[#allocation2 + $0x219] sm:$0xff]  ;;  %v4170_v17 = vld [vmem:[#allocation2 + $0x221] sm:$0xff]  ;;  %v1526_v9 = vld [vmem:[#allocation2 + $0x12f] sm:$0xff] }
 0x126   : > { %v1523_v13 = vld [vmem:[#allocation2 + $0x117] sm:$0xff]  ;;  %v1524_v33 = vld [vmem:[#allocation2 + $0x11f] sm:$0xff]  ;;  %v4202_v34 = vpack.c.bf16 %v4170_v17, %v4169_v16  ;;  %v1525_v35 = vld [vmem:[#allocation2 + $0x127] sm:$0xff] }
 0x127   : > { %v10761_v37 = vpack.c.bf16 %v1524_v33, %v1523_v13  ;;  %v10765_v27 = vpack.c.bf16 %v1526_v9, %v1525_v35  ;;  %v1527_v38 = vld [vmem:[#allocation2 + $0x137] sm:$0xff]  ;;  %v1528_v39 = vld [vmem:[#allocation2 + $0x13f] sm:$0xff]  ;;  %v1529_v8 = vld [vmem:[#allocation2 + $0x147] sm:$0xff] }
 0x128   : > { %v1530_v3 = vld [vmem:[#allocation2 + $0x14f] sm:$0xff]  ;;  %v1531_v25 = vld [vmem:[#allocation2 + $0x157] sm:$0xff]  ;;  %v1536_v50 = vld [vmem:[#allocation2 + $0x17f] sm:$0xff] }
 0x129   : > { %8853 = vmatmul.mubr.msk.bf16.gmra.mrb[32].mxu0 %vm493_vm0, %v10654_v48  ;;  %v10784_v47 = vpack.c.bf16 %v1530_v3, %v1529_v8  ;;  %v1534_v4 = vld [vmem:[#allocation2 + $0x16f] sm:$0xff]  ;;  %v1535_v19 = vld [vmem:[#allocation2 + $0x177] sm:$0xff]  ;;  %v1537_v51 = vld [vmem:[#allocation2 + $0x187] sm:$0xff] }
 0x12a   : > { %8856 = vmatprep.mubr.msk.bf16.mxu0 %vm493_vm0, %v10656_v49  ;;  %v1538_v54 = vld [vmem:[#allocation2 + $0x18f] sm:$0xff]  ;;  %v1539_v10 = vld [vmem:[#allocation2 + $0x197] sm:$0xff]  ;;  %v1540_v56 = vld [vmem:[#allocation2 + $0x19f] sm:$0xff] }
 0x12b   : > { %8561 = vmatmul.mubr.msk.bf16.gmra.mrb[4].mxu1 %vm493_vm0, %v1556_v40  ;;  %v10731_v40 = vpack.c.bf16 %v4162_v46, %v4161_v28  ;;  %v10776_v46 = vld [vmem:[%s11730_s3 + $0x20] sm:$0xf]  ;;  %v1541_v57 = vld [vmem:[#allocation2 + $0x1a7] sm:$0xff]  ;;  %v1542_v61 = vld [vmem:[#allocation2 + $0x1af] sm:$0xff] }
 0x12c   : > { %8564 = vmatprep.mubr.msk.bf16.mxu1 %vm493_vm0, %v10662_v0  ;;  %v1532_v28 = vld [vmem:[#allocation2 + $0x15f] sm:$0xff]  ;;  %v1543_v59 = vld [vmem:[#allocation2 + $0x1b7] sm:$0xff]  ;;  %v1545_v14 = vld [vmem:[#allocation2 + $0x1c7] sm:$0xff] }
 0x12d   : > { %v10794_v29 = vpack.c.bf16 %v1532_v28, %v1531_v25  ;;  %v1544_v60 = vld [vmem:[#allocation2 + $0x1bf] sm:$0xff]  ;;  %v1547_v16 = vld [vmem:[#allocation2 + $0x1d7] sm:$0xff]  ;;  %v1549_v13 = vld [vmem:[#allocation2 + $0x1e7] sm:$0xff] }
 0x12e   : > { %v1548_v17 = vld [vmem:[#allocation2 + $0x1df] sm:$0xff]  ;;  %v1550_v33 = vld [vmem:[#allocation2 + $0x1ef] sm:$0xff]  ;;  %v1551_v9 = vld [vmem:[#allocation2 + $0x1f7] sm:$0xff] }
 0x12f   : > { %v2461_v35 = vld [vmem:[#allocation2 + $0x11] sm:$0xff]  ;;  %v2464_v25 = vld [vmem:[#allocation2 + $0x29] sm:$0xff] }
 0x130   : > { %v2465_v8 = vld [vmem:[#allocation2 + $0x31] sm:$0xff] }
 0x131   : > { %8857 = vmatmul.mubr.msk.bf16.gmra.mrb[36].mxu0 %vm493_vm0, %v10667_v22  ;;  %v9637_v28 = vld [vmem:[%s11730_s3 + $0x10] sm:$0xf] }
 0x132   : > { %8860 = vmatprep.mubr.msk.bf16.mxu0 %vm493_vm0, %v10669_v55 }
 0x133   : > { %8565 = vmatmul.mubr.msk.bf16.gmra.mrb[8].mxu1 %vm493_vm0, %v10673_v11 }
 0x134   : > { %8568 = vmatprep.mubr.msk.bf16.mxu1 %vm493_vm0, %v10677_v31 }
 0x139   : > { %8861 = vmatmul.mubr.msk.bf16.gmra.mrb[40].mxu0 %vm493_vm0, %v10683_v18 }
 0x13a   : > { %8864 = vmatprep.mubr.msk.bf16.mxu0 %vm493_vm0, %v10685_v6 }
 0x13b   : > { %8569 = vmatmul.mubr.msk.bf16.gmra.mrb[12].mxu1 %vm493_vm0, %v10689_v7 }
 0x13c   : > { %8572 = vmatprep.mubr.msk.bf16.mxu1 %vm493_vm0, %v10693_v24 }
 0x141   : > { %8865 = vmatmul.mubr.msk.bf16.gmra.mrb[44].mxu0 %vm493_vm0, %v10699_v15 }
 0x142   : > { %8868 = vmatprep.mubr.msk.bf16.mxu0 %vm493_vm0, %v10701_v5 }
 0x143   : > { %8573 = vmatmul.mubr.msk.bf16.gmra.mrb[16].mxu1 %vm493_vm0, %v10705_v36 }
 0x144   : > { %8576 = vmatprep.mubr.msk.bf16.mxu1 %vm493_vm0, %v10709_v1 }
 0x149   : > { %8869 = vmatmul.mubr.msk.bf16.gmra.mrb[48].mxu0 %vm493_vm0, %v10715_v41 }
 0x14a   : > { %8872 = vmatprep.mubr.msk.bf16.mxu0 %vm493_vm0, %v10717_v20 }
 0x14b   : > { %8577 = vmatmul.mubr.msk.bf16.gmra.mrb[20].mxu1 %vm493_vm0, %v10721_v44 }
 0x14c   : > { %8580 = vmatprep.mubr.msk.bf16.mxu1 %vm493_vm0, %v10725_v45 }
 0x151   : > { %8873 = vmatmul.mubr.msk.bf16.gmra.mrb[52].mxu0 %vm493_vm0, %v10731_v40 }
 0x152   : > { %8876 = vmatprep.mubr.msk.bf16.mxu0 %vm493_vm0, %v10733_v52 }
 0x153   : > { %8581 = vmatmul.mubr.msk.bf16.gmra.mrb[24].mxu1 %vm493_vm0, %v10737_v53 }
 0x154   : > { %8584 = vmatprep.mubr.msk.bf16.mxu1 %vm493_vm0, %v10741_v23 }
 0x159   : > { %8877 = vmatmul.mubr.msk.bf16.gmra.mrb[56].mxu0 %vm493_vm0, %v10747_v58 }
 0x15a   : > { %8880 = vmatprep.mubr.msk.bf16.mxu0 %vm493_vm0, %v4201_v30  ;;  %v1546_v30 = vld [vmem:[#allocation2 + $0x1cf] sm:$0xff] }
 0x15b   : > { %8585 = vmatmul.mubr.msk.bf16.gmra.mrb[28].mxu1 %vm493_vm0, %v10751_v2 }
 0x15c   : > { %8588 = vmatprep.mubr.msk.bf16.mxu1 %vm493_vm0, %v10754_v12 }
 0x161   : > { %8881 = vmatmul.mubr.msk.bf16.gmra.mrb[60].mxu0 %vm493_vm0, %v4202_v34  ;;  %v2460_v34 = vld [vmem:[#allocation2 + $0x9] sm:$0xff] }
 0x162   : > { %8886 = vmatprep.mubr.msk.bf16.mxu0 %vm493_vm0, %v10662_v0  ;;  %v10780_v0 = vpack.c.bf16 %v1528_v39, %v1527_v38  ;;  %v1552_v38 = vld [vmem:[#allocation2 + $0x1ff] sm:$0xff]  ;;  %v2524_v39 = vpack.c.bf16 %v2461_v35, %v2460_v34  ;;  %v2484_v34 = vld [vmem:[#allocation2 + $0xc9] sm:$0xff] }
 0x163   : > { %8589 = vmatmul.mubr.msk.bf16.gmra.mrb[32].mxu1 %vm493_vm0, %v10761_v37  ;;  %v4712_v35 = vld [vmem:[#allocation2 + $0x207] sm:$0xff] }
 0x164   : > { %8592 = vmatprep.mubr.msk.bf16.mxu1 %vm493_vm0, %v10765_v27 }
 0x169   : > { %8887 = vmatmul.mubr.msk.bf16.vlgmr.msra.gmra.mrb[0].mxu0 %vm493_vm0, %v10673_v11  ;;  %v1533_v11 = vld [vmem:[#allocation2 + $0x167] sm:$0xff] }
 0x16a   : > { %8951 = vmatpush3.bf16.msra.mxu0 %v5399_v32  ;;  %8890 = vmatprep.mubr.msk.bf16.mxu0 %vm493_vm0, %v10677_v31  ;;  %v10798_v31 = vpack.c.bf16 %v1534_v4, %v1533_v11  ;;  %v2463_v32 = vld [vmem:[#allocation2 + $0x21] sm:$0xff]  ;;  %v2469_v11 = vld [vmem:[#allocation2 + $0x51] sm:$0xff]  ;;  %v2466_v4 = vld [vmem:[#allocation2 + $0x39] sm:$0xff] }
 0x16b   : > { %8593 = vmatmul.mubr.msk.bf16.gmra.mrb[36].mxu1 %vm493_vm0, %v10780_v0  ;;  %9605 = vmatprep.subr.msk.bf16.mxu0 %vm1779_vm1, %v10776_v46 }
 0x16c   : > { %8596 = vmatprep.mubr.msk.bf16.mxu1 %vm493_vm0, %v10784_v47 }
 0x171   : > { %8891 = vmatmul.mubr.msk.bf16.gmra.mrb[4].mxu0 %vm493_vm0, %v10689_v7  ;;  %v10806_v7 = vpack.c.bf16 %v1536_v50, %v1535_v19  ;;  %v2471_v50 = vld [vmem:[#allocation2 + $0x61] sm:$0xff] }
 0x172   : > { %8894 = vmatprep.mubr.msk.bf16.mxu0 %vm493_vm0, %v10693_v24  ;;  %v10810_v24 = vpack.c.bf16 %v1538_v54, %v1537_v51  ;;  %v2473_v51 = vld [vmem:[#allocation2 + $0x71] sm:$0xff]  ;;  %v2470_v54 = vld [vmem:[#allocation2 + $0x59] sm:$0xff] }
 0x173   : > { %8597 = vmatmul.mubr.msk.bf16.gmra.mrb[40].mxu1 %vm493_vm0, %v10794_v29 }
 0x174   : > { %8600 = vmatprep.mubr.msk.bf16.mxu1 %vm493_vm0, %v10798_v31 }
 0x179   : > { %8895 = vmatmul.mubr.msk.bf16.gmra.mrb[8].mxu0 %vm493_vm0, %v10705_v36  ;;  %v10818_v36 = vpack.c.bf16 %v1540_v56, %v1539_v10  ;;  %v10884_v10 = vpack.c.bf16 %v2471_v50, %v2470_v54  ;;  %v2475_v56 = vld [vmem:[#allocation2 + $0x81] sm:$0xff]  ;;  %v5206_v54 = vld [vmem:[#allocation2 + $0x50] sm:$0xff] }
 0x17a   : > { %8898 = vmatprep.mubr.msk.bf16.mxu0 %vm493_vm0, %v10709_v1  ;;  %v10822_v1 = vpack.c.bf16 %v1542_v61, %v1541_v57  ;;  %v2477_v57 = vld [vmem:[#allocation2 + $0x91] sm:$0xff]  ;;  %v2474_v61 = vld [vmem:[#allocation2 + $0x79] sm:$0xff] }
 0x17b   : > { %8601 = vmatmul.mubr.msk.bf16.gmra.mrb[44].mxu1 %vm493_vm0, %v10806_v7 }
 0x17c   : > { %8604 = vmatprep.mubr.msk.bf16.mxu1 %vm493_vm0, %v10810_v24 }
 0x181   : > { %8899 = vmatmul.mubr.msk.bf16.gmra.mrb[12].mxu0 %vm493_vm0, %v10721_v44  ;;  %v10830_v44 = vpack.c.bf16 %v1544_v60, %v1543_v59  ;;  %v2476_v59 = vld [vmem:[#allocation2 + $0x89] sm:$0xff]  ;;  %v2479_v60 = vld [vmem:[#allocation2 + $0xa1] sm:$0xff] }
 0x182   : > { %8902 = vmatprep.mubr.msk.bf16.mxu0 %vm493_vm0, %v10725_v45  ;;  %v10834_v45 = vpack.c.bf16 %v1546_v30, %v1545_v14  ;;  %v2481_v14 = vld [vmem:[#allocation2 + $0xb1] sm:$0xff]  ;;  %v2478_v30 = vld [vmem:[#allocation2 + $0x99] sm:$0xff] }
 0x183   : > { %8605 = vmatmul.mubr.msk.bf16.gmra.mrb[48].mxu1 %vm493_vm0, %v10818_v36 }
 0x184   : > { %8608 = vmatprep.mubr.msk.bf16.mxu1 %vm493_vm0, %v10822_v1 }
 0x189   : > { %8903 = vmatmul.mubr.msk.bf16.gmra.mrb[16].mxu0 %vm493_vm0, %v10737_v53  ;;  %v10842_v53 = vpack.c.bf16 %v1548_v17, %v1547_v16  ;;  %v2480_v16 = vld [vmem:[#allocation2 + $0xa9] sm:$0xff]  ;;  %v2483_v17 = vld [vmem:[#allocation2 + $0xc1] sm:$0xff] }
 0x18a   : > { %8906 = vmatprep.mubr.msk.bf16.mxu0 %vm493_vm0, %v10741_v23  ;;  %v10846_v23 = vpack.c.bf16 %v1550_v33, %v1549_v13  ;;  %v2485_v13 = vld [vmem:[#allocation2 + $0xd1] sm:$0xff]  ;;  %v2482_v33 = vld [vmem:[#allocation2 + $0xb9] sm:$0xff] }
 0x18b   : > { %8609 = vmatmul.mubr.msk.bf16.gmra.mrb[52].mxu1 %vm493_vm0, %v10830_v44 }
 0x18c   : > { %8612 = vmatprep.mubr.msk.bf16.mxu1 %vm493_vm0, %v10834_v45 }
 0x191   : > { %8907 = vmatmul.mubr.msk.bf16.gmra.mrb[20].mxu0 %vm493_vm0, %v10751_v2  ;;  %v10854_v2 = vpack.c.bf16 %v1552_v38, %v1551_v9  ;;  %v4713_v9 = vld [vmem:[#allocation2 + $0x20f] sm:$0xff]  ;;  %v2487_v38 = vld [vmem:[#allocation2 + $0xe1] sm:$0xff] }
 0x192   : > { %8910 = vmatprep.mubr.msk.bf16.mxu0 %vm493_vm0, %v10754_v12  ;;  %v2462_v12 = vld [vmem:[#allocation2 + $0x19] sm:$0xff] }
 0x193   : > { %8613 = vmatmul.mubr.msk.bf16.gmra.mrb[56].mxu1 %vm493_vm0, %v10842_v53  ;;  %v2525_v3 = vpack.c.bf16 %v2463_v32, %v2462_v12  ;;  %v10930_v12 = vpack.c.bf16 %v4713_v9, %v4712_v35  ;;  %v2486_v32 = vld [vmem:[#allocation2 + $0xd9] sm:$0xff]  ;;  %v5221_v9 = vld [vmem:[#allocation2 + $0xc8] sm:$0xff] }
 0x194   : > { %8616 = vmatprep.mubr.msk.bf16.mxu1 %vm493_vm0, %v10846_v23  ;;  %v5220_v35 = vld [vmem:[#allocation2 + $0xc0] sm:$0xff] }
 0x199   : > { %8911 = vmatmul.mubr.msk.bf16.gmra.mrb[24].mxu0 %vm493_vm0, %v10761_v37  ;;  %v3203_v37 = vsel %vm1779_vm1, %v10650_v43, 0 }
 0x19a   : > { %8914 = vmatprep.mubr.msk.bf16.mxu0 %vm493_vm0, %v10765_v27  ;;  %v2526_v27 = vpack.c.bf16 %v2465_v8, %v2464_v25  ;;  %v10934_v8 = vpack.c.bf16 %v2487_v38, %v2486_v32  ;;  %v5224_v32 = vld [vmem:[#allocation2 + $0xe0] sm:$0xff] }
 0x19b   : > { %8617 = vmatmul.mubr.msk.bf16.gmra.mrb[60].mxu1 %vm493_vm0, %v10854_v2 }
 0x19c   : > { %8622 = vmatprep.mubr.msk.bf16.mxu1 %vm493_vm0, %v2524_v39  ;;  %v2489_v39 = vld [vmem:[#allocation2 + $0xf1] sm:$0xff] }
 0x1a1   : > { %8915 = vmatmul.mubr.msk.bf16.gmra.mrb[28].mxu0 %vm493_vm0, %v10780_v0  ;;  %v2467_v0 = vld [vmem:[#allocation2 + $0x41] sm:$0xff] }
 0x1a2   : > { %8918 = vmatprep.mubr.msk.bf16.mxu0 %vm493_vm0, %v10784_v47  ;;  %v2527_v43 = vpack.c.bf16 %v2467_v0, %v2466_v4  ;;  %v2468_v47 = vld [vmem:[#allocation2 + $0x49] sm:$0xff]  ;;  %v4714_v0 = vld [vmem:[#allocation2 + $0x217] sm:$0xff] }
 0x1a3   : > { %8623 = vmatmul.mubr.msk.bf16.vlgmr.msra.gmra.mrb[0].mxu1 %vm493_vm0, %v2525_v3  ;;  %v10877_v19 = vpack.c.bf16 %v2469_v11, %v2468_v47  ;;  %v2488_v3 = vld [vmem:[#allocation2 + $0xe9] sm:$0xff]  ;;  %v4719_v47 = vld [vmem:[#allocation2 + $0x23f] sm:$0xff] }
 0x1a4   : > { %8626 = vmatprep.mubr.msk.bf16.mxu1 %vm493_vm0, %v2526_v27  ;;  %8687 = vmatpush3.bf16.msra.mxu1 %v3203_v37  ;;  %v10938_v25 = vpack.c.bf16 %v2489_v39, %v2488_v3  ;;  %v4715_v37 = vld [vmem:[#allocation2 + $0x21f] sm:$0xff]  ;;  %v4716_v27 = vld [vmem:[#allocation2 + $0x227] sm:$0xff] }
 0x1a5   : > { %9601 = vmatprep.subr.msk.bf16.mxu1 %vm1779_vm1, %v9637_v28  ;;  %v4717_v28 = vld [vmem:[#allocation2 + $0x22f] sm:$0xff]  ;;  %v10944_v11 = vpack.c.bf16 %v4715_v37, %v4714_v0 }
 0x1a6   : > { %v4750_v4 = vpack.c.bf16 %v4717_v28, %v4716_v27  ;;  %v5225_v3 = vld [vmem:[#allocation2 + $0xe8] sm:$0xff]  ;;  %v5228_v28 = vld [vmem:[#allocation2 + $0x100] sm:$0xff] }
 0x1a7   : > { %v5229_v0 = vld [vmem:[#allocation2 + $0x108] sm:$0xff] }
 0x1a9   : > { %8919 = vmatmul.mubr.msk.bf16.gmra.mrb[32].mxu0 %vm493_vm0, %v10794_v29  ;;  %v2472_v29 = vld [vmem:[#allocation2 + $0x69] sm:$0xff] }
 0x1aa   : > { %8922 = vmatprep.mubr.msk.bf16.mxu0 %vm493_vm0, %v10798_v31  ;;  %v10888_v31 = vpack.c.bf16 %v2473_v51, %v2472_v29  ;;  %v5205_v51 = vld [vmem:[#allocation2 + $0x48] sm:$0xff] }
 0x1ab   : > { %8627 = vmatmul.mubr.msk.bf16.gmra.mrb[4].mxu1 %vm493_vm0, %v2527_v43  ;;  %v4718_v43 = vld [vmem:[#allocation2 + $0x237] sm:$0xff]  ;;  %v5269_v29 = vpack.c.bf16 %v5206_v54, %v5205_v51  ;;  %v3009_v54 = vld [vmem:[#allocation2 + $0x27] sm:$0xff] }
 0x1ac   : > { %8630 = vmatprep.mubr.msk.bf16.mxu1 %vm493_vm0, %v10877_v19  ;;  %v4751_v50 = vpack.c.bf16 %v4719_v47, %v4718_v43  ;;  %v5232_v47 = vld [vmem:[#allocation2 + $0x120] sm:$0xff] }
 0x1b1   : > { %8923 = vmatmul.mubr.msk.bf16.gmra.mrb[36].mxu0 %vm493_vm0, %v10806_v7  ;;  %v10896_v7 = vpack.c.bf16 %v2475_v56, %v2474_v61  ;;  %v5207_v56 = vld [vmem:[#allocation2 + $0x58] sm:$0xff]  ;;  %v5210_v61 = vld [vmem:[#allocation2 + $0x70] sm:$0xff] }
 0x1b2   : > { %8926 = vmatprep.mubr.msk.bf16.mxu0 %vm493_vm0, %v10810_v24  ;;  %v10900_v24 = vpack.c.bf16 %v2477_v57, %v2476_v59  ;;  %v5208_v57 = vld [vmem:[#allocation2 + $0x60] sm:$0xff] }
 0x1b3   : > { %8631 = vmatmul.mubr.msk.bf16.gmra.mrb[8].mxu1 %vm493_vm0, %v10884_v10  ;;  %v5270_v59 = vpack.c.bf16 %v5208_v57, %v5207_v56 }
 0x1b4   : > { %8634 = vmatprep.mubr.msk.bf16.mxu1 %vm493_vm0, %v10888_v31 }
 0x1b9   : > { %8927 = vmatmul.mubr.msk.bf16.gmra.mrb[40].mxu0 %vm493_vm0, %v10818_v36  ;;  %v10908_v36 = vpack.c.bf16 %v2479_v60, %v2478_v30  ;;  %v5214_v30 = vld [vmem:[#allocation2 + $0x90] sm:$0xff] }
 0x1ba   : > { %8930 = vmatprep.mubr.msk.bf16.mxu0 %vm493_vm0, %v10822_v1  ;;  %v10912_v1 = vpack.c.bf16 %v2481_v14, %v2480_v16  ;;  %v5213_v14 = vld [vmem:[#allocation2 + $0x88] sm:$0xff] }
 0x1bb   : > { %8635 = vmatmul.mubr.msk.bf16.gmra.mrb[12].mxu1 %vm493_vm0, %v10896_v7 }
 0x1bc   : > { %8638 = vmatprep.mubr.msk.bf16.mxu1 %vm493_vm0, %v10900_v24 }
 0x1c1   : > { %8931 = vmatmul.mubr.msk.bf16.gmra.mrb[44].mxu0 %vm493_vm0, %v10830_v44  ;;  %v10920_v44 = vpack.c.bf16 %v2483_v17, %v2482_v33  ;;  %v5273_v17 = vpack.c.bf16 %v5214_v30, %v5213_v14 }
 0x1c2   : > { %8934 = vmatprep.mubr.msk.bf16.mxu0 %vm493_vm0, %v10834_v45  ;;  %v10924_v45 = vpack.c.bf16 %v2485_v13, %v2484_v34  ;;  %v5217_v13 = vld [vmem:[#allocation2 + $0xa8] sm:$0xff] }
 0x1c3   : > { %8639 = vmatmul.mubr.msk.bf16.gmra.mrb[16].mxu1 %vm493_vm0, %v10908_v36 }
 0x1c4   : > { %8642 = vmatprep.mubr.msk.bf16.mxu1 %vm493_vm0, %v10912_v1 }
 0x1c9   : > { %8935 = vmatmul.mubr.msk.bf16.gmra.mrb[48].mxu0 %vm493_vm0, %v10842_v53 }
 0x1ca   : > { %8938 = vmatprep.mubr.msk.bf16.mxu0 %vm493_vm0, %v10846_v23 }
 0x1cb   : > { %8643 = vmatmul.mubr.msk.bf16.gmra.mrb[20].mxu1 %vm493_vm0, %v10920_v44 }
 0x1cc   : > { %8646 = vmatprep.mubr.msk.bf16.mxu1 %vm493_vm0, %v10924_v45 }
 0x1d1   : > { %8939 = vmatmul.mubr.msk.bf16.gmra.mrb[52].mxu0 %vm493_vm0, %v10854_v2 }
 0x1d2   : > { %8942 = vmatprep.mubr.msk.bf16.mxu0 %vm493_vm0, %v10930_v12 }
 0x1d3   : > { %8647 = vmatmul.mubr.msk.bf16.gmra.mrb[24].mxu1 %vm493_vm0, %v10934_v8 }
 0x1d4   : > { %8650 = vmatprep.mubr.msk.bf16.mxu1 %vm493_vm0, %v10938_v25 }
 0x1d9   : > { %8943 = vmatmul.mubr.msk.bf16.gmra.mrb[56].mxu0 %vm493_vm0, %v10944_v11 }
 0x1da   : > { %8946 = vmatprep.mubr.msk.bf16.mxu0 %vm493_vm0, %v4750_v4 }
 0x1db   : > { %8651 = vmatmul.mubr.msk.bf16.gmra.mrb[28].mxu1 %vm493_vm0, %v10607_v62  ;;  %v5209_v62 = vld [vmem:[#allocation2 + $0x68] sm:$0xff] }
 0x1dc   : > { %8654 = vmatprep.mubr.msk.bf16.mxu1 %vm493_vm0, %v10609_v63  ;;  %v5948_v63 = vsel %vm1779_vm1, %v10776_v46, 0  ;;  %v5271_v60 = vpack.c.bf16 %v5210_v61, %v5209_v62  ;;  %v5216_v46 = vld [vmem:[#allocation2 + $0xa0] sm:$0xff]  ;;  %v5237_v62 = vld [vmem:[#allocation2 + $0x148] sm:$0xff]  ;;  %v5238_v61 = vld [vmem:[#allocation2 + $0x150] sm:$0xff] }
 0x1dd   : > { %v11007_v14 = vpack.c.bf16 %v5238_v61, %v5237_v62  ;;  %v5252_v62 = vld [vmem:[#allocation2 + $0x1c0] sm:$0xff]  ;;  %v5253_v61 = vld [vmem:[#allocation2 + $0x1c8] sm:$0xff] }
 0x1e1   : > { %8947 = vmatmul.mubr.msk.bf16.gmra.mrb[60].mxu0 %vm493_vm0, %v4751_v50  ;;  %v5233_v50 = vld [vmem:[#allocation2 + $0x128] sm:$0xff] }
 0x1e2   : > { %8952 = vmatprep.mubr.msk.bf16.mxu0 %vm493_vm0, %v5269_v29  ;;  %v3010_v29 = vld [vmem:[#allocation2 + $0x2f] sm:$0xff] }
 0x1e3   : > { %8655 = vmatmul.mubr.msk.bf16.gmra.mrb[32].mxu1 %vm493_vm0, %v10633_v26  ;;  %v5211_v26 = vld [vmem:[#allocation2 + $0x78] sm:$0xff]  ;;  %v3073_v57 = vpack.c.bf16 %v3010_v29, %v3009_v54  ;;  %v3026_v54 = vld [vmem:[#allocation2 + $0xaf] sm:$0xff] }
 0x1e4   : > { %8658 = vmatprep.mubr.msk.bf16.mxu1 %vm493_vm0, %v10635_v42  ;;  %v5212_v42 = vld [vmem:[#allocation2 + $0x80] sm:$0xff] }
 0x1e5   : > { %v5272_v16 = vpack.c.bf16 %v5212_v42, %v5211_v26  ;;  %v3013_v26 = vld [vmem:[#allocation2 + $0x47] sm:$0xff]  ;;  %v3014_v42 = vld [vmem:[#allocation2 + $0x4f] sm:$0xff] }
 0x1e9   : > { %8953 = vmatmul.mubr.msk.bf16.vlgmr.msra.gmra.mrb[0].mxu0 %vm493_vm0, %v5270_v59  ;;  %v3011_v59 = vld [vmem:[#allocation2 + $0x37] sm:$0xff] }
 0x1ea   : > { %9017 = vmatpush3.bf16.msra.mxu0 %v5948_v63  ;;  %8956 = vmatprep.mubr.msk.bf16.mxu0 %vm493_vm0, %v5271_v60  ;;  %v3012_v63 = vld [vmem:[#allocation2 + $0x3f] sm:$0xff] }
 0x1eb   : > { %8659 = vmatmul.mubr.msk.bf16.gmra.mrb[36].mxu1 %vm493_vm0, %v10654_v48  ;;  %v5215_v48 = vld [vmem:[#allocation2 + $0x98] sm:$0xff]  ;;  %v3074_v30 = vpack.c.bf16 %v3012_v63, %v3011_v59  ;;  %v5254_v59 = vld [vmem:[#allocation2 + $0x1d0] sm:$0xff] }
 0x1ec   : > { %8662 = vmatprep.mubr.msk.bf16.mxu1 %vm493_vm0, %v10656_v49  ;;  %v5218_v49 = vld [vmem:[#allocation2 + $0xb0] sm:$0xff]  ;;  %v5274_v33 = vpack.c.bf16 %v5216_v46, %v5215_v48  ;;  %v5241_v48 = vld [vmem:[#allocation2 + $0x168] sm:$0xff] }
 0x1ed   : > { %v5275_v34 = vpack.c.bf16 %v5218_v49, %v5217_v13  ;;  %v5242_v46 = vld [vmem:[#allocation2 + $0x170] sm:$0xff]  ;;  %v3016_v49 = vld [vmem:[#allocation2 + $0x5f] sm:$0xff] }
 0x1ee   : > { %v3015_v13 = vld [vmem:[#allocation2 + $0x57] sm:$0xff] }
 0x1ef   : > { %v3027_v63 = vld [vmem:[#allocation2 + $0xb7] sm:$0xff] }
 0x1f1   : > { %8957 = vmatmul.mubr.msk.bf16.gmra.mrb[4].mxu0 %vm493_vm0, %v5272_v16  ;;  %v5239_v16 = vld [vmem:[#allocation2 + $0x158] sm:$0xff] }
 0x1f2   : > { %8960 = vmatprep.mubr.msk.bf16.mxu0 %vm493_vm0, %v5273_v17  ;;  %v5240_v17 = vld [vmem:[#allocation2 + $0x160] sm:$0xff] }
 0x1f3   : > { %8663 = vmatmul.mubr.msk.bf16.gmra.mrb[40].mxu1 %vm493_vm0, %v10667_v22  ;;  %v5219_v22 = vld [vmem:[#allocation2 + $0xb8] sm:$0xff] }
 0x1f4   : > { %8666 = vmatprep.mubr.msk.bf16.mxu1 %vm493_vm0, %v10669_v55  ;;  %v5222_v55 = vld [vmem:[#allocation2 + $0xd0] sm:$0xff]  ;;  %v5276_v38 = vpack.c.bf16 %v5220_v35, %v5219_v22  ;;  %v11018_v35 = vpack.c.bf16 %v5242_v46, %v5241_v48  ;;  %v5255_v46 = vld [vmem:[#allocation2 + $0x1d8] sm:$0xff] }
 0x1f5   : > { %v5277_v39 = vpack.c.bf16 %v5222_v55, %v5221_v9  ;;  %v3018_v22 = vld [vmem:[#allocation2 + $0x6f] sm:$0xff]  ;;  %v3076_v9 = vpack.c.bf16 %v3016_v49, %v3015_v13  ;;  %v5243_v55 = vld [vmem:[#allocation2 + $0x178] sm:$0xff]  ;;  %v5256_v13 = vld [vmem:[#allocation2 + $0x1e0] sm:$0xff] }
 0x1f6   : > { %v5257_v49 = vld [vmem:[#allocation2 + $0x1e8] sm:$0xff] }
 0x1f9   : > { %8961 = vmatmul.mubr.msk.bf16.gmra.mrb[8].mxu0 %vm493_vm0, %v5274_v33  ;;  %v11016_v33 = vpack.c.bf16 %v5240_v17, %v5239_v16  ;;  %v11048_v16 = vpack.c.bf16 %v5254_v59, %v5253_v61  ;;  %v3040_v61 = vld [vmem:[#allocation2 + $0x11f] sm:$0xff] }
 0x1fa   : > { %8964 = vmatprep.mubr.msk.bf16.mxu0 %vm493_vm0, %v5275_v34  ;;  %v3017_v34 = vld [vmem:[#allocation2 + $0x67] sm:$0xff] }
 0x1fb   : > { %8667 = vmatmul.mubr.msk.bf16.gmra.mrb[44].mxu1 %vm493_vm0, %v10683_v18  ;;  %v5223_v18 = vld [vmem:[#allocation2 + $0xd8] sm:$0xff] }
 0x1fc   : > { %8670 = vmatprep.mubr.msk.bf16.mxu1 %vm493_vm0, %v10685_v6  ;;  %v5226_v6 = vld [vmem:[#allocation2 + $0xf0] sm:$0xff]  ;;  %v5278_v37 = vpack.c.bf16 %v5224_v32, %v5223_v18 }
 0x1fd   : > { %v5279_v27 = vpack.c.bf16 %v5226_v6, %v5225_v3  ;;  %v5246_v18 = vld [vmem:[#allocation2 + $0x190] sm:$0xff]  ;;  %v3020_v3 = vld [vmem:[#allocation2 + $0x7f] sm:$0xff] }
 0x1fe   : > { %v3019_v32 = vld [vmem:[#allocation2 + $0x77] sm:$0xff] }
 0x201   : > { %8965 = vmatmul.mubr.msk.bf16.gmra.mrb[12].mxu0 %vm493_vm0, %v5276_v38  ;;  %v5244_v38 = vld [vmem:[#allocation2 + $0x180] sm:$0xff] }
 0x202   : > { %8968 = vmatprep.mubr.msk.bf16.mxu0 %vm493_vm0, %v5277_v39  ;;  %v5245_v39 = vld [vmem:[#allocation2 + $0x188] sm:$0xff]  ;;  %v11026_v6 = vpack.c.bf16 %v5244_v38, %v5243_v55 }
 0x203   : > { %8671 = vmatmul.mubr.msk.bf16.gmra.mrb[48].mxu1 %vm493_vm0, %v10699_v15  ;;  %v5227_v15 = vld [vmem:[#allocation2 + $0xf8] sm:$0xff]  ;;  %v3033_v55 = vld [vmem:[#allocation2 + $0xe7] sm:$0xff]  ;;  %v3034_v38 = vld [vmem:[#allocation2 + $0xef] sm:$0xff] }
 0x204   : > { %8674 = vmatprep.mubr.msk.bf16.mxu1 %vm493_vm0, %v10701_v5  ;;  %v5230_v5 = vld [vmem:[#allocation2 + $0x110] sm:$0xff]  ;;  %v5280_v4 = vpack.c.bf16 %v5228_v28, %v5227_v15  ;;  %v11028_v15 = vpack.c.bf16 %v5246_v18, %v5245_v39  ;;  %v3078_v28 = vpack.c.bf16 %v3020_v3, %v3019_v32  ;;  %v3085_v32 = vpack.c.bf16 %v3034_v38, %v3033_v55  ;;  %v5259_v3 = vld [vmem:[#allocation2 + $0x1f8] sm:$0xff] }
 0x205   : > { %v5281_v43 = vpack.c.bf16 %v5230_v5, %v5229_v0  ;;  %v5247_v5 = vld [vmem:[#allocation2 + $0x198] sm:$0xff] }
 0x209   : > { %8969 = vmatmul.mubr.msk.bf16.gmra.mrb[16].mxu0 %vm493_vm0, %v5278_v37  ;;  %v3021_v37 = vld [vmem:[#allocation2 + $0x87] sm:$0xff] }
 0x20a   : > { %8972 = vmatprep.mubr.msk.bf16.mxu0 %vm493_vm0, %v5279_v27  ;;  %v3022_v27 = vld [vmem:[#allocation2 + $0x8f] sm:$0xff] }
 0x20b   : > { %8675 = vmatmul.mubr.msk.bf16.gmra.mrb[52].mxu1 %vm493_vm0, %v10715_v41  ;;  %v5231_v41 = vld [vmem:[#allocation2 + $0x118] sm:$0xff]  ;;  %v3079_v0 = vpack.c.bf16 %v3022_v27, %v3021_v37  ;;  %v5260_v37 = vld [vmem:[#allocation2 + $0x200] sm:$0xff]  ;;  %v5261_v27 = vld [vmem:[#allocation2 + $0x208] sm:$0xff] }
 0x20c   : > { %8678 = vmatprep.mubr.msk.bf16.mxu1 %vm493_vm0, %v10717_v20  ;;  %v5234_v20 = vld [vmem:[#allocation2 + $0x130] sm:$0xff]  ;;  %v5282_v51 = vpack.c.bf16 %v5232_v47, %v5231_v41 }
 0x20d   : > { %v10997_v56 = vpack.c.bf16 %v5234_v20, %v5233_v50  ;;  %v5250_v41 = vld [vmem:[#allocation2 + $0x1b0] sm:$0xff]  ;;  %v3024_v50 = vld [vmem:[#allocation2 + $0x9f] sm:$0xff] }
 0x20e   : > { %v3023_v47 = vld [vmem:[#allocation2 + $0x97] sm:$0xff] }
 0x211   : > { %8973 = vmatmul.mubr.msk.bf16.gmra.mrb[20].mxu0 %vm493_vm0, %v5280_v4  ;;  %v5248_v4 = vld [vmem:[#allocation2 + $0x1a0] sm:$0xff] }
 0x212   : > { %8976 = vmatprep.mubr.msk.bf16.mxu0 %vm493_vm0, %v5281_v43  ;;  %v5249_v43 = vld [vmem:[#allocation2 + $0x1a8] sm:$0xff]  ;;  %v11036_v20 = vpack.c.bf16 %v5248_v4, %v5247_v5  ;;  %v3036_v5 = vld [vmem:[#allocation2 + $0xff] sm:$0xff]  ;;  %v11066_v4 = vpack.c.bf16 %v5260_v37, %v5259_v3 }
 0x213   : > { %8679 = vmatmul.mubr.msk.bf16.gmra.mrb[56].mxu1 %vm493_vm0, %v10731_v40  ;;  %v5235_v40 = vld [vmem:[#allocation2 + $0x138] sm:$0xff]  ;;  %v11038_v29 = vpack.c.bf16 %v5250_v41, %v5249_v43  ;;  %v3037_v43 = vld [vmem:[#allocation2 + $0x107] sm:$0xff]  ;;  %v3038_v41 = vld [vmem:[#allocation2 + $0x10f] sm:$0xff] }
 0x214   : > { %8682 = vmatprep.mubr.msk.bf16.mxu1 %vm493_vm0, %v10733_v52  ;;  %v5236_v52 = vld [vmem:[#allocation2 + $0x140] sm:$0xff]  ;;  %v3050_v37 = vld [vmem:[#allocation2 + $0x16f] sm:$0xff] }
 0x215   : > { %v11005_v60 = vpack.c.bf16 %v5236_v52, %v5235_v40  ;;  %v5251_v52 = vld [vmem:[#allocation2 + $0x1b8] sm:$0xff]  ;;  %v3049_v3 = vld [vmem:[#allocation2 + $0x167] sm:$0xff] }
 0x219   : > { %8977 = vmatmul.mubr.msk.bf16.gmra.mrb[24].mxu0 %vm493_vm0, %v5282_v51  ;;  %v3025_v51 = vld [vmem:[#allocation2 + $0xa7] sm:$0xff] }
 0x21a   : > { %8980 = vmatprep.mubr.msk.bf16.mxu0 %vm493_vm0, %v10997_v56  ;;  %v3081_v40 = vpack.c.bf16 %v3026_v54, %v3025_v51  ;;  %v3087_v51 = vpack.c.bf16 %v3038_v41, %v3037_v43  ;;  %v5265_v54 = vld [vmem:[#allocation2 + $0x228] sm:$0xff] }
 0x21b   : > { %8683 = vmatmul.mubr.msk.bf16.gmra.mrb[60].mxu1 %vm493_vm0, %v10747_v58  ;;  %v3075_v58 = vpack.c.bf16 %v3014_v42, %v3013_v26  ;;  %v3028_v26 = vld [vmem:[#allocation2 + $0xbf] sm:$0xff]  ;;  %v11046_v42 = vpack.c.bf16 %v5252_v62, %v5251_v52  ;;  %v3039_v62 = vld [vmem:[#allocation2 + $0x117] sm:$0xff]  ;;  %v3054_v43 = vld [vmem:[#allocation2 + $0x18f] sm:$0xff] }
 0x21c   : > { %8688 = vmatprep.mubr.msk.bf16.mxu1 %vm493_vm0, %v3073_v57  ;;  %v3080_v57 = vpack.c.bf16 %v3024_v50, %v3023_v47  ;;  %v3082_v17 = vpack.c.bf16 %v3028_v26, %v3027_v63  ;;  %v5263_v52 = vld [vmem:[#allocation2 + $0x218] sm:$0xff]  ;;  %v3041_v26 = vld [vmem:[#allocation2 + $0x127] sm:$0xff] }
 0x221   : > { %8981 = vmatmul.mubr.msk.bf16.gmra.mrb[28].mxu0 %vm493_vm0, %v11005_v60 }
 0x222   : > { %8984 = vmatprep.mubr.msk.bf16.mxu0 %vm493_vm0, %v11007_v14 }
 0x223   : > { %8689 = vmatmul.mubr.msk.bf16.vlgmr.msra.gmra.mrb[0].mxu1 %vm493_vm0, %v3074_v30  ;;  %v3029_v30 = vld [vmem:[#allocation2 + $0xc7] sm:$0xff] }
 0x224   : > { %8692 = vmatprep.mubr.msk.bf16.mxu1 %vm493_vm0, %v3075_v58  ;;  %9083 = vmatpush3.bf16.msra.mxu1 %v9841_v21  ;;  %v3077_v21 = vpack.c.bf16 %v3018_v22, %v3017_v34  ;;  %v3030_v58 = vld [vmem:[#allocation2 + $0xcf] sm:$0xff]  ;;  %v3031_v22 = vld [vmem:[#allocation2 + $0xd7] sm:$0xff] }
 0x225   : > { %v3083_v48 = vpack.c.bf16 %v3030_v58, %v3029_v30  ;;  %v5258_v34 = vld [vmem:[#allocation2 + $0x1f0] sm:$0xff]  ;;  %v3088_v58 = vpack.c.bf16 %v3040_v61, %v3039_v62 }
 0x226   : > { %v11058_v39 = vpack.c.bf16 %v5258_v34, %v5257_v49  ;;  %v3042_v30 = vld [vmem:[#allocation2 + $0x12f] sm:$0xff]  ;;  %v3043_v49 = vld [vmem:[#allocation2 + $0x137] sm:$0xff]  ;;  %v3044_v34 = vld [vmem:[#allocation2 + $0x13f] sm:$0xff] }
 0x227   : > { %v3090_v55 = vpack.c.bf16 %v3044_v34, %v3043_v49  ;;  %v3062_v62 = vld [vmem:[#allocation2 + $0x1cf] sm:$0xff] }
 0x228   : > { %v5791_v34 = vld [vmem:[#allocation2 + $0x171] sm:$0xff] }
 0x229   : > { %8985 = vmatmul.mubr.msk.bf16.gmra.mrb[32].mxu0 %vm493_vm0, %v11016_v33 }
 0x22a   : > { %8988 = vmatprep.mubr.msk.bf16.mxu0 %vm493_vm0, %v11018_v35 }
 0x22b   : > { %8693 = vmatmul.mubr.msk.bf16.gmra.mrb[4].mxu1 %vm493_vm0, %v3076_v9  ;;  %v3032_v9 = vld [vmem:[#allocation2 + $0xdf] sm:$0xff] }
 0x22c   : > { %8696 = vmatprep.mubr.msk.bf16.mxu1 %vm493_vm0, %v3077_v21  ;;  %v11056_v21 = vpack.c.bf16 %v5256_v13, %v5255_v46  ;;  %v3084_v18 = vpack.c.bf16 %v3032_v9, %v3031_v22  ;;  %v5268_v46 = vld [vmem:[#allocation2 + $0x240] sm:$0xff]  ;;  %v3046_v9 = vld [vmem:[#allocation2 + $0x14f] sm:$0xff] }
 0x22d   : > { %v3045_v22 = vld [vmem:[#allocation2 + $0x147] sm:$0xff] }
 0x22e   : > { %v3091_v38 = vpack.c.bf16 %v3046_v9, %v3045_v22  ;;  %v5788_v22 = vld [vmem:[#allocation2 + $0x159] sm:$0xff]  ;;  %v5790_v9 = vld [vmem:[#allocation2 + $0x169] sm:$0xff] }
 0x231   : > { %8989 = vmatmul.mubr.msk.bf16.gmra.mrb[36].mxu0 %vm493_vm0, %v11026_v6 }
 0x232   : > { %8992 = vmatprep.mubr.msk.bf16.mxu0 %vm493_vm0, %v11028_v15 }
 0x233   : > { %8697 = vmatmul.mubr.msk.bf16.gmra.mrb[8].mxu1 %vm493_vm0, %v3078_v28  ;;  %v5262_v28 = vld [vmem:[#allocation2 + $0x210] sm:$0xff] }
 0x234   : > { %8700 = vmatprep.mubr.msk.bf16.mxu1 %vm493_vm0, %v3079_v0  ;;  %v3035_v0 = vld [vmem:[#allocation2 + $0xf7] sm:$0xff]  ;;  %v11068_v47 = vpack.c.bf16 %v5262_v28, %v5261_v27  ;;  %v3093_v28 = vpack.c.bf16 %v3050_v37, %v3049_v3 }
 0x235   : > { %v3086_v50 = vpack.c.bf16 %v3036_v5, %v3035_v0  ;;  %v3052_v0 = vld [vmem:[#allocation2 + $0x17f] sm:$0xff]  ;;  %v3053_v5 = vld [vmem:[#allocation2 + $0x187] sm:$0xff]  ;;  %v5799_v37 = vld [vmem:[#allocation2 + $0x1b1] sm:$0xff] }
 0x239   : > { %8993 = vmatmul.mubr.msk.bf16.gmra.mrb[40].mxu0 %vm493_vm0, %v11036_v20 }
 0x23a   : > { %8996 = vmatprep.mubr.msk.bf16.mxu0 %vm493_vm0, %v11038_v29 }
 0x23b   : > { %8701 = vmatmul.mubr.msk.bf16.gmra.mrb[12].mxu1 %vm493_vm0, %v3080_v57  ;;  %v5266_v57 = vld [vmem:[#allocation2 + $0x230] sm:$0xff] }
 0x23c   : > { %8704 = vmatprep.mubr.msk.bf16.mxu1 %vm493_vm0, %v3081_v40  ;;  %v5264_v40 = vld [vmem:[#allocation2 + $0x220] sm:$0xff]  ;;  %v5299_v59 = vpack.c.bf16 %v5266_v57, %v5265_v54  ;;  %v3058_v54 = vld [vmem:[#allocation2 + $0x1af] sm:$0xff] }
 0x23d   : > { %v11076_v63 = vpack.c.bf16 %v5264_v40, %v5263_v52  ;;  %v3060_v40 = vld [vmem:[#allocation2 + $0x1bf] sm:$0xff]  ;;  %v3061_v52 = vld [vmem:[#allocation2 + $0x1c7] sm:$0xff] }
 0x241   : > { %8997 = vmatmul.mubr.msk.bf16.gmra.mrb[44].mxu0 %vm493_vm0, %v11046_v42 }
 0x242   : > { %9000 = vmatprep.mubr.msk.bf16.mxu0 %vm493_vm0, %v11048_v16 }
 0x243   : > { %8705 = vmatmul.mubr.msk.bf16.gmra.mrb[16].mxu1 %vm493_vm0, %v3082_v17  ;;  %v3089_v17 = vpack.c.bf16 %v3042_v30, %v3041_v26  ;;  %v5778_v26 = vld [vmem:[#allocation2 + $0x109] sm:$0xff] }
 0x244   : > { %8708 = vmatprep.mubr.msk.bf16.mxu1 %vm493_vm0, %v3083_v48  ;;  %v5267_v48 = vld [vmem:[#allocation2 + $0x238] sm:$0xff] }
 0x245   : > { %v5300_v13 = vpack.c.bf16 %v5268_v46, %v5267_v48  ;;  %v5787_v48 = vld [vmem:[#allocation2 + $0x151] sm:$0xff]  ;;  %v5784_v46 = vld [vmem:[#allocation2 + $0x139] sm:$0xff] }
 0x249   : > { %9001 = vmatmul.mubr.msk.bf16.gmra.mrb[48].mxu0 %vm493_vm0, %v11056_v21 }
 0x24a   : > { %9004 = vmatprep.mubr.msk.bf16.mxu0 %vm493_vm0, %v11058_v39 }
 0x24b   : > { %8709 = vmatmul.mubr.msk.bf16.gmra.mrb[20].mxu1 %vm493_vm0, %v3084_v18  ;;  %v3047_v18 = vld [vmem:[#allocation2 + $0x157] sm:$0xff] }
 0x24c   : > { %8712 = vmatprep.mubr.msk.bf16.mxu1 %vm493_vm0, %v3085_v32  ;;  %v3048_v32 = vld [vmem:[#allocation2 + $0x15f] sm:$0xff] }
 0x24d   : > { %v3092_v27 = vpack.c.bf16 %v3048_v32, %v3047_v18  ;;  %v5792_v18 = vld [vmem:[#allocation2 + $0x179] sm:$0xff]  ;;  %v5794_v32 = vld [vmem:[#allocation2 + $0x189] sm:$0xff] }
 0x251   : > { %9005 = vmatmul.mubr.msk.bf16.gmra.mrb[52].mxu0 %vm493_vm0, %v11066_v4 }
 0x252   : > { %9008 = vmatprep.mubr.msk.bf16.mxu0 %vm493_vm0, %v11068_v47 }
 0x253   : > { %8713 = vmatmul.mubr.msk.bf16.gmra.mrb[24].mxu1 %vm493_vm0, %v3086_v50  ;;  %v3056_v50 = vld [vmem:[#allocation2 + $0x19f] sm:$0xff] }
 0x254   : > { %8716 = vmatprep.mubr.msk.bf16.mxu1 %vm493_vm0, %v3087_v51  ;;  %v3057_v51 = vld [vmem:[#allocation2 + $0x1a7] sm:$0xff] }
 0x259   : > { %9009 = vmatmul.mubr.msk.bf16.gmra.mrb[56].mxu0 %vm493_vm0, %v11076_v63 }
 0x25a   : > { %9012 = vmatprep.mubr.msk.bf16.mxu0 %vm493_vm0, %v5299_v59 }
 0x25b   : > { %8717 = vmatmul.mubr.msk.bf16.gmra.mrb[28].mxu1 %vm493_vm0, %v3088_v58  ;;  %v5782_v58 = vld [vmem:[#allocation2 + $0x129] sm:$0xff] }
 0x25c   : > { %8720 = vmatprep.mubr.msk.bf16.mxu1 %vm493_vm0, %v3089_v17 }
 0x261   : > { %9013 = vmatmul.mubr.msk.bf16.gmra.mrb[60].mxu0 %vm493_vm0, %v5300_v13  ;;  %v5786_v13 = vld [vmem:[#allocation2 + $0x149] sm:$0xff] }
 0x262   : > { %9018 = vmatprep.mubr.msk.bf16.mxu0 %vm493_vm0, %v10877_v19  ;;  %v3051_v19 = vld [vmem:[#allocation2 + $0x177] sm:$0xff]  ;;  %v5834_v49 = vpack.c.bf16 %v5787_v48, %v5786_v13 }
 0x263   : > { %8721 = vmatmul.mubr.msk.bf16.gmra.mrb[32].mxu1 %vm493_vm0, %v3090_v55  ;;  %v3094_v41 = vpack.c.bf16 %v3052_v0, %v3051_v19  ;;  %v5836_v55 = vpack.c.bf16 %v5791_v34, %v5790_v9  ;;  %v5803_v0 = vld [vmem:[#allocation2 + $0x1d1] sm:$0xff] }
 0x264   : > { %8724 = vmatprep.mubr.msk.bf16.mxu1 %vm493_vm0, %v3091_v38  ;;  %v5795_v38 = vld [vmem:[#allocation2 + $0x191] sm:$0xff] }
 0x265   : > { %v5838_v3 = vpack.c.bf16 %v5795_v38, %v5794_v32 }
 0x269   : > { %9019 = vmatmul.mubr.msk.bf16.vlgmr.msra.gmra.mrb[0].mxu0 %vm493_vm0, %v10884_v10  ;;  %v3095_v10 = vpack.c.bf16 %v3054_v43, %v3053_v5  ;;  %v5800_v5 = vld [vmem:[#allocation2 + $0x1b9] sm:$0xff]  ;;  %v5802_v43 = vld [vmem:[#allocation2 + $0x1c9] sm:$0xff] }
 0x26a   : > { %9022 = vmatprep.mubr.msk.bf16.mxu0 %vm493_vm0, %v10888_v31  ;;  %v3055_v31 = vld [vmem:[#allocation2 + $0x197] sm:$0xff] }
 0x26b   : > { %8725 = vmatmul.mubr.msk.bf16.gmra.mrb[36].mxu1 %vm493_vm0, %v3092_v27  ;;  %v3096_v57 = vpack.c.bf16 %v3056_v50, %v3055_v31  ;;  %v5796_v27 = vld [vmem:[#allocation2 + $0x199] sm:$0xff]  ;;  %v5806_v50 = vld [vmem:[#allocation2 + $0x1e9] sm:$0xff] }
 0x26c   : > { %8728 = vmatprep.mubr.msk.bf16.mxu1 %vm493_vm0, %v3093_v28  ;;  %v5798_v28 = vld [vmem:[#allocation2 + $0x1a9] sm:$0xff]  ;;  %v5804_v31 = vld [vmem:[#allocation2 + $0x1d9] sm:$0xff] }
 0x26d   : > { %v5840_v19 = vpack.c.bf16 %v5799_v37, %v5798_v28 }
 0x271   : > { %9023 = vmatmul.mubr.msk.bf16.gmra.mrb[4].mxu0 %vm493_vm0, %v10896_v7  ;;  %v3097_v7 = vpack.c.bf16 %v3058_v54, %v3057_v51  ;;  %v5811_v54 = vld [vmem:[#allocation2 + $0x211] sm:$0xff] }
 0x272   : > { %9026 = vmatprep.mubr.msk.bf16.mxu0 %vm493_vm0, %v10900_v24  ;;  %v3059_v24 = vld [vmem:[#allocation2 + $0x1b7] sm:$0xff] }
 0x273   : > { %8729 = vmatmul.mubr.msk.bf16.gmra.mrb[40].mxu1 %vm493_vm0, %v3094_v41  ;;  %v3098_v61 = vpack.c.bf16 %v3060_v40, %v3059_v24  ;;  %v5842_v41 = vpack.c.bf16 %v5803_v0, %v5802_v43  ;;  %v5814_v40 = vld [vmem:[#allocation2 + $0x229] sm:$0xff] }
 0x274   : > { %8732 = vmatprep.mubr.msk.bf16.mxu1 %vm493_vm0, %v3095_v10  ;;  %v5807_v10 = vld [vmem:[#allocation2 + $0x1f1] sm:$0xff] }
 0x275   : > { %v5844_v51 = vpack.c.bf16 %v5807_v10, %v5806_v50 }
 0x279   : > { %9027 = vmatmul.mubr.msk.bf16.gmra.mrb[8].mxu0 %vm493_vm0, %v10908_v36  ;;  %v3099_v36 = vpack.c.bf16 %v3062_v62, %v3061_v52  ;;  %v5815_v52 = vld [vmem:[#allocation2 + $0x231] sm:$0xff] }
 0x27a   : > { %9030 = vmatprep.mubr.msk.bf16.mxu0 %vm493_vm0, %v10912_v1  ;;  %v5777_v1 = vld [vmem:[#allocation2 + $0x101] sm:$0xff]  ;;  %v5848_v62 = vpack.c.bf16 %v5815_v52, %v5814_v40 }
 0x27b   : > { %8733 = vmatmul.mubr.msk.bf16.gmra.mrb[44].mxu1 %vm493_vm0, %v3096_v57  ;;  %v5808_v57 = vld [vmem:[#allocation2 + $0x1f9] sm:$0xff] }
 0x27c   : > { %8736 = vmatprep.mubr.msk.bf16.mxu1 %vm493_vm0, %v3097_v7  ;;  %v5810_v7 = vld [vmem:[#allocation2 + $0x209] sm:$0xff] }
 0x27d   : > { %v5846_v24 = vpack.c.bf16 %v5811_v54, %v5810_v7 }
 0x281   : > { %9031 = vmatmul.mubr.msk.bf16.gmra.mrb[12].mxu0 %vm493_vm0, %v10920_v44  ;;  %v5779_v44 = vld [vmem:[#allocation2 + $0x111] sm:$0xff] }
 0x282   : > { %9034 = vmatprep.mubr.msk.bf16.mxu0 %vm493_vm0, %v10924_v45  ;;  %v5776_v45 = vld [vmem:[#allocation2 + $0xf9] sm:$0xff]  ;;  %v5830_v30 = vpack.c.bf16 %v5779_v44, %v5778_v26 }
 0x283   : > { %8737 = vmatmul.mubr.msk.bf16.gmra.mrb[48].mxu1 %vm493_vm0, %v3098_v61  ;;  %v5829_v59 = vpack.c.bf16 %v5777_v1, %v5776_v45  ;;  %v5817_v1 = vld [vmem:[#allocation2 + $0x241] sm:$0xff]  ;;  %v11181_v45 = vpop.permute.xlu1 %6374 }
 0x284   : > { %8740 = vmatprep.mubr.msk.bf16.mxu1 %vm493_vm0, %v3099_v36  ;;  %v5816_v36 = vld [vmem:[#allocation2 + $0x239] sm:$0xff] }
 0x285   : > { %v5849_v44 = vpack.c.bf16 %v5817_v1, %v5816_v36 }
 0x289   : > { %9035 = vmatmul.mubr.msk.bf16.gmra.mrb[16].mxu0 %vm493_vm0, %v10934_v8  ;;  %v5783_v8 = vld [vmem:[#allocation2 + $0x131] sm:$0xff] }
 0x28a   : > { %9038 = vmatprep.mubr.msk.bf16.mxu0 %vm493_vm0, %v10938_v25  ;;  %v5780_v25 = vld [vmem:[#allocation2 + $0x119] sm:$0xff]  ;;  %v5832_v17 = vpack.c.bf16 %v5783_v8, %v5782_v58  ;;  %v11185_v8 = vpop.permute.xlu1 %6384 }
 0x28b   : > { %8741 = vmatmul.mubr.msk.bf16.gmra.mrb[52].mxu1 %vm493_vm0, %v10842_v53  ;;  %v5781_v53 = vld [vmem:[#allocation2 + $0x121] sm:$0xff] }
 0x28c   : > { %8744 = vmatprep.mubr.msk.bf16.mxu1 %vm493_vm0, %v10846_v23  ;;  %v5831_v23 = vpack.c.bf16 %v5781_v53, %v5780_v25 }
 0x291   : > { %9039 = vmatmul.mubr.msk.bf16.gmra.mrb[20].mxu0 %vm493_vm0, %v5829_v59 }
 0x292   : > { %9042 = vmatprep.mubr.msk.bf16.mxu0 %vm493_vm0, %v5830_v30 }
 0x293   : > { %8745 = vmatmul.mubr.msk.bf16.gmra.mrb[56].mxu1 %vm493_vm0, %v10854_v2  ;;  %v5785_v2 = vld [vmem:[#allocation2 + $0x141] sm:$0xff] }
 0x294   : > { %8748 = vmatprep.mubr.msk.bf16.mxu1 %vm493_vm0, %v10930_v12  ;;  %v5833_v12 = vpack.c.bf16 %v5785_v2, %v5784_v46  ;;  %v11197_v2 = vpop.permute.xlu1 %6394 }
 0x298   : > { %v11205_v13 = vpop.permute.xlu1 %6404 }
 0x299   : > { %9043 = vmatmul.mubr.msk.bf16.gmra.mrb[24].mxu0 %vm493_vm0, %v5831_v23 }
 0x29a   : > { %9046 = vmatprep.mubr.msk.bf16.mxu0 %vm493_vm0, %v5832_v17 }
 0x29b   : > { %8749 = vmatmul.mubr.msk.bf16.gmra.mrb[60].mxu1 %vm493_vm0, %v10944_v11  ;;  %v5789_v11 = vld [vmem:[#allocation2 + $0x161] sm:$0xff] }
 0x29c   : > { %8786 = vmatprep.mubr.msk.bf16.mxu1 %vm493_vm0, %v10997_v56  ;;  %v5835_v56 = vpack.c.bf16 %v5789_v11, %v5788_v22  ;;  %v11213_v22 = vpop.permute.xlu1 %6414 }
 0x2a1   : > { %9047 = vmatmul.mubr.msk.bf16.gmra.mrb[28].mxu0 %vm493_vm0, %v5833_v12 }
 0x2a2   : > { %9050 = vmatprep.mubr.msk.bf16.mxu0 %vm493_vm0, %v5834_v49 }
 0x2a3   : > { %8787 = vmatmul.mubr.msk.bf16.vlgmr.msra.gmra.mrb[32].mxu1 %vm493_vm0, %v11005_v60  ;;  %v5793_v60 = vld [vmem:[#allocation2 + $0x181] sm:$0xff] }
 0x2a4   : > { %8790 = vmatprep.mubr.msk.bf16.mxu1 %vm493_vm0, %v11007_v14  ;;  %v5837_v14 = vpack.c.bf16 %v5793_v60, %v5792_v18  ;;  %v11225_v18 = vpop.permute.xlu1 %6424 }
 0x2a9   : > { %9051 = vmatmul.mubr.msk.bf16.gmra.mrb[32].mxu0 %vm493_vm0, %v5835_v56 }
 0x2aa   : > { %9054 = vmatprep.mubr.msk.bf16.mxu0 %vm493_vm0, %v5836_v55 }
 0x2ab   : > { %8791 = vmatmul.mubr.msk.bf16.gmra.mrb[36].mxu1 %vm493_vm0, %v11016_v33  ;;  %v5797_v33 = vld [vmem:[#allocation2 + $0x1a1] sm:$0xff] }
 0x2ac   : > { %8794 = vmatprep.mubr.msk.bf16.mxu1 %vm493_vm0, %v11018_v35  ;;  %v5839_v35 = vpack.c.bf16 %v5797_v33, %v5796_v27  ;;  %v11237_v27 = vpop.permute.xlu1 %6434 }
 0x2b1   : > { %9055 = vmatmul.mubr.msk.bf16.gmra.mrb[36].mxu0 %vm493_vm0, %v5837_v14 }
 0x2b2   : > { %9058 = vmatprep.mubr.msk.bf16.mxu0 %vm493_vm0, %v5838_v3 }
 0x2b3   : > { %8795 = vmatmul.mubr.msk.bf16.gmra.mrb[40].mxu1 %vm493_vm0, %v11026_v6  ;;  %v5801_v6 = vld [vmem:[#allocation2 + $0x1c1] sm:$0xff] }
 0x2b4   : > { %8798 = vmatprep.mubr.msk.bf16.mxu1 %vm493_vm0, %v11028_v15  ;;  %v5841_v15 = vpack.c.bf16 %v5801_v6, %v5800_v5  ;;  %v11245_v6 = vpop.permute.xlu1 %6444 }
 0x2b8   : > { %v11253_v43 = vpop.permute.xlu1 %6454 }
 0x2b9   : > { %9059 = vmatmul.mubr.msk.bf16.gmra.mrb[40].mxu0 %vm493_vm0, %v5839_v35 }
 0x2ba   : > { %9062 = vmatprep.mubr.msk.bf16.mxu0 %vm493_vm0, %v5840_v19 }
 0x2bb   : > { %8799 = vmatmul.mubr.msk.bf16.gmra.mrb[44].mxu1 %vm493_vm0, %v11036_v20  ;;  %v5805_v20 = vld [vmem:[#allocation2 + $0x1e1] sm:$0xff] }
 0x2bc   : > { %8802 = vmatprep.mubr.msk.bf16.mxu1 %vm493_vm0, %v11038_v29  ;;  %v5843_v29 = vpack.c.bf16 %v5805_v20, %v5804_v31  ;;  %v11265_v50 = vpop.permute.xlu1 %6464 }
 0x2c0   : > { %v11277_v7 = vpop.permute.xlu1 %6474 }
 0x2c1   : > { %9063 = vmatmul.mubr.msk.bf16.gmra.mrb[44].mxu0 %vm493_vm0, %v5841_v15 }
 0x2c2   : > { %9066 = vmatprep.mubr.msk.bf16.mxu0 %vm493_vm0, %v5842_v41 }
 0x2c3   : > { %8803 = vmatmul.mubr.msk.bf16.gmra.mrb[48].mxu1 %vm493_vm0, %v11046_v42  ;;  %v5809_v42 = vld [vmem:[#allocation2 + $0x201] sm:$0xff] }
 0x2c4   : > { %8806 = vmatprep.mubr.msk.bf16.mxu1 %vm493_vm0, %v11048_v16  ;;  %v5845_v16 = vpack.c.bf16 %v5809_v42, %v5808_v57  ;;  %v11281_v40 = vpop.permute.xlu1 %6484 }
 0x2c9   : > { %9067 = vmatmul.mubr.msk.bf16.gmra.mrb[48].mxu0 %vm493_vm0, %v5843_v29 }
 0x2ca   : > { %9070 = vmatprep.mubr.msk.bf16.mxu0 %vm493_vm0, %v5844_v51 }
 0x2cb   : > { %8807 = vmatmul.mubr.msk.bf16.gmra.mrb[52].mxu1 %vm493_vm0, %v11056_v21  ;;  %v5812_v21 = vld [vmem:[#allocation2 + $0x219] sm:$0xff] }
 0x2cc   : > { %8810 = vmatprep.mubr.msk.bf16.mxu1 %vm493_vm0, %v11058_v39  ;;  %v5813_v39 = vld [vmem:[#allocation2 + $0x221] sm:$0xff] }
 0x2cd   : > { %v5847_v61 = vpack.c.bf16 %v5813_v39, %v5812_v21 }
 0x2d1   : > { %9071 = vmatmul.mubr.msk.bf16.gmra.mrb[52].mxu0 %vm493_vm0, %v5845_v16 }
 0x2d2   : > { %9074 = vmatprep.mubr.msk.bf16.mxu0 %vm493_vm0, %v5846_v24 }
 0x2d3   : > { %8811 = vmatmul.mubr.msk.bf16.gmra.mrb[56].mxu1 %vm493_vm0, %v11066_v4  ;;  %v11179_v4 = vpop.permute.xlu0 %6369 }
 0x2d4   : > { %8814 = vmatprep.mubr.msk.bf16.mxu1 %vm493_vm0, %v11068_v47 }
 0x2d7   : > { %v6380_v59 = vpop.permute.xlu0 %6379 }
 0x2d9   : > { %9075 = vmatmul.mubr.msk.bf16.gmra.mrb[56].mxu0 %vm493_vm0, %v5847_v61  ;;  %v11285_v61 = vpop.permute.xlu1 %6494 }
 0x2da   : > { %9078 = vmatprep.mubr.msk.bf16.mxu0 %vm493_vm0, %v5848_v62  ;;  %11742 = vst [vmem:[#allocation9_spill] sm:$0xff] %v11285_v61 }
 0x2db   : > { %8815 = vmatmul.mubr.msk.bf16.gmra.mrb[60].mxu1 %vm493_vm0, %v11076_v63  ;;  %v11187_v25 = vpop.permute.xlu0 %6389 }
 0x2dd   : > { %v11301_v61 = vpop.permute.xlu1 %6504 }
 0x2de   : > { %11744 = vst [vmem:[#allocation11_spill] sm:$0xff] %v11301_v61 }
 0x2df   : > { %v11199_v48 = vpop.permute.xlu0 %6399 }
 0x2e1   : > { %9079 = vmatmul.mubr.msk.bf16.gmra.mrb[60].mxu0 %vm493_vm0, %v5849_v44 }
 0x2e3   : > { %v11209_v11 = vpop.permute.xlu0 %6409 }
 0x2e7   : > { %v11217_v9 = vpop.permute.xlu0 %6419 }
 0x2eb   : > { %v11227_v14 = vpop.permute.xlu0 %6429 }
 0x2ef   : > { %v11239_v35 = vpop.permute.xlu0 %6439 }
 0x2f3   : > { %v11249_v5 = vpop.permute.xlu0 %6449 }
 0x2f6   : > { %v8690_v47 = vpop.f32.mrb[0].mxu1 }
 0x2f7   : > { %v3239_v26 = vpop.f32.mrb[1].mxu1  ;;  %v11257_v20 = vpop.permute.xlu0 %6459 }
 0x2f8   : > { %v8691_v30 = vpop.f32.mrb[2].mxu1 }
 0x2f9   : > { %v11183_v53 = vpop.f32.mrb[3].mxu1 }
 0x2fb   : > { %v11267_v51 = vpop.permute.xlu0 %6469 }
 0x2fe   : > { %v11189_v23 = vpop.f32.mrb[4].mxu1 }
 0x2ff   : > { %v11191_v63 = vpop.f32.mrb[5].mxu1  ;;  %v11279_v24 = vpop.permute.xlu0 %6479 }
 0x300   : > { %v11193_v58 = vpop.f32.mrb[6].mxu1 }
 0x301   : > { %v11195_v17 = vpop.f32.mrb[7].mxu1 }
 0x303   : > { %v11283_v52 = vpop.permute.xlu0 %6489 }
 0x304   : > { %11741 = vst [vmem:[#allocation8_spill] sm:$0xff] %v11283_v52 }
 0x306   : > { %v11201_v46 = vpop.f32.mrb[8].mxu1 }
 0x307   : > { %v11203_v12 = vpop.f32.mrb[9].mxu1  ;;  %v11287_v44 = vpop.permute.xlu0 %6499 }
 0x308   : > { %v11207_v49 = vpop.f32.mrb[10].mxu1  ;;  %11743 = vst [vmem:[#allocation10_spill] sm:$0xff] %v11287_v44 }
 0x309   : > { %v11211_v34 = vpop.f32.mrb[11].mxu1 }
 0x30e   : > { %v11215_v56 = vpop.f32.mrb[12].mxu1 }
 0x30f   : > { %v11219_v55 = vpop.f32.mrb[13].mxu1 }
 0x310   : > { %v11221_v60 = vpop.f32.mrb[14].mxu1 }
 0x311   : > { %v11223_v38 = vpop.f32.mrb[15].mxu1 }
 0x316   : > { %v11229_v32 = vpop.f32.mrb[16].mxu1 }
 0x317   : > { %v11231_v3 = vpop.f32.mrb[17].mxu1 }
 0x318   : > { %v11233_v33 = vpop.f32.mrb[18].mxu1 }
 0x319   : > { %v11235_v37 = vpop.f32.mrb[19].mxu1 }
 0x31e   : > { %v11241_v28 = vpop.f32.mrb[20].mxu1 }
 0x31f   : > { %v11243_v19 = vpop.f32.mrb[21].mxu1 }
 0x320   : > { %v11247_v0 = vpop.f32.mrb[22].mxu1 }
 0x321   : > { %v11251_v15 = vpop.f32.mrb[23].mxu1 }
 0x326   : > { %v11255_v41 = vpop.f32.mrb[24].mxu1 }
 0x327   : > { %v11259_v10 = vpop.f32.mrb[25].mxu1 }
 0x328   : > { %v11261_v31 = vpop.f32.mrb[26].mxu1 }
 0x329   : > { %v11263_v29 = vpop.f32.mrb[27].mxu1 }
 0x32a   : > { %11736 = vst [vmem:[#allocation3_spill] sm:$0xff] %v11263_v29 }
 0x32e   : > { %v11269_v42 = vpop.f32.mrb[28].mxu1 }
 0x32f   : > { %11737 = vst [vmem:[#allocation4_spill] sm:$0xff] %v11269_v42  ;;  %v11271_v54 = vpop.f32.mrb[29].mxu1 }
 0x330   : > { %11738 = vst [vmem:[#allocation5_spill] sm:$0xff] %v11271_v54  ;;  %v11273_v57 = vpop.f32.mrb[30].mxu1 }
 0x331   : > { %11739 = vst [vmem:[#allocation6_spill] sm:$0xff] %v11273_v57  ;;  %v11275_v16 = vpop.f32.mrb[31].mxu1 }
 0x332   : > { %11740 = vst [vmem:[#allocation7_spill] sm:$0xff] %v11275_v16 }
 0x33c   : > { %v9020_v21 = vpop.f32.mrb[0].mxu0 }
 0x33d   : > { %v9084_v39 = vadd.f32 %v9020_v21, %v8690_v47  ;;  %v5984_v62 = vpop.f32.mrb[1].mxu0 }
 0x33e   : > { %v9085_v36 = vadd.f32 %v5984_v62, %v3239_v26  ;;  %v9021_v1 = vpop.f32.mrb[2].mxu0 }
 0x33f   : > { %v6689_v57 = vmul.f32 %v9084_v39, %v6380_v59  ;;  %v9086_v54 = vadd.f32 %v9021_v1, %v8691_v30  ;;  %v5987_v16 = vpop.f32.mrb[3].mxu0 }
 0x340   : > { %v6687_v47 = vmul.f32 %v9085_v36, %v11179_v4  ;;  %v9087_v21 = vadd.f32 %v5987_v16, %v11183_v53 }
 0x341   : > { %v7951_v42 = vpack.c.bf16 %v6689_v57, %v6689_v57  ;;  %v6690_v26 = vmul.f32 %v9086_v54, %v11185_v8  ;;  %v7207_v39 = vmul.f32 %v6689_v57, %v6689_v57  ;;  %v11307_v54 = vpop.permute.xlu0 %6509  ;;  %v7075_v61 = vsel %vm493_vm0, %v6689_v57, 0.0 }
 0x342   : > { %v7949_v62 = vpack.c.bf16 %v6687_v47, %v6687_v47  ;;  %v7205_v59 = vmul.f32 %v6687_v47, %v6687_v47  ;;  %v6688_v30 = vmul.f32 %v9087_v21, %v11181_v45  ;;  %v7072_v4 = vsel %vm493_vm0, %v6687_v47, 0.0  ;;  %11745 = vst [vmem:[#allocation12_spill] sm:$0xff] %v11307_v54 }
 0x343   : > { %7010 = vst.msk [vmem:[%s11293_s24 + $0x8] sm:$0xf] %vm7007_vm2, %v7951_v42  ;;  %v7952_v1 = vpack.c.bf16 %v6690_v26, %v6690_v26  ;;  %v7208_v45 = vmul.f32 %v6690_v26, %v6690_v26 }
 0x344   : > { %7008 = vst.msk [vmem:[%s11293_s24] sm:$0xf] %vm7007_vm2, %v7949_v62  ;;  %v7950_v53 = vpack.c.bf16 %v6688_v30, %v6688_v30  ;;  %v7073_v16 = vsel %vm493_vm0, %v6688_v30, 0.0  ;;  %v7206_v36 = vmul.f32 %v6688_v30, %v6688_v30  ;;  %v9024_v8 = vpop.f32.mrb[4].mxu0  ;;  %v7269_v62 = vsel %vm493_vm0, %v7205_v59, 0.0 }
 0x345   : > { %7011 = vst.msk [vmem:[%s11293_s24 + $0xc] sm:$0xf] %vm7007_vm2, %v7952_v1  ;;  %v7074_v42 = vadd.f32 %v7073_v16, %v7072_v4  ;;  %v9088_v21 = vadd.f32 %v9024_v8, %v11189_v23  ;;  %v6000_v52 = vpop.f32.mrb[5].mxu0  ;;  %v7272_v16 = vsel %vm493_vm0, %v7207_v39, 0.0 }
 0x346   : > { %7009 = vst.msk [vmem:[%s11293_s24 + $0x4] sm:$0xf] %vm7007_vm2, %v7950_v53  ;;  %v7270_v47 = vsel %vm493_vm0, %v7206_v36, 0.0  ;;  %v9089_v30 = vadd.f32 %v6000_v52, %v11191_v63  ;;  %v9025_v29 = vpop.f32.mrb[6].mxu0  ;;  %v7077_v53 = vsel %vm493_vm0, %v6690_v26, 0.0  ;;  %v7274_v63 = vsel %vm493_vm0, %v7208_v45, 0.0  ;;  %v11325_v36 = vpop.permute.xlu1 %6514 }
 0x347   : > { %v7076_v44 = vadd.f32 %v7075_v61, %v7074_v42  ;;  %v7271_v54 = vadd.f32 %v7270_v47, %v7269_v62  ;;  %v6693_v1 = vmul.f32 %v9088_v21, %v11199_v48  ;;  %v9090_v4 = vadd.f32 %v9025_v29, %v11193_v58  ;;  %v6003_v23 = vpop.f32.mrb[7].mxu0  ;;  %v11328_v42 = vpop.permute.xlu0 %6519 }
 0x348   : > { %v6691_v57 = vmul.f32 %v9089_v30, %v11187_v25  ;;  %v9091_v59 = vadd.f32 %v6003_v23, %v11195_v17 }
 0x349   : > { %v7273_v52 = vadd.f32 %v7272_v16, %v7271_v54  ;;  %v7955_v61 = vpack.c.bf16 %v6693_v1, %v6693_v1  ;;  %v7078_v8 = vadd.f32 %v7077_v53, %v7076_v44  ;;  %v6694_v17 = vmul.f32 %v9090_v4, %v11205_v13 }
 0x34a   : > { %v7953_v48 = vpack.c.bf16 %v6691_v57, %v6691_v57  ;;  %v7079_v58 = vsel %vm493_vm0, %v6691_v57, 0.0  ;;  %v7209_v29 = vmul.f32 %v6691_v57, %v6691_v57  ;;  %v6692_v26 = vmul.f32 %v9091_v59, %v11197_v2 }
 0x34b   : > { %7014 = vst.msk [vmem:[%s11293_s24 + $0x18] sm:$0xf] %vm7007_vm2, %v7955_v61  ;;  %v7275_v25 = vadd.f32 %v7274_v63, %v7273_v52  ;;  %v7080_v39 = vadd.f32 %v7079_v58, %v7078_v8  ;;  %v7211_v44 = vmul.f32 %v6693_v1, %v6693_v1  ;;  %v7956_v62 = vpack.c.bf16 %v6694_v17, %v6694_v17  ;;  %v11344_v52 = vpop.permute.xlu1 %6524  ;;  %v11351_v8 = vpop.permute.xlu0 %6529 }
 0x34c   : > { %7012 = vst.msk [vmem:[%s11293_s24 + $0x10] sm:$0xf] %vm7007_vm2, %v7953_v48  ;;  %v7276_v54 = vsel %vm493_vm0, %v7209_v29, 0.0  ;;  %v9028_v45 = vpop.f32.mrb[8].mxu0  ;;  %v7954_v30 = vpack.c.bf16 %v6692_v26, %v6692_v26  ;;  %v7081_v23 = vsel %vm493_vm0, %v6692_v26, 0.0  ;;  %v7210_v16 = vmul.f32 %v6692_v26, %v6692_v26 }
 0x34d   : > { %v7277_v21 = vadd.f32 %v7276_v54, %v7275_v25  ;;  %v6016_v47 = vpop.f32.mrb[9].mxu0  ;;  %v9092_v13 = vadd.f32 %v9028_v45, %v11201_v46  ;;  %v7083_v2 = vsel %vm493_vm0, %v6693_v1, 0.0  ;;  %7015 = vst.msk [vmem:[%s11293_s24 + $0x1c] sm:$0xf] %vm7007_vm2, %v7956_v62  ;;  %v7082_v57 = vadd.f32 %v7081_v23, %v7080_v39 }
 0x34e   : > { %v9029_v4 = vpop.f32.mrb[10].mxu0  ;;  %v9093_v59 = vadd.f32 %v6016_v47, %v11203_v12  ;;  %v7212_v61 = vmul.f32 %v6694_v17, %v6694_v17  ;;  %7013 = vst.msk [vmem:[%s11293_s24 + $0x14] sm:$0xf] %vm7007_vm2, %v7954_v30  ;;  %v7278_v48 = vsel %vm493_vm0, %v7210_v16, 0.0  ;;  %v7280_v25 = vsel %vm493_vm0, %v7211_v44, 0.0 }
 0x34f   : > { %v9094_v53 = vadd.f32 %v9029_v4, %v11207_v49  ;;  %v6019_v63 = vpop.f32.mrb[11].mxu0  ;;  %v6697_v46 = vmul.f32 %v9092_v13, %v11217_v9  ;;  %v7084_v58 = vadd.f32 %v7083_v2, %v7082_v57  ;;  %v7279_v29 = vadd.f32 %v7278_v48, %v7277_v21  ;;  %v11365_v13 = vpop.permute.xlu1 %6534 }
 0x350   : > { %v9095_v1 = vadd.f32 %v6019_v63, %v11211_v34  ;;  %v6695_v12 = vmul.f32 %v9093_v59, %v11209_v11  ;;  %v7085_v26 = vsel %vm493_vm0, %v6694_v17, 0.0  ;;  %v7282_v21 = vsel %vm493_vm0, %v7212_v61, 0.0  ;;  %v11372_v63 = vpop.permute.xlu0 %6539 }
 0x351   : > { %v6698_v49 = vmul.f32 %v9094_v53, %v11225_v18  ;;  %v7959_v39 = vpack.c.bf16 %v6697_v46, %v6697_v46  ;;  %v7281_v9 = vadd.f32 %v7280_v25, %v7279_v29  ;;  %v7086_v62 = vadd.f32 %v7085_v26, %v7084_v58 }
 0x352   : > { %v6696_v54 = vmul.f32 %v9095_v1, %v11213_v22  ;;  %v7957_v45 = vpack.c.bf16 %v6695_v12, %v6695_v12  ;;  %v7087_v34 = vsel %vm493_vm0, %v6695_v12, 0.0  ;;  %v7091_v11 = vsel %vm493_vm0, %v6697_v46, 0.0 }
 0x353   : > { %7018 = vst.msk [vmem:[%s11293_s24 + $0x28] sm:$0xf] %vm7007_vm2, %v7959_v39  ;;  %v7213_v18 = vmul.f32 %v6695_v12, %v6695_v12  ;;  %v7960_v47 = vpack.c.bf16 %v6698_v49, %v6698_v49  ;;  %v7215_v30 = vmul.f32 %v6697_v46, %v6697_v46  ;;  %v7088_v22 = vadd.f32 %v7087_v34, %v7086_v62 }
 0x354   : > { %v9032_v44 = vpop.f32.mrb[12].mxu0  ;;  %7016 = vst.msk [vmem:[%s11293_s24 + $0x20] sm:$0xf] %vm7007_vm2, %v7957_v45  ;;  %v7283_v17 = vadd.f32 %v7282_v21, %v7281_v9  ;;  %v7958_v23 = vpack.c.bf16 %v6696_v54, %v6696_v54  ;;  %v7089_v2 = vsel %vm493_vm0, %v6696_v54, 0.0  ;;  %v7214_v57 = vmul.f32 %v6696_v54, %v6696_v54 }
 0x355   : > { %v6032_v16 = vpop.f32.mrb[13].mxu0  ;;  %v7284_v4 = vsel %vm493_vm0, %v7213_v18, 0.0  ;;  %7019 = vst.msk [vmem:[%s11293_s24 + $0x2c] sm:$0xf] %vm7007_vm2, %v7960_v47  ;;  %v9096_v59 = vadd.f32 %v9032_v44, %v11215_v56  ;;  %v7216_v48 = vmul.f32 %v6698_v49, %v6698_v49  ;;  %v7090_v46 = vadd.f32 %v7089_v2, %v7088_v22  ;;  %v11386_v18 = vpop.permute.xlu1 %6544 }
 0x356   : > { %v9033_v53 = vpop.f32.mrb[14].mxu0  ;;  %v7285_v61 = vadd.f32 %v7284_v4, %v7283_v17  ;;  %7017 = vst.msk [vmem:[%s11293_s24 + $0x24] sm:$0xf] %vm7007_vm2, %v7958_v23  ;;  %v9097_v1 = vadd.f32 %v6032_v16, %v11219_v55  ;;  %v7286_v29 = vsel %vm493_vm0, %v7214_v57, 0.0  ;;  %v7288_v9 = vsel %vm493_vm0, %v7215_v30, 0.0  ;;  %v11391_v44 = vpop.permute.xlu0 %6549 }
 0x357   : > { %v6035_v58 = vpop.f32.mrb[15].mxu0  ;;  %v6701_v12 = vmul.f32 %v9096_v59, %v11239_v35  ;;  %v9098_v25 = vadd.f32 %v9033_v53, %v11221_v60  ;;  %v7092_v26 = vadd.f32 %v7091_v11, %v7090_v46  ;;  %v7093_v45 = vsel %vm493_vm0, %v6698_v49, 0.0 }
 0x358   : > { %v9099_v56 = vadd.f32 %v6035_v58, %v11223_v38  ;;  %v7287_v39 = vadd.f32 %v7286_v29, %v7285_v61  ;;  %v6699_v54 = vmul.f32 %v9097_v1, %v11227_v14  ;;  %v7290_v38 = vsel %vm493_vm0, %v7216_v48, 0.0 }
 0x359   : > { %v7963_v55 = vpack.c.bf16 %v6701_v12, %v6701_v12  ;;  %v6702_v62 = vmul.f32 %v9098_v25, %v11245_v6  ;;  %v7094_v35 = vadd.f32 %v7093_v45, %v7092_v26  ;;  %v7219_v17 = vmul.f32 %v6701_v12, %v6701_v12  ;;  %v11409_v25 = vpop.permute.xlu1 %6554 }
 0x35a   : > { %v7289_v34 = vadd.f32 %v7288_v9, %v7287_v39  ;;  %v7961_v21 = vpack.c.bf16 %v6699_v54, %v6699_v54  ;;  %v7095_v60 = vsel %vm493_vm0, %v6699_v54, 0.0  ;;  %v7217_v14 = vmul.f32 %v6699_v54, %v6699_v54 }
 0x35b   : > { %7022 = vst.msk [vmem:[%s11293_s24 + $0x38] sm:$0xf] %vm7007_vm2, %v7963_v55  ;;  %v7964_v11 = vpack.c.bf16 %v6702_v62, %v6702_v62  ;;  %v7096_v6 = vadd.f32 %v7095_v60, %v7094_v35  ;;  %v6700_v30 = vmul.f32 %v9099_v56, %v11237_v27  ;;  %v7099_v58 = vsel %vm493_vm0, %v6701_v12, 0.0 }
 0x35c   : > { %v9036_v47 = vpop.f32.mrb[16].mxu0  ;;  %7020 = vst.msk [vmem:[%s11293_s24 + $0x30] sm:$0xf] %vm7007_vm2, %v7961_v21  ;;  %v7291_v49 = vadd.f32 %v7290_v38, %v7289_v34  ;;  %v7292_v23 = vsel %vm493_vm0, %v7217_v14, 0.0  ;;  %v7220_v29 = vmul.f32 %v6702_v62, %v6702_v62  ;;  %v7296_v56 = vsel %vm493_vm0, %v7219_v17, 0.0 }
 0x35d   : > { %v6048_v22 = vpop.f32.mrb[17].mxu0  ;;  %7023 = vst.msk [vmem:[%s11293_s24 + $0x3c] sm:$0xf] %vm7007_vm2, %v7964_v11  ;;  %v9100_v16 = vadd.f32 %v9036_v47, %v11229_v32  ;;  %v7962_v59 = vpack.c.bf16 %v6700_v30, %v6700_v30  ;;  %v7097_v53 = vsel %vm493_vm0, %v6700_v30, 0.0  ;;  %v7218_v46 = vmul.f32 %v6700_v30, %v6700_v30 }
 0x35e   : > { %v9101_v4 = vadd.f32 %v6048_v22, %v11231_v3  ;;  %v9037_v2 = vpop.f32.mrb[18].mxu0  ;;  %v7293_v57 = vadd.f32 %v7292_v23, %v7291_v49  ;;  %v7098_v48 = vadd.f32 %v7097_v53, %v7096_v6  ;;  %v7101_v12 = vsel %vm493_vm0, %v6702_v62, 0.0  ;;  %v11428_v23 = vpop.permute.xlu1 %6564 }
 0x35f   : > { %v6051_v61 = vpop.f32.mrb[19].mxu0  ;;  %v6705_v27 = vmul.f32 %v9100_v16, %v11257_v20  ;;  %7021 = vst.msk [vmem:[%s11293_s24 + $0x34] sm:$0xf] %vm7007_vm2, %v7962_v59  ;;  %v9102_v32 = vadd.f32 %v9037_v2, %v11233_v33  ;;  %v7294_v20 = vsel %vm493_vm0, %v7218_v46, 0.0  ;;  %v7298_v35 = vsel %vm493_vm0, %v7220_v29, 0.0 }
 0x360   : > { %v6703_v1 = vmul.f32 %v9101_v4, %v11249_v5  ;;  %v9103_v3 = vadd.f32 %v6051_v61, %v11235_v37  ;;  %v7100_v26 = vadd.f32 %v7099_v58, %v7098_v48  ;;  %v11413_v5 = vpop.permute.xlu0 %6559  ;;  %v7295_v54 = vadd.f32 %v7294_v20, %v7293_v57 }
 0x361   : > { %v7967_v39 = vpack.c.bf16 %v6705_v27, %v6705_v27  ;;  %v6706_v55 = vmul.f32 %v9102_v32, %v11265_v50  ;;  %v7107_v14 = vsel %vm493_vm0, %v6705_v27, 0.0  ;;  %v7223_v49 = vmul.f32 %v6705_v27, %v6705_v27 }
 0x362   : > { %v7965_v9 = vpack.c.bf16 %v6703_v1, %v6703_v1  ;;  %v7103_v45 = vsel %vm493_vm0, %v6703_v1, 0.0  ;;  %v7102_v33 = vadd.f32 %v7101_v12, %v7100_v26  ;;  %v7221_v37 = vmul.f32 %v6703_v1, %v6703_v1 }
 0x363   : > { %7026 = vst.msk [vmem:[%s11293_s24 + $0x48] sm:$0xf] %vm7007_vm2, %v7967_v39  ;;  %v6704_v34 = vmul.f32 %v9103_v3, %v11253_v43  ;;  %v7297_v60 = vadd.f32 %v7296_v56, %v7295_v54  ;;  %v7968_v6 = vpack.c.bf16 %v6706_v55, %v6706_v55  ;;  %v7224_v53 = vmul.f32 %v6706_v55, %v6706_v55 }
 0x364   : > { %v9040_v21 = vpop.f32.mrb[20].mxu0  ;;  %7024 = vst.msk [vmem:[%s11293_s24 + $0x40] sm:$0xf] %vm7007_vm2, %v7965_v9  ;;  %v7104_v11 = vadd.f32 %v7103_v45, %v7102_v33  ;;  %v7300_v47 = vsel %vm493_vm0, %v7221_v37, 0.0  ;;  %v11434_v57 = vpop.permute.xlu0 %6569  ;;  %v7109_v58 = vsel %vm493_vm0, %v6706_v55, 0.0  ;;  %v7304_v32 = vsel %vm493_vm0, %v7223_v49, 0.0 }
 0x365   : > { %v9104_v62 = vadd.f32 %v9040_v21, %v11241_v28  ;;  %v6064_v38 = vpop.f32.mrb[21].mxu0  ;;  %v7299_v43 = vadd.f32 %v7298_v35, %v7297_v60  ;;  %v7966_v30 = vpack.c.bf16 %v6704_v34, %v6704_v34  ;;  %v7105_v22 = vsel %vm493_vm0, %v6704_v34, 0.0  ;;  %7027 = vst.msk [vmem:[%s11293_s24 + $0x4c] sm:$0xf] %vm7007_vm2, %v7968_v6 }
 0x366   : > { %v9041_v50 = vpop.f32.mrb[22].mxu0  ;;  %v7106_v28 = vadd.f32 %v7105_v22, %v7104_v11  ;;  %v7222_v16 = vmul.f32 %v6704_v34, %v6704_v34  ;;  %v9105_v2 = vadd.f32 %v6064_v38, %v11243_v19  ;;  %v7306_v56 = vsel %vm493_vm0, %v7224_v53, 0.0 }
 0x367   : > { %v6067_v17 = vpop.f32.mrb[23].mxu0  ;;  %v6709_v4 = vmul.f32 %v9104_v62, %v11279_v24  ;;  %v7301_v59 = vadd.f32 %v7300_v47, %v7299_v43  ;;  %7025 = vst.msk [vmem:[%s11293_s24 + $0x44] sm:$0xf] %vm7007_vm2, %v7966_v30  ;;  %v9106_v61 = vadd.f32 %v9041_v50, %v11247_v0  ;;  %v11746_v30 = vld [vmem:[#allocation10_spill] sm:$0xff] }
 0x368   : > { %v9107_v48 = vadd.f32 %v6067_v17, %v11251_v15  ;;  %v7108_v46 = vadd.f32 %v7107_v14, %v7106_v28  ;;  %v7302_v27 = vsel %vm493_vm0, %v7222_v16, 0.0  ;;  %v6707_v29 = vmul.f32 %v9105_v2, %v11267_v51  ;;  %v11450_v51 = vpop.permute.xlu1 %6574  ;;  %v11453_v37 = vpop.permute.xlu0 %6579  ;;  %v11747_v17 = vld [vmem:[#allocation3_spill] sm:$0xff] }
 0x369   : > { %v7971_v1 = vpack.c.bf16 %v6709_v4, %v6709_v4  ;;  %v7303_v24 = vadd.f32 %v7302_v27, %v7301_v59  ;;  %v6710_v19 = vmul.f32 %v9106_v61, %v11281_v40  ;;  %v7115_v40 = vsel %vm493_vm0, %v6709_v4, 0.0  ;;  %v11749_v59 = vld [vmem:[#allocation11_spill] sm:$0xff] }
 0x36a   : > { %v7110_v3 = vadd.f32 %v7109_v58, %v7108_v46  ;;  %v6708_v0 = vmul.f32 %v9107_v48, %v11277_v7  ;;  %v7969_v20 = vpack.c.bf16 %v6707_v29, %v6707_v29  ;;  %v7111_v39 = vsel %vm493_vm0, %v6707_v29, 0.0 }
 0x36b   : > { %7030 = vst.msk [vmem:[%s11293_s24 + $0x58] sm:$0xf] %vm7007_vm2, %v7971_v1  ;;  %v7305_v26 = vadd.f32 %v7304_v32, %v7303_v24  ;;  %v7225_v9 = vmul.f32 %v6707_v29, %v6707_v29  ;;  %v7972_v45 = vpack.c.bf16 %v6710_v19, %v6710_v19  ;;  %v7227_v7 = vmul.f32 %v6709_v4, %v6709_v4 }
 0x36c   : > { %v9044_v15 = vpop.f32.mrb[24].mxu0  ;;  %v7112_v54 = vadd.f32 %v7111_v39, %v7110_v3  ;;  %7028 = vst.msk [vmem:[%s11293_s24 + $0x50] sm:$0xf] %vm7007_vm2, %v7969_v20  ;;  %v7970_v34 = vpack.c.bf16 %v6708_v0, %v6708_v0  ;;  %v7113_v21 = vsel %vm493_vm0, %v6708_v0, 0.0  ;;  %v7226_v38 = vmul.f32 %v6708_v0, %v6708_v0  ;;  %v11472_v61 = vpop.permute.xlu1 %6584  ;;  %v11750_v39 = vld [vmem:[#allocation9_spill] sm:$0xff] }
 0x36d   : > { %v6080_v12 = vpop.f32.mrb[25].mxu0  ;;  %v7307_v55 = vadd.f32 %v7306_v56, %v7305_v26  ;;  %v7308_v60 = vsel %vm493_vm0, %v7225_v9, 0.0  ;;  %7031 = vst.msk [vmem:[%s11293_s24 + $0x5c] sm:$0xf] %vm7007_vm2, %v7972_v45  ;;  %v9108_v14 = vadd.f32 %v9044_v15, %v11255_v41  ;;  %v7228_v47 = vmul.f32 %v6710_v19, %v6710_v19  ;;  %v11748_v41 = vld [vmem:[#allocation8_spill] sm:$0xff]  ;;  %v11475_v27 = vpop.permute.xlu0 %6589 }
 0x36e   : > { %v9045_v33 = vpop.f32.mrb[26].mxu0  ;;  %v7114_v62 = vadd.f32 %v7113_v21, %v7112_v54  ;;  %7029 = vst.msk [vmem:[%s11293_s24 + $0x54] sm:$0xf] %vm7007_vm2, %v7970_v34  ;;  %v9109_v6 = vadd.f32 %v6080_v12, %v11259_v10  ;;  %v7310_v43 = vsel %vm493_vm0, %v7226_v38, 0.0  ;;  %v7117_v16 = vsel %vm493_vm0, %v6710_v19, 0.0  ;;  %v11751_v9 = vld [vmem:[#allocation4_spill] sm:$0xff] }
 0x36f   : > { %v6083_v35 = vpop.f32.mrb[27].mxu0  ;;  %v7309_v11 = vadd.f32 %v7308_v60, %v7307_v55  ;;  %v9110_v50 = vadd.f32 %v9045_v33, %v11261_v31  ;;  %v6713_v22 = vmul.f32 %v9108_v14, %v11746_v30  ;;  %v7312_v10 = vsel %vm493_vm0, %v7227_v7, 0.0  ;;  %v11752_v33 = vld [vmem:[#allocation5_spill] sm:$0xff]  ;;  %v11753_v55 = vld [vmem:[#allocation6_spill] sm:$0xff]  ;;  %v11754_v21 = vld [vmem:[#allocation7_spill] sm:$0xff] }
 0x370   : > { %v7116_v49 = vadd.f32 %v7115_v40, %v7114_v62  ;;  %v9111_v28 = vadd.f32 %v6083_v35, %v11747_v17  ;;  %v6711_v2 = vmul.f32 %v9109_v6, %v11748_v41  ;;  %v7314_v32 = vsel %vm493_vm0, %v7228_v47, 0.0  ;;  %v11499_v41 = vpop.permute.xlu1 %6594 }
 0x371   : > { %v7311_v4 = vadd.f32 %v7310_v43, %v7309_v11  ;;  %v6714_v53 = vmul.f32 %v9110_v50, %v11749_v59  ;;  %v7975_v31 = vpack.c.bf16 %v6713_v22, %v6713_v22  ;;  %v7231_v62 = vmul.f32 %v6713_v22, %v6713_v22  ;;  %v11755_v43 = vld [vmem:[#allocation12_spill] sm:$0xff] }
 0x372   : > { %v7118_v48 = vadd.f32 %v7117_v16, %v7116_v49  ;;  %v7973_v58 = vpack.c.bf16 %v6711_v2, %v6711_v2  ;;  %v7119_v24 = vsel %vm493_vm0, %v6711_v2, 0.0  ;;  %v7229_v29 = vmul.f32 %v6711_v2, %v6711_v2 }
 0x373   : > { %v7313_v1 = vadd.f32 %v7312_v10, %v7311_v4  ;;  %7034 = vst.msk [vmem:[%s11293_s24 + $0x68] sm:$0xf] %vm7007_vm2, %v7975_v31  ;;  %v7976_v0 = vpack.c.bf16 %v6714_v53, %v6714_v53  ;;  %v6712_v12 = vmul.f32 %v9111_v28, %v11750_v39  ;;  %v7123_v17 = vsel %vm493_vm0, %v6713_v22, 0.0 }
 0x374   : > { %v9048_v46 = vpop.f32.mrb[28].mxu0  ;;  %v7120_v3 = vadd.f32 %v7119_v24, %v7118_v48  ;;  %7032 = vst.msk [vmem:[%s11293_s24 + $0x60] sm:$0xf] %vm7007_vm2, %v7973_v58  ;;  %v7316_v20 = vsel %vm493_vm0, %v7229_v29, 0.0  ;;  %v7232_v28 = vmul.f32 %v6714_v53, %v6714_v53  ;;  %v7125_v22 = vsel %vm493_vm0, %v6714_v53, 0.0 }
 0x375   : > { %v6096_v19 = vpop.f32.mrb[29].mxu0  ;;  %v7315_v26 = vadd.f32 %v7314_v32, %v7313_v1  ;;  %7035 = vst.msk [vmem:[%s11293_s24 + $0x6c] sm:$0xf] %vm7007_vm2, %v7976_v0  ;;  %v9112_v45 = vadd.f32 %v9048_v46, %v11751_v9  ;;  %v7974_v14 = vpack.c.bf16 %v6712_v12, %v6712_v12  ;;  %v7121_v11 = vsel %vm493_vm0, %v6712_v12, 0.0 }
 0x376   : > { %v8788_v15 = vpop.f32.mrb[32].mxu1  ;;  %v9049_v56 = vpop.f32.mrb[30].mxu0  ;;  %v9113_v7 = vadd.f32 %v6096_v19, %v11752_v33  ;;  %v7122_v6 = vadd.f32 %v7121_v11, %v7120_v3  ;;  %v7230_v50 = vmul.f32 %v6712_v12, %v6712_v12  ;;  %v7322_v3 = vsel %vm493_vm0, %v7232_v28, 0.0 }
 0x377   : > { %v3916_v40 = vpop.f32.mrb[33].mxu1  ;;  %v6099_v54 = vpop.f32.mrb[31].mxu0  ;;  %v9114_v34 = vadd.f32 %v9049_v56, %v11753_v55  ;;  %v7317_v38 = vadd.f32 %v7316_v20, %v7315_v26  ;;  %v6717_v49 = vmul.f32 %v9112_v45, %v11328_v42  ;;  %7033 = vst.msk [vmem:[%s11293_s24 + $0x64] sm:$0xf] %vm7007_vm2, %v7974_v14 }
 0x378   : > { %v9115_v35 = vadd.f32 %v6099_v54, %v11754_v21  ;;  %v8789_v60 = vpop.f32.mrb[34].mxu1  ;;  %v6715_v30 = vmul.f32 %v9113_v7, %v11755_v43  ;;  %v7124_v2 = vadd.f32 %v7123_v17, %v7122_v6  ;;  %v7318_v59 = vsel %vm493_vm0, %v7230_v50, 0.0  ;;  %v11502_v42 = vpop.permute.xlu0 %6599 }
 0x379   : > { %v3919_v47 = vpop.f32.mrb[35].mxu1  ;;  %v6718_v16 = vmul.f32 %v9114_v34, %v11344_v52  ;;  %v7979_v10 = vpack.c.bf16 %v6717_v49, %v6717_v49  ;;  %v7319_v48 = vadd.f32 %v7318_v59, %v7317_v38  ;;  %v7320_v52 = vsel %vm493_vm0, %v7231_v62, 0.0 }
 0x37a   : > { %v6716_v4 = vmul.f32 %v9115_v35, %v11325_v36  ;;  %v7977_v46 = vpack.c.bf16 %v6715_v30, %v6715_v30  ;;  %v7127_v1 = vsel %vm493_vm0, %v6715_v30, 0.0  ;;  %v7126_v36 = vadd.f32 %v7125_v22, %v7124_v2 }
 0x37b   : > { %7038 = vst.msk [vmem:[%s11293_s24 + $0x78] sm:$0xf] %vm7007_vm2, %v7979_v10  ;;  %v7233_v24 = vmul.f32 %v6715_v30, %v6715_v30  ;;  %v7980_v29 = vpack.c.bf16 %v6718_v16, %v6718_v16  ;;  %v7321_v53 = vadd.f32 %v7320_v52, %v7319_v48  ;;  %v7131_v0 = vsel %vm493_vm0, %v6717_v49, 0.0  ;;  %v11524_v30 = vpop.permute.xlu1 %6604 }
 0x37c   : > { %v9052_v31 = vpop.f32.mrb[32].mxu0  ;;  %7036 = vst.msk [vmem:[%s11293_s24 + $0x70] sm:$0xf] %vm7007_vm2, %v7977_v46  ;;  %v7978_v56 = vpack.c.bf16 %v6716_v4, %v6716_v4  ;;  %v7128_v39 = vadd.f32 %v7127_v1, %v7126_v36  ;;  %v7129_v54 = vsel %vm493_vm0, %v6716_v4, 0.0  ;;  %v7234_v9 = vmul.f32 %v6716_v4, %v6716_v4  ;;  %v11528_v28 = vpop.permute.xlu0 %6609 }
 0x37d   : > { %v6112_v58 = vpop.f32.mrb[33].mxu0  ;;  %v7324_v12 = vsel %vm493_vm0, %v7233_v24, 0.0  ;;  %7039 = vst.msk [vmem:[%s11293_s24 + $0x7c] sm:$0xf] %vm7007_vm2, %v7980_v29  ;;  %v7235_v33 = vmul.f32 %v6717_v49, %v6717_v49  ;;  %v7323_v7 = vadd.f32 %v7322_v3, %v7321_v53  ;;  %v9116_v55 = vadd.f32 %v9052_v31, %v8788_v15 }
 0x37e   : > { %v11509_v19 = vpop.f32.mrb[36].mxu1  ;;  %v9053_v32 = vpop.f32.mrb[34].mxu0  ;;  %7037 = vst.msk [vmem:[%s11293_s24 + $0x74] sm:$0xf] %vm7007_vm2, %v7978_v56  ;;  %v9117_v34 = vadd.f32 %v6112_v58, %v3916_v40  ;;  %v7130_v35 = vadd.f32 %v7129_v54, %v7128_v39  ;;  %v7326_v62 = vsel %vm493_vm0, %v7234_v9, 0.0  ;;  %v7236_v6 = vmul.f32 %v6718_v16, %v6718_v16 }
 0x37f   : > { %v3932_v26 = vpop.f32.mrb[37].mxu1  ;;  %v6115_v20 = vpop.f32.mrb[35].mxu0  ;;  %v9118_v38 = vadd.f32 %v9053_v32, %v8789_v60  ;;  %v7325_v11 = vadd.f32 %v7324_v12, %v7323_v7  ;;  %v6721_v50 = vmul.f32 %v9116_v55, %v11372_v63  ;;  %v7328_v60 = vsel %vm493_vm0, %v7235_v33, 0.0 }
 0x380   : > { %v8793_v45 = vpop.f32.mrb[38].mxu1  ;;  %v9119_v14 = vadd.f32 %v6115_v20, %v3919_v47  ;;  %v6719_v43 = vmul.f32 %v9117_v34, %v11351_v8  ;;  %v7132_v49 = vadd.f32 %v7131_v0, %v7130_v35  ;;  %v7133_v47 = vsel %vm493_vm0, %v6718_v16, 0.0  ;;  %v11548_v35 = vpop.permute.xlu1 %6614 }
 0x381   : > { %v3935_v21 = vpop.f32.mrb[39].mxu1  ;;  %v6722_v17 = vmul.f32 %v9118_v38, %v11386_v18  ;;  %v7327_v4 = vadd.f32 %v7326_v62, %v7325_v11  ;;  %v7983_v2 = vpack.c.bf16 %v6721_v50, %v6721_v50  ;;  %v7330_v22 = vsel %vm493_vm0, %v7236_v6, 0.0  ;;  %v11552_v11 = vpop.permute.xlu0 %6619 }
 0x382   : > { %v6720_v15 = vmul.f32 %v9119_v14, %v11365_v13  ;;  %v7981_v8 = vpack.c.bf16 %v6719_v43, %v6719_v43  ;;  %v7134_v59 = vadd.f32 %v7133_v47, %v7132_v49  ;;  %v7135_v10 = vsel %vm493_vm0, %v6719_v43, 0.0 }
 0x383   : > { %v7237_v31 = vmul.f32 %v6719_v43, %v6719_v43  ;;  %v7329_v48 = vadd.f32 %v7328_v60, %v7327_v4  ;;  %7042 = vst.msk [vmem:[%s11293_s24 + $0x88] sm:$0xf] %vm7007_vm2, %v7983_v2  ;;  %v7139_v46 = vsel %vm493_vm0, %v6721_v50, 0.0  ;;  %v7984_v16 = vpack.c.bf16 %v6722_v17, %v6722_v17 }
 0x384   : > { %v9056_v40 = vpop.f32.mrb[36].mxu0  ;;  %v7239_v52 = vmul.f32 %v6721_v50, %v6721_v50  ;;  %7040 = vst.msk [vmem:[%s11293_s24 + $0x80] sm:$0xf] %vm7007_vm2, %v7981_v8  ;;  %v7136_v36 = vadd.f32 %v7135_v10, %v7134_v59  ;;  %v7982_v29 = vpack.c.bf16 %v6720_v15, %v6720_v15  ;;  %v7137_v53 = vsel %vm493_vm0, %v6720_v15, 0.0 }
 0x385   : > { %v6128_v63 = vpop.f32.mrb[37].mxu0  ;;  %v7332_v24 = vsel %vm493_vm0, %v7237_v31, 0.0  ;;  %v7331_v3 = vadd.f32 %v7330_v22, %v7329_v48  ;;  %7043 = vst.msk [vmem:[%s11293_s24 + $0x8c] sm:$0xf] %vm7007_vm2, %v7984_v16  ;;  %v7238_v0 = vmul.f32 %v6720_v15, %v6720_v15  ;;  %v9120_v56 = vadd.f32 %v9056_v40, %v11509_v19 }
 0x386   : > { %v8796_v18 = vpop.f32.mrb[40].mxu1  ;;  %v9057_v13 = vpop.f32.mrb[38].mxu0  ;;  %v7240_v39 = vmul.f32 %v6722_v17, %v6722_v17  ;;  %7041 = vst.msk [vmem:[%s11293_s24 + $0x84] sm:$0xf] %vm7007_vm2, %v7982_v29  ;;  %v7138_v12 = vadd.f32 %v7137_v53, %v7136_v36  ;;  %v9121_v54 = vadd.f32 %v6128_v63, %v3932_v26  ;;  %v7336_v26 = vsel %vm493_vm0, %v7239_v52, 0.0 }
 0x387   : > { %v3948_v1 = vpop.f32.mrb[41].mxu1  ;;  %v6131_v58 = vpop.f32.mrb[39].mxu0  ;;  %v9122_v9 = vadd.f32 %v9057_v13, %v8793_v45  ;;  %v7333_v33 = vadd.f32 %v7332_v24, %v7331_v3  ;;  %v7334_v7 = vsel %vm493_vm0, %v7238_v0, 0.0  ;;  %v6725_v55 = vmul.f32 %v9120_v56, %v11413_v5 }
 0x388   : > { %v8797_v32 = vpop.f32.mrb[42].mxu1  ;;  %v9123_v34 = vadd.f32 %v6131_v58, %v3935_v21  ;;  %v7140_v62 = vadd.f32 %v7139_v46, %v7138_v12  ;;  %v6723_v38 = vmul.f32 %v9121_v54, %v11391_v44  ;;  %v7141_v45 = vsel %vm493_vm0, %v6722_v17, 0.0  ;;  %v11572_v53 = vpop.permute.xlu1 %6624 }
 0x389   : > { %v3951_v20 = vpop.f32.mrb[43].mxu1  ;;  %v6726_v19 = vmul.f32 %v9122_v9, %v11428_v23  ;;  %v7335_v6 = vadd.f32 %v7334_v7, %v7333_v33  ;;  %v7987_v50 = vpack.c.bf16 %v6725_v55, %v6725_v55  ;;  %v7338_v40 = vsel %vm493_vm0, %v7240_v39, 0.0  ;;  %v11578_v39 = vpop.permute.xlu0 %6629 }
 0x38a   : > { %v7985_v21 = vpack.c.bf16 %v6723_v38, %v6723_v38  ;;  %v7142_v43 = vadd.f32 %v7141_v45, %v7140_v62  ;;  %v7143_v49 = vsel %vm493_vm0, %v6723_v38, 0.0  ;;  %v7241_v15 = vmul.f32 %v6723_v38, %v6723_v38 }
 0x38b   : > { %v7337_v60 = vadd.f32 %v7336_v26, %v7335_v6  ;;  %7046 = vst.msk [vmem:[%s11293_s24 + $0x98] sm:$0xf] %vm7007_vm2, %v7987_v50  ;;  %v7988_v47 = vpack.c.bf16 %v6726_v19, %v6726_v19  ;;  %v7243_v2 = vmul.f32 %v6725_v55, %v6725_v55  ;;  %v6724_v59 = vmul.f32 %v9123_v34, %v11409_v25 }
 0x38c   : > { %v9060_v14 = vpop.f32.mrb[40].mxu0  ;;  %7044 = vst.msk [vmem:[%s11293_s24 + $0x90] sm:$0xf] %vm7007_vm2, %v7985_v21  ;;  %v7144_v63 = vadd.f32 %v7143_v49, %v7142_v43  ;;  %v7340_v8 = vsel %vm493_vm0, %v7241_v15, 0.0  ;;  %v7147_v16 = vsel %vm493_vm0, %v6725_v55, 0.0  ;;  %v7244_v0 = vmul.f32 %v6726_v19, %v6726_v19 }
 0x38d   : > { %v6144_v5 = vpop.f32.mrb[41].mxu0  ;;  %v7339_v31 = vadd.f32 %v7338_v40, %v7337_v60  ;;  %7047 = vst.msk [vmem:[%s11293_s24 + $0x9c] sm:$0xf] %vm7007_vm2, %v7988_v47  ;;  %v9124_v13 = vadd.f32 %v9060_v14, %v8796_v18  ;;  %v7986_v58 = vpack.c.bf16 %v6724_v59, %v6724_v59  ;;  %v7145_v52 = vsel %vm493_vm0, %v6724_v59, 0.0 }
 0x38e   : > { %v8800_v44 = vpop.f32.mrb[44].mxu1  ;;  %v9061_v23 = vpop.f32.mrb[42].mxu0  ;;  %v9125_v22 = vadd.f32 %v6144_v5, %v3948_v1  ;;  %v7242_v36 = vmul.f32 %v6724_v59, %v6724_v59  ;;  %v7146_v29 = vadd.f32 %v7145_v52, %v7144_v63  ;;  %v7344_v12 = vsel %vm493_vm0, %v7243_v2, 0.0 }
 0x38f   : > { %v3964_v4 = vpop.f32.mrb[45].mxu1  ;;  %v6147_v17 = vpop.f32.mrb[43].mxu0  ;;  %v9126_v48 = vadd.f32 %v9061_v23, %v8797_v32  ;;  %v7341_v24 = vadd.f32 %v7340_v8, %v7339_v31  ;;  %v6729_v25 = vmul.f32 %v9124_v13, %v11453_v37  ;;  %7045 = vst.msk [vmem:[%s11293_s24 + $0x94] sm:$0xf] %vm7007_vm2, %v7986_v58  ;;  %v7149_v33 = vsel %vm493_vm0, %v6726_v19, 0.0 }
 0x390   : > { %v11564_v10 = vpop.f32.mrb[46].mxu1  ;;  %v6727_v3 = vmul.f32 %v9125_v22, %v11434_v57  ;;  %v7342_v18 = vsel %vm493_vm0, %v7242_v36, 0.0  ;;  %v9127_v32 = vadd.f32 %v6147_v17, %v3951_v20  ;;  %v7148_v54 = vadd.f32 %v7147_v16, %v7146_v29  ;;  %v11598_v31 = vpop.permute.xlu1 %6634 }
 0x391   : > { %v3967_v46 = vpop.f32.mrb[47].mxu1  ;;  %v6730_v1 = vmul.f32 %v9126_v48, %v11472_v61  ;;  %v7343_v37 = vadd.f32 %v7342_v18, %v7341_v24  ;;  %v7991_v9 = vpack.c.bf16 %v6729_v25, %v6729_v25  ;;  %v7346_v6 = vsel %vm493_vm0, %v7244_v0, 0.0  ;;  %v11604_v16 = vpop.permute.xlu0 %6639 }
 0x392   : > { %v7989_v7 = vpack.c.bf16 %v6727_v3, %v6727_v3  ;;  %v7151_v55 = vsel %vm493_vm0, %v6727_v3, 0.0  ;;  %v7245_v34 = vmul.f32 %v6727_v3, %v6727_v3  ;;  %v7150_v38 = vadd.f32 %v7149_v33, %v7148_v54 }
 0x393   : > { %v7345_v20 = vadd.f32 %v7344_v12, %v7343_v37  ;;  %7050 = vst.msk [vmem:[%s11293_s24 + $0xa8] sm:$0xf] %vm7007_vm2, %v7991_v9  ;;  %v7992_v14 = vpack.c.bf16 %v6730_v1, %v6730_v1  ;;  %v7155_v50 = vsel %vm493_vm0, %v6729_v25, 0.0  ;;  %v6728_v5 = vmul.f32 %v9127_v32, %v11450_v51 }
 0x394   : > { %v9064_v56 = vpop.f32.mrb[44].mxu0  ;;  %7048 = vst.msk [vmem:[%s11293_s24 + $0xa0] sm:$0xf] %vm7007_vm2, %v7989_v7  ;;  %v7348_v19 = vsel %vm493_vm0, %v7245_v34, 0.0  ;;  %v7152_v43 = vadd.f32 %v7151_v55, %v7150_v38  ;;  %v7247_v60 = vmul.f32 %v6729_v25, %v6729_v25  ;;  %v7248_v13 = vmul.f32 %v6730_v1, %v6730_v1 }
 0x395   : > { %v6160_v57 = vpop.f32.mrb[45].mxu0  ;;  %v7347_v49 = vadd.f32 %v7346_v6, %v7345_v20  ;;  %7051 = vst.msk [vmem:[%s11293_s24 + $0xac] sm:$0xf] %vm7007_vm2, %v7992_v14  ;;  %v9128_v15 = vadd.f32 %v9064_v56, %v8800_v44  ;;  %v7990_v47 = vpack.c.bf16 %v6728_v5, %v6728_v5  ;;  %v7153_v17 = vsel %vm493_vm0, %v6728_v5, 0.0 }
 0x396   : > { %v8804_v62 = vpop.f32.mrb[48].mxu1  ;;  %v9065_v61 = vpop.f32.mrb[46].mxu0  ;;  %v9129_v23 = vadd.f32 %v6160_v57, %v3964_v4  ;;  %v7246_v2 = vmul.f32 %v6728_v5, %v6728_v5  ;;  %v7154_v8 = vadd.f32 %v7153_v17, %v7152_v43  ;;  %v7157_v58 = vsel %vm493_vm0, %v6730_v1, 0.0 }
 0x397   : > { %v3980_v26 = vpop.f32.mrb[49].mxu1  ;;  %v6163_v45 = vpop.f32.mrb[47].mxu0  ;;  %v7349_v63 = vadd.f32 %v7348_v19, %v7347_v49  ;;  %v6733_v59 = vmul.f32 %v9128_v15, %v11502_v42  ;;  %7049 = vst.msk [vmem:[%s11293_s24 + $0xa4] sm:$0xf] %vm7007_vm2, %v7990_v47  ;;  %v9130_v4 = vadd.f32 %v9065_v61, %v11564_v10  ;;  %v7352_v24 = vsel %vm493_vm0, %v7247_v60, 0.0 }
 0x398   : > { %v11591_v21 = vpop.f32.mrb[50].mxu1  ;;  %v6731_v51 = vmul.f32 %v9129_v23, %v11475_v27  ;;  %v7350_v44 = vsel %vm493_vm0, %v7246_v2, 0.0  ;;  %v9131_v22 = vadd.f32 %v6163_v45, %v3967_v46  ;;  %v7156_v52 = vadd.f32 %v7155_v50, %v7154_v8  ;;  %v11625_v50 = vpop.permute.xlu1 %6644 }
 0x399   : > { %v3983_v40 = vpop.f32.mrb[51].mxu1  ;;  %v7351_v42 = vadd.f32 %v7350_v44, %v7349_v63  ;;  %v7995_v36 = vpack.c.bf16 %v6733_v59, %v6733_v59  ;;  %v6734_v32 = vmul.f32 %v9130_v4, %v11524_v30  ;;  %v7354_v54 = vsel %vm493_vm0, %v7248_v13, 0.0  ;;  %v11631_v23 = vpop.permute.xlu0 %6649 }
 0x39a   : > { %v7993_v29 = vpack.c.bf16 %v6731_v51, %v6731_v51  ;;  %v7159_v25 = vsel %vm493_vm0, %v6731_v51, 0.0  ;;  %v7249_v3 = vmul.f32 %v6731_v51, %v6731_v51  ;;  %v7158_v46 = vadd.f32 %v7157_v58, %v7156_v52 }
 0x39b   : > { %v7353_v18 = vadd.f32 %v7352_v24, %v7351_v42  ;;  %7054 = vst.msk [vmem:[%s11293_s24 + $0xb8] sm:$0xf] %vm7007_vm2, %v7995_v36  ;;  %v6732_v1 = vmul.f32 %v9131_v22, %v11499_v41  ;;  %v7251_v7 = vmul.f32 %v6733_v59, %v6733_v59  ;;  %v7996_v30 = vpack.c.bf16 %v6734_v32, %v6734_v32 }
 0x39c   : > { %v9068_v48 = vpop.f32.mrb[48].mxu0  ;;  %7052 = vst.msk [vmem:[%s11293_s24 + $0xb0] sm:$0xf] %vm7007_vm2, %v7993_v29  ;;  %v7356_v37 = vsel %vm493_vm0, %v7249_v3, 0.0  ;;  %v7160_v55 = vadd.f32 %v7159_v25, %v7158_v46  ;;  %v7163_v41 = vsel %vm493_vm0, %v6733_v59, 0.0  ;;  %v7252_v19 = vmul.f32 %v6734_v32, %v6734_v32 }
 0x39d   : > { %v6176_v27 = vpop.f32.mrb[49].mxu0  ;;  %v9132_v9 = vadd.f32 %v9068_v48, %v8804_v62  ;;  %v7355_v34 = vadd.f32 %v7354_v54, %v7353_v18  ;;  %v7994_v20 = vpack.c.bf16 %v6732_v1, %v6732_v1  ;;  %v7161_v38 = vsel %vm493_vm0, %v6732_v1, 0.0  ;;  %7055 = vst.msk [vmem:[%s11293_s24 + $0xbc] sm:$0xf] %vm7007_vm2, %v7996_v30 }
 0x39e   : > { %v8808_v0 = vpop.f32.mrb[52].mxu1  ;;  %v9069_v10 = vpop.f32.mrb[50].mxu0  ;;  %v9133_v57 = vadd.f32 %v6176_v27, %v3980_v26  ;;  %v7250_v14 = vmul.f32 %v6732_v1, %v6732_v1  ;;  %v7162_v6 = vadd.f32 %v7161_v38, %v7160_v55  ;;  %v7360_v60 = vsel %vm493_vm0, %v7251_v7, 0.0 }
 0x39f   : > { %v3996_v56 = vpop.f32.mrb[53].mxu1  ;;  %v6179_v12 = vpop.f32.mrb[51].mxu0  ;;  %v7357_v45 = vadd.f32 %v7356_v37, %v7355_v34  ;;  %v6737_v62 = vmul.f32 %v9132_v9, %v11552_v11  ;;  %7053 = vst.msk [vmem:[%s11293_s24 + $0xb4] sm:$0xf] %vm7007_vm2, %v7994_v20  ;;  %v9134_v43 = vadd.f32 %v9069_v10, %v11591_v21  ;;  %v7165_v2 = vsel %vm493_vm0, %v6734_v32, 0.0 }
 0x3a0   : > { %v11617_v33 = vpop.f32.mrb[54].mxu1  ;;  %v6735_v26 = vmul.f32 %v9133_v57, %v11528_v28  ;;  %v7358_v5 = vsel %vm493_vm0, %v7250_v14, 0.0  ;;  %v9135_v49 = vadd.f32 %v6179_v12, %v3983_v40  ;;  %v7164_v47 = vadd.f32 %v7163_v41, %v7162_v6  ;;  %v11652_v12 = vpop.permute.xlu1 %6654 }
 0x3a1   : > { %v3999_v61 = vpop.f32.mrb[55].mxu1  ;;  %v7359_v11 = vadd.f32 %v7358_v5, %v7357_v45  ;;  %v7999_v17 = vpack.c.bf16 %v6737_v62, %v6737_v62  ;;  %v6738_v44 = vmul.f32 %v9134_v43, %v11572_v53  ;;  %v7362_v58 = vsel %vm493_vm0, %v7252_v19, 0.0  ;;  %v6660_v55 = vpop.permute.xlu0 %6659 }
 0x3a2   : > { %v7997_v63 = vpack.c.bf16 %v6735_v26, %v6735_v26  ;;  %v7167_v8 = vsel %vm493_vm0, %v6735_v26, 0.0  ;;  %v7253_v59 = vmul.f32 %v6735_v26, %v6735_v26  ;;  %v7166_v40 = vadd.f32 %v7165_v2, %v7164_v47 }
 0x3a3   : > { %v7361_v13 = vadd.f32 %v7360_v60, %v7359_v11  ;;  %7058 = vst.msk [vmem:[%s11293_s24 + $0xc8] sm:$0xf] %vm7007_vm2, %v7999_v17  ;;  %v6736_v4 = vmul.f32 %v9135_v49, %v11548_v35  ;;  %v7255_v24 = vmul.f32 %v6737_v62, %v6737_v62  ;;  %v8000_v53 = vpack.c.bf16 %v6738_v44, %v6738_v44 }
 0x3a4   : > { %v9072_v15 = vpop.f32.mrb[52].mxu0  ;;  %7056 = vst.msk [vmem:[%s11293_s24 + $0xc0] sm:$0xf] %vm7007_vm2, %v7997_v63  ;;  %v7364_v52 = vsel %vm493_vm0, %v7253_v59, 0.0  ;;  %v7168_v29 = vadd.f32 %v7167_v8, %v7166_v40  ;;  %v7171_v35 = vsel %vm493_vm0, %v6737_v62, 0.0  ;;  %v7256_v54 = vmul.f32 %v6738_v44, %v6738_v44  ;;  %v6665_v8 = vpop.permute.xlu1 %6664 }
 0x3a5   : > { %v6192_v28 = vpop.f32.mrb[53].mxu0  ;;  %v9136_v42 = vadd.f32 %v9072_v15, %v8808_v0  ;;  %v7363_v25 = vadd.f32 %v7362_v58, %v7361_v13  ;;  %v7998_v10 = vpack.c.bf16 %v6736_v4, %v6736_v4  ;;  %v7169_v18 = vsel %vm493_vm0, %v6736_v4, 0.0  ;;  %7059 = vst.msk [vmem:[%s11293_s24 + $0xcc] sm:$0xf] %vm7007_vm2, %v8000_v53 }
 0x3a6   : > { %v8812_v51 = vpop.f32.mrb[56].mxu1  ;;  %v9073_v21 = vpop.f32.mrb[54].mxu0  ;;  %v9137_v36 = vadd.f32 %v6192_v28, %v3996_v56  ;;  %v7254_v46 = vmul.f32 %v6736_v4, %v6736_v4  ;;  %v7170_v1 = vadd.f32 %v7169_v18, %v7168_v29  ;;  %v7368_v34 = vsel %vm493_vm0, %v7255_v24, 0.0 }
 0x3a7   : > { %v4012_v22 = vpop.f32.mrb[57].mxu1  ;;  %v6195_v48 = vpop.f32.mrb[55].mxu0  ;;  %v7365_v32 = vadd.f32 %v7364_v52, %v7363_v25  ;;  %v6741_v0 = vmul.f32 %v9136_v42, %v11604_v16  ;;  %7057 = vst.msk [vmem:[%s11293_s24 + $0xc4] sm:$0xf] %vm7007_vm2, %v7998_v10  ;;  %v9138_v9 = vadd.f32 %v9073_v21, %v11617_v33  ;;  %v7173_v20 = vsel %vm493_vm0, %v6738_v44, 0.0 }
 0x3a8   : > { %v11644_v27 = vpop.f32.mrb[58].mxu1  ;;  %v6739_v56 = vmul.f32 %v9137_v36, %v11578_v39  ;;  %v7366_v37 = vsel %vm493_vm0, %v7254_v46, 0.0  ;;  %v9139_v57 = vadd.f32 %v6195_v48, %v3999_v61  ;;  %v7172_v30 = vadd.f32 %v7171_v35, %v7170_v1 }
 0x3a9   : > { %v4015_v3 = vpop.f32.mrb[59].mxu1  ;;  %v7367_v41 = vadd.f32 %v7366_v37, %v7365_v32  ;;  %v8003_v16 = vpack.c.bf16 %v6741_v0, %v6741_v0  ;;  %v6742_v26 = vmul.f32 %v9138_v9, %v11625_v50  ;;  %v7370_v49 = vsel %vm493_vm0, %v7256_v54, 0.0  ;;  %v6675_v54 = vpop.permute.xlu1 %6674 }
 0x3aa   : > { %v8001_v38 = vpack.c.bf16 %v6739_v56, %v6739_v56  ;;  %v7175_v14 = vsel %vm493_vm0, %v6739_v56, 0.0  ;;  %v7257_v45 = vmul.f32 %v6739_v56, %v6739_v56  ;;  %v7174_v61 = vadd.f32 %v7173_v20, %v7172_v30 }
 0x3ab   : > { %v7369_v33 = vadd.f32 %v7368_v34, %v7367_v41  ;;  %7062 = vst.msk [vmem:[%s11293_s24 + $0xd8] sm:$0xf] %vm7007_vm2, %v8003_v16  ;;  %v6740_v19 = vmul.f32 %v9139_v57, %v11598_v31  ;;  %v7259_v17 = vmul.f32 %v6741_v0, %v6741_v0  ;;  %v8004_v63 = vpack.c.bf16 %v6742_v26, %v6742_v26 }
 0x3ac   : > { %v9076_v7 = vpop.f32.mrb[56].mxu0  ;;  %7060 = vst.msk [vmem:[%s11293_s24 + $0xd0] sm:$0xf] %vm7007_vm2, %v8001_v38  ;;  %v7372_v15 = vsel %vm493_vm0, %v7257_v45, 0.0  ;;  %v7176_v28 = vadd.f32 %v7175_v14, %v7174_v61  ;;  %v7179_v31 = vsel %vm493_vm0, %v6741_v0, 0.0  ;;  %v7260_v48 = vmul.f32 %v6742_v26, %v6742_v26 }
 0x3ad   : > { %v6208_v39 = vpop.f32.mrb[57].mxu0  ;;  %v9140_v60 = vadd.f32 %v9076_v7, %v8812_v51  ;;  %v7371_v2 = vadd.f32 %v7370_v49, %v7369_v33  ;;  %v8002_v59 = vpack.c.bf16 %v6740_v19, %v6740_v19  ;;  %v7177_v21 = vsel %vm493_vm0, %v6740_v19, 0.0  ;;  %7063 = vst.msk [vmem:[%s11293_s24 + $0xdc] sm:$0xf] %vm7007_vm2, %v8004_v63 }
 0x3ae   : > { %v8816_v6 = vpop.f32.mrb[60].mxu1  ;;  %v9077_v62 = vpop.f32.mrb[58].mxu0  ;;  %v9141_v47 = vadd.f32 %v6208_v39, %v4012_v22  ;;  %v7258_v13 = vmul.f32 %v6740_v19, %v6740_v19  ;;  %v7178_v44 = vadd.f32 %v7177_v21, %v7176_v28  ;;  %v7376_v24 = vsel %vm493_vm0, %v7259_v17, 0.0 }
 0x3af   : > { %v4028_v5 = vpop.f32.mrb[61].mxu1  ;;  %v6211_v43 = vpop.f32.mrb[59].mxu0  ;;  %v7373_v40 = vadd.f32 %v7372_v15, %v7371_v2  ;;  %v6745_v51 = vmul.f32 %v9140_v60, %v6660_v55  ;;  %7061 = vst.msk [vmem:[%s11293_s24 + $0xd4] sm:$0xf] %vm7007_vm2, %v8002_v59  ;;  %v9142_v52 = vadd.f32 %v9077_v62, %v11644_v27  ;;  %v7378_v37 = vsel %vm493_vm0, %v7260_v48, 0.0 }
 0x3b0   : > { %v8817_v11 = vpop.f32.mrb[62].mxu1  ;;  %v6743_v4 = vmul.f32 %v9141_v47, %v11631_v23  ;;  %v6670_v22 = vpop.permute.xlu0 %6669  ;;  %v7374_v58 = vsel %vm493_vm0, %v7258_v13, 0.0  ;;  %v9143_v42 = vadd.f32 %v6211_v43, %v4015_v3  ;;  %v7180_v29 = vadd.f32 %v7179_v31, %v7178_v44 }
 0x3b1   : > { %v4031_v50 = vpop.f32.mrb[63].mxu1  ;;  %v7375_v25 = vadd.f32 %v7374_v58, %v7373_v40  ;;  %v8007_v53 = vpack.c.bf16 %v6745_v51, %v6745_v51  ;;  %v7181_v23 = vsel %vm493_vm0, %v6742_v26, 0.0  ;;  %v6746_v3 = vmul.f32 %v9142_v52, %v6665_v8  ;;  %v6685_v60 = vpop.permute.xlu1 %6684 }
 0x3b2   : > { %v8005_v10 = vpack.c.bf16 %v6743_v4, %v6743_v4  ;;  %v7183_v18 = vsel %vm493_vm0, %v6743_v4, 0.0  ;;  %v7261_v46 = vmul.f32 %v6743_v4, %v6743_v4  ;;  %v7182_v27 = vadd.f32 %v7181_v23, %v7180_v29 }
 0x3b3   : > { %v7377_v1 = vadd.f32 %v7376_v24, %v7375_v25  ;;  %7066 = vst.msk [vmem:[%s11293_s24 + $0xe8] sm:$0xf] %vm7007_vm2, %v8007_v53  ;;  %v6744_v0 = vmul.f32 %v9143_v42, %v11652_v12  ;;  %v7263_v55 = vmul.f32 %v6745_v51, %v6745_v51  ;;  %v8008_v41 = vpack.c.bf16 %v6746_v3, %v6746_v3 }
 0x3b4   : > { %v9080_v36 = vpop.f32.mrb[60].mxu0  ;;  %7064 = vst.msk [vmem:[%s11293_s24 + $0xe0] sm:$0xf] %vm7007_vm2, %v8005_v10  ;;  %v7380_v9 = vsel %vm493_vm0, %v7261_v46, 0.0  ;;  %v7184_v34 = vadd.f32 %v7183_v18, %v7182_v27  ;;  %v6680_v16 = vpop.permute.xlu0 %6679  ;;  %v7187_v39 = vsel %vm493_vm0, %v6745_v51, 0.0  ;;  %v7189_v47 = vsel %vm493_vm0, %v6746_v3, 0.0 }
 0x3b5   : > { %v6224_v35 = vpop.f32.mrb[61].mxu0  ;;  %v9144_v57 = vadd.f32 %v9080_v36, %v8816_v6  ;;  %v7379_v30 = vadd.f32 %v7378_v37, %v7377_v1  ;;  %v8006_v12 = vpack.c.bf16 %v6744_v0, %v6744_v0  ;;  %v7185_v20 = vsel %vm493_vm0, %v6744_v0, 0.0  ;;  %7067 = vst.msk [vmem:[%s11293_s24 + $0xec] sm:$0xf] %vm7007_vm2, %v8008_v41 }
 0x3b6   : > { %v9081_v32 = vpop.f32.mrb[62].mxu0  ;;  %v9145_v7 = vadd.f32 %v6224_v35, %v4028_v5  ;;  %v7262_v38 = vmul.f32 %v6744_v0, %v6744_v0  ;;  %v7186_v45 = vadd.f32 %v7185_v20, %v7184_v34  ;;  %v7264_v6 = vmul.f32 %v6746_v3, %v6746_v3 }
 0x3b7   : > { %v6227_v56 = vpop.f32.mrb[63].mxu0  ;;  %v7381_v14 = vadd.f32 %v7380_v9, %v7379_v30  ;;  %v6749_v62 = vmul.f32 %v9144_v57, %v6680_v16  ;;  %7065 = vst.msk [vmem:[%s11293_s24 + $0xe4] sm:$0xf] %vm7007_vm2, %v8006_v12  ;;  %v9146_v26 = vadd.f32 %v9081_v32, %v8817_v11  ;;  %v7384_v5 = vsel %vm493_vm0, %v7263_v55, 0.0 }
 0x3b8   : > { %v6747_v33 = vmul.f32 %v9145_v7, %v6670_v22  ;;  %v7382_v61 = vsel %vm493_vm0, %v7262_v38, 0.0  ;;  %v9147_v19 = vadd.f32 %v6227_v56, %v4031_v50  ;;  %v7188_v43 = vadd.f32 %v7187_v39, %v7186_v45 }
 0x3b9   : > { %v7383_v49 = vadd.f32 %v7382_v61, %v7381_v14  ;;  %v8011_v15 = vpack.c.bf16 %v6749_v62, %v6749_v62  ;;  %v6750_v11 = vmul.f32 %v9146_v26, %v6685_v60  ;;  %v7386_v31 = vsel %vm493_vm0, %v7264_v6, 0.0 }
 0x3ba   : > { %v8009_v17 = vpack.c.bf16 %v6747_v33, %v6747_v33  ;;  %v7191_v28 = vsel %vm493_vm0, %v6747_v33, 0.0  ;;  %v7265_v2 = vmul.f32 %v6747_v33, %v6747_v33  ;;  %v7190_v8 = vadd.f32 %v7189_v47, %v7188_v43 }
 0x3bb   : > { %v7385_v63 = vadd.f32 %v7384_v5, %v7383_v49  ;;  %7070 = vst.msk [vmem:[%s11293_s24 + $0xf8] sm:$0xf] %vm7007_vm2, %v8011_v15  ;;  %v6748_v50 = vmul.f32 %v9147_v19, %v6675_v54  ;;  %v8012_v40 = vpack.c.bf16 %v6750_v11, %v6750_v11  ;;  %v7267_v44 = vmul.f32 %v6749_v62, %v6749_v62 }
 0x3bc   : > { %7068 = vst.msk [vmem:[%s11293_s24 + $0xf0] sm:$0xf] %vm7007_vm2, %v8009_v17  ;;  %v7388_v59 = vsel %vm493_vm0, %v7265_v2, 0.0  ;;  %v7192_v21 = vadd.f32 %v7191_v28, %v7190_v8  ;;  %v7195_v52 = vsel %vm493_vm0, %v6749_v62, 0.0  ;;  %v7268_v42 = vmul.f32 %v6750_v11, %v6750_v11 }
 0x3bd   : > { %v7387_v13 = vadd.f32 %v7386_v31, %v7385_v63  ;;  %v8010_v51 = vpack.c.bf16 %v6748_v50, %v6748_v50  ;;  %v7193_v4 = vsel %vm493_vm0, %v6748_v50, 0.0  ;;  %v7266_v22 = vmul.f32 %v6748_v50, %v6748_v50  ;;  %7071 = vst.msk [vmem:[%s11293_s24 + $0xfc] sm:$0xf] %vm7007_vm2, %v8012_v40 }
 0x3be   : > { %v7194_v58 = vadd.f32 %v7193_v4, %v7192_v21  ;;  %v7392_v25 = vsel %vm493_vm0, %v7267_v44, 0.0  ;;  %v7197_v53 = vsel %vm493_vm0, %v6750_v11, 0.0  ;;  %v7394_v10 = vsel %vm493_vm0, %v7268_v42, 0.0 }
 0x3bf   : > { %v7389_v48 = vadd.f32 %v7388_v59, %v7387_v13  ;;  %7069 = vst.msk [vmem:[%s11293_s24 + $0xf4] sm:$0xf] %vm7007_vm2, %v8010_v51  ;;  %v7390_v36 = vsel %vm493_vm0, %v7266_v22, 0.0 }
 0x3c0   : > { %v7196_v24 = vadd.f32 %v7195_v52, %v7194_v58 }
 0x3c1   : > { %v7391_v29 = vadd.f32 %v7390_v36, %v7389_v48 }
 0x3c2   : > { %v7198_v35 = vadd.f32 %v7197_v53, %v7196_v24 }
 0x3c3   : > { %v7393_v23 = vadd.f32 %v7392_v25, %v7391_v29 }
 0x3c4   : > { %v7199_v18 = vrot.slane %v7198_v35, 4 }
 0x3c5   : > { %v7395_v46 = vadd.f32 %v7394_v10, %v7393_v23 }
 0x3c6   : > { %v7200_v32 = vadd.f32 %v7199_v18, %v7198_v35 }
 0x3c7   : > { %v7396_v1 = vrot.slane %v7395_v46, 4 }
 0x3c8   : > { %v7201_v27 = vrot.slane %v7200_v32, 2 }
 0x3c9   : > { %v7397_v3 = vadd.f32 %v7396_v1, %v7395_v46 }
 0x3ca   : > { %v7202_v0 = vadd.f32 %v7201_v27, %v7200_v32 }
 0x3cb   : > { %v7398_v56 = vrot.slane %v7397_v3, 2 }
 0x3cc   : > { %v7203_v54 = vrot.slane %v7202_v0, 1 }
 0x3cd   : > { %v7399_v37 = vadd.f32 %v7398_v56, %v7397_v3 }
 0x3ce   : > { %v7204_v57 = vadd.f32 %v7203_v54, %v7202_v0 }
 0x3cf   : > { %v7400_v9 = vrot.slane %v7399_v37, 1 }
 0x3d1   : > { %v7401_v7 = vadd.f32 %v7400_v9, %v7399_v37 }
 0x3d3   : > { %v7403_v55 = vsel %vm7402_vm3, %v7204_v57, %v7401_v7 }
 0x3d4   : > { %7405 = vst.msk [vmem:[%s491_s11] sm:$0x3] %vm7404_vm4, %v7403_v55 }
 0x3d5 PF: > { %s19_s29 = sadd.s32 1, %s9660_s29   ;;  %s11756_s27 = smov %s9656_s28 }
 0x3d6   : > { %p16_p5 = scmp.ge.s32.totalorder %s19_s29, 4   ;;  %s11757_s28 = smov %s11759_s30 }
 0x3d8   :  { %18 = sbr.rel (!%p16_p5) target bundleno = 2 (0x2), region = 104 }

</bundles_post_ra>
